<compile_context>
chip_gen: v7x
topology: tpu7x:2x2x1
jax: 0.10.0
libtpu: 0.0.40
codegen_flags: <defaults>
</compile_context>

<pallas_src>
import functools

import jax
import jax.numpy as jnp
from jax.experimental import pallas as pl
from jax.experimental.pallas import tpu as pltpu


# --------------------------------------------------------------------------
# Fused C3 kernel: per grid step = one batch image (flattened padded pixels)
# --------------------------------------------------------------------------
def _c3_kernel(x_ref, mask_ref,
               w1_ref, b1_ref, w2_ref, b2_ref,
               wm1_ref, bm1_ref, wm2_ref, bm2_ref,
               w3a_ref, w3b_ref, b3_ref,
               o_ref, t_scr, *, H, W, c_, halo):
    f32 = jnp.float32
    Wp = W + 2
    Mp = (H + 2) * Wp            # rows = flattened spatially-padded image

    def silu(z):
        return z * jax.nn.sigmoid(z)

    def mm(a, w_ref, b_ref):     # (rows, K) @ (K, N) + bias, f32 accumulate
        z = jnp.dot(a.astype(w_ref.dtype), w_ref[...],
                    preferred_element_type=f32)
        return z + b_ref[...]

    xb = x_ref[...]                                    # (Mp, C1)
    y1 = silu(mm(xb, w1_ref, b1_ref))                  # C3.cv1   (Mp, c_) f32
    y2 = silu(mm(xb, w2_ref, b2_ref))                  # C3.cv2   (Mp, c_) f32

    # Bottleneck cv1 (1x1).  Rows belonging to the spatial padding are zeroed
    # so the 3x3 taps below see proper zero padding.
    t = silu(mm(y1, wm1_ref, bm1_ref)) * mask_ref[...]  # (Mp, c_) f32

    # Stage t in VMEM with a flat halo so all 9 shifted tap reads are in-bounds.
    t_scr[...] = jnp.zeros_like(t_scr)
    t_scr[pl.ds(halo, Mp), :] = t

    # 3x3 conv (pad=1, stride=1) as 9 shifted (Mp, c_) x (c_, c_) matmuls.
    acc = jnp.zeros((Mp, c_), f32)
    for k in range(9):
        ky, kx = k // 3, k % 3
        off = halo + (ky - 1) * Wp + (kx - 1)          # static, >= 0
        tap = t_scr[pl.ds(off, Mp), :]
        acc = acc + jnp.dot(tap.astype(wm2_ref.dtype), wm2_ref[k],
                            preferred_element_type=f32)
    y1 = y1 + silu(acc + bm2_ref[...])                 # bottleneck residual add

    # C3.cv3 on concat([m(cv1(x)), cv2(x)]): split the weight instead of
    # concatenating activations.
    z = (jnp.dot(y1.astype(w3a_ref.dtype), w3a_ref[...], preferred_element_type=f32)
         + jnp.dot(y2.astype(w3b_ref.dtype), w3b_ref[...], preferred_element_type=f32)
         + b3_ref[...])
    o_ref[...] = silu(z).astype(o_ref.dtype)


def c3_forward(x_nchw, params, compute_dtype=jnp.bfloat16):
    """Full C3 forward.  x_nchw: (N, C1, H, W) f32.  Returns (N, C2, H, W) f32."""
    N, C1, H, W = x_nchw.shape
    c_ = params["cv1"][0].shape[1]
    c2 = params["cv3"][0].shape[1]
    Wp = W + 2
    Mp = (H + 2) * Wp
    halo = ((W + 3 + 7) // 8) * 8              # sublane-aligned top halo
    R = halo + Mp + (W + 3)                    # scratch rows (t + both halos)

    cd = compute_dtype
    x = jnp.transpose(x_nchw, (0, 2, 3, 1))                       # NHWC
    x_pad = jnp.pad(x, ((0, 0), (1, 1), (1, 1), (0, 0)))
    x_pad = x_pad.reshape(N, Mp, C1).astype(cd)

    # 1.0 on interior (real) pixels, 0.0 on the spatial padding ring.
    pos = jnp.arange(Mp)
    hp, wp = pos // Wp, pos % Wp
    mask = (((hp >= 1) & (hp <= H) & (wp >= 1) & (wp <= W))
            .astype(jnp.float32).reshape(Mp, 1))

    w1, b1 = params["cv1"]
    w2, b2 = params["cv2"]
    wm1, bm1 = params["m0_cv1"]
    wm2, bm2 = params["m0_cv2"]                 # wm2: (9, c_, c_) tap stack
    w3, b3 = params["cv3"]
    w3a, w3b = w3[:c_, :], w3[c_:, :]

    def rowvec(v):
        return v.reshape(1, -1).astype(jnp.float32)

    args = (x_pad, mask,
            w1.astype(cd), rowvec(b1), w2.astype(cd), rowvec(b2),
            wm1.astype(cd), rowvec(bm1), wm2.astype(cd), rowvec(bm2),
            w3a.astype(cd), w3b.astype(cd), rowvec(b3))

    def full_spec(shape):
        return pl.BlockSpec(shape, lambda b, _n=len(shape): (0,) * _n)

    in_specs = [
        pl.BlockSpec((None, Mp, C1), lambda b: (b, 0, 0)),   # x (one image)
        full_spec((Mp, 1)),                                   # mask
        full_spec(w1.shape), full_spec((1, c_)),
        full_spec(w2.shape), full_spec((1, c_)),
        full_spec(wm1.shape), full_spec((1, c_)),
        full_spec(wm2.shape), full_spec((1, c_)),
        full_spec(w3a.shape), full_spec(w3b.shape), full_spec((1, c2)),
    ]

    flops = int(2 * N * Mp * (2 * C1 * c_ + c_ * c_ + 9 * c_ * c_ + 2 * c_ * c2))
    transcendentals = int(N * Mp * (4 * c_ + c2))
    bytes_accessed = int(x_pad.size * x_pad.dtype.itemsize
                         + N * Mp * c2 * 4
                         + N * sum(int(a.size) * a.dtype.itemsize
                                   for a in args[1:]))

    kernel = functools.partial(_c3_kernel, H=H, W=W, c_=c_, halo=halo)

    out_pad = pl.pallas_call(
        kernel,
        out_shape=jax.ShapeDtypeStruct((N, Mp, c2), jnp.float32),
        grid_spec=pltpu.PrefetchScalarGridSpec(
            num_scalar_prefetch=0,
            grid=(N,),
            in_specs=in_specs,
            out_specs=pl.BlockSpec((None, Mp, c2), lambda b: (b, 0, 0)),
            scratch_shapes=[pltpu.VMEM((R, c_), jnp.float32)],
        ),
        compiler_params=pltpu.CompilerParams(
            dimension_semantics=("parallel",)),
        cost_estimate=pl.CostEstimate(
            flops=flops, transcendentals=transcendentals,
            bytes_accessed=bytes_accessed),
    )(*args)

    out = out_pad.reshape(N, H + 2, W + 2, c2)[:, 1:-1, 1:-1, :]   # drop pad ring
    return jnp.transpose(out, (0, 3, 1, 2))                        # back to NCHW


# --------------------------------------------------------------------------
# Parameter construction (deterministic, synthetic) + BatchNorm folding
# --------------------------------------------------------------------------
def _fold_bn(w_mat, gamma, beta, mean, var, eps=1e-3):
    scale = gamma / jnp.sqrt(var + eps)          # per output channel (last axis)
    return w_mat * scale, beta - mean * scale


def _make_conv_params(key, cin, cout, k):
    """Conv(k x k, no bias) + BatchNorm(eps=1e-3) folded to (weights, bias)."""
    kw, kg, kb, km, kv = jax.random.split(key, 5)
    w = 0.1 * jax.random.normal(kw, (cout, cin, k, k), dtype=jnp.float32)
    gamma = 0.5 + jax.random.uniform(kg, (cout,), dtype=jnp.float32)
    beta = 0.1 * jax.random.normal(kb, (cout,), dtype=jnp.float32)
    mean = 0.1 * jax.random.normal(km, (cout,), dtype=jnp.float32)
    var = 0.5 + jax.random.uniform(kv, (cout,), dtype=jnp.float32)
    if k == 1:
        w_mat = jnp.transpose(w[:, :, 0, 0], (1, 0))                     # (cin, cout)
    else:
        # (k*k, cin, cout), tap index = ky*k + kx
        w_mat = jnp.transpose(w, (2, 3, 1, 0)).reshape(k * k, cin, cout)
    return _fold_bn(w_mat, gamma, beta, mean, var)


def make_c3_params(key, c1, c2, n=1, e=0.5):
    assert n == 1, "this synthetic script builds n=1 bottlenecks"
    c_ = int(c2 * e)
    k0, k1, k2, k3, k4 = jax.random.split(key, 5)
    return {
        "cv1": _make_conv_params(k0, c1, c_, 1),
        "cv2": _make_conv_params(k1, c1, c_, 1),
        "cv3": _make_conv_params(k2, 2 * c_, c2, 1),
        "m0_cv1": _make_conv_params(k3, c_, c_, 1),     # bottleneck e=1.0
        "m0_cv2": _make_conv_params(k4, c_, c_, 3),
    }


# --------------------------------------------------------------------------
# Pure-JAX f32 reference (independent structure: im2col + concat) for checks
# --------------------------------------------------------------------------
def _im2col3x3(x_nhwc):
    N, H, W, C = x_nhwc.shape
    xp = jnp.pad(x_nhwc, ((0, 0), (1, 1), (1, 1), (0, 0)))
    cols = [xp[:, ky:ky + H, kx:kx + W, :] for ky in range(3) for kx in range(3)]
    return jnp.concatenate(cols, axis=-1).reshape(N * H * W, 9 * C)


def c3_reference(x_nchw, params):
    N, C1, H, W = x_nchw.shape
    c_ = params["cv1"][0].shape[1]

    def cbs(x2d, w, b):                          # folded conv-bn-silu
        z = x2d @ w + b[None, :]
        return z * jax.nn.sigmoid(z)

    x2d = jnp.transpose(x_nchw, (0, 2, 3, 1)).reshape(N * H * W, C1)
    y1 = cbs(x2d, *params["cv1"])
    y2 = cbs(x2d, *params["cv2"])
    t = cbs(y1, *params["m0_cv1"])
    t_cols = _im2col3x3(t.reshape(N, H, W, c_))
    wm2, bm2 = params["m0_cv2"]
    y1 = y1 + cbs(t_cols, wm2.reshape(9 * c_, c_), bm2)
    out2d = cbs(jnp.concatenate([y1, y2], axis=-1), *params["cv3"])
    return jnp.transpose(out2d.reshape(N, H, W, -1), (0, 3, 1, 2))


if __name__ == "__main__":
    # Shapes consistent with C3(c1=8, c2=8, n=1, shortcut=True, e=0.5) -> c_ = 4
    batch, c1, c2, H, W = 2, 8, 8, 16, 16

    key = jax.random.PRNGKey(0)
    kx_, kp = jax.random.split(key)
    x = jax.random.normal(kx_, (batch, c1, H, W), dtype=jnp.float32)
    params = make_c3_params(kp, c1, c2, n=1, e=0.5)

    ref = jax.block_until_ready(c3_reference(x, params))

    # f32 mode: primary (tight) correctness check.
    fwd_f32 = jax.jit(functools.partial(c3_forward, compute_dtype=jnp.float32))
    out_f32 = jax.block_until_ready(fwd_f32(x, params))
    assert out_f32.shape == (batch, c2, H, W), out_f32.shape
    assert jnp.allclose(out_f32, ref, atol=1e-4, rtol=1e-4), "f32 Pallas mismatch"

    # bf16 matmul inputs / f32 accumulation: performance mode, looser tolerance.
    fwd_bf16 = jax.jit(functools.partial(c3_forward, compute_dtype=jnp.bfloat16))
    out_bf16 = jax.block_until_ready(fwd_bf16(x, params))
    assert out_bf16.shape == (batch, c2, H, W), out_bf16.shape
    assert jnp.allclose(out_bf16, ref, atol=5e-2, rtol=5e-2), "bf16 Pallas mismatch"

    print("KERNEL_OK")
</pallas_src>

<mosaic_0001>
module attributes {stable_mosaic.version = 11 : i64} {
  func.func @_c3_kernel(%arg0: i32, %arg1: memref<1x324x8xf32, #tpu.memory_space<vmem>>, %arg2: memref<324x1xf32, #tpu.memory_space<vmem>>, %arg3: memref<8x4xf32, #tpu.memory_space<vmem>>, %arg4: memref<1x4xf32, #tpu.memory_space<vmem>>, %arg5: memref<8x4xf32, #tpu.memory_space<vmem>>, %arg6: memref<1x4xf32, #tpu.memory_space<vmem>>, %arg7: memref<4x4xf32, #tpu.memory_space<vmem>>, %arg8: memref<1x4xf32, #tpu.memory_space<vmem>>, %arg9: memref<9x4x4xf32, #tpu.memory_space<vmem>>, %arg10: memref<1x4xf32, #tpu.memory_space<vmem>>, %arg11: memref<4x8xf32, #tpu.memory_space<vmem>>, %arg12: memref<4x8xf32, #tpu.memory_space<vmem>>, %arg13: memref<1x8xf32, #tpu.memory_space<vmem>>, %arg14: memref<1x324x8xf32, #tpu.memory_space<vmem>>, %arg15: memref<367x4xf32, #tpu.memory_space<vmem>>) attributes {dimension_semantics = [#tpu.dimension_semantics<parallel>], iteration_bounds = array<i64: 2>, scalar_prefetch = 0 : i64, scratch_operands = 1 : i64, tpu.core_type = #tpu.core_type<tc>, window_params = [{transform_indices = @transform_0, window_bounds = array<i64: 1, 324, 8>}, {pipeline_mode = #tpu.pipeline_mode<synchronous>, transform_indices = @transform_1, window_bounds = array<i64: 324, 1>}, {pipeline_mode = #tpu.pipeline_mode<synchronous>, transform_indices = @transform_2, window_bounds = array<i64: 8, 4>}, {pipeline_mode = #tpu.pipeline_mode<synchronous>, transform_indices = @transform_3, window_bounds = array<i64: 1, 4>}, {pipeline_mode = #tpu.pipeline_mode<synchronous>, transform_indices = @transform_4, window_bounds = array<i64: 8, 4>}, {pipeline_mode = #tpu.pipeline_mode<synchronous>, transform_indices = @transform_5, window_bounds = array<i64: 1, 4>}, {pipeline_mode = #tpu.pipeline_mode<synchronous>, transform_indices = @transform_6, window_bounds = array<i64: 4, 4>}, {pipeline_mode = #tpu.pipeline_mode<synchronous>, transform_indices = @transform_7, window_bounds = array<i64: 1, 4>}, {pipeline_mode = #tpu.pipeline_mode<synchronous>, transform_indices = @transform_8, window_bounds = array<i64: 9, 4, 4>}, {pipeline_mode = #tpu.pipeline_mode<synchronous>, transform_indices = @transform_9, window_bounds = array<i64: 1, 4>}, {pipeline_mode = #tpu.pipeline_mode<synchronous>, transform_indices = @transform_10, window_bounds = array<i64: 4, 8>}, {pipeline_mode = #tpu.pipeline_mode<synchronous>, transform_indices = @transform_11, window_bounds = array<i64: 4, 8>}, {pipeline_mode = #tpu.pipeline_mode<synchronous>, transform_indices = @transform_12, window_bounds = array<i64: 1, 8>}, {transform_indices = @transform_13, window_bounds = array<i64: 1, 324, 8>}]} {
    %c0 = arith.constant 0 : index
    %c0_0 = arith.constant 0 : index
    %c0_1 = arith.constant 0 : index
    %0 = vector.load %arg1[%c0, %c0_0, %c0_1] : memref<1x324x8xf32, #tpu.memory_space<vmem>>, vector<1x324x8xf32>
    %1 = vector.shape_cast %0 : vector<1x324x8xf32> to vector<324x8xf32>
    %c0_2 = arith.constant 0 : index
    %c0_3 = arith.constant 0 : index
    %2 = vector.load %arg3[%c0_2, %c0_3] : memref<8x4xf32, #tpu.memory_space<vmem>>, vector<8x4xf32>
    %cst = arith.constant dense<0.000000e+00> : vector<324x4xf32>
    %3 = tpu.matmul %1, %2, %cst {dimension_numbers = #tpu.dot_dimension_numbers<[1], [0], [0], [1], [0, 0, 1, 1], [], []>} : vector<324x8xf32>, vector<8x4xf32>, vector<324x4xf32> -> vector<324x4xf32>
    %c0_4 = arith.constant 0 : index
    %c0_5 = arith.constant 0 : index
    %4 = vector.load %arg4[%c0_4, %c0_5] : memref<1x4xf32, #tpu.memory_space<vmem>>, vector<1x4xf32>
    %5 = vector.broadcast %4 : vector<1x4xf32> to vector<324x4xf32>
    %6 = arith.addf %3, %5 : vector<324x4xf32>
    %7 = arith.negf %6 : vector<324x4xf32>
    %8 = math.exp %7 : vector<324x4xf32>
    %cst_6 = arith.constant 1.000000e+00 : f32
    %9 = vector.broadcast %cst_6 : f32 to vector<324x4xf32>
    %10 = arith.addf %9, %8 : vector<324x4xf32>
    %11 = arith.divf %9, %10 : vector<324x4xf32>
    %12 = arith.mulf %6, %11 : vector<324x4xf32>
    %c0_7 = arith.constant 0 : index
    %c0_8 = arith.constant 0 : index
    %13 = vector.load %arg5[%c0_7, %c0_8] : memref<8x4xf32, #tpu.memory_space<vmem>>, vector<8x4xf32>
    %cst_9 = arith.constant dense<0.000000e+00> : vector<324x4xf32>
    %14 = tpu.matmul %1, %13, %cst_9 {dimension_numbers = #tpu.dot_dimension_numbers<[1], [0], [0], [1], [0, 0, 1, 1], [], []>} : vector<324x8xf32>, vector<8x4xf32>, vector<324x4xf32> -> vector<324x4xf32>
    %c0_10 = arith.constant 0 : index
    %c0_11 = arith.constant 0 : index
    %15 = vector.load %arg6[%c0_10, %c0_11] : memref<1x4xf32, #tpu.memory_space<vmem>>, vector<1x4xf32>
    %16 = vector.broadcast %15 : vector<1x4xf32> to vector<324x4xf32>
    %17 = arith.addf %14, %16 : vector<324x4xf32>
    %18 = arith.negf %17 : vector<324x4xf32>
    %19 = math.exp %18 : vector<324x4xf32>
    %cst_12 = arith.constant 1.000000e+00 : f32
    %20 = vector.broadcast %cst_12 : f32 to vector<324x4xf32>
    %21 = arith.addf %20, %19 : vector<324x4xf32>
    %22 = arith.divf %20, %21 : vector<324x4xf32>
    %23 = arith.mulf %17, %22 : vector<324x4xf32>
    %c0_13 = arith.constant 0 : index
    %c0_14 = arith.constant 0 : index
    %24 = vector.load %arg7[%c0_13, %c0_14] : memref<4x4xf32, #tpu.memory_space<vmem>>, vector<4x4xf32>
    %cst_15 = arith.constant dense<0.000000e+00> : vector<324x4xf32>
    %25 = tpu.matmul %12, %24, %cst_15 {dimension_numbers = #tpu.dot_dimension_numbers<[1], [0], [0], [1], [0, 0, 1, 1], [], []>} : vector<324x4xf32>, vector<4x4xf32>, vector<324x4xf32> -> vector<324x4xf32>
    %c0_16 = arith.constant 0 : index
    %c0_17 = arith.constant 0 : index
    %26 = vector.load %arg8[%c0_16, %c0_17] : memref<1x4xf32, #tpu.memory_space<vmem>>, vector<1x4xf32>
    %27 = vector.broadcast %26 : vector<1x4xf32> to vector<324x4xf32>
    %28 = arith.addf %25, %27 : vector<324x4xf32>
    %29 = arith.negf %28 : vector<324x4xf32>
    %30 = math.exp %29 : vector<324x4xf32>
    %cst_18 = arith.constant 1.000000e+00 : f32
    %31 = vector.broadcast %cst_18 : f32 to vector<324x4xf32>
    %32 = arith.addf %31, %30 : vector<324x4xf32>
    %33 = arith.divf %31, %32 : vector<324x4xf32>
    %34 = arith.mulf %28, %33 : vector<324x4xf32>
    %c0_19 = arith.constant 0 : index
    %c0_20 = arith.constant 0 : index
    %35 = vector.load %arg2[%c0_19, %c0_20] : memref<324x1xf32, #tpu.memory_space<vmem>>, vector<324x1xf32>
    %36 = vector.broadcast %35 : vector<324x1xf32> to vector<324x4xf32>
    %37 = arith.mulf %34, %36 : vector<324x4xf32>
    %cst_21 = arith.constant 0.000000e+00 : f32
    %38 = vector.broadcast %cst_21 : f32 to vector<367x4xf32>
    %c0_22 = arith.constant 0 : index
    %c0_23 = arith.constant 0 : index
    %39 = vector.load %arg15[%c0_22, %c0_23] : memref<367x4xf32, #tpu.memory_space<vmem>>, vector<367x4xf32>
    tpu.vector_store %arg15[%c0_22, %c0_23], %38 {strides = array<i32>} : memref<367x4xf32, #tpu.memory_space<vmem>>, vector<367x4xf32>,
    %c24 = arith.constant 24 : index
    %c0_24 = arith.constant 0 : index
    %40 = vector.load %arg15[%c24, %c0_24] : memref<367x4xf32, #tpu.memory_space<vmem>>, vector<324x4xf32>
    tpu.vector_store %arg15[%c24, %c0_24], %37 {strides = array<i32>} : memref<367x4xf32, #tpu.memory_space<vmem>>, vector<324x4xf32>,
    %cst_25 = arith.constant 0.000000e+00 : f32
    %41 = vector.broadcast %cst_25 : f32 to vector<324x4xf32>
    %c5 = arith.constant 5 : index
    %c0_26 = arith.constant 0 : index
    %42 = vector.load %arg15[%c5, %c0_26] : memref<367x4xf32, #tpu.memory_space<vmem>>, vector<324x4xf32>
    %c0_27 = arith.constant 0 : index
    %c0_28 = arith.constant 0 : index
    %c0_29 = arith.constant 0 : index
    %43 = vector.load %arg9[%c0_27, %c0_28, %c0_29] : memref<9x4x4xf32, #tpu.memory_space<vmem>>, vector<1x4x4xf32>
    %44 = vector.shape_cast %43 : vector<1x4x4xf32> to vector<4x4xf32>
    %cst_30 = arith.constant dense<0.000000e+00> : vector<324x4xf32>
    %45 = tpu.matmul %42, %44, %cst_30 {dimension_numbers = #tpu.dot_dimension_numbers<[1], [0], [0], [1], [0, 0, 1, 1], [], []>} : vector<324x4xf32>, vector<4x4xf32>, vector<324x4xf32> -> vector<324x4xf32>
    %46 = arith.addf %41, %45 : vector<324x4xf32>
    %c6 = arith.constant 6 : index
    %c0_31 = arith.constant 0 : index
    %47 = vector.load %arg15[%c6, %c0_31] : memref<367x4xf32, #tpu.memory_space<vmem>>, vector<324x4xf32>
    %c1 = arith.constant 1 : index
    %c0_32 = arith.constant 0 : index
    %c0_33 = arith.constant 0 : index
    %48 = vector.load %arg9[%c1, %c0_32, %c0_33] : memref<9x4x4xf32, #tpu.memory_space<vmem>>, vector<1x4x4xf32>
    %49 = vector.shape_cast %48 : vector<1x4x4xf32> to vector<4x4xf32>
    %cst_34 = arith.constant dense<0.000000e+00> : vector<324x4xf32>
    %50 = tpu.matmul %47, %49, %cst_34 {dimension_numbers = #tpu.dot_dimension_numbers<[1], [0], [0], [1], [0, 0, 1, 1], [], []>} : vector<324x4xf32>, vector<4x4xf32>, vector<324x4xf32> -> vector<324x4xf32>
    %51 = arith.addf %46, %50 : vector<324x4xf32>
    %c7 = arith.constant 7 : index
    %c0_35 = arith.constant 0 : index
    %52 = vector.load %arg15[%c7, %c0_35] : memref<367x4xf32, #tpu.memory_space<vmem>>, vector<324x4xf32>
    %c2 = arith.constant 2 : index
    %c0_36 = arith.constant 0 : index
    %c0_37 = arith.constant 0 : index
    %53 = vector.load %arg9[%c2, %c0_36, %c0_37] : memref<9x4x4xf32, #tpu.memory_space<vmem>>, vector<1x4x4xf32>
    %54 = vector.shape_cast %53 : vector<1x4x4xf32> to vector<4x4xf32>
    %cst_38 = arith.constant dense<0.000000e+00> : vector<324x4xf32>
    %55 = tpu.matmul %52, %54, %cst_38 {dimension_numbers = #tpu.dot_dimension_numbers<[1], [0], [0], [1], [0, 0, 1, 1], [], []>} : vector<324x4xf32>, vector<4x4xf32>, vector<324x4xf32> -> vector<324x4xf32>
    %56 = arith.addf %51, %55 : vector<324x4xf32>
    %c23 = arith.constant 23 : index
    %c0_39 = arith.constant 0 : index
    %57 = vector.load %arg15[%c23, %c0_39] : memref<367x4xf32, #tpu.memory_space<vmem>>, vector<324x4xf32>
    %c3 = arith.constant 3 : index
    %c0_40 = arith.constant 0 : index
    %c0_41 = arith.constant 0 : index
    %58 = vector.load %arg9[%c3, %c0_40, %c0_41] : memref<9x4x4xf32, #tpu.memory_space<vmem>>, vector<1x4x4xf32>
    %59 = vector.shape_cast %58 : vector<1x4x4xf32> to vector<4x4xf32>
    %cst_42 = arith.constant dense<0.000000e+00> : vector<324x4xf32>
    %60 = tpu.matmul %57, %59, %cst_42 {dimension_numbers = #tpu.dot_dimension_numbers<[1], [0], [0], [1], [0, 0, 1, 1], [], []>} : vector<324x4xf32>, vector<4x4xf32>, vector<324x4xf32> -> vector<324x4xf32>
    %61 = arith.addf %56, %60 : vector<324x4xf32>
    %c24_43 = arith.constant 24 : index
    %c0_44 = arith.constant 0 : index
    %62 = vector.load %arg15[%c24_43, %c0_44] : memref<367x4xf32, #tpu.memory_space<vmem>>, vector<324x4xf32>
    %c4 = arith.constant 4 : index
    %c0_45 = arith.constant 0 : index
    %c0_46 = arith.constant 0 : index
    %63 = vector.load %arg9[%c4, %c0_45, %c0_46] : memref<9x4x4xf32, #tpu.memory_space<vmem>>, vector<1x4x4xf32>
    %64 = vector.shape_cast %63 : vector<1x4x4xf32> to vector<4x4xf32>
    %cst_47 = arith.constant dense<0.000000e+00> : vector<324x4xf32>
    %65 = tpu.matmul %62, %64, %cst_47 {dimension_numbers = #tpu.dot_dimension_numbers<[1], [0], [0], [1], [0, 0, 1, 1], [], []>} : vector<324x4xf32>, vector<4x4xf32>, vector<324x4xf32> -> vector<324x4xf32>
    %66 = arith.addf %61, %65 : vector<324x4xf32>
    %c25 = arith.constant 25 : index
    %c0_48 = arith.constant 0 : index
    %67 = vector.load %arg15[%c25, %c0_48] : memref<367x4xf32, #tpu.memory_space<vmem>>, vector<324x4xf32>
    %c5_49 = arith.constant 5 : index
    %c0_50 = arith.constant 0 : index
    %c0_51 = arith.constant 0 : index
    %68 = vector.load %arg9[%c5_49, %c0_50, %c0_51] : memref<9x4x4xf32, #tpu.memory_space<vmem>>, vector<1x4x4xf32>
    %69 = vector.shape_cast %68 : vector<1x4x4xf32> to vector<4x4xf32>
    %cst_52 = arith.constant dense<0.000000e+00> : vector<324x4xf32>
    %70 = tpu.matmul %67, %69, %cst_52 {dimension_numbers = #tpu.dot_dimension_numbers<[1], [0], [0], [1], [0, 0, 1, 1], [], []>} : vector<324x4xf32>, vector<4x4xf32>, vector<324x4xf32> -> vector<324x4xf32>
    %71 = arith.addf %66, %70 : vector<324x4xf32>
    %c41 = arith.constant 41 : index
    %c0_53 = arith.constant 0 : index
    %72 = vector.load %arg15[%c41, %c0_53] : memref<367x4xf32, #tpu.memory_space<vmem>>, vector<324x4xf32>
    %c6_54 = arith.constant 6 : index
    %c0_55 = arith.constant 0 : index
    %c0_56 = arith.constant 0 : index
    %73 = vector.load %arg9[%c6_54, %c0_55, %c0_56] : memref<9x4x4xf32, #tpu.memory_space<vmem>>, vector<1x4x4xf32>
    %74 = vector.shape_cast %73 : vector<1x4x4xf32> to vector<4x4xf32>
    %cst_57 = arith.constant dense<0.000000e+00> : vector<324x4xf32>
    %75 = tpu.matmul %72, %74, %cst_57 {dimension_numbers = #tpu.dot_dimension_numbers<[1], [0], [0], [1], [0, 0, 1, 1], [], []>} : vector<324x4xf32>, vector<4x4xf32>, vector<324x4xf32> -> vector<324x4xf32>
    %76 = arith.addf %71, %75 : vector<324x4xf32>
    %c42 = arith.constant 42 : index
    %c0_58 = arith.constant 0 : index
    %77 = vector.load %arg15[%c42, %c0_58] : memref<367x4xf32, #tpu.memory_space<vmem>>, vector<324x4xf32>
    %c7_59 = arith.constant 7 : index
    %c0_60 = arith.constant 0 : index
    %c0_61 = arith.constant 0 : index
    %78 = vector.load %arg9[%c7_59, %c0_60, %c0_61] : memref<9x4x4xf32, #tpu.memory_space<vmem>>, vector<1x4x4xf32>
    %79 = vector.shape_cast %78 : vector<1x4x4xf32> to vector<4x4xf32>
    %cst_62 = arith.constant dense<0.000000e+00> : vector<324x4xf32>
    %80 = tpu.matmul %77, %79, %cst_62 {dimension_numbers = #tpu.dot_dimension_numbers<[1], [0], [0], [1], [0, 0, 1, 1], [], []>} : vector<324x4xf32>, vector<4x4xf32>, vector<324x4xf32> -> vector<324x4xf32>
    %81 = arith.addf %76, %80 : vector<324x4xf32>
    %c43 = arith.constant 43 : index
    %c0_63 = arith.constant 0 : index
    %82 = vector.load %arg15[%c43, %c0_63] : memref<367x4xf32, #tpu.memory_space<vmem>>, vector<324x4xf32>
    %c8 = arith.constant 8 : index
    %c0_64 = arith.constant 0 : index
    %c0_65 = arith.constant 0 : index
    %83 = vector.load %arg9[%c8, %c0_64, %c0_65] : memref<9x4x4xf32, #tpu.memory_space<vmem>>, vector<1x4x4xf32>
    %84 = vector.shape_cast %83 : vector<1x4x4xf32> to vector<4x4xf32>
    %cst_66 = arith.constant dense<0.000000e+00> : vector<324x4xf32>
    %85 = tpu.matmul %82, %84, %cst_66 {dimension_numbers = #tpu.dot_dimension_numbers<[1], [0], [0], [1], [0, 0, 1, 1], [], []>} : vector<324x4xf32>, vector<4x4xf32>, vector<324x4xf32> -> vector<324x4xf32>
    %86 = arith.addf %81, %85 : vector<324x4xf32>
    %c0_67 = arith.constant 0 : index
    %c0_68 = arith.constant 0 : index
    %87 = vector.load %arg10[%c0_67, %c0_68] : memref<1x4xf32, #tpu.memory_space<vmem>>, vector<1x4xf32>
    %88 = vector.broadcast %87 : vector<1x4xf32> to vector<324x4xf32>
    %89 = arith.addf %86, %88 : vector<324x4xf32>
    %90 = arith.negf %89 : vector<324x4xf32>
    %91 = math.exp %90 : vector<324x4xf32>
    %cst_69 = arith.constant 1.000000e+00 : f32
    %92 = vector.broadcast %cst_69 : f32 to vector<324x4xf32>
    %93 = arith.addf %92, %91 : vector<324x4xf32>
    %94 = arith.divf %92, %93 : vector<324x4xf32>
    %95 = arith.mulf %89, %94 : vector<324x4xf32>
    %96 = arith.addf %12, %95 : vector<324x4xf32>
    %c0_70 = arith.constant 0 : index
    %c0_71 = arith.constant 0 : index
    %97 = vector.load %arg11[%c0_70, %c0_71] : memref<4x8xf32, #tpu.memory_space<vmem>>, vector<4x8xf32>
    %cst_72 = arith.constant dense<0.000000e+00> : vector<324x8xf32>
    %98 = tpu.matmul %96, %97, %cst_72 {dimension_numbers = #tpu.dot_dimension_numbers<[1], [0], [0], [1], [0, 0, 1, 1], [], []>} : vector<324x4xf32>, vector<4x8xf32>, vector<324x8xf32> -> vector<324x8xf32>
    %c0_73 = arith.constant 0 : index
    %c0_74 = arith.constant 0 : index
    %99 = vector.load %arg12[%c0_73, %c0_74] : memref<4x8xf32, #tpu.memory_space<vmem>>, vector<4x8xf32>
    %cst_75 = arith.constant dense<0.000000e+00> : vector<324x8xf32>
    %100 = tpu.matmul %23, %99, %cst_75 {dimension_numbers = #tpu.dot_dimension_numbers<[1], [0], [0], [1], [0, 0, 1, 1], [], []>} : vector<324x4xf32>, vector<4x8xf32>, vector<324x8xf32> -> vector<324x8xf32>
    %101 = arith.addf %98, %100 : vector<324x8xf32>
    %c0_76 = arith.constant 0 : index
    %c0_77 = arith.constant 0 : index
    %102 = vector.load %arg13[%c0_76, %c0_77] : memref<1x8xf32, #tpu.memory_space<vmem>>, vector<1x8xf32>
    %103 = vector.broadcast %102 : vector<1x8xf32> to vector<324x8xf32>
    %104 = arith.addf %101, %103 : vector<324x8xf32>
    %105 = arith.negf %104 : vector<324x8xf32>
    %106 = math.exp %105 : vector<324x8xf32>
    %cst_78 = arith.constant 1.000000e+00 : f32
    %107 = vector.broadcast %cst_78 : f32 to vector<324x8xf32>
    %108 = arith.addf %107, %106 : vector<324x8xf32>
    %109 = arith.divf %107, %108 : vector<324x8xf32>
    %110 = arith.mulf %104, %109 : vector<324x8xf32>
    %c0_79 = arith.constant 0 : index
    %c0_80 = arith.constant 0 : index
    %c0_81 = arith.constant 0 : index
    %111 = vector.load %arg14[%c0_79, %c0_80, %c0_81] : memref<1x324x8xf32, #tpu.memory_space<vmem>>, vector<1x324x8xf32>
    %112 = vector.shape_cast %111 : vector<1x324x8xf32> to vector<324x8xf32>
    %113 = vector.shape_cast %110 : vector<324x8xf32> to vector<1x324x8xf32>
    tpu.vector_store %arg14[%c0_79, %c0_80, %c0_81], %113 {strides = array<i32>} : memref<1x324x8xf32, #tpu.memory_space<vmem>>, vector<1x324x8xf32>,
    return
  }
  func.func @transform_0(%arg0: i32) -> (i32, i32, i32) {
    %c0_i32 = arith.constant 0 : i32
    %c0_i32_0 = arith.constant 0 : i32
    %c0_i32_1 = arith.constant 0 : i32
    return %arg0, %c0_i32, %c0_i32_0 : i32, i32, i32
  }
  func.func @transform_1(%arg0: i32) -> (i32, i32) {
    %c0_i32 = arith.constant 0 : i32
    %c0_i32_0 = arith.constant 0 : i32
    %c0_i32_1 = arith.constant 0 : i32
    return %c0_i32, %c0_i32_0 : i32, i32
  }
  func.func @transform_2(%arg0: i32) -> (i32, i32) {
    %c0_i32 = arith.constant 0 : i32
    %c0_i32_0 = arith.constant 0 : i32
    %c0_i32_1 = arith.constant 0 : i32
    return %c0_i32, %c0_i32_0 : i32, i32
  }
  func.func @transform_3(%arg0: i32) -> (i32, i32) {
    %c0_i32 = arith.constant 0 : i32
    %c0_i32_0 = arith.constant 0 : i32
    %c0_i32_1 = arith.constant 0 : i32
    return %c0_i32, %c0_i32_0 : i32, i32
  }
  func.func @transform_4(%arg0: i32) -> (i32, i32) {
    %c0_i32 = arith.constant 0 : i32
    %c0_i32_0 = arith.constant 0 : i32
    %c0_i32_1 = arith.constant 0 : i32
    return %c0_i32, %c0_i32_0 : i32, i32
  }
  func.func @transform_5(%arg0: i32) -> (i32, i32) {
    %c0_i32 = arith.constant 0 : i32
    %c0_i32_0 = arith.constant 0 : i32
    %c0_i32_1 = arith.constant 0 : i32
    return %c0_i32, %c0_i32_0 : i32, i32
  }
  func.func @transform_6(%arg0: i32) -> (i32, i32) {
    %c0_i32 = arith.constant 0 : i32
    %c0_i32_0 = arith.constant 0 : i32
    %c0_i32_1 = arith.constant 0 : i32
    return %c0_i32, %c0_i32_0 : i32, i32
  }
  func.func @transform_7(%arg0: i32) -> (i32, i32) {
    %c0_i32 = arith.constant 0 : i32
    %c0_i32_0 = arith.constant 0 : i32
    %c0_i32_1 = arith.constant 0 : i32
    return %c0_i32, %c0_i32_0 : i32, i32
  }
  func.func @transform_8(%arg0: i32) -> (i32, i32, i32) {
    %c0_i32 = arith.constant 0 : i32
    %c0_i32_0 = arith.constant 0 : i32
    %c0_i32_1 = arith.constant 0 : i32
    %c0_i32_2 = arith.constant 0 : i32
    return %c0_i32, %c0_i32_0, %c0_i32_1 : i32, i32, i32
  }
  func.func @transform_9(%arg0: i32) -> (i32, i32) {
    %c0_i32 = arith.constant 0 : i32
    %c0_i32_0 = arith.constant 0 : i32
    %c0_i32_1 = arith.constant 0 : i32
    return %c0_i32, %c0_i32_0 : i32, i32
  }
  func.func @transform_10(%arg0: i32) -> (i32, i32) {
    %c0_i32 = arith.constant 0 : i32
    %c0_i32_0 = arith.constant 0 : i32
    %c0_i32_1 = arith.constant 0 : i32
    return %c0_i32, %c0_i32_0 : i32, i32
  }
  func.func @transform_11(%arg0: i32) -> (i32, i32) {
    %c0_i32 = arith.constant 0 : i32
    %c0_i32_0 = arith.constant 0 : i32
    %c0_i32_1 = arith.constant 0 : i32
    return %c0_i32, %c0_i32_0 : i32, i32
  }
  func.func @transform_12(%arg0: i32) -> (i32, i32) {
    %c0_i32 = arith.constant 0 : i32
    %c0_i32_0 = arith.constant 0 : i32
    %c0_i32_1 = arith.constant 0 : i32
    return %c0_i32, %c0_i32_0 : i32, i32
  }
  func.func @transform_13(%arg0: i32) -> (i32, i32, i32) {
    %c0_i32 = arith.constant 0 : i32
    %c0_i32_0 = arith.constant 0 : i32
    %c0_i32_1 = arith.constant 0 : i32
    return %arg0, %c0_i32, %c0_i32_0 : i32, i32, i32
  }
}

</mosaic_0001>

<bundles_post_ra>
// kernel: c3_forward.1
= control target key start
LH: loop header
LB: loop body
LE: loop exit
PB: predicated region body
PF: predicated region fallthrough
CT: control target
= control target key end

     0   :  { %s12714_s25 = smov 0   ;;  %s17157_s0 = inlined_call_operand.vmem [shape: f32[2,324,8], index: 0, kind: input, shape index: {}]   ;;  %s17158_s1 = inlined_call_operand.vmem [shape: f32[324,1], index: 1, kind: input, shape index: {}]   ;;  %s17159_s2 = inlined_call_operand.vmem [shape: f32[8,4], index: 2, kind: input, shape index: {}]   ;;  %s17160_s3 = inlined_call_operand.vmem [shape: f32[1,4], index: 3, kind: input, shape index: {}]   ;;  %s17161_s4 = inlined_call_operand.vmem [shape: f32[8,4], index: 4, kind: input, shape index: {}]   ;;  %s17162_s5 = inlined_call_operand.vmem [shape: f32[1,4], index: 5, kind: input, shape index: {}]   ;;  %s17163_s6 = inlined_call_operand.vmem [shape: f32[4,4], index: 6, kind: input, shape index: {}]   ;;  %s17164_s7 = inlined_call_operand.vmem [shape: f32[1,4], index: 7, kind: input, shape index: {}]   ;;  %s17165_s8 = inlined_call_operand.vmem [shape: f32[9,4,4], index: 8, kind: input, shape index: {}]   ;;  %s17166_s9 = inlined_call_operand.vmem [shape: f32[1,4], index: 9, kind: input, shape index: {}]   ;;  %s17167_s10 = inlined_call_operand.vmem [shape: f32[4,8], index: 10, kind: input, shape index: {}]   ;;  %s17168_s11 = inlined_call_operand.vmem [shape: f32[4,8], index: 11, kind: input, shape index: {}]   ;;  %s17169_s12 = inlined_call_operand.vmem [shape: f32[1,8], index: 12, kind: input, shape index: {}]   ;;  %s17170_s13 = inlined_call_operand.vmem [shape: f32[2,324,8], index: 13, kind: output, shape index: {}]  }
   0x1 LB: > { %s8644_s26 = sadd.s32 4294967295, %s12639_s25   ;;  %p8648_p0 = scmp.ge.s32.totalorder %s12639_s25, 1  ;;  %s12639_s25 = sphi %s12714_s25, %s23_s25  }
   0x2   : > { %p387_p1 = scmp.lt.s32.totalorder %s12639_s25, 3 }
   0x4   : > { %p388_p2 = pnand %p8648_p0, %p387_p1 }
   0x6   : > { %391 = sbr.rel (%p388_p2) target bundleno = 1814 (0x716), region = 72 }
   0xd   : > { %v482_v0 = vld [vmem:[%s17159_s2] sm:$0xff]  ;;  %p431_p3 = scmp.lt.s32.totalorder %s8644_s26, 1  ;;  %v17171_v1 = vmov 0.0   ;;  %vm12642_vm0 = vmmov 0   ;;  %vm490_vm1 = vcmask 64512   ;;  %vm1868_vm2 = vcmask 1043456  }
   0xe   : > { %10045 = vmatprep.subr.mxu0 %v17171_v1  ;;  %10047 = vmatprep.mubr.msk.f32.mxu0 %vm12642_vm0, %v17171_v1  ;;  %v1736_v2 = vld [vmem:[%s17163_s6] sm:$0xf]  ;;  %vm1744_vm3 = vcmask 31744   ;;  %v12643_v41 = vmov 0   ;;  %v2430_v44 = vld [vmem:[%s17158_s1 + $0x8] sm:$0xff]  ;;  %v2431_v48 = vld [vmem:[%s17158_s1 + $0x10] sm:$0xff] }
   0xf   : > { %10046 = vmatpush3.msra.mxu0 %v482_v0  ;;  %s17454_s26 = smov (!%p431_p3, %s8644_s26), 1  ;;  %10170 = vmatprep.subr.mxu1 %v17171_v1  ;;  %2716 = vst.msk [vmem:[#allocation2] sm:$0xff] %vm1744_vm3, %v17171_v1  ;;  %2717 = vst.msk [vmem:[#allocation2 + $0x8] sm:$0xff] %vm1744_vm3, %v17171_v1  ;;  %v2429_v42 = vld [vmem:[%s17158_s1] sm:$0xff]  ;;  %v2435_v49 = vld [vmem:[%s17158_s1 + $0x30] sm:$0xff]  ;;  %vm2803_vm4 = vcmask 27648  }
  0x10   : > { %10295 = vmatprep.subr.mxu0 %v17171_v1  ;;  %10172 = vmatprep.mubr.msk.f32.mxu1 %vm12642_vm0, %v17171_v1  ;;  %s11795_s29 = smul.u32 328, %s17454_s26  ;;  %2718 = vst.msk [vmem:[#allocation2 + $0x10] sm:$0xff] %vm1744_vm3, %v17171_v1  ;;  %2719 = vst.msk [vmem:[#allocation2 + $0x18] sm:$0xff] %vm1744_vm3, %v17171_v1  ;;  %v2433_v46 = vld [vmem:[%s17158_s1 + $0x20] sm:$0xff]  ;;  %v2432_v50 = vld [vmem:[%s17158_s1 + $0x18] sm:$0xff]  ;;  %vm2761_vm5 = vcmask 30720  }
  0x11   : > { %2720 = vst.msk [vmem:[#allocation2 + $0x20] sm:$0xff] %vm1744_vm3, %v17171_v1  ;;  %2721 = vst.msk [vmem:[#allocation2 + $0x28] sm:$0xff] %vm1744_vm3, %v17171_v1  ;;  %11807 = vset.pattern.permute.xlu0 %v12643_v41  ;;  %11808 = vset.pattern.permute.xlu1 %v12643_v41  ;;  %v2437_v51 = vld [vmem:[%s17158_s1 + $0x40] sm:$0xff]  ;;  %v2434_v53 = vld [vmem:[%s17158_s1 + $0x28] sm:$0xff]  ;;  %vm8587_vm6 = vcmask 60416  }
  0x12   : > { %s12740_s15 = scalar_lea.vmem %s17157_s0, %s11795_s29  ;;  %2722 = vst.msk [vmem:[#allocation2 + $0x30] sm:$0xff] %vm1744_vm3, %v17171_v1  ;;  %2723 = vst.msk [vmem:[#allocation2 + $0x38] sm:$0xff] %vm1744_vm3, %v17171_v1  ;;  %2472 = vperm.xlu0 %11807, %v2429_v42   ;;  %2482 = vperm.xlu1 %11808, %v2431_v48   ;;  %v1171_v52 = vld [vmem:[%s17161_s4] sm:$0xff]  ;;  %v2439_v54 = vld [vmem:[%s17158_s1 + $0x50] sm:$0xff]  ;;  %s16879_s18 = scalar_lea.vmem %s17170_s13, %s11795_s29 }
  0x13   : > { %v12746_v3 = vld [vmem:[%s12740_s15] sm:$0xff]  ;;  %v12753_v4 = vld [vmem:[%s12740_s15 + $0x8] sm:$0xff]  ;;  %v12762_v5 = vld [vmem:[%s12740_s15 + $0x10] sm:$0xff]  ;;  %2724 = vst.msk [vmem:[#allocation2 + $0x40] sm:$0xff] %vm1744_vm3, %v17171_v1  ;;  %10171 = vmatpush3.msra.mxu1 %v1171_v52 }
  0x14   : > { %10048 = vmatmul.mubr.msk.f32.vlgmr.msra.gmra.mrb[0].mxu0 %vm490_vm1, %v12746_v3  ;;  %v12769_v6 = vld [vmem:[%s12740_s15 + $0x18] sm:$0xff]  ;;  %v12776_v7 = vld [vmem:[%s12740_s15 + $0x20] sm:$0xff]  ;;  %v12783_v8 = vld [vmem:[%s12740_s15 + $0x28] sm:$0xff]  ;;  %2725 = vst.msk [vmem:[#allocation2 + $0x48] sm:$0xff] %vm1744_vm3, %v17171_v1  ;;  %10173 = vmatmul.mubr.msk.f32.vlgmr.msra.gmra.mrb[0].mxu1 %vm490_vm1, %v12746_v3 }
  0x15   : > { %10050 = vmatprep.mubr.msk.f32.mxu0 %vm12642_vm0, %v17171_v1  ;;  %10296 = vmatpush3.msk.msra.mxu0 %vm1868_vm2, %v1736_v2  ;;  %v12790_v9 = vld [vmem:[%s12740_s15 + $0x30] sm:$0xff]  ;;  %v12797_v10 = vld [vmem:[%s12740_s15 + $0x38] sm:$0xff]  ;;  %v12804_v11 = vld [vmem:[%s12740_s15 + $0x40] sm:$0xff]  ;;  %2726 = vst.msk [vmem:[#allocation2 + $0x50] sm:$0xff] %vm1744_vm3, %v17171_v1 }
  0x16   : > { %10545 = vmatprep.subr.mxu0 %v17171_v1  ;;  %v12811_v12 = vld [vmem:[%s12740_s15 + $0x48] sm:$0xff]  ;;  %v12818_v13 = vld [vmem:[%s12740_s15 + $0x50] sm:$0xff]  ;;  %v12825_v14 = vld [vmem:[%s12740_s15 + $0x58] sm:$0xff]  ;;  %2727 = vst.msk [vmem:[#allocation2 + $0x58] sm:$0xff] %vm1744_vm3, %v17171_v1  ;;  %2477 = vperm.xlu0 %11807, %v2430_v44  }
  0x17   : > { %v12832_v15 = vld [vmem:[%s12740_s15 + $0x60] sm:$0xff]  ;;  %v12839_v16 = vld [vmem:[%s12740_s15 + $0x68] sm:$0xff]  ;;  %v12846_v17 = vld [vmem:[%s12740_s15 + $0x70] sm:$0xff]  ;;  %2728 = vst.msk [vmem:[#allocation2 + $0x60] sm:$0xff] %vm1744_vm3, %v17171_v1  ;;  %2487 = vperm.xlu1 %11808, %v2432_v50   ;;  %10175 = vmatprep.mubr.msk.f32.mxu1 %vm12642_vm0, %v17171_v1 }
  0x18   : > { %10051 = vmatmul.mubr.msk.f32.gmra.mrb[2].mxu0 %vm490_vm1, %v12753_v4  ;;  %v12853_v18 = vld [vmem:[%s12740_s15 + $0x78] sm:$0xff]  ;;  %v12860_v19 = vld [vmem:[%s12740_s15 + $0x80] sm:$0xff]  ;;  %v12867_v20 = vld [vmem:[%s12740_s15 + $0x88] sm:$0xff]  ;;  %2729 = vst.msk [vmem:[#allocation2 + $0x68] sm:$0xff] %vm1744_vm3, %v17171_v1  ;;  %10420 = vmatprep.subr.mxu1 %v17171_v1 }
  0x19   : > { %10053 = vmatprep.mubr.msk.f32.mxu0 %vm12642_vm0, %v17171_v1  ;;  %v12874_v21 = vld [vmem:[%s12740_s15 + $0x90] sm:$0xff]  ;;  %v12881_v22 = vld [vmem:[%s12740_s15 + $0x98] sm:$0xff]  ;;  %v12888_v23 = vld [vmem:[%s12740_s15 + $0xa0] sm:$0xff]  ;;  %2730 = vst.msk [vmem:[#allocation2 + $0x70] sm:$0xff] %vm1744_vm3, %v17171_v1  ;;  %10176 = vmatmul.mubr.msk.f32.gmra.mrb[2].mxu1 %vm490_vm1, %v12753_v4 }
  0x1a   : > { %v12895_v24 = vld [vmem:[%s12740_s15 + $0xa8] sm:$0xff]  ;;  %v12902_v25 = vld [vmem:[%s12740_s15 + $0xb0] sm:$0xff]  ;;  %v12909_v26 = vld [vmem:[%s12740_s15 + $0xb8] sm:$0xff]  ;;  %2731 = vst.msk [vmem:[#allocation2 + $0x78] sm:$0xff] %vm1744_vm3, %v17171_v1  ;;  %2492 = vperm.xlu0 %11807, %v2433_v46   ;;  %10178 = vmatprep.mubr.msk.f32.mxu1 %vm12642_vm0, %v17171_v1 }
  0x1b   : > { %v12916_v27 = vld [vmem:[%s12740_s15 + $0xc0] sm:$0xff]  ;;  %v12923_v28 = vld [vmem:[%s12740_s15 + $0xc8] sm:$0xff]  ;;  %v12930_v29 = vld [vmem:[%s12740_s15 + $0xd0] sm:$0xff]  ;;  %2732 = vst.msk [vmem:[#allocation2 + $0x80] sm:$0xff] %vm1744_vm3, %v17171_v1  ;;  %2497 = vperm.xlu1 %11808, %v2434_v53  }
  0x1c   : > { %10054 = vmatmul.mubr.msk.f32.gmra.mrb[4].mxu0 %vm490_vm1, %v12762_v5  ;;  %v12937_v30 = vld [vmem:[%s12740_s15 + $0xd8] sm:$0xff]  ;;  %v12944_v31 = vld [vmem:[%s12740_s15 + $0xe0] sm:$0xff]  ;;  %v12951_v32 = vld [vmem:[%s12740_s15 + $0xe8] sm:$0xff]  ;;  %2733 = vst.msk [vmem:[#allocation2 + $0x88] sm:$0xff] %vm1744_vm3, %v17171_v1 }
  0x1d   : > { %10056 = vmatprep.mubr.msk.f32.mxu0 %vm12642_vm0, %v17171_v1  ;;  %2734 = vst.msk [vmem:[#allocation2 + $0x90] sm:$0xff] %vm1744_vm3, %v17171_v1  ;;  %2735 = vst.msk [vmem:[#allocation2 + $0x98] sm:$0xff] %vm1744_vm3, %v17171_v1  ;;  %v13048_v33 = vld [vmem:[%s12740_s15 + $0xf0] sm:$0xff]  ;;  %v13055_v34 = vld [vmem:[%s12740_s15 + $0xf8] sm:$0xff]  ;;  %10179 = vmatmul.mubr.msk.f32.gmra.mrb[4].mxu1 %vm490_vm1, %v12762_v5 }
  0x1e   : > { %2736 = vst.msk [vmem:[#allocation2 + $0xa0] sm:$0xff] %vm1744_vm3, %v17171_v1  ;;  %2737 = vst.msk [vmem:[#allocation2 + $0xa8] sm:$0xff] %vm1744_vm3, %v17171_v1  ;;  %v13062_v35 = vld [vmem:[%s12740_s15 + $0x100] sm:$0xff]  ;;  %v13069_v36 = vld [vmem:[%s12740_s15 + $0x108] sm:$0xff]  ;;  %2502 = vperm.xlu0 %11807, %v2435_v49   ;;  %10181 = vmatprep.mubr.msk.f32.mxu1 %vm12642_vm0, %v17171_v1 }
  0x1f   : > { %2738 = vst.msk [vmem:[#allocation2 + $0xb0] sm:$0xff] %vm1744_vm3, %v17171_v1  ;;  %2739 = vst.msk [vmem:[#allocation2 + $0xb8] sm:$0xff] %vm1744_vm3, %v17171_v1  ;;  %v13076_v37 = vld [vmem:[%s12740_s15 + $0x110] sm:$0xff]  ;;  %v13083_v38 = vld [vmem:[%s12740_s15 + $0x118] sm:$0xff] }
  0x20   : > { %10057 = vmatmul.mubr.msk.f32.gmra.mrb[6].mxu0 %vm490_vm1, %v12769_v6  ;;  %2740 = vst.msk [vmem:[#allocation2 + $0xc0] sm:$0xff] %vm1744_vm3, %v17171_v1  ;;  %2741 = vst.msk [vmem:[#allocation2 + $0xc8] sm:$0xff] %vm1744_vm3, %v17171_v1  ;;  %v13090_v39 = vld [vmem:[%s12740_s15 + $0x120] sm:$0xff]  ;;  %v13097_v40 = vld [vmem:[%s12740_s15 + $0x128] sm:$0xff] }
  0x21   : > { %10059 = vmatprep.mubr.msk.f32.mxu0 %vm12642_vm0, %v17171_v1  ;;  %2742 = vst.msk [vmem:[#allocation2 + $0xd0] sm:$0xff] %vm1744_vm3, %v17171_v1  ;;  %2743 = vst.msk [vmem:[#allocation2 + $0xd8] sm:$0xff] %vm1744_vm3, %v17171_v1  ;;  %v13107_v43 = vld [vmem:[%s12740_s15 + $0x130] sm:$0xff]  ;;  %v13117_v45 = vld [vmem:[%s12740_s15 + $0x138] sm:$0xff]  ;;  %10182 = vmatmul.mubr.msk.f32.gmra.mrb[6].mxu1 %vm490_vm1, %v12769_v6 }
  0x22   : > { %2744 = vst.msk [vmem:[#allocation2 + $0xe0] sm:$0xff] %vm1744_vm3, %v17171_v1  ;;  %2745 = vst.msk [vmem:[#allocation2 + $0xe8] sm:$0xff] %vm1744_vm3, %v17171_v1  ;;  %v13127_v47 = vld [vmem:[%s12740_s15 + $0x140] sm:$0xf]  ;;  %2512 = vperm.xlu0 %11807, %v2437_v51   ;;  %v2436_v55 = vld [vmem:[%s17158_s1 + $0x38] sm:$0xff]  ;;  %10184 = vmatprep.mubr.msk.f32.mxu1 %vm12642_vm0, %v17171_v1 }
  0x23   : > { %2746 = vst.msk [vmem:[#allocation2 + $0xf0] sm:$0xff] %vm1744_vm3, %v17171_v1  ;;  %2747 = vst.msk [vmem:[#allocation2 + $0xf8] sm:$0xff] %vm1744_vm3, %v17171_v1  ;;  %v2441_v56 = vld [vmem:[%s17158_s1 + $0x60] sm:$0xff]  ;;  %2507 = vperm.xlu1 %11808, %v2436_v55   ;;  %v2438_v57 = vld [vmem:[%s17158_s1 + $0x48] sm:$0xff] }
  0x24   : > { %10060 = vmatmul.mubr.msk.f32.gmra.mrb[8].mxu0 %vm490_vm1, %v12776_v7  ;;  %2748 = vst.msk [vmem:[#allocation2 + $0x100] sm:$0xff] %vm1744_vm3, %v17171_v1  ;;  %2749 = vst.msk [vmem:[#allocation2 + $0x108] sm:$0xff] %vm1744_vm3, %v17171_v1  ;;  %v2443_v58 = vld [vmem:[%s17158_s1 + $0x70] sm:$0xff]  ;;  %v2440_v59 = vld [vmem:[%s17158_s1 + $0x58] sm:$0xff] }
  0x25   : > { %10062 = vmatprep.mubr.msk.f32.mxu0 %vm12642_vm0, %v17171_v1  ;;  %2750 = vst.msk [vmem:[#allocation2 + $0x110] sm:$0xff] %vm1744_vm3, %v17171_v1  ;;  %2751 = vst.msk [vmem:[#allocation2 + $0x118] sm:$0xff] %vm1744_vm3, %v17171_v1  ;;  %v2445_v60 = vld [vmem:[%s17158_s1 + $0x80] sm:$0xff]  ;;  %v2442_v61 = vld [vmem:[%s17158_s1 + $0x68] sm:$0xff]  ;;  %10185 = vmatmul.mubr.msk.f32.gmra.mrb[8].mxu1 %vm490_vm1, %v12776_v7 }
  0x26   : > { %2752 = vst.msk [vmem:[#allocation2 + $0x120] sm:$0xff] %vm1744_vm3, %v17171_v1  ;;  %2753 = vst.msk [vmem:[#allocation2 + $0x128] sm:$0xff] %vm1744_vm3, %v17171_v1  ;;  %2522 = vperm.xlu0 %11807, %v2439_v54   ;;  %v2447_v62 = vld [vmem:[%s17158_s1 + $0x90] sm:$0xff]  ;;  %10187 = vmatprep.mubr.msk.f32.mxu1 %vm12642_vm0, %v17171_v1  ;;  %v2444_v63 = vld [vmem:[%s17158_s1 + $0x78] sm:$0xff] }
  0x27   : > { %2754 = vst.msk [vmem:[#allocation2 + $0x130] sm:$0xff] %vm1744_vm3, %v17171_v1  ;;  %2755 = vst.msk [vmem:[#allocation2 + $0x138] sm:$0xff] %vm1744_vm3, %v17171_v1  ;;  %2517 = vperm.xlu1 %11808, %v2438_v57   ;;  %v2449_v0 = vld [vmem:[%s17158_s1 + $0xa0] sm:$0xff]  ;;  %v2446_v2 = vld [vmem:[%s17158_s1 + $0x88] sm:$0xff] }
  0x28   : > { %10063 = vmatmul.mubr.msk.f32.gmra.mrb[10].mxu0 %vm490_vm1, %v12783_v8  ;;  %2756 = vst.msk [vmem:[#allocation2 + $0x140] sm:$0xff] %vm1744_vm3, %v17171_v1  ;;  %2757 = vst.msk [vmem:[#allocation2 + $0x148] sm:$0xff] %vm1744_vm3, %v17171_v1  ;;  %v2451_v3 = vld [vmem:[%s17158_s1 + $0xb0] sm:$0xff]  ;;  %v2448_v4 = vld [vmem:[%s17158_s1 + $0x98] sm:$0xff] }
  0x29   : > { %10065 = vmatprep.mubr.msk.f32.mxu0 %vm12642_vm0, %v17171_v1  ;;  %2758 = vst.msk [vmem:[#allocation2 + $0x150] sm:$0xff] %vm1744_vm3, %v17171_v1  ;;  %2759 = vst.msk [vmem:[#allocation2 + $0x158] sm:$0xff] %vm1744_vm3, %v17171_v1  ;;  %10188 = vmatmul.mubr.msk.f32.gmra.mrb[10].mxu1 %vm490_vm1, %v12783_v8  ;;  %v2453_v5 = vld [vmem:[%s17158_s1 + $0xc0] sm:$0xff]  ;;  %v2450_v6 = vld [vmem:[%s17158_s1 + $0xa8] sm:$0xff] }
  0x2a   : > { %2760 = vst.msk [vmem:[#allocation2 + $0x160] sm:$0xff] %vm1744_vm3, %v17171_v1  ;;  %2532 = vperm.xlu0 %11807, %v2441_v56   ;;  %10190 = vmatprep.mubr.msk.f32.mxu1 %vm12642_vm0, %v17171_v1  ;;  %v2455_v7 = vld [vmem:[%s17158_s1 + $0xd0] sm:$0xff]  ;;  %v2452_v8 = vld [vmem:[%s17158_s1 + $0xb8] sm:$0xff]  ;;  %v2461_v44 = vld [vmem:[%s17158_s1 + $0x100] sm:$0xff] }
  0x2b   : > { %2527 = vperm.xlu1 %11808, %v2440_v59   ;;  %v2456_v42 = vld [vmem:[%s17158_s1 + $0xd8] sm:$0xff]  ;;  %v2458_v50 = vld [vmem:[%s17158_s1 + $0xe8] sm:$0xff]  ;;  %v2463_v51 = vld [vmem:[%s17158_s1 + $0x110] sm:$0xff] }
  0x2c   : > { %10066 = vmatmul.mubr.msk.f32.gmra.mrb[12].mxu0 %vm490_vm1, %v12790_v9  ;;  %v2460_v55 = vld [vmem:[%s17158_s1 + $0xf8] sm:$0xff]  ;;  %v2465_v56 = vld [vmem:[%s17158_s1 + $0x120] sm:$0xff] }
  0x2d   : > { %10068 = vmatprep.mubr.msk.f32.mxu0 %vm12642_vm0, %v17171_v1  ;;  %10191 = vmatmul.mubr.msk.f32.gmra.mrb[12].mxu1 %vm490_vm1, %v12790_v9  ;;  %v2457_v9 = vld [vmem:[%s17158_s1 + $0xe0] sm:$0xff] }
  0x2e   : > { %2542 = vperm.xlu0 %11807, %v2443_v58   ;;  %10193 = vmatprep.mubr.msk.f32.mxu1 %vm12642_vm0, %v17171_v1  ;;  %v8901_v58 = vld [vmem:[%s17165_s8 + $0x4] sm:$0xf] }
  0x2f   : > { %2537 = vperm.xlu1 %11808, %v2442_v61   ;;  %10421 = vmatpush3.msk.msra.mxu1 %vm1868_vm2, %v8901_v58  ;;  %v2462_v61 = vld [vmem:[%s17158_s1 + $0x108] sm:$0xff] }
  0x30   : > { %10069 = vmatmul.mubr.msk.f32.gmra.mrb[14].mxu0 %vm490_vm1, %v12797_v10  ;;  %10670 = vmatprep.subr.mxu1 %v17171_v1 }
  0x31   : > { %10071 = vmatprep.mubr.msk.f32.mxu0 %vm12642_vm0, %v17171_v1  ;;  %10194 = vmatmul.mubr.msk.f32.gmra.mrb[14].mxu1 %vm490_vm1, %v12797_v10  ;;  %v2454_v10 = vld [vmem:[%s17158_s1 + $0xc8] sm:$0xff] }
  0x32   : > { %2552 = vperm.xlu0 %11807, %v2445_v60   ;;  %10196 = vmatprep.mubr.msk.f32.mxu1 %vm12642_vm0, %v17171_v1 }
  0x33   : > { %2547 = vperm.xlu1 %11808, %v2444_v63  }
  0x34   : > { %10072 = vmatmul.mubr.msk.f32.gmra.mrb[16].mxu0 %vm490_vm1, %v12804_v11 }
  0x35   : > { %10074 = vmatprep.mubr.msk.f32.mxu0 %vm12642_vm0, %v17171_v1  ;;  %10197 = vmatmul.mubr.msk.f32.gmra.mrb[16].mxu1 %vm490_vm1, %v12804_v11  ;;  %v2459_v11 = vld [vmem:[%s17158_s1 + $0xf0] sm:$0xff] }
  0x36   : > { %2562 = vperm.xlu0 %11807, %v2447_v62   ;;  %10199 = vmatprep.mubr.msk.f32.mxu1 %vm12642_vm0, %v17171_v1  ;;  %v2467_v62 = vld [vmem:[%s17158_s1 + $0x130] sm:$0xff] }
  0x37   : > { %2557 = vperm.xlu1 %11808, %v2446_v2  }
  0x38   : > { %10075 = vmatmul.mubr.msk.f32.gmra.mrb[18].mxu0 %vm490_vm1, %v12811_v12 }
  0x39   : > { %10077 = vmatprep.mubr.msk.f32.mxu0 %vm12642_vm0, %v17171_v1  ;;  %10200 = vmatmul.mubr.msk.f32.gmra.mrb[18].mxu1 %vm490_vm1, %v12811_v12  ;;  %v13260_v12 = vld [vmem:[%s17160_s3] ss:$0 sm:$0xff] }
  0x3a   : > { %2572 = vperm.xlu0 %11807, %v2449_v0   ;;  %10202 = vmatprep.mubr.msk.f32.mxu1 %vm12642_vm0, %v17171_v1 }
  0x3b   : > { %2567 = vperm.xlu1 %11808, %v2448_v4  }
  0x3c   : > { %10078 = vmatmul.mubr.msk.f32.gmra.mrb[20].mxu0 %vm490_vm1, %v12818_v13 }
  0x3d   : > { %10080 = vmatprep.mubr.msk.f32.mxu0 %vm12642_vm0, %v17171_v1  ;;  %10203 = vmatmul.mubr.msk.f32.gmra.mrb[20].mxu1 %vm490_vm1, %v12818_v13 }
  0x3e   : > { %2582 = vperm.xlu0 %11807, %v2451_v3   ;;  %10205 = vmatprep.mubr.msk.f32.mxu1 %vm12642_vm0, %v17171_v1 }
  0x3f   : > { %2577 = vperm.xlu1 %11808, %v2450_v6   ;;  %v2469_v6 = vld [vmem:[%s17158_s1 + $0x140] sm:$0xf] }
  0x40   : > { %10081 = vmatmul.mubr.msk.f32.gmra.mrb[22].mxu0 %vm490_vm1, %v12825_v14 }
  0x41   : > { %10083 = vmatprep.mubr.msk.f32.mxu0 %vm12642_vm0, %v17171_v1  ;;  %10206 = vmatmul.mubr.msk.f32.gmra.mrb[22].mxu1 %vm490_vm1, %v12825_v14 }
  0x42   : > { %2592 = vperm.xlu0 %11807, %v2453_v5   ;;  %10208 = vmatprep.mubr.msk.f32.mxu1 %vm12642_vm0, %v17171_v1  ;;  %v2464_v5 = vld [vmem:[%s17158_s1 + $0x118] sm:$0xff] }
  0x43   : > { %2587 = vperm.xlu1 %11808, %v2452_v8  }
  0x44   : > { %10084 = vmatmul.mubr.msk.f32.gmra.mrb[24].mxu0 %vm490_vm1, %v12832_v15 }
  0x45   : > { %10086 = vmatprep.mubr.msk.f32.mxu0 %vm12642_vm0, %v17171_v1  ;;  %10209 = vmatmul.mubr.msk.f32.gmra.mrb[24].mxu1 %vm490_vm1, %v12832_v15 }
  0x46   : > { %2602 = vperm.xlu0 %11807, %v2455_v7   ;;  %10211 = vmatprep.mubr.msk.f32.mxu1 %vm12642_vm0, %v17171_v1 }
  0x47   : > { %2597 = vperm.xlu1 %11808, %v2454_v10  }
  0x48   : > { %10087 = vmatmul.mubr.msk.f32.gmra.mrb[26].mxu0 %vm490_vm1, %v12839_v16 }
  0x49   : > { %10089 = vmatprep.mubr.msk.f32.mxu0 %vm12642_vm0, %v17171_v1  ;;  %10212 = vmatmul.mubr.msk.f32.gmra.mrb[26].mxu1 %vm490_vm1, %v12839_v16 }
  0x4a   : > { %2612 = vperm.xlu0 %11807, %v2457_v9   ;;  %10214 = vmatprep.mubr.msk.f32.mxu1 %vm12642_vm0, %v17171_v1 }
  0x4b   : > { %2607 = vperm.xlu1 %11808, %v2456_v42  }
  0x4c   : > { %10090 = vmatmul.mubr.msk.f32.gmra.mrb[28].mxu0 %vm490_vm1, %v12846_v17 }
  0x4d   : > { %10092 = vmatprep.mubr.msk.f32.mxu0 %vm12642_vm0, %v17171_v1  ;;  %10215 = vmatmul.mubr.msk.f32.gmra.mrb[28].mxu1 %vm490_vm1, %v12846_v17 }
  0x4e   : > { %2622 = vperm.xlu0 %11807, %v2459_v11   ;;  %10217 = vmatprep.mubr.msk.f32.mxu1 %vm12642_vm0, %v17171_v1 }
  0x4f   : > { %2617 = vperm.xlu1 %11808, %v2458_v50   ;;  %v2468_v50 = vld [vmem:[%s17158_s1 + $0x138] sm:$0xff] }
  0x50   : > { %10093 = vmatmul.mubr.msk.f32.gmra.mrb[30].mxu0 %vm490_vm1, %v12853_v18 }
  0x51   : > { %10095 = vmatprep.mubr.msk.f32.mxu0 %vm12642_vm0, %v17171_v1  ;;  %10218 = vmatmul.mubr.msk.f32.gmra.mrb[30].mxu1 %vm490_vm1, %v12853_v18 }
  0x52   : > { %2632 = vperm.xlu0 %11807, %v2461_v44   ;;  %10220 = vmatprep.mubr.msk.f32.mxu1 %vm12642_vm0, %v17171_v1 }
  0x53   : > { %2627 = vperm.xlu1 %11808, %v2460_v55  }
  0x54   : > { %10096 = vmatmul.mubr.msk.f32.gmra.mrb[32].mxu0 %vm490_vm1, %v12860_v19 }
  0x55   : > { %10098 = vmatprep.mubr.msk.f32.mxu0 %vm12642_vm0, %v17171_v1  ;;  %10221 = vmatmul.mubr.msk.f32.gmra.mrb[32].mxu1 %vm490_vm1, %v12860_v19 }
  0x56   : > { %2642 = vperm.xlu0 %11807, %v2463_v51   ;;  %10223 = vmatprep.mubr.msk.f32.mxu1 %vm12642_vm0, %v17171_v1 }
  0x57   : > { %2637 = vperm.xlu1 %11808, %v2462_v61  }
  0x58   : > { %10099 = vmatmul.mubr.msk.f32.gmra.mrb[34].mxu0 %vm490_vm1, %v12867_v20 }
  0x59   : > { %10101 = vmatprep.mubr.msk.f32.mxu0 %vm12642_vm0, %v17171_v1  ;;  %10224 = vmatmul.mubr.msk.f32.gmra.mrb[34].mxu1 %vm490_vm1, %v12867_v20 }
  0x5a   : > { %2652 = vperm.xlu0 %11807, %v2465_v56   ;;  %10226 = vmatprep.mubr.msk.f32.mxu1 %vm12642_vm0, %v17171_v1 }
  0x5b   : > { %2647 = vperm.xlu1 %11808, %v2464_v5  }
  0x5c   : > { %10102 = vmatmul.mubr.msk.f32.gmra.mrb[36].mxu0 %vm490_vm1, %v12874_v21 }
  0x5d   : > { %10104 = vmatprep.mubr.msk.f32.mxu0 %vm12642_vm0, %v17171_v1  ;;  %10227 = vmatmul.mubr.msk.f32.gmra.mrb[36].mxu1 %vm490_vm1, %v12874_v21 }
  0x5e   : > { %2662 = vperm.xlu0 %11807, %v2467_v62   ;;  %10229 = vmatprep.mubr.msk.f32.mxu1 %vm12642_vm0, %v17171_v1 }
  0x60   : > { %10105 = vmatmul.mubr.msk.f32.gmra.mrb[38].mxu0 %vm490_vm1, %v12881_v22 }
  0x61   : > { %10107 = vmatprep.mubr.msk.f32.mxu0 %vm12642_vm0, %v17171_v1  ;;  %10230 = vmatmul.mubr.msk.f32.gmra.mrb[38].mxu1 %vm490_vm1, %v12881_v22 }
  0x62   : > { %2672 = vperm.xlu0 %11807, %v2469_v6   ;;  %10232 = vmatprep.mubr.msk.f32.mxu1 %vm12642_vm0, %v17171_v1 }
  0x64   : > { %10108 = vmatmul.mubr.msk.f32.gmra.mrb[40].mxu0 %vm490_vm1, %v12888_v23 }
  0x65   : > { %10110 = vmatprep.mubr.msk.f32.mxu0 %vm12642_vm0, %v17171_v1  ;;  %10233 = vmatmul.mubr.msk.f32.gmra.mrb[40].mxu1 %vm490_vm1, %v12888_v23 }
  0x66   : > { %10235 = vmatprep.mubr.msk.f32.mxu1 %vm12642_vm0, %v17171_v1 }
  0x68   : > { %10111 = vmatmul.mubr.msk.f32.gmra.mrb[42].mxu0 %vm490_vm1, %v12895_v24 }
  0x69   : > { %10113 = vmatprep.mubr.msk.f32.mxu0 %vm12642_vm0, %v17171_v1  ;;  %10236 = vmatmul.mubr.msk.f32.gmra.mrb[42].mxu1 %vm490_vm1, %v12895_v24 }
  0x6a   : > { %10238 = vmatprep.mubr.msk.f32.mxu1 %vm12642_vm0, %v17171_v1 }
  0x6c   : > { %10114 = vmatmul.mubr.msk.f32.gmra.mrb[44].mxu0 %vm490_vm1, %v12902_v25 }
  0x6d   : > { %10116 = vmatprep.mubr.msk.f32.mxu0 %vm12642_vm0, %v17171_v1  ;;  %10239 = vmatmul.mubr.msk.f32.gmra.mrb[44].mxu1 %vm490_vm1, %v12902_v25 }
  0x6e   : > { %10241 = vmatprep.mubr.msk.f32.mxu1 %vm12642_vm0, %v17171_v1 }
  0x70   : > { %10117 = vmatmul.mubr.msk.f32.gmra.mrb[46].mxu0 %vm490_vm1, %v12909_v26 }
  0x71   : > { %10119 = vmatprep.mubr.msk.f32.mxu0 %vm12642_vm0, %v17171_v1  ;;  %10242 = vmatmul.mubr.msk.f32.gmra.mrb[46].mxu1 %vm490_vm1, %v12909_v26 }
  0x72   : > { %10244 = vmatprep.mubr.msk.f32.mxu1 %vm12642_vm0, %v17171_v1 }
  0x74   : > { %10120 = vmatmul.mubr.msk.f32.gmra.mrb[48].mxu0 %vm490_vm1, %v12916_v27 }
  0x75   : > { %10122 = vmatprep.mubr.msk.f32.mxu0 %vm12642_vm0, %v17171_v1  ;;  %10245 = vmatmul.mubr.msk.f32.gmra.mrb[48].mxu1 %vm490_vm1, %v12916_v27 }
  0x76   : > { %10247 = vmatprep.mubr.msk.f32.mxu1 %vm12642_vm0, %v17171_v1 }
  0x78   : > { %10123 = vmatmul.mubr.msk.f32.gmra.mrb[50].mxu0 %vm490_vm1, %v12923_v28 }
  0x79   : > { %10125 = vmatprep.mubr.msk.f32.mxu0 %vm12642_vm0, %v17171_v1  ;;  %10248 = vmatmul.mubr.msk.f32.gmra.mrb[50].mxu1 %vm490_vm1, %v12923_v28 }
  0x7a   : > { %10250 = vmatprep.mubr.msk.f32.mxu1 %vm12642_vm0, %v17171_v1 }
  0x7c   : > { %10126 = vmatmul.mubr.msk.f32.gmra.mrb[52].mxu0 %vm490_vm1, %v12930_v29 }
  0x7d   : > { %10128 = vmatprep.mubr.msk.f32.mxu0 %vm12642_vm0, %v17171_v1  ;;  %10251 = vmatmul.mubr.msk.f32.gmra.mrb[52].mxu1 %vm490_vm1, %v12930_v29 }
  0x7e   : > { %10253 = vmatprep.mubr.msk.f32.mxu1 %vm12642_vm0, %v17171_v1 }
  0x80   : > { %10129 = vmatmul.mubr.msk.f32.gmra.mrb[54].mxu0 %vm490_vm1, %v12937_v30 }
  0x81   : > { %10131 = vmatprep.mubr.msk.f32.mxu0 %vm12642_vm0, %v17171_v1  ;;  %10254 = vmatmul.mubr.msk.f32.gmra.mrb[54].mxu1 %vm490_vm1, %v12937_v30 }
  0x82   : > { %10256 = vmatprep.mubr.msk.f32.mxu1 %vm12642_vm0, %v17171_v1 }
  0x84   : > { %10132 = vmatmul.mubr.msk.f32.gmra.mrb[56].mxu0 %vm490_vm1, %v12944_v31 }
  0x85   : > { %10134 = vmatprep.mubr.msk.f32.mxu0 %vm12642_vm0, %v17171_v1  ;;  %10257 = vmatmul.mubr.msk.f32.gmra.mrb[56].mxu1 %vm490_vm1, %v12944_v31 }
  0x86   : > { %10259 = vmatprep.mubr.msk.f32.mxu1 %vm12642_vm0, %v17171_v1 }
  0x88   : > { %10135 = vmatmul.mubr.msk.f32.gmra.mrb[58].mxu0 %vm490_vm1, %v12951_v32 }
  0x89   : > { %10137 = vmatprep.mubr.msk.f32.mxu0 %vm12642_vm0, %v17171_v1  ;;  %10260 = vmatmul.mubr.msk.f32.gmra.mrb[58].mxu1 %vm490_vm1, %v12951_v32 }
  0x8a   : > { %10262 = vmatprep.mubr.msk.f32.mxu1 %vm12642_vm0, %v17171_v1 }
  0x8c   : > { %10138 = vmatmul.mubr.msk.f32.gmra.mrb[60].mxu0 %vm490_vm1, %v13048_v33 }
  0x8d   : > { %10140 = vmatprep.mubr.msk.f32.mxu0 %vm12642_vm0, %v17171_v1  ;;  %10263 = vmatmul.mubr.msk.f32.gmra.mrb[60].mxu1 %vm490_vm1, %v13048_v33 }
  0x8e   : > { %10265 = vmatprep.mubr.msk.f32.mxu1 %vm12642_vm0, %v17171_v1 }
  0x90   : > { %10141 = vmatmul.mubr.msk.f32.gmra.mrb[62].mxu0 %vm490_vm1, %v13055_v34 }
  0x91   : > { %10143 = vmatprep.mubr.msk.f32.mxu0 %vm12642_vm0, %v17171_v1  ;;  %10266 = vmatmul.mubr.msk.f32.gmra.mrb[62].mxu1 %vm490_vm1, %v13055_v34 }
  0x92   : > { %10268 = vmatprep.mubr.msk.f32.mxu1 %vm12642_vm0, %v17171_v1 }
  0x94   : > { %10144 = vmatmul.mubr.msk.f32.gmra.mrb[64].mxu0 %vm490_vm1, %v13062_v35 }
  0x95   : > { %10146 = vmatprep.mubr.msk.f32.mxu0 %vm12642_vm0, %v17171_v1  ;;  %10269 = vmatmul.mubr.msk.f32.gmra.mrb[64].mxu1 %vm490_vm1, %v13062_v35 }
  0x96   : > { %10271 = vmatprep.mubr.msk.f32.mxu1 %vm12642_vm0, %v17171_v1 }
  0x98   : > { %10147 = vmatmul.mubr.msk.f32.gmra.mrb[66].mxu0 %vm490_vm1, %v13069_v36 }
  0x99   : > { %10149 = vmatprep.mubr.msk.f32.mxu0 %vm12642_vm0, %v17171_v1  ;;  %10272 = vmatmul.mubr.msk.f32.gmra.mrb[66].mxu1 %vm490_vm1, %v13069_v36 }
  0x9a   : > { %10274 = vmatprep.mubr.msk.f32.mxu1 %vm12642_vm0, %v17171_v1 }
  0x9c   : > { %10150 = vmatmul.mubr.msk.f32.gmra.mrb[68].mxu0 %vm490_vm1, %v13076_v37 }
  0x9d   : > { %10152 = vmatprep.mubr.msk.f32.mxu0 %vm12642_vm0, %v17171_v1  ;;  %10275 = vmatmul.mubr.msk.f32.gmra.mrb[68].mxu1 %vm490_vm1, %v13076_v37 }
  0x9e   : > { %10277 = vmatprep.mubr.msk.f32.mxu1 %vm12642_vm0, %v17171_v1 }
  0xa0   : > { %10153 = vmatmul.mubr.msk.f32.gmra.mrb[70].mxu0 %vm490_vm1, %v13083_v38 }
  0xa1   : > { %10155 = vmatprep.mubr.msk.f32.mxu0 %vm12642_vm0, %v17171_v1  ;;  %10278 = vmatmul.mubr.msk.f32.gmra.mrb[70].mxu1 %vm490_vm1, %v13083_v38 }
  0xa2   : > { %10280 = vmatprep.mubr.msk.f32.mxu1 %vm12642_vm0, %v17171_v1 }
  0xa4   : > { %10156 = vmatmul.mubr.msk.f32.gmra.mrb[72].mxu0 %vm490_vm1, %v13090_v39 }
  0xa5   : > { %10158 = vmatprep.mubr.msk.f32.mxu0 %vm12642_vm0, %v17171_v1  ;;  %10281 = vmatmul.mubr.msk.f32.gmra.mrb[72].mxu1 %vm490_vm1, %v13090_v39 }
  0xa6   : > { %10283 = vmatprep.mubr.msk.f32.mxu1 %vm12642_vm0, %v17171_v1 }
  0xa8   : > { %10159 = vmatmul.mubr.msk.f32.gmra.mrb[74].mxu0 %vm490_vm1, %v13097_v40 }
  0xa9   : > { %10161 = vmatprep.mubr.msk.f32.mxu0 %vm12642_vm0, %v17171_v1  ;;  %10284 = vmatmul.mubr.msk.f32.gmra.mrb[74].mxu1 %vm490_vm1, %v13097_v40 }
  0xaa   : > { %10286 = vmatprep.mubr.msk.f32.mxu1 %vm12642_vm0, %v17171_v1 }
  0xac   : > { %10162 = vmatmul.mubr.msk.f32.gmra.mrb[76].mxu0 %vm490_vm1, %v13107_v43 }
  0xad   : > { %10164 = vmatprep.mubr.msk.f32.mxu0 %vm12642_vm0, %v17171_v1  ;;  %10287 = vmatmul.mubr.msk.f32.gmra.mrb[76].mxu1 %vm490_vm1, %v13107_v43 }
  0xae   : > { %10289 = vmatprep.mubr.msk.f32.mxu1 %vm12642_vm0, %v17171_v1 }
  0xb0   : > { %10165 = vmatmul.mubr.msk.f32.gmra.mrb[78].mxu0 %vm490_vm1, %v13117_v45 }
  0xb1   : > { %10167 = vmatprep.mubr.msk.f32.mxu0 %vm12642_vm0, %v17171_v1  ;;  %10290 = vmatmul.mubr.msk.f32.gmra.mrb[78].mxu1 %vm490_vm1, %v13117_v45 }
  0xb2   : > { %10292 = vmatprep.mubr.msk.f32.mxu1 %vm12642_vm0, %v17171_v1 }
  0xb4   : > { %10168 = vmatmul.mubr.msk.f32.gmra.mrb[80].mxu0 %vm490_vm1, %v13127_v47 }
  0xb5   : > { %10297 = vmatprep.mubr.msk.f32.mxu0 %vm12642_vm0, %v17171_v1  ;;  %10293 = vmatmul.mubr.msk.f32.gmra.mrb[80].mxu1 %vm490_vm1, %v13127_v47 }
  0xb6   : > { %10422 = vmatprep.mubr.msk.f32.mxu1 %vm12642_vm0, %v17171_v1 }
  0xe7   : > { %v680_v41 = vpop.f32.mrb[0].mxu0 }
  0xe8   : > { %v13271_v13 = vadd.f32 %v13260_v12, %v680_v41  ;;  %v10049_v46 = vpop.f32.mrb[1].mxu0  ;;  %v2466_v41 = vld [vmem:[%s17158_s1 + $0x128] sm:$0xff] }
  0xe9   : > { %2657 = vperm.xlu1 %11808, %v2466_v41  }
  0xea   : > { %v8693_v48 = vmul.f32 -1.442695, %v13271_v13 }
  0xeb   : > { %v685_v49 = vpop.f32.mrb[2].mxu0 }
  0xec   : > { %11809 = vpow2.f32 %v8693_v48  ;;  %v13285_v52 = vadd.f32 %v13260_v12, %v685_v49  ;;  %v10052_v14 = vpop.f32.mrb[3].mxu0 }
  0xed   : > { %2667 = vperm.xlu1 %11808, %v2468_v50  }
  0xee   : > { %v8694_v53 = vmul.f32 -1.442695, %v13285_v52 }
  0xef   : > { %v690_v54 = vpop.f32.mrb[4].mxu0 }
  0xf0   : > { %11811 = vpow2.f32 %v8694_v53  ;;  %v13299_v57 = vadd.f32 %v13260_v12, %v690_v54  ;;  %v10055_v15 = vpop.f32.mrb[5].mxu0 }
  0xf2   : > { %v8695_v59 = vmul.f32 -1.442695, %v13299_v57 }
  0xf3   : > { %v695_v60 = vpop.f32.mrb[6].mxu0 }
  0xf4   : > { %11813 = vpow2.f32 %v8695_v59  ;;  %v13318_v16 = vadd.f32 %v13260_v12, %v695_v60  ;;  %v10058_v63 = vpop.f32.mrb[7].mxu0 }
  0xf6   : > { %v11810_v0 = vpop.eup %11809  ;;  %v8696_v2 = vmul.f32 -1.442695, %v13318_v16 }
  0xf7   : > { %v1007_v3 = vadd.f32 1.0, %v11810_v0  ;;  %v700_v4 = vpop.f32.mrb[8].mxu0 }
  0xf8   : > { %11815 = vpow2.f32 %v8696_v2  ;;  %v13332_v17 = vadd.f32 %v13260_v12, %v700_v4  ;;  %v10061_v7 = vpop.f32.mrb[9].mxu0 }
  0xf9   : > { %11817 = vrcp.f32 %v1007_v3 }
  0xfa   : > { %v11812_v8 = vpop.eup %11811  ;;  %v8697_v9 = vmul.f32 -1.442695, %v13332_v17 }
  0xfb   : > { %v1008_v10 = vadd.f32 1.0, %v11812_v8  ;;  %v705_v11 = vpop.f32.mrb[10].mxu0 }
  0xfc   : > { %11819 = vpow2.f32 %v8697_v9  ;;  %v13343_v42 = vadd.f32 %v13260_v12, %v705_v11  ;;  %v10064_v44 = vpop.f32.mrb[11].mxu0 }
  0xfd   : > { %11821 = vrcp.f32 %v1008_v10 }
  0xfe   : > { %v11814_v18 = vpop.eup %11813  ;;  %v8698_v46 = vmul.f32 -1.442695, %v13343_v42 }
  0xff   : > { %v1009_v48 = vadd.f32 1.0, %v11814_v18  ;;  %v710_v49 = vpop.f32.mrb[12].mxu0 }
 0x100   : > { %11823 = vpow2.f32 %v8698_v46  ;;  %v13354_v51 = vadd.f32 %v13260_v12, %v710_v49  ;;  %v10067_v14 = vpop.f32.mrb[13].mxu0 }
 0x101   : > { %11825 = vrcp.f32 %v1009_v48 }
 0x102   : > { %v11816_v19 = vpop.eup %11815  ;;  %v8699_v53 = vmul.f32 -1.442695, %v13354_v51 }
 0x103   : > { %v11818_v54 = vpop.eup %11817  ;;  %v1010_v55 = vadd.f32 1.0, %v11816_v19  ;;  %v715_v56 = vpop.f32.mrb[14].mxu0 }
 0x104   : > { %v13362_v15 = vmul.f32 %v11818_v54, %v13271_v13  ;;  %11827 = vpow2.f32 %v8699_v53  ;;  %v13365_v58 = vadd.f32 %v13260_v12, %v715_v56  ;;  %v10070_v59 = vpop.f32.mrb[15].mxu0 }
 0x105   : > { %11829 = vrcp.f32 %v1010_v55 }
 0x106   : > { %17214 = vst [vmem:[#allocation3_spill] sm:$0xff] %v13362_v15  ;;  %v11820_v20 = vpop.eup %11819  ;;  %v8700_v60 = vmul.f32 -1.442695, %v13365_v58  ;;  %10298 = vmatmul.mubr.msk.f32.vlgmr.msra.gmra.mrb[82].mxu0 %vm1744_vm3, %v13362_v15 }
 0x107   : > { %v11822_v13 = vpop.eup %11821  ;;  %v1011_v61 = vadd.f32 1.0, %v11820_v20  ;;  %v720_v62 = vpop.f32.mrb[16].mxu0  ;;  %10300 = vmatprep.mubr.msk.f32.mxu0 %vm12642_vm0, %v17171_v1 }
 0x108   : > { %v13377_v63 = vmul.f32 %v11822_v13, %v13285_v52  ;;  %11831 = vpow2.f32 %v8700_v60  ;;  %v13380_v21 = vadd.f32 %v13260_v12, %v720_v62  ;;  %v10073_v0 = vpop.f32.mrb[17].mxu0 }
 0x109   : > { %11833 = vrcp.f32 %v1011_v61 }
 0x10a   : > { %17215 = vst [vmem:[#allocation4_spill] sm:$0xff] %v13377_v63  ;;  %v11824_v2 = vpop.eup %11823  ;;  %v8701_v3 = vmul.f32 -1.442695, %v13380_v21  ;;  %10301 = vmatmul.mubr.msk.f32.gmra.mrb[84].mxu0 %vm1744_vm3, %v13377_v63 }
 0x10b   : > { %v11826_v52 = vpop.eup %11825  ;;  %v1012_v4 = vadd.f32 1.0, %v11824_v2  ;;  %v725_v5 = vpop.f32.mrb[18].mxu0  ;;  %10303 = vmatprep.mubr.msk.f32.mxu0 %vm12642_vm0, %v17171_v1 }
 0x10c   : > { %v13392_v6 = vmul.f32 %v11826_v52, %v13299_v57  ;;  %11835 = vpow2.f32 %v8701_v3  ;;  %v13395_v22 = vadd.f32 %v13260_v12, %v725_v5  ;;  %v10076_v7 = vpop.f32.mrb[19].mxu0 }
 0x10d   : > { %11837 = vrcp.f32 %v1012_v4 }
 0x10e   : > { %17216 = vst [vmem:[#allocation5_spill] sm:$0xff] %v13392_v6  ;;  %v11828_v8 = vpop.eup %11827  ;;  %v8702_v9 = vmul.f32 -1.442695, %v13395_v22  ;;  %10304 = vmatmul.mubr.msk.f32.gmra.mrb[86].mxu0 %vm1744_vm3, %v13392_v6 }
 0x10f   : > { %v11830_v57 = vpop.eup %11829  ;;  %v1013_v10 = vadd.f32 1.0, %v11828_v8  ;;  %v730_v11 = vpop.f32.mrb[20].mxu0  ;;  %10306 = vmatprep.mubr.msk.f32.mxu0 %vm12642_vm0, %v17171_v1 }
 0x110   : > { %v13407_v41 = vmul.f32 %v11830_v57, %v13318_v16  ;;  %11839 = vpow2.f32 %v8702_v9  ;;  %v13410_v23 = vadd.f32 %v13260_v12, %v730_v11  ;;  %v10079_v44 = vpop.f32.mrb[21].mxu0 }
 0x111   : > { %11841 = vrcp.f32 %v1013_v10 }
 0x112   : > { %17217 = vst [vmem:[#allocation6_spill] sm:$0xff] %v13407_v41  ;;  %v11832_v18 = vpop.eup %11831  ;;  %v8703_v46 = vmul.f32 -1.442695, %v13410_v23  ;;  %10307 = vmatmul.mubr.msk.f32.gmra.mrb[88].mxu0 %vm1744_vm3, %v13407_v41 }
 0x113   : > { %v11834_v16 = vpop.eup %11833  ;;  %v1014_v48 = vadd.f32 1.0, %v11832_v18  ;;  %v735_v49 = vpop.f32.mrb[22].mxu0  ;;  %10309 = vmatprep.mubr.msk.f32.mxu0 %vm12642_vm0, %v17171_v1 }
 0x114   : > { %v13422_v50 = vmul.f32 %v11834_v16, %v13332_v17  ;;  %11843 = vpow2.f32 %v8703_v46  ;;  %v13425_v24 = vadd.f32 %v13260_v12, %v735_v49  ;;  %v10082_v14 = vpop.f32.mrb[23].mxu0 }
 0x115   : > { %11845 = vrcp.f32 %v1014_v48 }
 0x116   : > { %17218 = vst [vmem:[#allocation7_spill] sm:$0xff] %v13422_v50  ;;  %v11836_v19 = vpop.eup %11835  ;;  %v8704_v53 = vmul.f32 -1.442695, %v13425_v24  ;;  %10310 = vmatmul.mubr.msk.f32.gmra.mrb[90].mxu0 %vm1744_vm3, %v13422_v50 }
 0x117   : > { %v11838_v17 = vpop.eup %11837  ;;  %v1015_v54 = vadd.f32 1.0, %v11836_v19  ;;  %v740_v55 = vpop.f32.mrb[24].mxu0  ;;  %10312 = vmatprep.mubr.msk.f32.mxu0 %vm12642_vm0, %v17171_v1 }
 0x118   : > { %v13437_v56 = vmul.f32 %v11838_v17, %v13343_v42  ;;  %11847 = vpow2.f32 %v8704_v53  ;;  %v13440_v25 = vadd.f32 %v13260_v12, %v740_v55  ;;  %v10085_v59 = vpop.f32.mrb[25].mxu0 }
 0x119   : > { %11849 = vrcp.f32 %v1015_v54 }
 0x11a   : > { %17219 = vst [vmem:[#allocation8_spill] sm:$0xff] %v13437_v56  ;;  %v11840_v20 = vpop.eup %11839  ;;  %v8705_v60 = vmul.f32 -1.442695, %v13440_v25  ;;  %10313 = vmatmul.mubr.msk.f32.gmra.mrb[92].mxu0 %vm1744_vm3, %v13437_v56 }
 0x11b   : > { %v11842_v42 = vpop.eup %11841  ;;  %v1016_v13 = vadd.f32 1.0, %v11840_v20  ;;  %v745_v61 = vpop.f32.mrb[26].mxu0  ;;  %10315 = vmatprep.mubr.msk.f32.mxu0 %vm12642_vm0, %v17171_v1 }
 0x11c   : > { %v13452_v62 = vmul.f32 %v11842_v42, %v13354_v51  ;;  %11851 = vpow2.f32 %v8705_v60  ;;  %v13455_v26 = vadd.f32 %v13260_v12, %v745_v61  ;;  %v10088_v0 = vpop.f32.mrb[27].mxu0 }
 0x11d   : > { %11853 = vrcp.f32 %v1016_v13 }
 0x11e   : > { %17220 = vst [vmem:[#allocation9_spill] sm:$0xff] %v13452_v62  ;;  %v11844_v2 = vpop.eup %11843  ;;  %v8706_v3 = vmul.f32 -1.442695, %v13455_v26  ;;  %10316 = vmatmul.mubr.msk.f32.gmra.mrb[94].mxu0 %vm1744_vm3, %v13452_v62 }
 0x11f   : > { %v11846_v51 = vpop.eup %11845  ;;  %v1017_v52 = vadd.f32 1.0, %v11844_v2  ;;  %v750_v4 = vpop.f32.mrb[28].mxu0  ;;  %10318 = vmatprep.mubr.msk.f32.mxu0 %vm12642_vm0, %v17171_v1 }
 0x120   : > { %v13467_v5 = vmul.f32 %v11846_v51, %v13365_v58  ;;  %11855 = vpow2.f32 %v8706_v3  ;;  %v13470_v27 = vadd.f32 %v13260_v12, %v750_v4  ;;  %v10091_v7 = vpop.f32.mrb[29].mxu0 }
 0x121   : > { %11857 = vrcp.f32 %v1017_v52 }
 0x122   : > { %17221 = vst [vmem:[#allocation10_spill] sm:$0xff] %v13467_v5  ;;  %v11848_v8 = vpop.eup %11847  ;;  %v8707_v9 = vmul.f32 -1.442695, %v13470_v27  ;;  %10319 = vmatmul.mubr.msk.f32.gmra.mrb[96].mxu0 %vm1744_vm3, %v13467_v5 }
 0x123   : > { %v11850_v58 = vpop.eup %11849  ;;  %v1018_v57 = vadd.f32 1.0, %v11848_v8  ;;  %v755_v10 = vpop.f32.mrb[30].mxu0  ;;  %10321 = vmatprep.mubr.msk.f32.mxu0 %vm12642_vm0, %v17171_v1 }
 0x124   : > { %v13482_v11 = vmul.f32 %v11850_v58, %v13380_v21  ;;  %11859 = vpow2.f32 %v8707_v9  ;;  %v13485_v28 = vadd.f32 %v13260_v12, %v755_v10  ;;  %v10094_v44 = vpop.f32.mrb[31].mxu0 }
 0x125   : > { %11861 = vrcp.f32 %v1018_v57 }
 0x126   : > { %17222 = vst [vmem:[#allocation11_spill] sm:$0xff] %v13482_v11  ;;  %v11852_v18 = vpop.eup %11851  ;;  %v8708_v46 = vmul.f32 -1.442695, %v13485_v28  ;;  %10322 = vmatmul.mubr.msk.f32.gmra.mrb[98].mxu0 %vm1744_vm3, %v13482_v11 }
 0x127   : > { %v11854_v21 = vpop.eup %11853  ;;  %v1019_v16 = vadd.f32 1.0, %v11852_v18  ;;  %v760_v48 = vpop.f32.mrb[32].mxu0  ;;  %10324 = vmatprep.mubr.msk.f32.mxu0 %vm12642_vm0, %v17171_v1 }
 0x128   : > { %v13497_v49 = vmul.f32 %v11854_v21, %v13395_v22  ;;  %11863 = vpow2.f32 %v8708_v46  ;;  %v13500_v29 = vadd.f32 %v13260_v12, %v760_v48  ;;  %v10097_v14 = vpop.f32.mrb[33].mxu0 }
 0x129   : > { %11865 = vrcp.f32 %v1019_v16 }
 0x12a   : > { %17223 = vst [vmem:[#allocation12_spill] sm:$0xff] %v13497_v49  ;;  %v11856_v19 = vpop.eup %11855  ;;  %v8709_v53 = vmul.f32 -1.442695, %v13500_v29  ;;  %10325 = vmatmul.mubr.msk.f32.gmra.mrb[100].mxu0 %vm1744_vm3, %v13497_v49 }
 0x12b   : > { %v11858_v22 = vpop.eup %11857  ;;  %v1020_v17 = vadd.f32 1.0, %v11856_v19  ;;  %v765_v54 = vpop.f32.mrb[34].mxu0  ;;  %10327 = vmatprep.mubr.msk.f32.mxu0 %vm12642_vm0, %v17171_v1 }
 0x12c   : > { %v13512_v55 = vmul.f32 %v11858_v22, %v13410_v23  ;;  %11867 = vpow2.f32 %v8709_v53  ;;  %v13515_v30 = vadd.f32 %v13260_v12, %v765_v54  ;;  %v10100_v59 = vpop.f32.mrb[35].mxu0 }
 0x12d   : > { %11869 = vrcp.f32 %v1020_v17 }
 0x12e   : > { %17224 = vst [vmem:[#allocation13_spill] sm:$0xff] %v13512_v55  ;;  %v11860_v20 = vpop.eup %11859  ;;  %v8710_v60 = vmul.f32 -1.442695, %v13515_v30  ;;  %10328 = vmatmul.mubr.msk.f32.gmra.mrb[102].mxu0 %vm1744_vm3, %v13512_v55 }
 0x12f   : > { %v11862_v23 = vpop.eup %11861  ;;  %v1021_v42 = vadd.f32 1.0, %v11860_v20  ;;  %v770_v13 = vpop.f32.mrb[36].mxu0  ;;  %10330 = vmatprep.mubr.msk.f32.mxu0 %vm12642_vm0, %v17171_v1 }
 0x130   : > { %v13527_v61 = vmul.f32 %v11862_v23, %v13425_v24  ;;  %11871 = vpow2.f32 %v8710_v60  ;;  %v13530_v31 = vadd.f32 %v13260_v12, %v770_v13  ;;  %v10103_v0 = vpop.f32.mrb[37].mxu0 }
 0x131   : > { %11873 = vrcp.f32 %v1021_v42 }
 0x132   : > { %17225 = vst [vmem:[#allocation14_spill] sm:$0xff] %v13527_v61  ;;  %v11864_v2 = vpop.eup %11863  ;;  %v8711_v3 = vmul.f32 -1.442695, %v13530_v31  ;;  %10331 = vmatmul.mubr.msk.f32.gmra.mrb[104].mxu0 %vm1744_vm3, %v13527_v61 }
 0x133   : > { %v11866_v24 = vpop.eup %11865  ;;  %v1022_v51 = vadd.f32 1.0, %v11864_v2  ;;  %v775_v52 = vpop.f32.mrb[38].mxu0  ;;  %10333 = vmatprep.mubr.msk.f32.mxu0 %vm12642_vm0, %v17171_v1 }
 0x134   : > { %v13542_v4 = vmul.f32 %v11866_v24, %v13440_v25  ;;  %11875 = vpow2.f32 %v8711_v3  ;;  %v13545_v32 = vadd.f32 %v13260_v12, %v775_v52  ;;  %v10106_v7 = vpop.f32.mrb[39].mxu0 }
 0x135   : > { %11877 = vrcp.f32 %v1022_v51 }
 0x136   : > { %17226 = vst [vmem:[#allocation15_spill] sm:$0xff] %v13542_v4  ;;  %v11868_v8 = vpop.eup %11867  ;;  %v8712_v9 = vmul.f32 -1.442695, %v13545_v32  ;;  %10334 = vmatmul.mubr.msk.f32.gmra.mrb[106].mxu0 %vm1744_vm3, %v13542_v4 }
 0x137   : > { %v11870_v25 = vpop.eup %11869  ;;  %v1023_v58 = vadd.f32 1.0, %v11868_v8  ;;  %v780_v57 = vpop.f32.mrb[40].mxu0  ;;  %10336 = vmatprep.mubr.msk.f32.mxu0 %vm12642_vm0, %v17171_v1 }
 0x138   : > { %v13557_v10 = vmul.f32 %v11870_v25, %v13455_v26  ;;  %11879 = vpow2.f32 %v8712_v9  ;;  %v13560_v33 = vadd.f32 %v13260_v12, %v780_v57  ;;  %v10109_v44 = vpop.f32.mrb[41].mxu0 }
 0x139   : > { %11881 = vrcp.f32 %v1023_v58 }
 0x13a   : > { %17227 = vst [vmem:[#allocation16_spill] sm:$0xff] %v13557_v10  ;;  %v11872_v18 = vpop.eup %11871  ;;  %v8713_v46 = vmul.f32 -1.442695, %v13560_v33  ;;  %10337 = vmatmul.mubr.msk.f32.gmra.mrb[108].mxu0 %vm1744_vm3, %v13557_v10 }
 0x13b   : > { %v11874_v26 = vpop.eup %11873  ;;  %v1024_v21 = vadd.f32 1.0, %v11872_v18  ;;  %v785_v16 = vpop.f32.mrb[42].mxu0  ;;  %10339 = vmatprep.mubr.msk.f32.mxu0 %vm12642_vm0, %v17171_v1 }
 0x13c   : > { %v13572_v48 = vmul.f32 %v11874_v26, %v13470_v27  ;;  %11883 = vpow2.f32 %v8713_v46  ;;  %v13575_v34 = vadd.f32 %v13260_v12, %v785_v16  ;;  %v10112_v14 = vpop.f32.mrb[43].mxu0 }
 0x13d   : > { %11885 = vrcp.f32 %v1024_v21 }
 0x13e   : > { %17228 = vst [vmem:[#allocation17_spill] sm:$0xff] %v13572_v48  ;;  %v11876_v19 = vpop.eup %11875  ;;  %v8714_v53 = vmul.f32 -1.442695, %v13575_v34  ;;  %10340 = vmatmul.mubr.msk.f32.gmra.mrb[110].mxu0 %vm1744_vm3, %v13572_v48 }
 0x13f   : > { %v11878_v27 = vpop.eup %11877  ;;  %v1025_v22 = vadd.f32 1.0, %v11876_v19  ;;  %v790_v17 = vpop.f32.mrb[44].mxu0  ;;  %10342 = vmatprep.mubr.msk.f32.mxu0 %vm12642_vm0, %v17171_v1 }
 0x140   : > { %v13587_v54 = vmul.f32 %v11878_v27, %v13485_v28  ;;  %11887 = vpow2.f32 %v8714_v53  ;;  %v13590_v35 = vadd.f32 %v13260_v12, %v790_v17  ;;  %v10115_v59 = vpop.f32.mrb[45].mxu0 }
 0x141   : > { %11889 = vrcp.f32 %v1025_v22 }
 0x142   : > { %17229 = vst [vmem:[#allocation18_spill] sm:$0xff] %v13587_v54  ;;  %v11880_v20 = vpop.eup %11879  ;;  %v8715_v60 = vmul.f32 -1.442695, %v13590_v35  ;;  %10343 = vmatmul.mubr.msk.f32.gmra.mrb[112].mxu0 %vm1744_vm3, %v13587_v54 }
 0x143   : > { %v11882_v28 = vpop.eup %11881  ;;  %v1026_v23 = vadd.f32 1.0, %v11880_v20  ;;  %v795_v42 = vpop.f32.mrb[46].mxu0  ;;  %10345 = vmatprep.mubr.msk.f32.mxu0 %vm12642_vm0, %v17171_v1 }
 0x144   : > { %v13602_v13 = vmul.f32 %v11882_v28, %v13500_v29  ;;  %11891 = vpow2.f32 %v8715_v60  ;;  %v13605_v36 = vadd.f32 %v13260_v12, %v795_v42  ;;  %v10118_v0 = vpop.f32.mrb[47].mxu0 }
 0x145   : > { %11893 = vrcp.f32 %v1026_v23 }
 0x146   : > { %17230 = vst [vmem:[#allocation19_spill] sm:$0xff] %v13602_v13  ;;  %v11884_v2 = vpop.eup %11883  ;;  %v8716_v3 = vmul.f32 -1.442695, %v13605_v36  ;;  %10346 = vmatmul.mubr.msk.f32.gmra.mrb[114].mxu0 %vm1744_vm3, %v13602_v13 }
 0x147   : > { %v11886_v29 = vpop.eup %11885  ;;  %v1027_v24 = vadd.f32 1.0, %v11884_v2  ;;  %v800_v51 = vpop.f32.mrb[48].mxu0  ;;  %10348 = vmatprep.mubr.msk.f32.mxu0 %vm12642_vm0, %v17171_v1 }
 0x148   : > { %v13617_v52 = vmul.f32 %v11886_v29, %v13515_v30  ;;  %11895 = vpow2.f32 %v8716_v3  ;;  %v13620_v37 = vadd.f32 %v13260_v12, %v800_v51  ;;  %v10121_v7 = vpop.f32.mrb[49].mxu0 }
 0x149   : > { %11897 = vrcp.f32 %v1027_v24 }
 0x14a   : > { %17231 = vst [vmem:[#allocation20_spill] sm:$0xff] %v13617_v52  ;;  %v11888_v8 = vpop.eup %11887  ;;  %v8717_v9 = vmul.f32 -1.442695, %v13620_v37  ;;  %10349 = vmatmul.mubr.msk.f32.gmra.mrb[116].mxu0 %vm1744_vm3, %v13617_v52 }
 0x14b   : > { %v11890_v30 = vpop.eup %11889  ;;  %v1028_v25 = vadd.f32 1.0, %v11888_v8  ;;  %v805_v58 = vpop.f32.mrb[50].mxu0  ;;  %10351 = vmatprep.mubr.msk.f32.mxu0 %vm12642_vm0, %v17171_v1 }
 0x14c   : > { %v13632_v57 = vmul.f32 %v11890_v30, %v13530_v31  ;;  %11899 = vpow2.f32 %v8717_v9  ;;  %v13635_v38 = vadd.f32 %v13260_v12, %v805_v58  ;;  %v10124_v44 = vpop.f32.mrb[51].mxu0 }
 0x14d   : > { %11901 = vrcp.f32 %v1028_v25 }
 0x14e   : > { %17232 = vst [vmem:[#allocation21_spill] sm:$0xff] %v13632_v57  ;;  %v11892_v18 = vpop.eup %11891  ;;  %v8718_v46 = vmul.f32 -1.442695, %v13635_v38  ;;  %10352 = vmatmul.mubr.msk.f32.gmra.mrb[118].mxu0 %vm1744_vm3, %v13632_v57 }
 0x14f   : > { %v11894_v31 = vpop.eup %11893  ;;  %v1029_v26 = vadd.f32 1.0, %v11892_v18  ;;  %v810_v21 = vpop.f32.mrb[52].mxu0  ;;  %10354 = vmatprep.mubr.msk.f32.mxu0 %vm12642_vm0, %v17171_v1 }
 0x150   : > { %v13647_v16 = vmul.f32 %v11894_v31, %v13545_v32  ;;  %11903 = vpow2.f32 %v8718_v46  ;;  %v13650_v39 = vadd.f32 %v13260_v12, %v810_v21  ;;  %v10127_v14 = vpop.f32.mrb[53].mxu0 }
 0x151   : > { %11905 = vrcp.f32 %v1029_v26 }
 0x152   : > { %17233 = vst [vmem:[#allocation22_spill] sm:$0xff] %v13647_v16  ;;  %v11896_v19 = vpop.eup %11895  ;;  %v8719_v53 = vmul.f32 -1.442695, %v13650_v39  ;;  %10355 = vmatmul.mubr.msk.f32.gmra.mrb[120].mxu0 %vm1744_vm3, %v13647_v16  ;;  %v2473_v16 = vpop.permute.xlu0 %2472 }
 0x153   : > { %v11898_v32 = vpop.eup %11897  ;;  %v1030_v27 = vadd.f32 1.0, %v11896_v19  ;;  %v815_v22 = vpop.f32.mrb[54].mxu0  ;;  %10357 = vmatprep.mubr.msk.f32.mxu0 %vm12642_vm0, %v17171_v1 }
 0x154   : > { %v13662_v17 = vmul.f32 %v11898_v32, %v13560_v33  ;;  %11907 = vpow2.f32 %v8719_v53  ;;  %v13665_v40 = vadd.f32 %v13260_v12, %v815_v22  ;;  %v10130_v59 = vpop.f32.mrb[55].mxu0 }
 0x155   : > { %11909 = vrcp.f32 %v1030_v27 }
 0x156   : > { %17234 = vst [vmem:[#allocation23_spill] sm:$0xff] %v13662_v17  ;;  %v11900_v20 = vpop.eup %11899  ;;  %v8720_v60 = vmul.f32 -1.442695, %v13665_v40  ;;  %10358 = vmatmul.mubr.msk.f32.gmra.mrb[122].mxu0 %vm1744_vm3, %v13662_v17 }
 0x157   : > { %v11902_v33 = vpop.eup %11901  ;;  %v1031_v28 = vadd.f32 1.0, %v11900_v20  ;;  %v820_v23 = vpop.f32.mrb[56].mxu0  ;;  %10360 = vmatprep.mubr.msk.f32.mxu0 %vm12642_vm0, %v17171_v1 }
 0x158   : > { %v13677_v42 = vmul.f32 %v11902_v33, %v13575_v34  ;;  %11911 = vpow2.f32 %v8720_v60  ;;  %v13680_v43 = vadd.f32 %v13260_v12, %v820_v23  ;;  %v10133_v0 = vpop.f32.mrb[57].mxu0 }
 0x159   : > { %11913 = vrcp.f32 %v1031_v28 }
 0x15a   : > { %17235 = vst [vmem:[#allocation24_spill] sm:$0xff] %v13677_v42  ;;  %v11904_v2 = vpop.eup %11903  ;;  %v8721_v3 = vmul.f32 -1.442695, %v13680_v43  ;;  %10361 = vmatmul.mubr.msk.f32.gmra.mrb[124].mxu0 %vm1744_vm3, %v13677_v42 }
 0x15b   : > { %v11906_v34 = vpop.eup %11905  ;;  %v1032_v29 = vadd.f32 1.0, %v11904_v2  ;;  %v825_v24 = vpop.f32.mrb[58].mxu0  ;;  %10363 = vmatprep.mubr.msk.f32.mxu0 %vm12642_vm0, %v17171_v1 }
 0x15c   : > { %v13692_v51 = vmul.f32 %v11906_v34, %v13590_v35  ;;  %11915 = vpow2.f32 %v8721_v3  ;;  %v13695_v45 = vadd.f32 %v13260_v12, %v825_v24  ;;  %v10136_v7 = vpop.f32.mrb[59].mxu0 }
 0x15d   : > { %11917 = vrcp.f32 %v1032_v29 }
 0x15e   : > { %17236 = vst [vmem:[#allocation25_spill] sm:$0xff] %v13692_v51  ;;  %v11908_v8 = vpop.eup %11907  ;;  %v8722_v9 = vmul.f32 -1.442695, %v13695_v45  ;;  %10364 = vmatmul.mubr.msk.f32.gmra.mrb[126].mxu0 %vm1744_vm3, %v13692_v51 }
 0x15f   : > { %v11910_v35 = vpop.eup %11909  ;;  %v1033_v30 = vadd.f32 1.0, %v11908_v8  ;;  %v830_v25 = vpop.f32.mrb[60].mxu0  ;;  %10366 = vmatprep.mubr.msk.f32.mxu0 %vm12642_vm0, %v17171_v1 }
 0x160   : > { %v13707_v58 = vmul.f32 %v11910_v35, %v13605_v36  ;;  %11919 = vpow2.f32 %v8722_v9  ;;  %v13710_v47 = vadd.f32 %v13260_v12, %v830_v25  ;;  %v10139_v44 = vpop.f32.mrb[61].mxu0 }
 0x161   : > { %11921 = vrcp.f32 %v1033_v30 }
 0x162   : > { %17237 = vst [vmem:[#allocation26_spill] sm:$0xff] %v13707_v58  ;;  %v11912_v18 = vpop.eup %11911  ;;  %v8723_v46 = vmul.f32 -1.442695, %v13710_v47  ;;  %10367 = vmatmul.mubr.msk.f32.gmra.mrb[128].mxu0 %vm1744_vm3, %v13707_v58 }
 0x163   : > { %v11914_v31 = vpop.eup %11913  ;;  %v1034_v26 = vadd.f32 1.0, %v11912_v18  ;;  %v835_v21 = vpop.f32.mrb[62].mxu0  ;;  %10369 = vmatprep.mubr.msk.f32.mxu0 %vm12642_vm0, %v17171_v1 }
 0x164   : > { %v13718_v36 = vmul.f32 %v11914_v31, %v13620_v37  ;;  %11923 = vpow2.f32 %v8723_v46  ;;  %v13721_v14 = vadd.f32 %v13260_v12, %v835_v21  ;;  %v10142_v19 = vpop.f32.mrb[63].mxu0 }
 0x165   : > { %11925 = vrcp.f32 %v1034_v26 }
 0x166   : > { %17238 = vst [vmem:[#allocation27_spill] sm:$0xff] %v13718_v36  ;;  %v11916_v53 = vpop.eup %11915  ;;  %v8724_v32 = vmul.f32 -1.442695, %v13721_v14  ;;  %10370 = vmatmul.mubr.msk.f32.gmra.mrb[130].mxu0 %vm1744_vm3, %v13718_v36 }
 0x167   : > { %v11918_v27 = vpop.eup %11917  ;;  %v1035_v22 = vadd.f32 1.0, %v11916_v53  ;;  %v840_v59 = vpop.f32.mrb[64].mxu0  ;;  %10372 = vmatprep.mubr.msk.f32.mxu0 %vm12642_vm0, %v17171_v1 }
 0x168   : > { %v13729_v37 = vmul.f32 %v11918_v27, %v13635_v38  ;;  %11927 = vpow2.f32 %v8724_v32  ;;  %v13732_v20 = vadd.f32 %v13260_v12, %v840_v59  ;;  %v10145_v60 = vpop.f32.mrb[65].mxu0 }
 0x169   : > { %11929 = vrcp.f32 %v1035_v22 }
 0x16a   : > { %17239 = vst [vmem:[#allocation28_spill] sm:$0xff] %v13729_v37  ;;  %v11920_v33 = vpop.eup %11919  ;;  %v8725_v28 = vmul.f32 -1.442695, %v13732_v20  ;;  %10373 = vmatmul.mubr.msk.f32.gmra.mrb[132].mxu0 %vm1744_vm3, %v13729_v37 }
 0x16b   : > { %v11922_v23 = vpop.eup %11921  ;;  %v1036_v0 = vadd.f32 1.0, %v11920_v33  ;;  %v845_v2 = vpop.f32.mrb[66].mxu0  ;;  %10375 = vmatprep.mubr.msk.f32.mxu0 %vm12642_vm0, %v17171_v1  ;;  %v2846_v33 = vld [vmem:[%s17165_s8] sm:$0xf] }
 0x16c   : > { %v13740_v38 = vmul.f32 %v11922_v23, %v13650_v39  ;;  %11931 = vpow2.f32 %v8725_v28  ;;  %v13743_v3 = vadd.f32 %v13260_v12, %v845_v2  ;;  %v10148_v34 = vpop.f32.mrb[67].mxu0  ;;  %v2847_v28 = vld [vmem:[#allocation2 + $0x6] sm:$0xff]  ;;  %10546 = vmatpush3.msk.msra.mxu0 %vm1868_vm2, %v2846_v33 }
 0x16d   : > { %11933 = vrcp.f32 %v1036_v0  ;;  %10423 = vmatmul.mubr.msk.f32.vlgmr.msra.gmra.mrb[82].mxu1 %vm1744_vm3, %v2847_v28  ;;  %10795 = vmatprep.subr.mxu0 %v17171_v1 }
 0x16e   : > { %17240 = vst [vmem:[#allocation29_spill] sm:$0xff] %v13740_v38  ;;  %v11924_v29 = vpop.eup %11923  ;;  %v8726_v24 = vmul.f32 -1.442695, %v13743_v3  ;;  %10376 = vmatmul.mubr.msk.f32.gmra.mrb[134].mxu0 %vm1744_vm3, %v13740_v38  ;;  %10425 = vmatprep.mubr.msk.f32.mxu1 %vm12642_vm0, %v17171_v1 }
 0x16f   : > { %v11926_v7 = vpop.eup %11925  ;;  %v1037_v8 = vadd.f32 1.0, %v11924_v29  ;;  %v850_v9 = vpop.f32.mrb[68].mxu0  ;;  %10378 = vmatprep.mubr.msk.f32.mxu0 %vm12642_vm0, %v17171_v1 }
 0x170   : > { %v13751_v39 = vmul.f32 %v11926_v7, %v13665_v40  ;;  %11935 = vpow2.f32 %v8726_v24  ;;  %v13754_v35 = vadd.f32 %v13260_v12, %v850_v9  ;;  %v10151_v30 = vpop.f32.mrb[69].mxu0 }
 0x171   : > { %11937 = vrcp.f32 %v1037_v8  ;;  %v2848_v8 = vld [vmem:[#allocation2 + $0xe] sm:$0xff] }
 0x172   : > { %17241 = vst [vmem:[#allocation30_spill] sm:$0xff] %v13751_v39  ;;  %v11928_v25 = vpop.eup %11927  ;;  %v8727_v44 = vmul.f32 -1.442695, %v13754_v35  ;;  %10379 = vmatmul.mubr.msk.f32.gmra.mrb[136].mxu0 %vm1744_vm3, %v13751_v39  ;;  %10426 = vmatmul.mubr.msk.f32.gmra.mrb[84].mxu1 %vm1744_vm3, %v2848_v8 }
 0x173   : > { %v11930_v18 = vpop.eup %11929  ;;  %v1038_v46 = vadd.f32 1.0, %v11928_v25  ;;  %v855_v31 = vpop.f32.mrb[70].mxu0  ;;  %10381 = vmatprep.mubr.msk.f32.mxu0 %vm12642_vm0, %v17171_v1  ;;  %10428 = vmatprep.mubr.msk.f32.mxu1 %vm12642_vm0, %v17171_v1 }
 0x174   : > { %v13762_v40 = vmul.f32 %v11930_v18, %v13680_v43  ;;  %11939 = vpow2.f32 %v8727_v44  ;;  %v13765_v26 = vadd.f32 %v13260_v12, %v855_v31  ;;  %v10154_v21 = vpop.f32.mrb[71].mxu0  ;;  %v12629_v18 = vld [vmem:[%s17160_s3] ss:$0 sm:$0xff] }
 0x175   : > { %11941 = vrcp.f32 %v1038_v46 }
 0x176   : > { %17242 = vst [vmem:[#allocation31_spill] sm:$0xff] %v13762_v40  ;;  %v11932_v19 = vpop.eup %11931  ;;  %v8728_v53 = vmul.f32 -1.442695, %v13765_v26  ;;  %10382 = vmatmul.mubr.msk.f32.gmra.mrb[138].mxu0 %vm1744_vm3, %v13762_v40 }
 0x177   : > { %v11934_v32 = vpop.eup %11933  ;;  %v1039_v27 = vadd.f32 1.0, %v11932_v19  ;;  %v860_v22 = vpop.f32.mrb[72].mxu0  ;;  %10384 = vmatprep.mubr.msk.f32.mxu0 %vm12642_vm0, %v17171_v1 }
 0x178   : > { %v13773_v43 = vmul.f32 %v11934_v32, %v13695_v45  ;;  %11943 = vpow2.f32 %v8728_v53  ;;  %v13776_v59 = vadd.f32 %v13260_v12, %v860_v22  ;;  %v10157_v60 = vpop.f32.mrb[73].mxu0 }
 0x179   : > { %11945 = vrcp.f32 %v1039_v27 }
 0x17a   : > { %17243 = vst [vmem:[#allocation32_spill] sm:$0xff] %v13773_v43  ;;  %v11936_v23 = vpop.eup %11935  ;;  %v8729_v0 = vmul.f32 -1.442695, %v13776_v59  ;;  %10385 = vmatmul.mubr.msk.f32.gmra.mrb[140].mxu0 %vm1744_vm3, %v13773_v43 }
 0x17b   : > { %v11938_v45 = vpop.eup %11937  ;;  %v1040_v2 = vadd.f32 1.0, %v11936_v23  ;;  %v865_v34 = vpop.f32.mrb[74].mxu0  ;;  %10387 = vmatprep.mubr.msk.f32.mxu0 %vm12642_vm0, %v17171_v1 }
 0x17c   : > { %v13792_v29 = vmul.f32 %v11938_v45, %v13710_v47  ;;  %11947 = vpow2.f32 %v8729_v0  ;;  %v13795_v24 = vadd.f32 %v13260_v12, %v865_v34  ;;  %v10160_v7 = vpop.f32.mrb[75].mxu0 }
 0x17d   : > { %11949 = vrcp.f32 %v1040_v2 }
 0x17e   : > { %17244 = vst [vmem:[#allocation33_spill] sm:$0xff] %v13792_v29  ;;  %v11940_v9 = vpop.eup %11939  ;;  %v8730_v30 = vmul.f32 -1.442695, %v13795_v24  ;;  %10388 = vmatmul.mubr.msk.f32.gmra.mrb[142].mxu0 %vm1744_vm3, %v13792_v29 }
 0x17f   : > { %v11942_v47 = vpop.eup %11941  ;;  %v1041_v25 = vadd.f32 1.0, %v11940_v9  ;;  %v870_v44 = vpop.f32.mrb[76].mxu0  ;;  %10390 = vmatprep.mubr.msk.f32.mxu0 %vm12642_vm0, %v17171_v1 }
 0x180   : > { %v13806_v12 = vmul.f32 %v11942_v47, %v13721_v14  ;;  %11951 = vpow2.f32 %v8730_v30  ;;  %v13811_v46 = vadd.f32 %v12629_v18, %v870_v44  ;;  %v10163_v31 = vpop.f32.mrb[77].mxu0 }
 0x181   : > { %11953 = vrcp.f32 %v1041_v25 }
 0x182   : > { %17245 = vst [vmem:[#allocation34_spill] sm:$0xff] %v13806_v12  ;;  %v11944_v21 = vpop.eup %11943  ;;  %v8731_v19 = vmul.f32 -1.442695, %v13811_v46  ;;  %10391 = vmatmul.mubr.msk.f32.gmra.mrb[144].mxu0 %vm1744_vm3, %v13806_v12 }
 0x183   : > { %v11946_v53 = vpop.eup %11945  ;;  %v1042_v32 = vadd.f32 1.0, %v11944_v21  ;;  %v875_v27 = vpop.f32.mrb[78].mxu0  ;;  %10393 = vmatprep.mubr.msk.f32.mxu0 %vm12642_vm0, %v17171_v1 }
 0x184   : > { %v13819_v14 = vmul.f32 %v11946_v53, %v13732_v20  ;;  %11955 = vpow2.f32 %v8731_v19  ;;  %v13821_v22 = vadd.f32 %v12629_v18, %v875_v27  ;;  %v10166_v60 = vpop.f32.mrb[79].mxu0 }
 0x185   : > { %11957 = vrcp.f32 %v1042_v32 }
 0x186   : > { %17246 = vst [vmem:[#allocation35_spill] sm:$0xff] %v13819_v14  ;;  %v11948_v33 = vpop.eup %11947  ;;  %v8732_v28 = vmul.f32 -1.442695, %v13821_v22  ;;  %10394 = vmatmul.mubr.msk.f32.gmra.mrb[146].mxu0 %vm1744_vm3, %v13819_v14 }
 0x187   : > { %v11950_v23 = vpop.eup %11949  ;;  %v1043_v0 = vadd.f32 1.0, %v11948_v33  ;;  %v880_v45 = vpop.f32.mrb[80].mxu0  ;;  %10396 = vmatprep.mubr.msk.f32.mxu0 %vm12642_vm0, %v17171_v1 }
 0x188   : > { %v13829_v20 = vmul.f32 %v11950_v23, %v13743_v3  ;;  %11959 = vpow2.f32 %v8732_v28  ;;  %v881_v2 = vadd.f32 %v12629_v18, %v880_v45  ;;  %v10169_v34 = vpop.f32.mrb[81].mxu0  ;;  %v13842_v18 = vpop.f32.mrb[0].mxu1 }
 0x189   : > { %11961 = vrcp.f32 %v1043_v0  ;;  %17249 = vst [vmem:[#allocation38_spill] sm:$0xff] %v13842_v18  ;;  %v10174_v21 = vpop.f32.mrb[1].mxu1 }
 0x18a   : > { %17247 = vst [vmem:[#allocation36_spill] sm:$0xff] %v13829_v20  ;;  %v11952_v7 = vpop.eup %11951  ;;  %v8733_v8 = vmul.f32 -1.442695, %v881_v2  ;;  %10397 = vmatmul.mubr.msk.f32.gmra.mrb[148].mxu0 %vm1744_vm3, %v13829_v20  ;;  %v13851_v32 = vpop.f32.mrb[2].mxu1 }
 0x18b   : > { %v11954_v9 = vpop.eup %11953  ;;  %v1044_v30 = vadd.f32 1.0, %v11952_v7  ;;  %10399 = vmatprep.mubr.msk.f32.mxu0 %vm12642_vm0, %v17171_v1  ;;  %17251 = vst [vmem:[#allocation40_spill] sm:$0xff] %v13851_v32  ;;  %v10177_v60 = vpop.f32.mrb[3].mxu1 }
 0x18c   : > { %v13836_v47 = vmul.f32 %v11954_v9, %v13754_v35  ;;  %11963 = vpow2.f32 %v8733_v8  ;;  %v13860_v23 = vpop.f32.mrb[4].mxu1  ;;  %v2806_v60 = vld [vmem:[#allocation2 + $0xd] sm:$0xff] }
 0x18d   : > { %11965 = vrcp.f32 %v1044_v30  ;;  %17253 = vst [vmem:[#allocation42_spill] sm:$0xff] %v13860_v23  ;;  %v10180_v45 = vpop.f32.mrb[5].mxu1 }
 0x18e   : > { %17248 = vst [vmem:[#allocation37_spill] sm:$0xff] %v13836_v47  ;;  %v11956_v3 = vpop.eup %11955  ;;  %10400 = vmatmul.mubr.msk.f32.gmra.mrb[150].mxu0 %vm1744_vm3, %v13836_v47  ;;  %v13873_v7 = vpop.f32.mrb[6].mxu1 }
 0x18f   : > { %v11958_v25 = vpop.eup %11957  ;;  %v1045_v44 = vadd.f32 1.0, %v11956_v3  ;;  %10402 = vmatprep.mubr.msk.f32.mxu0 %vm12642_vm0, %v17171_v1  ;;  %17255 = vst [vmem:[#allocation44_spill] sm:$0xff] %v13873_v7  ;;  %v10183_v8 = vpop.f32.mrb[7].mxu1 }
 0x190   : > { %v13845_v31 = vmul.f32 %v11958_v25, %v13765_v26  ;;  %v13883_v30 = vpop.f32.mrb[8].mxu1 }
 0x191   : > { %11967 = vrcp.f32 %v1045_v44  ;;  %17257 = vst [vmem:[#allocation46_spill] sm:$0xff] %v13883_v30  ;;  %v10186_v25 = vpop.f32.mrb[9].mxu1 }
 0x192   : > { %17250 = vst [vmem:[#allocation39_spill] sm:$0xff] %v13845_v31  ;;  %v11960_v35 = vpop.eup %11959  ;;  %10403 = vmatmul.mubr.msk.f32.gmra.mrb[152].mxu0 %vm1744_vm3, %v13845_v31  ;;  %v13892_v44 = vpop.f32.mrb[10].mxu1 }
 0x193   : > { %v11962_v19 = vpop.eup %11961  ;;  %v1046_v53 = vadd.f32 1.0, %v11960_v35  ;;  %10405 = vmatprep.mubr.msk.f32.mxu0 %vm12642_vm0, %v17171_v1  ;;  %17259 = vst [vmem:[#allocation48_spill] sm:$0xff] %v13892_v44  ;;  %v10189_v35 = vpop.f32.mrb[11].mxu1 }
 0x194   : > { %v13854_v27 = vmul.f32 %v11962_v19, %v13776_v59  ;;  %v8986_v59 = vld [vmem:[%s17165_s8 + $0x8] sm:$0xf]  ;;  %v13900_v19 = vpop.f32.mrb[12].mxu1 }
 0x195   : > { %11969 = vrcp.f32 %v1046_v53  ;;  %10671 = vmatpush3.msk.msra.mxu1 %vm1868_vm2, %v8986_v59  ;;  %17261 = vst [vmem:[#allocation50_spill] sm:$0xff] %v13900_v19  ;;  %v10192_v53 = vpop.f32.mrb[13].mxu1 }
 0x196   : > { %17252 = vst [vmem:[#allocation41_spill] sm:$0xff] %v13854_v27  ;;  %v11964_v26 = vpop.eup %11963  ;;  %10406 = vmatmul.mubr.msk.f32.gmra.mrb[154].mxu0 %vm1744_vm3, %v13854_v27  ;;  %10920 = vmatprep.subr.mxu1 %v17171_v1 }
 0x197   : > { %v11966_v33 = vpop.eup %11965  ;;  %v1047_v28 = vadd.f32 1.0, %v11964_v26  ;;  %10408 = vmatprep.mubr.msk.f32.mxu0 %vm12642_vm0, %v17171_v1  ;;  %v13905_v26 = vpop.f32.mrb[14].mxu1 }
 0x198   : > { %v13863_v0 = vmul.f32 %v11966_v33, %v13795_v24  ;;  %17262 = vst [vmem:[#allocation51_spill] sm:$0xff] %v13905_v26 }
 0x199   : > { %11971 = vrcp.f32 %v1047_v28 }
 0x19a   : > { %17254 = vst [vmem:[#allocation43_spill] sm:$0xff] %v13863_v0  ;;  %10409 = vmatmul.mubr.msk.f32.gmra.mrb[156].mxu0 %vm1744_vm3, %v13863_v0 }
 0x19b   : > { %v11968_v34 = vpop.eup %11967  ;;  %10411 = vmatprep.mubr.msk.f32.mxu0 %vm12642_vm0, %v17171_v1 }
 0x19c   : > { %v13876_v24 = vmul.f32 %v11968_v34, %v13811_v46 }
 0x19e   : > { %17256 = vst [vmem:[#allocation45_spill] sm:$0xff] %v13876_v24  ;;  %10412 = vmatmul.mubr.msk.f32.gmra.mrb[158].mxu0 %vm1744_vm3, %v13876_v24 }
 0x19f   : > { %v11970_v9 = vpop.eup %11969  ;;  %10414 = vmatprep.mubr.msk.f32.mxu0 %vm12642_vm0, %v17171_v1 }
 0x1a0   : > { %v13886_v3 = vmul.f32 %v11970_v9, %v13821_v22  ;;  %v2805_v22 = vld [vmem:[#allocation2 + $0x5] sm:$0xff] }
 0x1a2   : > { %17258 = vst [vmem:[#allocation47_spill] sm:$0xff] %v13886_v3  ;;  %10415 = vmatmul.mubr.msk.f32.gmra.mrb[160].mxu0 %vm1744_vm3, %v13886_v3 }
 0x1a3   : > { %v11972_v46 = vpop.eup %11971  ;;  %10417 = vmatprep.mubr.msk.f32.mxu0 %vm12642_vm0, %v17171_v1 }
 0x1a4   : > { %v13894_v21 = vmul.f32 %v11972_v46, %v881_v2  ;;  %v10195_v2 = vpop.f32.mrb[15].mxu1 }
 0x1a5   : > { %v13910_v33 = vpop.f32.mrb[16].mxu1 }
 0x1a6   : > { %17260 = vst [vmem:[#allocation49_spill] sm:$0xff] %v13894_v21  ;;  %10418 = vmatmul.mubr.msk.f32.gmra.mrb[162].mxu0 %vm1744_vm3, %v13894_v21  ;;  %17263 = vst [vmem:[#allocation52_spill] sm:$0xff] %v13910_v33  ;;  %v10198_v28 = vpop.f32.mrb[17].mxu1 }
 0x1a7   : > { %10547 = vmatprep.mubr.msk.f32.mxu0 %vm12642_vm0, %v17171_v1  ;;  %v13912_v45 = vpop.f32.mrb[18].mxu1 }
 0x1a8   : > { %17264 = vst [vmem:[#allocation53_spill] sm:$0xff] %v13912_v45  ;;  %v10201_v59 = vpop.f32.mrb[19].mxu1 }
 0x1a9   : > { %v13914_v34 = vpop.f32.mrb[20].mxu1 }
 0x1aa   : > { %10548 = vmatmul.mubr.msk.f32.vlgmr.msra.gmra.mrb[164].mxu0 %vm1744_vm3, %v2805_v22  ;;  %17265 = vst [vmem:[#allocation54_spill] sm:$0xff] %v13914_v34  ;;  %v10204_v8 = vpop.f32.mrb[21].mxu1 }
 0x1ab   : > { %10550 = vmatprep.mubr.msk.f32.mxu0 %vm12642_vm0, %v17171_v1  ;;  %v13916_v9 = vpop.f32.mrb[22].mxu1 }
 0x1ac   : > { %17266 = vst [vmem:[#allocation55_spill] sm:$0xff] %v13916_v9  ;;  %v10207_v25 = vpop.f32.mrb[23].mxu1 }
 0x1ad   : > { %v13918_v46 = vpop.f32.mrb[24].mxu1  ;;  %v13933_v25 = vld [vmem:[%s17164_s7] ss:$0 sm:$0xff] }
 0x1ae   : > { %10551 = vmatmul.mubr.msk.f32.gmra.mrb[166].mxu0 %vm1744_vm3, %v2806_v60  ;;  %17267 = vst [vmem:[#allocation56_spill] sm:$0xff] %v13918_v46  ;;  %v10210_v35 = vpop.f32.mrb[25].mxu1 }
 0x1af   : > { %10553 = vmatprep.mubr.msk.f32.mxu0 %vm12642_vm0, %v17171_v1  ;;  %v13920_v22 = vpop.f32.mrb[26].mxu1 }
 0x1b0   : > { %17268 = vst [vmem:[#allocation57_spill] sm:$0xff] %v13920_v22  ;;  %v10213_v53 = vpop.f32.mrb[27].mxu1 }
 0x1b1   : > { %v13922_v60 = vpop.f32.mrb[28].mxu1 }
 0x1b2   : > { %17269 = vst [vmem:[#allocation58_spill] sm:$0xff] %v13922_v60  ;;  %v10216_v2 = vpop.f32.mrb[29].mxu1 }
 0x1b3   : > { %v13924_v1 = vpop.f32.mrb[30].mxu1 }
 0x1b4   : > { %17270 = vst [vmem:[#allocation59_spill] sm:$0xff] %v13924_v1  ;;  %v10219_v28 = vpop.f32.mrb[31].mxu1 }
 0x1b5   : > { %v13926_v21 = vpop.f32.mrb[32].mxu1 }
 0x1b6   : > { %17271 = vst [vmem:[#allocation60_spill] sm:$0xff] %v13926_v21  ;;  %v10222_v59 = vpop.f32.mrb[33].mxu1 }
 0x1b7   : > { %v13928_v3 = vpop.f32.mrb[34].mxu1 }
 0x1b8   : > { %17272 = vst [vmem:[#allocation61_spill] sm:$0xff] %v13928_v3  ;;  %v10225_v8 = vpop.f32.mrb[35].mxu1 }
 0x1b9   : > { %v13935_v35 = vpop.f32.mrb[36].mxu1 }
 0x1ba   : > { %17273 = vst [vmem:[#allocation62_spill] sm:$0xff] %v13935_v35  ;;  %v10228_v53 = vpop.f32.mrb[37].mxu1 }
 0x1bb   : > { %v13938_v27 = vpop.f32.mrb[38].mxu1 }
 0x1bc   : > { %17274 = vst [vmem:[#allocation63_spill] sm:$0xff] %v13938_v27  ;;  %v10231_v31 = vpop.f32.mrb[39].mxu1 }
 0x1bd   : > { %v13943_v20 = vpop.f32.mrb[40].mxu1 }
 0x1be   : > { %17275 = vst [vmem:[#allocation64_spill] sm:$0xff] %v13943_v20  ;;  %v10234_v12 = vpop.f32.mrb[41].mxu1 }
 0x1bf   : > { %v13949_v29 = vpop.f32.mrb[42].mxu1 }
 0x1c0   : > { %17276 = vst [vmem:[#allocation65_spill] sm:$0xff] %v13949_v29 }
 0x1d9   : > { %v1938_v24 = vpop.f32.mrb[82].mxu0 }
 0x1da   : > { %v1939_v2 = vadd.f32 %v13933_v25, %v1938_v24  ;;  %v10299_v0 = vpop.f32.mrb[83].mxu0 }
 0x1dc   : > { %v8860_v28 = vmul.f32 -1.442695, %v1939_v2 }
 0x1dd   : > { %v1943_v59 = vpop.f32.mrb[84].mxu0 }
 0x1de   : > { %11973 = vpow2.f32 %v8860_v28  ;;  %v13941_v8 = vadd.f32 %v13933_v25, %v1943_v59  ;;  %v10302_v47 = vpop.f32.mrb[85].mxu0  ;;  %v10237_v28 = vpop.f32.mrb[43].mxu1 }
 0x1df   : > { %v13955_v40 = vpop.f32.mrb[44].mxu1 }
 0x1e0   : > { %v8861_v14 = vmul.f32 -1.442695, %v13941_v8  ;;  %17277 = vst [vmem:[#allocation66_spill] sm:$0xff] %v13955_v40  ;;  %v10240_v39 = vpop.f32.mrb[45].mxu1 }
 0x1e1   : > { %v1948_v53 = vpop.f32.mrb[86].mxu0  ;;  %v13961_v28 = vpop.f32.mrb[46].mxu1 }
 0x1e2   : > { %11975 = vpow2.f32 %v8861_v14  ;;  %v13947_v24 = vadd.f32 %v13933_v25, %v1948_v53  ;;  %v10305_v0 = vpop.f32.mrb[87].mxu0  ;;  %17278 = vst [vmem:[#allocation67_spill] sm:$0xff] %v13961_v28 }
 0x1e4   : > { %v8862_v31 = vmul.f32 -1.442695, %v13947_v24 }
 0x1e5   : > { %v1953_v43 = vpop.f32.mrb[88].mxu0 }
 0x1e6   : > { %11977 = vpow2.f32 %v8862_v31  ;;  %v13953_v47 = vadd.f32 %v13933_v25, %v1953_v43  ;;  %v10308_v59 = vpop.f32.mrb[89].mxu0 }
 0x1e7   : > { %v10243_v59 = vpop.f32.mrb[47].mxu1 }
 0x1e8   : > { %v11974_v12 = vpop.eup %11973  ;;  %v8863_v14 = vmul.f32 -1.442695, %v13953_v47 }
 0x1e9   : > { %v2265_v53 = vadd.f32 1.0, %v11974_v12  ;;  %v1958_v38 = vpop.f32.mrb[90].mxu0  ;;  %v13967_v12 = vpop.f32.mrb[48].mxu1 }
 0x1ea   : > { %11979 = vpow2.f32 %v8863_v14  ;;  %v13959_v0 = vadd.f32 %v13933_v25, %v1958_v38  ;;  %v10311_v37 = vpop.f32.mrb[91].mxu0  ;;  %17279 = vst [vmem:[#allocation68_spill] sm:$0xff] %v13967_v12  ;;  %v10246_v14 = vpop.f32.mrb[49].mxu1 }
 0x1eb   : > { %11981 = vrcp.f32 %v2265_v53 }
 0x1ec   : > { %v11976_v31 = vpop.eup %11975  ;;  %v8864_v43 = vmul.f32 -1.442695, %v13959_v0 }
 0x1ed   : > { %v2266_v36 = vadd.f32 1.0, %v11976_v31  ;;  %v1963_v58 = vpop.f32.mrb[92].mxu0 }
 0x1ee   : > { %11983 = vpow2.f32 %v8864_v43  ;;  %v13965_v51 = vadd.f32 %v13933_v25, %v1963_v58  ;;  %v10314_v39 = vpop.f32.mrb[93].mxu0  ;;  %v13973_v43 = vpop.f32.mrb[50].mxu1 }
 0x1ef   : > { %11985 = vrcp.f32 %v2266_v36  ;;  %17280 = vst [vmem:[#allocation69_spill] sm:$0xff] %v13973_v43  ;;  %v10249_v36 = vpop.f32.mrb[51].mxu1 }
 0x1f0   : > { %v11978_v38 = vpop.eup %11977  ;;  %v8865_v37 = vmul.f32 -1.442695, %v13965_v51 }
 0x1f1   : > { %v2267_v53 = vadd.f32 1.0, %v11978_v38  ;;  %v1968_v42 = vpop.f32.mrb[94].mxu0 }
 0x1f2   : > { %11987 = vpow2.f32 %v8865_v37  ;;  %v13971_v17 = vadd.f32 %v13933_v25, %v1968_v42  ;;  %v10317_v31 = vpop.f32.mrb[95].mxu0  ;;  %v13979_v42 = vpop.f32.mrb[52].mxu1 }
 0x1f3   : > { %11989 = vrcp.f32 %v2267_v53  ;;  %17281 = vst [vmem:[#allocation70_spill] sm:$0xff] %v13979_v42  ;;  %v10252_v54 = vpop.f32.mrb[53].mxu1 }
 0x1f4   : > { %v11980_v58 = vpop.eup %11979  ;;  %v8866_v59 = vmul.f32 -1.442695, %v13971_v17 }
 0x1f5   : > { %v11982_v39 = vpop.eup %11981  ;;  %v2268_v57 = vadd.f32 1.0, %v11980_v58  ;;  %v1973_v52 = vpop.f32.mrb[96].mxu0 }
 0x1f6   : > { %v2388_v13 = vmul.f32 %v11982_v39, %v1939_v2  ;;  %11991 = vpow2.f32 %v8866_v59  ;;  %v13977_v38 = vadd.f32 %v13933_v25, %v1973_v52  ;;  %v10320_v37 = vpop.f32.mrb[97].mxu0  ;;  %v13987_v59 = vpop.f32.mrb[54].mxu1 }
 0x1f7   : > { %11993 = vrcp.f32 %v2268_v57  ;;  %v2478_v57 = vpop.permute.xlu0 %2477  ;;  %17282 = vst [vmem:[#allocation71_spill] sm:$0xff] %v13987_v59  ;;  %v10255_v39 = vpop.f32.mrb[55].mxu1 }
 0x1f8   : > { %v11984_v14 = vpop.eup %11983  ;;  %v2675_v53 = vmul.f32 %v2473_v16, %v2388_v13  ;;  %v8867_v31 = vmul.f32 -1.442695, %v13977_v38 }
 0x1f9   : > { %v11986_v48 = vpop.eup %11985  ;;  %v2269_v36 = vadd.f32 1.0, %v11984_v14  ;;  %v1978_v10 = vpop.f32.mrb[98].mxu0 }
 0x1fa   : > { %2763 = vst.msk [vmem:[#allocation2 + $0x18] sm:$0xff] %vm1744_vm3, %v2675_v53  ;;  %v2389_v2 = vmul.f32 %v11986_v48, %v13941_v8  ;;  %11995 = vpow2.f32 %v8867_v31  ;;  %v13985_v52 = vadd.f32 %v13933_v25, %v1978_v10  ;;  %v10323_v58 = vpop.f32.mrb[99].mxu0  ;;  %v2483_v14 = vpop.permute.xlu1 %2482 }
 0x1fb   : > { %11997 = vrcp.f32 %v2269_v36  ;;  %v13995_v31 = vpop.f32.mrb[56].mxu1 }
 0x1fc   : > { %v11988_v13 = vpop.eup %11987  ;;  %v2676_v16 = vmul.f32 %v2478_v57, %v2389_v2  ;;  %v8868_v54 = vmul.f32 -1.442695, %v13985_v52  ;;  %17283 = vst [vmem:[#allocation72_spill] sm:$0xff] %v13995_v31  ;;  %v10258_v57 = vpop.f32.mrb[57].mxu1 }
 0x1fd   : > { %v11990_v37 = vpop.eup %11989  ;;  %v2270_v4 = vadd.f32 1.0, %v11988_v13  ;;  %v1983_v53 = vpop.f32.mrb[100].mxu0 }
 0x1fe   : > { %2764 = vst.msk [vmem:[#allocation2 + $0x20] sm:$0xff] %vm1744_vm3, %v2676_v16  ;;  %v2390_v48 = vmul.f32 %v11990_v37, %v13947_v24  ;;  %11999 = vpow2.f32 %v8868_v54  ;;  %v13993_v10 = vadd.f32 %v13933_v25, %v1983_v53  ;;  %v10326_v8 = vpop.f32.mrb[101].mxu0  ;;  %v2488_v37 = vpop.permute.xlu1 %2487 }
 0x1ff   : > { %12001 = vrcp.f32 %v2270_v4  ;;  %v14009_v53 = vpop.f32.mrb[58].mxu1 }
 0x200   : > { %v11992_v36 = vpop.eup %11991  ;;  %v2677_v2 = vmul.f32 %v2483_v14, %v2390_v48  ;;  %v8869_v58 = vmul.f32 -1.442695, %v13993_v10  ;;  %v17284_v14 = vmov 0.0   ;;  %17285 = vst [vmem:[#allocation73_spill] sm:$0xff] %v14009_v53  ;;  %v10261_v8 = vpop.f32.mrb[59].mxu1 }
 0x201   : > { %v11994_v39 = vpop.eup %11993  ;;  %v2271_v13 = vadd.f32 1.0, %v11992_v36  ;;  %v1988_v61 = vpop.f32.mrb[102].mxu0  ;;  %v2849_v55 = vld [vmem:[#allocation2 + $0x16] sm:$0xff]  ;;  %2762 = vst.msk [vmem:[#allocation2 + $0x168] sm:$0x7f] %vm2761_vm5, %v17284_v14 }
 0x202   : > { %v2807_v16 = vld [vmem:[#allocation2 + $0x15] sm:$0xff]  ;;  %2765 = vst.msk [vmem:[#allocation2 + $0x28] sm:$0xff] %vm1744_vm3, %v2677_v2  ;;  %v2391_v24 = vmul.f32 %v11994_v39, %v13953_v47  ;;  %12003 = vpow2.f32 %v8869_v58  ;;  %v14001_v54 = vadd.f32 %v13933_v25, %v1988_v61  ;;  %v10329_v4 = vpop.f32.mrb[103].mxu0  ;;  %10429 = vmatmul.mubr.msk.f32.gmra.mrb[86].mxu1 %vm1744_vm3, %v2849_v55 }
 0x203   : > { %10554 = vmatmul.mubr.msk.f32.gmra.mrb[168].mxu0 %vm1744_vm3, %v2807_v16  ;;  %12005 = vrcp.f32 %v2271_v13  ;;  %10431 = vmatprep.mubr.msk.f32.mxu1 %vm12642_vm0, %v17284_v14  ;;  %v14023_v4 = vpop.f32.mrb[60].mxu1 }
 0x204   : > { %10556 = vmatprep.mubr.msk.f32.mxu0 %vm12642_vm0, %v17284_v14  ;;  %v11996_v47 = vpop.eup %11995  ;;  %v2678_v48 = vmul.f32 %v2488_v37, %v2391_v24  ;;  %v8870_v61 = vmul.f32 -1.442695, %v14001_v54  ;;  %v2493_v24 = vpop.permute.xlu0 %2492  ;;  %17286 = vst [vmem:[#allocation74_spill] sm:$0xff] %v14023_v4 }
 0x205   : > { %v11998_v36 = vpop.eup %11997  ;;  %v2272_v2 = vadd.f32 1.0, %v11996_v47  ;;  %v1993_v55 = vpop.f32.mrb[104].mxu0  ;;  %v2850_v58 = vld [vmem:[#allocation2 + $0x1e] sm:$0xff] }
 0x206   : > { %v2808_v57 = vld [vmem:[#allocation2 + $0x1d] sm:$0xff]  ;;  %2766 = vst.msk [vmem:[#allocation2 + $0x30] sm:$0xff] %vm1744_vm3, %v2678_v48  ;;  %v2392_v39 = vmul.f32 %v11998_v36, %v13959_v0  ;;  %12007 = vpow2.f32 %v8870_v61  ;;  %v14015_v13 = vadd.f32 %v13933_v25, %v1993_v55  ;;  %v10332_v16 = vpop.f32.mrb[105].mxu0  ;;  %10432 = vmatmul.mubr.msk.f32.gmra.mrb[88].mxu1 %vm1744_vm3, %v2850_v58  ;;  %v10264_v48 = vpop.f32.mrb[61].mxu1 }
 0x207   : > { %10557 = vmatmul.mubr.msk.f32.gmra.mrb[170].mxu0 %vm1744_vm3, %v2808_v57  ;;  %12009 = vrcp.f32 %v2272_v2  ;;  %10434 = vmatprep.mubr.msk.f32.mxu1 %vm12642_vm0, %v17284_v14 }
 0x208   : > { %10559 = vmatprep.mubr.msk.f32.mxu0 %vm12642_vm0, %v17284_v14  ;;  %v12000_v0 = vpop.eup %11999  ;;  %v2679_v37 = vmul.f32 %v2493_v24, %v2392_v39  ;;  %v8871_v47 = vmul.f32 -1.442695, %v14015_v13  ;;  %v2498_v39 = vpop.permute.xlu1 %2497 }
 0x209   : > { %v12002_v61 = vpop.eup %12001  ;;  %v2273_v8 = vadd.f32 1.0, %v12000_v0  ;;  %v1998_v36 = vpop.f32.mrb[106].mxu0  ;;  %v2851_v55 = vld [vmem:[#allocation2 + $0x26] sm:$0xff] }
 0x20a   : > { %v2809_v58 = vld [vmem:[#allocation2 + $0x25] sm:$0xff]  ;;  %2767 = vst.msk [vmem:[#allocation2 + $0x38] sm:$0xff] %vm1744_vm3, %v2679_v37  ;;  %v2393_v2 = vmul.f32 %v12002_v61, %v13965_v51  ;;  %12011 = vpow2.f32 %v8871_v47  ;;  %v14029_v57 = vadd.f32 %v13933_v25, %v1998_v36  ;;  %v10335_v16 = vpop.f32.mrb[107].mxu0  ;;  %10435 = vmatmul.mubr.msk.f32.gmra.mrb[90].mxu1 %vm1744_vm3, %v2851_v55  ;;  %v14037_v24 = vpop.f32.mrb[62].mxu1 }
 0x20b   : > { %10560 = vmatmul.mubr.msk.f32.gmra.mrb[172].mxu0 %vm1744_vm3, %v2809_v58  ;;  %12013 = vrcp.f32 %v2273_v8  ;;  %10437 = vmatprep.mubr.msk.f32.mxu1 %vm12642_vm0, %v17284_v14  ;;  %17287 = vst [vmem:[#allocation75_spill] sm:$0xff] %v14037_v24  ;;  %v10267_v47 = vpop.f32.mrb[63].mxu1  ;;  %v4644_v28 = vld [vmem:[#allocation2 + $0x28] sm:$0xff] }
 0x20c   : > { %10562 = vmatprep.mubr.msk.f32.mxu0 %vm12642_vm0, %v17284_v14  ;;  %v12004_v51 = vpop.eup %12003  ;;  %v2680_v0 = vmul.f32 %v2498_v39, %v2393_v2  ;;  %v8872_v37 = vmul.f32 -1.442695, %v14029_v57  ;;  %v2503_v2 = vpop.permute.xlu0 %2502 }
 0x20d   : > { %v12006_v48 = vpop.eup %12005  ;;  %v2274_v61 = vadd.f32 1.0, %v12004_v51  ;;  %v2003_v36 = vpop.f32.mrb[108].mxu0  ;;  %v2852_v55 = vld [vmem:[#allocation2 + $0x2e] sm:$0xff] }
 0x20e   : > { %v2810_v58 = vld [vmem:[#allocation2 + $0x2d] sm:$0xff]  ;;  %2768 = vst.msk [vmem:[#allocation2 + $0x40] sm:$0xff] %vm1744_vm3, %v2680_v0  ;;  %v2394_v8 = vmul.f32 %v12006_v48, %v13971_v17  ;;  %12015 = vpow2.f32 %v8872_v37  ;;  %v14043_v16 = vadd.f32 %v13933_v25, %v2003_v36  ;;  %v10338_v49 = vpop.f32.mrb[109].mxu0  ;;  %10438 = vmatmul.mubr.msk.f32.gmra.mrb[92].mxu1 %vm1744_vm3, %v2852_v55  ;;  %v14051_v39 = vpop.f32.mrb[64].mxu1 }
 0x20f   : > { %10563 = vmatmul.mubr.msk.f32.gmra.mrb[174].mxu0 %vm1744_vm3, %v2810_v58  ;;  %12017 = vrcp.f32 %v2274_v61  ;;  %10440 = vmatprep.mubr.msk.f32.mxu1 %vm12642_vm0, %v17284_v14  ;;  %17288 = vst [vmem:[#allocation76_spill] sm:$0xff] %v14051_v39  ;;  %v10270_v37 = vpop.f32.mrb[65].mxu1  ;;  %v14807_v40 = vld [vmem:[#allocation2 + $0x29] sm:$0xff] }
 0x210   : > { %10565 = vmatprep.mubr.msk.f32.mxu0 %vm12642_vm0, %v17284_v14  ;;  %v12008_v17 = vpop.eup %12007  ;;  %v2681_v51 = vmul.f32 %v2503_v2, %v2394_v8  ;;  %v8873_v0 = vmul.f32 -1.442695, %v14043_v16  ;;  %v2508_v8 = vpop.permute.xlu1 %2507 }
 0x211   : > { %v12010_v49 = vpop.eup %12009  ;;  %v2275_v47 = vadd.f32 1.0, %v12008_v17  ;;  %v2008_v48 = vpop.f32.mrb[110].mxu0  ;;  %v2853_v36 = vld [vmem:[#allocation2 + $0x36] sm:$0xff] }
 0x212   : > { %v2811_v55 = vld [vmem:[#allocation2 + $0x35] sm:$0xff]  ;;  %2769 = vst.msk [vmem:[#allocation2 + $0x48] sm:$0xff] %vm1744_vm3, %v2681_v51  ;;  %v2395_v61 = vmul.f32 %v12010_v49, %v13977_v38  ;;  %12019 = vpow2.f32 %v8873_v0  ;;  %v14057_v58 = vadd.f32 %v13933_v25, %v2008_v48  ;;  %v10341_v11 = vpop.f32.mrb[111].mxu0  ;;  %10441 = vmatmul.mubr.msk.f32.gmra.mrb[94].mxu1 %vm1744_vm3, %v2853_v36  ;;  %v14065_v2 = vpop.f32.mrb[66].mxu1 }
 0x213   : > { %10566 = vmatmul.mubr.msk.f32.gmra.mrb[176].mxu0 %vm1744_vm3, %v2811_v55  ;;  %12021 = vrcp.f32 %v2275_v47  ;;  %10443 = vmatprep.mubr.msk.f32.mxu1 %vm12642_vm0, %v17284_v14  ;;  %17289 = vst [vmem:[#allocation77_spill] sm:$0xff] %v14065_v2  ;;  %v10273_v0 = vpop.f32.mrb[67].mxu1  ;;  %v4646_v20 = vld [vmem:[#allocation2 + $0x38] sm:$0xff] }
 0x214   : > { %10568 = vmatprep.mubr.msk.f32.mxu0 %vm12642_vm0, %v17284_v14  ;;  %v12012_v38 = vpop.eup %12011  ;;  %v2682_v17 = vmul.f32 %v2508_v8, %v2395_v61  ;;  %v8874_v51 = vmul.f32 -1.442695, %v14057_v58  ;;  %v2513_v61 = vpop.permute.xlu0 %2512 }
 0x215   : > { %v12014_v11 = vpop.eup %12013  ;;  %v2276_v37 = vadd.f32 1.0, %v12012_v38  ;;  %v2013_v49 = vpop.f32.mrb[112].mxu0  ;;  %v2854_v48 = vld [vmem:[#allocation2 + $0x3e] sm:$0xff] }
 0x216   : > { %v2812_v36 = vld [vmem:[#allocation2 + $0x3d] sm:$0xff]  ;;  %2770 = vst.msk [vmem:[#allocation2 + $0x50] sm:$0xff] %vm1744_vm3, %v2682_v17  ;;  %v2396_v47 = vmul.f32 %v12014_v11, %v13985_v52  ;;  %12023 = vpow2.f32 %v8874_v51  ;;  %v14071_v55 = vadd.f32 %v13933_v25, %v2013_v49  ;;  %v10344_v5 = vpop.f32.mrb[113].mxu0  ;;  %10444 = vmatmul.mubr.msk.f32.gmra.mrb[96].mxu1 %vm1744_vm3, %v2854_v48  ;;  %v14079_v8 = vpop.f32.mrb[68].mxu1 }
 0x217   : > { %10569 = vmatmul.mubr.msk.f32.gmra.mrb[178].mxu0 %vm1744_vm3, %v2812_v36  ;;  %12025 = vrcp.f32 %v2276_v37  ;;  %10446 = vmatprep.mubr.msk.f32.mxu1 %vm12642_vm0, %v17284_v14  ;;  %17290 = vst [vmem:[#allocation78_spill] sm:$0xff] %v14079_v8  ;;  %v10276_v51 = vpop.f32.mrb[69].mxu1  ;;  %v14829_v27 = vld [vmem:[#allocation2 + $0x39] sm:$0xff] }
 0x218   : > { %10571 = vmatprep.mubr.msk.f32.mxu0 %vm12642_vm0, %v17284_v14  ;;  %v12016_v52 = vpop.eup %12015  ;;  %v2683_v38 = vmul.f32 %v2513_v61, %v2396_v47  ;;  %v8875_v17 = vmul.f32 -1.442695, %v14071_v55  ;;  %v9029_v47 = vld [vmem:[%s17165_s8 + $0xc] sm:$0xf]  ;;  %v2518_v61 = vpop.permute.xlu1 %2517  ;;  %v4647_v35 = vld [vmem:[#allocation2 + $0x40] sm:$0xff] }
 0x219   : > { %v12018_v5 = vpop.eup %12017  ;;  %v2277_v0 = vadd.f32 1.0, %v12016_v52  ;;  %v2018_v11 = vpop.f32.mrb[114].mxu0  ;;  %v2855_v49 = vld [vmem:[#allocation2 + $0x46] sm:$0xff]  ;;  %10796 = vmatpush3.msk.msra.mxu0 %vm1868_vm2, %v9029_v47 }
 0x21a   : > { %v2813_v48 = vld [vmem:[#allocation2 + $0x45] sm:$0xff]  ;;  %2771 = vst.msk [vmem:[#allocation2 + $0x58] sm:$0xff] %vm1744_vm3, %v2683_v38  ;;  %v2397_v37 = vmul.f32 %v12018_v5, %v13993_v10  ;;  %12027 = vpow2.f32 %v8875_v17  ;;  %v14085_v36 = vadd.f32 %v13933_v25, %v2018_v11  ;;  %v10347_v62 = vpop.f32.mrb[115].mxu0  ;;  %10447 = vmatmul.mubr.msk.f32.gmra.mrb[98].mxu1 %vm1744_vm3, %v2855_v49  ;;  %v14096_v10 = vpop.f32.mrb[70].mxu1  ;;  %11045 = vmatprep.subr.mxu0 %v17284_v14 }
 0x21b   : > { %10572 = vmatmul.mubr.msk.f32.gmra.mrb[180].mxu0 %vm1744_vm3, %v2813_v48  ;;  %12029 = vrcp.f32 %v2277_v0  ;;  %10449 = vmatprep.mubr.msk.f32.mxu1 %vm12642_vm0, %v17284_v14  ;;  %17291 = vst [vmem:[#allocation79_spill] sm:$0xff] %v14096_v10  ;;  %v10279_v17 = vpop.f32.mrb[71].mxu1  ;;  %v2523_v47 = vpop.permute.xlu0 %2522  ;;  %v14840_v3 = vld [vmem:[#allocation2 + $0x41] sm:$0xff] }
 0x21c   : > { %10574 = vmatprep.mubr.msk.f32.mxu0 %vm12642_vm0, %v17284_v14  ;;  %v12020_v52 = vpop.eup %12019  ;;  %v2684_v62 = vmul.f32 %v2518_v61, %v2397_v37  ;;  %v8876_v38 = vmul.f32 -1.442695, %v14085_v36  ;;  %v14112_v61 = vpop.f32.mrb[72].mxu1  ;;  %v4648_v21 = vld [vmem:[#allocation2 + $0x48] sm:$0xff] }
 0x21d   : > { %v12022_v51 = vpop.eup %12021  ;;  %v2278_v5 = vadd.f32 1.0, %v12020_v52  ;;  %v2023_v11 = vpop.f32.mrb[116].mxu0  ;;  %v2856_v49 = vld [vmem:[#allocation2 + $0x4e] sm:$0xff]  ;;  %17292 = vst [vmem:[#allocation80_spill] sm:$0xff] %v14112_v61 }
 0x21e   : > { %v2814_v0 = vld [vmem:[#allocation2 + $0x4d] sm:$0xff]  ;;  %2772 = vst.msk [vmem:[#allocation2 + $0x60] sm:$0xff] %vm1744_vm3, %v2684_v62  ;;  %v2398_v48 = vmul.f32 %v12022_v51, %v14001_v54  ;;  %12031 = vpow2.f32 %v8876_v38  ;;  %v14104_v56 = vadd.f32 %v13933_v25, %v2023_v11  ;;  %v10350_v37 = vpop.f32.mrb[117].mxu0  ;;  %10450 = vmatmul.mubr.msk.f32.gmra.mrb[100].mxu1 %vm1744_vm3, %v2856_v49  ;;  %v10282_v38 = vpop.f32.mrb[73].mxu1 }
 0x21f   : > { %10575 = vmatmul.mubr.msk.f32.gmra.mrb[182].mxu0 %vm1744_vm3, %v2814_v0  ;;  %12033 = vrcp.f32 %v2278_v5  ;;  %10452 = vmatprep.mubr.msk.f32.mxu1 %vm12642_vm0, %v17284_v14  ;;  %v14851_v1 = vld [vmem:[#allocation2 + $0x49] sm:$0xff] }
 0x220   : > { %10577 = vmatprep.mubr.msk.f32.mxu0 %vm12642_vm0, %v17284_v14  ;;  %v12024_v54 = vpop.eup %12023  ;;  %v2685_v52 = vmul.f32 %v2523_v47, %v2398_v48  ;;  %v8877_v62 = vmul.f32 -1.442695, %v14104_v56  ;;  %v2528_v48 = vpop.permute.xlu1 %2527  ;;  %v4649_v60 = vld [vmem:[#allocation2 + $0x50] sm:$0xff] }
 0x221   : > { %v12026_v17 = vpop.eup %12025  ;;  %v2279_v51 = vadd.f32 1.0, %v12024_v54  ;;  %v2028_v11 = vpop.f32.mrb[118].mxu0  ;;  %v2857_v49 = vld [vmem:[#allocation2 + $0x56] sm:$0xff] }
 0x222   : > { %v2815_v0 = vld [vmem:[#allocation2 + $0x55] sm:$0xff]  ;;  %2773 = vst.msk [vmem:[#allocation2 + $0x68] sm:$0xff] %vm1744_vm3, %v2685_v52  ;;  %v2399_v5 = vmul.f32 %v12026_v17, %v14015_v13  ;;  %12035 = vpow2.f32 %v8877_v62  ;;  %v14118_v37 = vadd.f32 %v13933_v25, %v2028_v11  ;;  %v10353_v50 = vpop.f32.mrb[119].mxu0  ;;  %10453 = vmatmul.mubr.msk.f32.gmra.mrb[102].mxu1 %vm1744_vm3, %v2857_v49  ;;  %v14126_v47 = vpop.f32.mrb[74].mxu1 }
 0x223   : > { %10578 = vmatmul.mubr.msk.f32.gmra.mrb[184].mxu0 %vm1744_vm3, %v2815_v0  ;;  %12037 = vrcp.f32 %v2279_v51  ;;  %10455 = vmatprep.mubr.msk.f32.mxu1 %vm12642_vm0, %v17284_v14  ;;  %17293 = vst [vmem:[#allocation81_spill] sm:$0xff] %v14126_v47  ;;  %v10285_v62 = vpop.f32.mrb[75].mxu1  ;;  %v14862_v22 = vld [vmem:[#allocation2 + $0x51] sm:$0xff] }
 0x224   : > { %10580 = vmatprep.mubr.msk.f32.mxu0 %vm12642_vm0, %v17284_v14  ;;  %v12028_v13 = vpop.eup %12027  ;;  %v2686_v54 = vmul.f32 %v2528_v48, %v2399_v5  ;;  %v8878_v52 = vmul.f32 -1.442695, %v14118_v37  ;;  %v2533_v5 = vpop.permute.xlu0 %2532  ;;  %v4650_v46 = vld [vmem:[#allocation2 + $0x58] sm:$0xff] }
 0x225   : > { %v12030_v50 = vpop.eup %12029  ;;  %v2280_v38 = vadd.f32 1.0, %v12028_v13  ;;  %v2033_v17 = vpop.f32.mrb[120].mxu0  ;;  %v2858_v11 = vld [vmem:[#allocation2 + $0x5e] sm:$0xff] }
 0x226   : > { %v2816_v49 = vld [vmem:[#allocation2 + $0x5d] sm:$0xff]  ;;  %2774 = vst.msk [vmem:[#allocation2 + $0x70] sm:$0xff] %vm1744_vm3, %v2686_v54  ;;  %v2400_v51 = vmul.f32 %v12030_v50, %v14029_v57  ;;  %12039 = vpow2.f32 %v8878_v52  ;;  %v14132_v0 = vadd.f32 %v13933_v25, %v2033_v17  ;;  %v10356_v41 = vpop.f32.mrb[121].mxu0  ;;  %10456 = vmatmul.mubr.msk.f32.gmra.mrb[104].mxu1 %vm1744_vm3, %v2858_v11  ;;  %v14140_v48 = vpop.f32.mrb[76].mxu1 }
 0x227   : > { %10581 = vmatmul.mubr.msk.f32.gmra.mrb[186].mxu0 %vm1744_vm3, %v2816_v49  ;;  %12041 = vrcp.f32 %v2280_v38  ;;  %10458 = vmatprep.mubr.msk.f32.mxu1 %vm12642_vm0, %v17284_v14  ;;  %17294 = vst [vmem:[#allocation82_spill] sm:$0xff] %v14140_v48  ;;  %v10288_v52 = vpop.f32.mrb[77].mxu1  ;;  %v14873_v9 = vld [vmem:[#allocation2 + $0x59] sm:$0xff] }
 0x228   : > { %10583 = vmatprep.mubr.msk.f32.mxu0 %vm12642_vm0, %v17284_v14  ;;  %v12032_v57 = vpop.eup %12031  ;;  %v2687_v13 = vmul.f32 %v2533_v5, %v2400_v51  ;;  %v8879_v54 = vmul.f32 -1.442695, %v14132_v0  ;;  %v2538_v51 = vpop.permute.xlu1 %2537 }
 0x229   : > { %v12034_v41 = vpop.eup %12033  ;;  %v2281_v62 = vadd.f32 1.0, %v12032_v57  ;;  %v2038_v50 = vpop.f32.mrb[122].mxu0  ;;  %v2859_v17 = vld [vmem:[#allocation2 + $0x66] sm:$0xff] }
 0x22a   : > { %v2817_v11 = vld [vmem:[#allocation2 + $0x65] sm:$0xff]  ;;  %2775 = vst.msk [vmem:[#allocation2 + $0x78] sm:$0xff] %vm1744_vm3, %v2687_v13  ;;  %v2401_v38 = vmul.f32 %v12034_v41, %v14043_v16  ;;  %12043 = vpow2.f32 %v8879_v54  ;;  %v14146_v49 = vadd.f32 %v13933_v25, %v2038_v50  ;;  %v10359_v6 = vpop.f32.mrb[123].mxu0  ;;  %10459 = vmatmul.mubr.msk.f32.gmra.mrb[106].mxu1 %vm1744_vm3, %v2859_v17  ;;  %v14154_v5 = vpop.f32.mrb[78].mxu1 }
 0x22b   : > { %10584 = vmatmul.mubr.msk.f32.gmra.mrb[188].mxu0 %vm1744_vm3, %v2817_v11  ;;  %12045 = vrcp.f32 %v2281_v62  ;;  %10461 = vmatprep.mubr.msk.f32.mxu1 %vm12642_vm0, %v17284_v14  ;;  %17295 = vst [vmem:[#allocation83_spill] sm:$0xff] %v14154_v5  ;;  %v10291_v54 = vpop.f32.mrb[79].mxu1 }
 0x22c   : > { %10586 = vmatprep.mubr.msk.f32.mxu0 %vm12642_vm0, %v17284_v14  ;;  %v12036_v16 = vpop.eup %12035  ;;  %v2688_v57 = vmul.f32 %v2538_v51, %v2401_v38  ;;  %v8880_v13 = vmul.f32 -1.442695, %v14146_v49  ;;  %v2543_v38 = vpop.permute.xlu0 %2542 }
 0x22d   : > { %v12038_v6 = vpop.eup %12037  ;;  %v2282_v52 = vadd.f32 1.0, %v12036_v16  ;;  %v2043_v41 = vpop.f32.mrb[124].mxu0  ;;  %v2860_v50 = vld [vmem:[#allocation2 + $0x6e] sm:$0xff] }
 0x22e   : > { %v2818_v17 = vld [vmem:[#allocation2 + $0x6d] sm:$0xff]  ;;  %2776 = vst.msk [vmem:[#allocation2 + $0x80] sm:$0xff] %vm1744_vm3, %v2688_v57  ;;  %v2402_v62 = vmul.f32 %v12038_v6, %v14057_v58  ;;  %12047 = vpow2.f32 %v8880_v13  ;;  %v14160_v11 = vadd.f32 %v13933_v25, %v2043_v41  ;;  %v10362_v63 = vpop.f32.mrb[125].mxu0  ;;  %10462 = vmatmul.mubr.msk.f32.gmra.mrb[108].mxu1 %vm1744_vm3, %v2860_v50  ;;  %v14168_v51 = vpop.f32.mrb[80].mxu1 }
 0x22f   : > { %10587 = vmatmul.mubr.msk.f32.gmra.mrb[190].mxu0 %vm1744_vm3, %v2818_v17  ;;  %12049 = vrcp.f32 %v2282_v52  ;;  %10464 = vmatprep.mubr.msk.f32.mxu1 %vm12642_vm0, %v17284_v14  ;;  %17296 = vst [vmem:[#allocation84_spill] sm:$0xff] %v14168_v51  ;;  %v10294_v13 = vpop.f32.mrb[81].mxu1  ;;  %v4653_v19 = vld [vmem:[#allocation2 + $0x70] sm:$0xff] }
 0x230   : > { %10589 = vmatprep.mubr.msk.f32.mxu0 %vm12642_vm0, %v17284_v14  ;;  %v12040_v58 = vpop.eup %12039  ;;  %v2689_v16 = vmul.f32 %v2543_v38, %v2402_v62  ;;  %v8881_v57 = vmul.f32 -1.442695, %v14160_v11  ;;  %v2548_v62 = vpop.permute.xlu1 %2547 }
 0x231   : > { %v12042_v63 = vpop.eup %12041  ;;  %v2283_v54 = vadd.f32 1.0, %v12040_v58  ;;  %v2048_v6 = vpop.f32.mrb[126].mxu0  ;;  %v2861_v41 = vld [vmem:[#allocation2 + $0x76] sm:$0xff] }
 0x232   : > { %v2819_v50 = vld [vmem:[#allocation2 + $0x75] sm:$0xff]  ;;  %2777 = vst.msk [vmem:[#allocation2 + $0x88] sm:$0xff] %vm1744_vm3, %v2689_v16  ;;  %v2403_v52 = vmul.f32 %v12042_v63, %v14071_v55  ;;  %12051 = vpow2.f32 %v8881_v57  ;;  %v14174_v17 = vadd.f32 %v13933_v25, %v2048_v6  ;;  %v10365_v15 = vpop.f32.mrb[127].mxu0  ;;  %10465 = vmatmul.mubr.msk.f32.gmra.mrb[110].mxu1 %vm1744_vm3, %v2861_v41 }
 0x233   : > { %10590 = vmatmul.mubr.msk.f32.gmra.mrb[192].mxu0 %vm1744_vm3, %v2819_v50  ;;  %12053 = vrcp.f32 %v2283_v54  ;;  %10467 = vmatprep.mubr.msk.f32.mxu1 %vm12642_vm0, %v17284_v14  ;;  %v2553_v50 = vpop.permute.xlu0 %2552  ;;  %v14911_v44 = vld [vmem:[#allocation2 + $0x71] sm:$0xff] }
 0x234   : > { %10592 = vmatprep.mubr.msk.f32.mxu0 %vm12642_vm0, %v17284_v14  ;;  %v12044_v38 = vpop.eup %12043  ;;  %v2690_v58 = vmul.f32 %v2548_v62, %v2403_v52  ;;  %v8882_v55 = vmul.f32 -1.442695, %v14174_v17  ;;  %v4654_v30 = vld [vmem:[#allocation2 + $0x78] sm:$0xff] }
 0x235   : > { %v12046_v16 = vpop.eup %12045  ;;  %v2284_v57 = vadd.f32 1.0, %v12044_v38  ;;  %v2053_v13 = vpop.f32.mrb[128].mxu0  ;;  %v2862_v15 = vld [vmem:[#allocation2 + $0x7e] sm:$0xff] }
 0x236   : > { %v2820_v63 = vld [vmem:[#allocation2 + $0x7d] sm:$0xff]  ;;  %2778 = vst.msk [vmem:[#allocation2 + $0x90] sm:$0xff] %vm1744_vm3, %v2690_v58  ;;  %v2404_v6 = vmul.f32 %v12046_v16, %v14085_v36  ;;  %12055 = vpow2.f32 %v8882_v55  ;;  %v14186_v54 = vadd.f32 %v13933_v25, %v2053_v13  ;;  %v10368_v41 = vpop.f32.mrb[129].mxu0  ;;  %10468 = vmatmul.mubr.msk.f32.gmra.mrb[112].mxu1 %vm1744_vm3, %v2862_v15 }
 0x237   : > { %10593 = vmatmul.mubr.msk.f32.gmra.mrb[194].mxu0 %vm1744_vm3, %v2820_v63  ;;  %12057 = vrcp.f32 %v2284_v57  ;;  %10470 = vmatprep.mubr.msk.f32.mxu1 %vm12642_vm0, %v17284_v14  ;;  %v14922_v7 = vld [vmem:[#allocation2 + $0x79] sm:$0xff] }
 0x238   : > { %10595 = vmatprep.mubr.msk.f32.mxu0 %vm12642_vm0, %v17284_v14  ;;  %v12048_v52 = vpop.eup %12047  ;;  %v2691_v62 = vmul.f32 %v2553_v50, %v2404_v6  ;;  %v8883_v36 = vmul.f32 -1.442695, %v14186_v54  ;;  %v2558_v6 = vpop.permute.xlu1 %2557  ;;  %v4655_v32 = vld [vmem:[#allocation2 + $0x80] sm:$0xff] }
 0x239   : > { %v12050_v38 = vpop.eup %12049  ;;  %v2285_v58 = vadd.f32 1.0, %v12048_v52  ;;  %v2058_v55 = vpop.f32.mrb[130].mxu0  ;;  %v2863_v16 = vld [vmem:[#allocation2 + $0x86] sm:$0xff] }
 0x23a   : > { %v2821_v13 = vld [vmem:[#allocation2 + $0x85] sm:$0xff]  ;;  %2779 = vst.msk [vmem:[#allocation2 + $0x98] sm:$0xff] %vm1744_vm3, %v2691_v62  ;;  %v2405_v15 = vmul.f32 %v12050_v38, %v14104_v56  ;;  %12059 = vpow2.f32 %v8883_v36  ;;  %v14198_v57 = vadd.f32 %v13933_v25, %v2058_v55  ;;  %v10371_v63 = vpop.f32.mrb[131].mxu0  ;;  %10471 = vmatmul.mubr.msk.f32.gmra.mrb[114].mxu1 %vm1744_vm3, %v2863_v16 }
 0x23b   : > { %10596 = vmatmul.mubr.msk.f32.gmra.mrb[196].mxu0 %vm1744_vm3, %v2821_v13  ;;  %12061 = vrcp.f32 %v2285_v58  ;;  %10473 = vmatprep.mubr.msk.f32.mxu1 %vm12642_vm0, %v17284_v14  ;;  %v14934_v18 = vld [vmem:[#allocation2 + $0x81] sm:$0xff] }
 0x23c   : > { %10598 = vmatprep.mubr.msk.f32.mxu0 %vm12642_vm0, %v17284_v14  ;;  %v12052_v41 = vpop.eup %12051  ;;  %v2692_v50 = vmul.f32 %v2558_v6, %v2405_v15  ;;  %v8884_v56 = vmul.f32 -1.442695, %v14198_v57  ;;  %v2563_v15 = vpop.permute.xlu0 %2562 }
 0x23d   : > { %v12054_v52 = vpop.eup %12053  ;;  %v2286_v62 = vadd.f32 1.0, %v12052_v41  ;;  %v2063_v36 = vpop.f32.mrb[132].mxu0  ;;  %v2864_v38 = vld [vmem:[#allocation2 + $0x8e] sm:$0xff] }
 0x23e   : > { %v2822_v55 = vld [vmem:[#allocation2 + $0x8d] sm:$0xff]  ;;  %2780 = vst.msk [vmem:[#allocation2 + $0xa0] sm:$0xff] %vm1744_vm3, %v2692_v50  ;;  %v2406_v16 = vmul.f32 %v12054_v52, %v14118_v37  ;;  %12063 = vpow2.f32 %v8884_v56  ;;  %v14210_v58 = vadd.f32 %v13933_v25, %v2063_v36  ;;  %v10374_v13 = vpop.f32.mrb[133].mxu0  ;;  %10474 = vmatmul.mubr.msk.f32.gmra.mrb[116].mxu1 %vm1744_vm3, %v2864_v38 }
 0x23f   : > { %10599 = vmatmul.mubr.msk.f32.gmra.mrb[198].mxu0 %vm1744_vm3, %v2822_v55  ;;  %12065 = vrcp.f32 %v2286_v62  ;;  %10476 = vmatprep.mubr.msk.f32.mxu1 %vm12642_vm0, %v17284_v14 }
 0x240   : > { %10601 = vmatprep.mubr.msk.f32.mxu0 %vm12642_vm0, %v17284_v14  ;;  %v12056_v63 = vpop.eup %12055  ;;  %v2693_v6 = vmul.f32 %v2563_v15, %v2406_v16  ;;  %v8885_v37 = vmul.f32 -1.442695, %v14210_v58  ;;  %v2568_v16 = vpop.permute.xlu1 %2567 }
 0x241   : > { %v12058_v41 = vpop.eup %12057  ;;  %v2287_v50 = vadd.f32 1.0, %v12056_v63  ;;  %v2068_v56 = vpop.f32.mrb[134].mxu0  ;;  %v2865_v52 = vld [vmem:[#allocation2 + $0x96] sm:$0xff] }
 0x242   : > { %v2823_v36 = vld [vmem:[#allocation2 + $0x95] sm:$0xff]  ;;  %2781 = vst.msk [vmem:[#allocation2 + $0xa8] sm:$0xff] %vm1744_vm3, %v2693_v6  ;;  %v2407_v38 = vmul.f32 %v12058_v41, %v14132_v0  ;;  %12067 = vpow2.f32 %v8885_v37  ;;  %v14222_v62 = vadd.f32 %v13933_v25, %v2068_v56  ;;  %v10377_v55 = vpop.f32.mrb[135].mxu0  ;;  %10477 = vmatmul.mubr.msk.f32.gmra.mrb[118].mxu1 %vm1744_vm3, %v2865_v52 }
 0x243   : > { %10602 = vmatmul.mubr.msk.f32.gmra.mrb[200].mxu0 %vm1744_vm3, %v2823_v36  ;;  %12069 = vrcp.f32 %v2287_v50  ;;  %10479 = vmatprep.mubr.msk.f32.mxu1 %vm12642_vm0, %v17284_v14 }
 0x244   : > { %10604 = vmatprep.mubr.msk.f32.mxu0 %vm12642_vm0, %v17284_v14  ;;  %v12060_v13 = vpop.eup %12059  ;;  %v2694_v15 = vmul.f32 %v2568_v16, %v2407_v38  ;;  %v8886_v0 = vmul.f32 -1.442695, %v14222_v62  ;;  %v2573_v38 = vpop.permute.xlu0 %2572 }
 0x245   : > { %v12062_v63 = vpop.eup %12061  ;;  %v2288_v6 = vadd.f32 1.0, %v12060_v13  ;;  %v2073_v37 = vpop.f32.mrb[136].mxu0  ;;  %v2866_v41 = vld [vmem:[#allocation2 + $0x9e] sm:$0xff] }
 0x246   : > { %v2824_v56 = vld [vmem:[#allocation2 + $0x9d] sm:$0xff]  ;;  %2782 = vst.msk [vmem:[#allocation2 + $0xb0] sm:$0xff] %vm1744_vm3, %v2694_v15  ;;  %v2408_v52 = vmul.f32 %v12062_v63, %v14146_v49  ;;  %12071 = vpow2.f32 %v8886_v0  ;;  %v14234_v50 = vadd.f32 %v13933_v25, %v2073_v37  ;;  %v10380_v36 = vpop.f32.mrb[137].mxu0  ;;  %10480 = vmatmul.mubr.msk.f32.gmra.mrb[120].mxu1 %vm1744_vm3, %v2866_v41 }
 0x247   : > { %10605 = vmatmul.mubr.msk.f32.gmra.mrb[202].mxu0 %vm1744_vm3, %v2824_v56  ;;  %12073 = vrcp.f32 %v2288_v6  ;;  %10482 = vmatprep.mubr.msk.f32.mxu1 %vm12642_vm0, %v17284_v14 }
 0x248   : > { %10607 = vmatprep.mubr.msk.f32.mxu0 %vm12642_vm0, %v17284_v14  ;;  %v12064_v55 = vpop.eup %12063  ;;  %v2695_v16 = vmul.f32 %v2573_v38, %v2408_v52  ;;  %v8887_v49 = vmul.f32 -1.442695, %v14234_v50  ;;  %v2578_v52 = vpop.permute.xlu1 %2577 }
 0x249   : > { %v12066_v13 = vpop.eup %12065  ;;  %v2289_v15 = vadd.f32 1.0, %v12064_v55  ;;  %v2078_v0 = vpop.f32.mrb[138].mxu0  ;;  %v2867_v63 = vld [vmem:[#allocation2 + $0xa6] sm:$0xff] }
 0x24a   : > { %v2825_v37 = vld [vmem:[#allocation2 + $0xa5] sm:$0xff]  ;;  %2783 = vst.msk [vmem:[#allocation2 + $0xb8] sm:$0xff] %vm1744_vm3, %v2695_v16  ;;  %v2409_v41 = vmul.f32 %v12066_v13, %v14160_v11  ;;  %12075 = vpow2.f32 %v8887_v49  ;;  %v14246_v6 = vadd.f32 %v13933_v25, %v2078_v0  ;;  %v10383_v56 = vpop.f32.mrb[139].mxu0  ;;  %10483 = vmatmul.mubr.msk.f32.gmra.mrb[122].mxu1 %vm1744_vm3, %v2867_v63  ;;  %v14255_v55 = vpop.f32.mrb[82].mxu1 }
 0x24b   : > { %10608 = vmatmul.mubr.msk.f32.gmra.mrb[204].mxu0 %vm1744_vm3, %v2825_v37  ;;  %12077 = vrcp.f32 %v2289_v15  ;;  %10485 = vmatprep.mubr.msk.f32.mxu1 %vm12642_vm0, %v17284_v14  ;;  %v10424_v37 = vpop.f32.mrb[83].mxu1 }
 0x24c   : > { %10610 = vmatprep.mubr.msk.f32.mxu0 %vm12642_vm0, %v17284_v14  ;;  %v12068_v36 = vpop.eup %12067  ;;  %v2696_v38 = vmul.f32 %v2578_v52, %v2409_v41  ;;  %v8888_v11 = vmul.f32 -1.442695, %v14246_v6  ;;  %v2583_v41 = vpop.permute.xlu0 %2582 }
 0x24d   : > { %v12070_v16 = vpop.eup %12069  ;;  %v2290_v49 = vadd.f32 1.0, %v12068_v36  ;;  %v2083_v13 = vpop.f32.mrb[140].mxu0  ;;  %v2868_v0 = vld [vmem:[#allocation2 + $0xae] sm:$0xff] }
 0x24e   : > { %v2826_v63 = vld [vmem:[#allocation2 + $0xad] sm:$0xff]  ;;  %2784 = vst.msk [vmem:[#allocation2 + $0xc0] sm:$0xff] %vm1744_vm3, %v2696_v38  ;;  %v2410_v15 = vmul.f32 %v12070_v16, %v14174_v17  ;;  %12079 = vpow2.f32 %v8888_v11  ;;  %v14260_v56 = vadd.f32 %v13933_v25, %v2083_v13  ;;  %v10386_v51 = vpop.f32.mrb[141].mxu0  ;;  %10486 = vmatmul.mubr.msk.f32.gmra.mrb[124].mxu1 %vm1744_vm3, %v2868_v0  ;;  %v14269_v38 = vpop.f32.mrb[84].mxu1 }
 0x24f   : > { %10611 = vmatmul.mubr.msk.f32.gmra.mrb[206].mxu0 %vm1744_vm3, %v2826_v63  ;;  %12081 = vrcp.f32 %v2290_v49  ;;  %10488 = vmatprep.mubr.msk.f32.mxu1 %vm12642_vm0, %v17284_v14  ;;  %v10427_v0 = vpop.f32.mrb[85].mxu1  ;;  %v14276_v63 = vld [vmem:[%s17164_s7] ss:$0 sm:$0xff] }
 0x250   : > { %10613 = vmatprep.mubr.msk.f32.mxu0 %vm12642_vm0, %v17284_v14  ;;  %v12072_v52 = vpop.eup %12071  ;;  %v2697_v36 = vmul.f32 %v2583_v41, %v2410_v15  ;;  %v8889_v17 = vmul.f32 -1.442695, %v14260_v56  ;;  %v2588_v41 = vpop.permute.xlu1 %2587 }
 0x251   : > { %v12074_v25 = vpop.eup %12073  ;;  %v2291_v51 = vadd.f32 1.0, %v12072_v52  ;;  %v2088_v11 = vpop.f32.mrb[142].mxu0  ;;  %v2869_v16 = vld [vmem:[#allocation2 + $0xb6] sm:$0xff] }
 0x252   : > { %v2827_v13 = vld [vmem:[#allocation2 + $0xb5] sm:$0xff]  ;;  %2785 = vst.msk [vmem:[#allocation2 + $0xc8] sm:$0xff] %vm1744_vm3, %v2697_v36  ;;  %v2411_v49 = vmul.f32 %v12074_v25, %v14186_v54  ;;  %12083 = vpow2.f32 %v8889_v17  ;;  %v14279_v37 = vadd.f32 %v14276_v63, %v2088_v11  ;;  %v10389_v15 = vpop.f32.mrb[143].mxu0  ;;  %10489 = vmatmul.mubr.msk.f32.gmra.mrb[126].mxu1 %vm1744_vm3, %v2869_v16 }
 0x253   : > { %10614 = vmatmul.mubr.msk.f32.gmra.mrb[208].mxu0 %vm1744_vm3, %v2827_v13  ;;  %12085 = vrcp.f32 %v2291_v51  ;;  %10491 = vmatprep.mubr.msk.f32.mxu1 %vm12642_vm0, %v17284_v14 }
 0x254   : > { %10616 = vmatprep.mubr.msk.f32.mxu0 %vm12642_vm0, %v17284_v14  ;;  %v12076_v54 = vpop.eup %12075  ;;  %v2698_v52 = vmul.f32 %v2588_v41, %v2411_v49  ;;  %v8890_v36 = vmul.f32 -1.442695, %v14279_v37  ;;  %v2593_v49 = vpop.permute.xlu0 %2592 }
 0x255   : > { %v12078_v17 = vpop.eup %12077  ;;  %v2292_v25 = vadd.f32 1.0, %v12076_v54  ;;  %v2093_v11 = vpop.f32.mrb[144].mxu0  ;;  %v2870_v0 = vld [vmem:[#allocation2 + $0xbe] sm:$0xff] }
 0x256   : > { %v2828_v15 = vld [vmem:[#allocation2 + $0xbd] sm:$0xff]  ;;  %2786 = vst.msk [vmem:[#allocation2 + $0xd0] sm:$0xff] %vm1744_vm3, %v2698_v52  ;;  %v2412_v16 = vmul.f32 %v12078_v17, %v14198_v57  ;;  %12087 = vpow2.f32 %v8890_v36  ;;  %v14291_v51 = vadd.f32 %v14276_v63, %v2093_v11  ;;  %v10392_v13 = vpop.f32.mrb[145].mxu0  ;;  %10492 = vmatmul.mubr.msk.f32.gmra.mrb[128].mxu1 %vm1744_vm3, %v2870_v0 }
 0x257   : > { %10617 = vmatmul.mubr.msk.f32.gmra.mrb[210].mxu0 %vm1744_vm3, %v2828_v15  ;;  %12089 = vrcp.f32 %v2292_v25  ;;  %10494 = vmatprep.mubr.msk.f32.mxu1 %vm12642_vm0, %v17284_v14 }
 0x258   : > { %10619 = vmatprep.mubr.msk.f32.mxu0 %vm12642_vm0, %v17284_v14  ;;  %v12080_v41 = vpop.eup %12079  ;;  %v2699_v54 = vmul.f32 %v2593_v49, %v2412_v16  ;;  %v8891_v57 = vmul.f32 -1.442695, %v14291_v51  ;;  %v2598_v16 = vpop.permute.xlu1 %2597 }
 0x259   : > { %v12082_v52 = vpop.eup %12081  ;;  %v2293_v36 = vadd.f32 1.0, %v12080_v41  ;;  %v2098_v17 = vpop.f32.mrb[146].mxu0  ;;  %v2871_v11 = vld [vmem:[#allocation2 + $0xc6] sm:$0xff] }
 0x25a   : > { %v2829_v13 = vld [vmem:[#allocation2 + $0xc5] sm:$0xff]  ;;  %2787 = vst.msk [vmem:[#allocation2 + $0xd8] sm:$0xff] %vm1744_vm3, %v2699_v54  ;;  %v2413_v0 = vmul.f32 %v12082_v52, %v14210_v58  ;;  %12091 = vpow2.f32 %v8891_v57  ;;  %v14303_v25 = vadd.f32 %v14276_v63, %v2098_v17  ;;  %v10395_v15 = vpop.f32.mrb[147].mxu0  ;;  %10495 = vmatmul.mubr.msk.f32.gmra.mrb[130].mxu1 %vm1744_vm3, %v2871_v11 }
 0x25b   : > { %10620 = vmatmul.mubr.msk.f32.gmra.mrb[212].mxu0 %vm1744_vm3, %v2829_v13  ;;  %12093 = vrcp.f32 %v2293_v36  ;;  %10497 = vmatprep.mubr.msk.f32.mxu1 %vm12642_vm0, %v17284_v14 }
 0x25c   : > { %10622 = vmatprep.mubr.msk.f32.mxu0 %vm12642_vm0, %v17284_v14  ;;  %v12084_v49 = vpop.eup %12083  ;;  %v2700_v41 = vmul.f32 %v2598_v16, %v2413_v0  ;;  %v8892_v58 = vmul.f32 -1.442695, %v14303_v25  ;;  %v2603_v0 = vpop.permute.xlu0 %2602 }
 0x25d   : > { %v12086_v54 = vpop.eup %12085  ;;  %v2294_v57 = vadd.f32 1.0, %v12084_v49  ;;  %v2103_v52 = vpop.f32.mrb[148].mxu0  ;;  %v2872_v17 = vld [vmem:[#allocation2 + $0xce] sm:$0xff] }
 0x25e   : > { %v2830_v15 = vld [vmem:[#allocation2 + $0xcd] sm:$0xff]  ;;  %2788 = vst.msk [vmem:[#allocation2 + $0xe0] sm:$0xff] %vm1744_vm3, %v2700_v41  ;;  %v2414_v11 = vmul.f32 %v12086_v54, %v14222_v62  ;;  %12095 = vpow2.f32 %v8892_v58  ;;  %v14315_v36 = vadd.f32 %v14276_v63, %v2103_v52  ;;  %v10398_v13 = vpop.f32.mrb[149].mxu0  ;;  %10498 = vmatmul.mubr.msk.f32.gmra.mrb[132].mxu1 %vm1744_vm3, %v2872_v17 }
 0x25f   : > { %10623 = vmatmul.mubr.msk.f32.gmra.mrb[214].mxu0 %vm1744_vm3, %v2830_v15  ;;  %12097 = vrcp.f32 %v2294_v57  ;;  %10500 = vmatprep.mubr.msk.f32.mxu1 %vm12642_vm0, %v17284_v14 }
 0x260   : > { %10625 = vmatprep.mubr.msk.f32.mxu0 %vm12642_vm0, %v17284_v14  ;;  %v12088_v16 = vpop.eup %12087  ;;  %v2701_v49 = vmul.f32 %v2603_v0, %v2414_v11  ;;  %v8893_v62 = vmul.f32 -1.442695, %v14315_v36  ;;  %v2608_v11 = vpop.permute.xlu1 %2607 }
 0x261   : > { %v12090_v41 = vpop.eup %12089  ;;  %v2295_v58 = vadd.f32 1.0, %v12088_v16  ;;  %v2108_v54 = vpop.f32.mrb[150].mxu0  ;;  %v2873_v52 = vld [vmem:[#allocation2 + $0xd6] sm:$0xff] }
 0x262   : > { %v2831_v13 = vld [vmem:[#allocation2 + $0xd5] sm:$0xff]  ;;  %2789 = vst.msk [vmem:[#allocation2 + $0xe8] sm:$0xff] %vm1744_vm3, %v2701_v49  ;;  %v2415_v17 = vmul.f32 %v12090_v41, %v14234_v50  ;;  %12099 = vpow2.f32 %v8893_v62  ;;  %v14327_v57 = vadd.f32 %v14276_v63, %v2108_v54  ;;  %v10401_v15 = vpop.f32.mrb[151].mxu0  ;;  %10501 = vmatmul.mubr.msk.f32.gmra.mrb[134].mxu1 %vm1744_vm3, %v2873_v52 }
 0x263   : > { %10626 = vmatmul.mubr.msk.f32.gmra.mrb[216].mxu0 %vm1744_vm3, %v2831_v13  ;;  %12101 = vrcp.f32 %v2295_v58  ;;  %10503 = vmatprep.mubr.msk.f32.mxu1 %vm12642_vm0, %v17284_v14 }
 0x264   : > { %10628 = vmatprep.mubr.msk.f32.mxu0 %vm12642_vm0, %v17284_v14  ;;  %v12092_v0 = vpop.eup %12091  ;;  %v2702_v16 = vmul.f32 %v2608_v11, %v2415_v17  ;;  %v8894_v50 = vmul.f32 -1.442695, %v14327_v57  ;;  %v2613_v17 = vpop.permute.xlu0 %2612 }
 0x265   : > { %v12094_v49 = vpop.eup %12093  ;;  %v2296_v62 = vadd.f32 1.0, %v12092_v0  ;;  %v2113_v41 = vpop.f32.mrb[152].mxu0  ;;  %v2874_v54 = vld [vmem:[#allocation2 + $0xde] sm:$0xff] }
 0x266   : > { %v2832_v15 = vld [vmem:[#allocation2 + $0xdd] sm:$0xff]  ;;  %2790 = vst.msk [vmem:[#allocation2 + $0xf0] sm:$0xff] %vm1744_vm3, %v2702_v16  ;;  %v2416_v52 = vmul.f32 %v12094_v49, %v14246_v6  ;;  %12103 = vpow2.f32 %v8894_v50  ;;  %v14339_v58 = vadd.f32 %v14276_v63, %v2113_v41  ;;  %v10404_v13 = vpop.f32.mrb[153].mxu0  ;;  %10504 = vmatmul.mubr.msk.f32.gmra.mrb[136].mxu1 %vm1744_vm3, %v2874_v54 }
 0x267   : > { %10629 = vmatmul.mubr.msk.f32.gmra.mrb[218].mxu0 %vm1744_vm3, %v2832_v15  ;;  %12105 = vrcp.f32 %v2296_v62  ;;  %10506 = vmatprep.mubr.msk.f32.mxu1 %vm12642_vm0, %v17284_v14 }
 0x268   : > { %10631 = vmatprep.mubr.msk.f32.mxu0 %vm12642_vm0, %v17284_v14  ;;  %v12096_v11 = vpop.eup %12095  ;;  %v2703_v0 = vmul.f32 %v2613_v17, %v2416_v52  ;;  %v8895_v6 = vmul.f32 -1.442695, %v14339_v58  ;;  %v2618_v52 = vpop.permute.xlu1 %2617 }
 0x269   : > { %v12098_v16 = vpop.eup %12097  ;;  %v2297_v50 = vadd.f32 1.0, %v12096_v11  ;;  %v2118_v49 = vpop.f32.mrb[154].mxu0  ;;  %v2875_v41 = vld [vmem:[#allocation2 + $0xe6] sm:$0xff] }
 0x26a   : > { %v2833_v13 = vld [vmem:[#allocation2 + $0xe5] sm:$0xff]  ;;  %2791 = vst.msk [vmem:[#allocation2 + $0xf8] sm:$0xff] %vm1744_vm3, %v2703_v0  ;;  %v2417_v54 = vmul.f32 %v12098_v16, %v14260_v56  ;;  %12107 = vpow2.f32 %v8895_v6  ;;  %v14351_v62 = vadd.f32 %v14276_v63, %v2118_v49  ;;  %v10407_v15 = vpop.f32.mrb[155].mxu0  ;;  %10507 = vmatmul.mubr.msk.f32.gmra.mrb[138].mxu1 %vm1744_vm3, %v2875_v41 }
 0x26b   : > { %10632 = vmatmul.mubr.msk.f32.gmra.mrb[220].mxu0 %vm1744_vm3, %v2833_v13  ;;  %12109 = vrcp.f32 %v2297_v50  ;;  %10509 = vmatprep.mubr.msk.f32.mxu1 %vm12642_vm0, %v17284_v14 }
 0x26c   : > { %10634 = vmatprep.mubr.msk.f32.mxu0 %vm12642_vm0, %v17284_v14  ;;  %v12100_v17 = vpop.eup %12099  ;;  %v2704_v11 = vmul.f32 %v2618_v52, %v2417_v54  ;;  %v8896_v56 = vmul.f32 -1.442695, %v14351_v62  ;;  %v2623_v54 = vpop.permute.xlu0 %2622 }
 0x26d   : > { %v12102_v0 = vpop.eup %12101  ;;  %v2298_v6 = vadd.f32 1.0, %v12100_v17  ;;  %v2123_v16 = vpop.f32.mrb[156].mxu0  ;;  %v2876_v49 = vld [vmem:[#allocation2 + $0xee] sm:$0xff] }
 0x26e   : > { %v2834_v15 = vld [vmem:[#allocation2 + $0xed] sm:$0xff]  ;;  %2792 = vst.msk [vmem:[#allocation2 + $0x100] sm:$0xff] %vm1744_vm3, %v2704_v11  ;;  %v2418_v41 = vmul.f32 %v12102_v0, %v14279_v37  ;;  %12111 = vpow2.f32 %v8896_v56  ;;  %v14363_v50 = vadd.f32 %v14276_v63, %v2123_v16  ;;  %v10410_v13 = vpop.f32.mrb[157].mxu0  ;;  %10510 = vmatmul.mubr.msk.f32.gmra.mrb[140].mxu1 %vm1744_vm3, %v2876_v49 }
 0x26f   : > { %10635 = vmatmul.mubr.msk.f32.gmra.mrb[222].mxu0 %vm1744_vm3, %v2834_v15  ;;  %12113 = vrcp.f32 %v2298_v6  ;;  %10512 = vmatprep.mubr.msk.f32.mxu1 %vm12642_vm0, %v17284_v14 }
 0x270   : > { %10637 = vmatprep.mubr.msk.f32.mxu0 %vm12642_vm0, %v17284_v14  ;;  %v12104_v52 = vpop.eup %12103  ;;  %v2705_v17 = vmul.f32 %v2623_v54, %v2418_v41  ;;  %v8897_v37 = vmul.f32 -1.442695, %v14363_v50  ;;  %v2628_v41 = vpop.permute.xlu1 %2627 }
 0x271   : > { %v12106_v11 = vpop.eup %12105  ;;  %v2299_v56 = vadd.f32 1.0, %v12104_v52  ;;  %v2128_v0 = vpop.f32.mrb[158].mxu0  ;;  %v2877_v16 = vld [vmem:[#allocation2 + $0xf6] sm:$0xff] }
 0x272   : > { %v2835_v13 = vld [vmem:[#allocation2 + $0xf5] sm:$0xff]  ;;  %2793 = vst.msk [vmem:[#allocation2 + $0x108] sm:$0xff] %vm1744_vm3, %v2705_v17  ;;  %v2419_v49 = vmul.f32 %v12106_v11, %v14291_v51  ;;  %12115 = vpow2.f32 %v8897_v37  ;;  %v14375_v6 = vadd.f32 %v14276_v63, %v2128_v0  ;;  %v10413_v15 = vpop.f32.mrb[159].mxu0  ;;  %10513 = vmatmul.mubr.msk.f32.gmra.mrb[142].mxu1 %vm1744_vm3, %v2877_v16 }
 0x273   : > { %10638 = vmatmul.mubr.msk.f32.gmra.mrb[224].mxu0 %vm1744_vm3, %v2835_v13  ;;  %12117 = vrcp.f32 %v2299_v56  ;;  %10515 = vmatprep.mubr.msk.f32.mxu1 %vm12642_vm0, %v17284_v14 }
 0x274   : > { %10640 = vmatprep.mubr.msk.f32.mxu0 %vm12642_vm0, %v17284_v14  ;;  %v12108_v54 = vpop.eup %12107  ;;  %v2706_v52 = vmul.f32 %v2628_v41, %v2419_v49  ;;  %v8898_v51 = vmul.f32 -1.442695, %v14375_v6  ;;  %v2633_v49 = vpop.permute.xlu0 %2632 }
 0x275   : > { %v12110_v17 = vpop.eup %12109  ;;  %v2300_v37 = vadd.f32 1.0, %v12108_v54  ;;  %v2133_v11 = vpop.f32.mrb[160].mxu0  ;;  %v2878_v0 = vld [vmem:[#allocation2 + $0xfe] sm:$0xff] }
 0x276   : > { %v2836_v15 = vld [vmem:[#allocation2 + $0xfd] sm:$0xff]  ;;  %2794 = vst.msk [vmem:[#allocation2 + $0x110] sm:$0xff] %vm1744_vm3, %v2706_v52  ;;  %v2420_v16 = vmul.f32 %v12110_v17, %v14303_v25  ;;  %12119 = vpow2.f32 %v8898_v51  ;;  %v14387_v56 = vadd.f32 %v14276_v63, %v2133_v11  ;;  %10516 = vmatmul.mubr.msk.f32.gmra.mrb[144].mxu1 %vm1744_vm3, %v2878_v0  ;;  %v10416_v13 = vpop.f32.mrb[161].mxu0 }
 0x277   : > { %10641 = vmatmul.mubr.msk.f32.gmra.mrb[226].mxu0 %vm1744_vm3, %v2836_v15  ;;  %12121 = vrcp.f32 %v2300_v37  ;;  %10518 = vmatprep.mubr.msk.f32.mxu1 %vm12642_vm0, %v17284_v14  ;;  %v2638_v13 = vpop.permute.xlu1 %2637 }
 0x278   : > { %10643 = vmatprep.mubr.msk.f32.mxu0 %vm12642_vm0, %v17284_v14  ;;  %v12112_v41 = vpop.eup %12111  ;;  %v2707_v54 = vmul.f32 %v2633_v49, %v2420_v16  ;;  %v8899_v25 = vmul.f32 -1.442695, %v14387_v56 }
 0x279   : > { %v12114_v52 = vpop.eup %12113  ;;  %v2301_v51 = vadd.f32 1.0, %v12112_v41  ;;  %v2138_v17 = vpop.f32.mrb[162].mxu0  ;;  %v2879_v11 = vld [vmem:[#allocation2 + $0x106] sm:$0xff] }
 0x27a   : > { %v2837_v0 = vld [vmem:[#allocation2 + $0x105] sm:$0xff]  ;;  %2795 = vst.msk [vmem:[#allocation2 + $0x118] sm:$0xff] %vm1744_vm3, %v2707_v54  ;;  %v2421_v15 = vmul.f32 %v12114_v52, %v14315_v36  ;;  %12123 = vpow2.f32 %v8899_v25  ;;  %v14399_v37 = vadd.f32 %v14276_v63, %v2138_v17  ;;  %10519 = vmatmul.mubr.msk.f32.gmra.mrb[146].mxu1 %vm1744_vm3, %v2879_v11  ;;  %v10419_v16 = vpop.f32.mrb[163].mxu0 }
 0x27b   : > { %10644 = vmatmul.mubr.msk.f32.gmra.mrb[228].mxu0 %vm1744_vm3, %v2837_v0  ;;  %12125 = vrcp.f32 %v2301_v51  ;;  %10521 = vmatprep.mubr.msk.f32.mxu1 %vm12642_vm0, %v17284_v14 }
 0x27c   : > { %10646 = vmatprep.mubr.msk.f32.mxu0 %vm12642_vm0, %v17284_v14  ;;  %v12116_v49 = vpop.eup %12115  ;;  %v2708_v41 = vmul.f32 %v2638_v13, %v2421_v15  ;;  %v8900_v36 = vmul.f32 -1.442695, %v14399_v37  ;;  %v2643_v15 = vpop.permute.xlu0 %2642 }
 0x27d   : > { %v12118_v54 = vpop.eup %12117  ;;  %v2302_v63 = vadd.f32 1.0, %v12116_v49  ;;  %v2880_v25 = vld [vmem:[#allocation2 + $0x10e] sm:$0xff]  ;;  %v3478_v17 = vpop.f32.mrb[164].mxu0 }
 0x27e   : > { %v2838_v52 = vld [vmem:[#allocation2 + $0x10d] sm:$0xff]  ;;  %2796 = vst.msk [vmem:[#allocation2 + $0x120] sm:$0xff] %vm1744_vm3, %v2708_v41  ;;  %v2422_v11 = vmul.f32 %v12118_v54, %v14327_v57  ;;  %12127 = vpow2.f32 %v8900_v36  ;;  %10522 = vmatmul.mubr.msk.f32.gmra.mrb[148].mxu1 %vm1744_vm3, %v2880_v25  ;;  %v14413_v51 = vadd.f32 %v3478_v17, %v14255_v55  ;;  %v10549_v0 = vpop.f32.mrb[165].mxu0 }
 0x27f   : > { %10647 = vmatmul.mubr.msk.f32.gmra.mrb[230].mxu0 %vm1744_vm3, %v2838_v52  ;;  %12129 = vrcp.f32 %v2302_v63  ;;  %10524 = vmatprep.mubr.msk.f32.mxu1 %vm12642_vm0, %v17284_v14  ;;  %v2648_v52 = vpop.permute.xlu1 %2647 }
 0x280   : > { %10649 = vmatprep.mubr.msk.f32.mxu0 %vm12642_vm0, %v17284_v14  ;;  %v12120_v16 = vpop.eup %12119  ;;  %v2709_v13 = vmul.f32 %v2643_v15, %v2422_v11 }
 0x281   : > { %v12122_v57 = vpop.eup %12121  ;;  %v2303_v49 = vadd.f32 1.0, %v12120_v16  ;;  %v2881_v41 = vld [vmem:[#allocation2 + $0x116] sm:$0xff]  ;;  %v3483_v54 = vpop.f32.mrb[166].mxu0 }
 0x282   : > { %v2839_v36 = vld [vmem:[#allocation2 + $0x115] sm:$0xff]  ;;  %2797 = vst.msk [vmem:[#allocation2 + $0x128] sm:$0xff] %vm1744_vm3, %v2709_v13  ;;  %v2423_v55 = vmul.f32 %v12122_v57, %v14339_v58  ;;  %10525 = vmatmul.mubr.msk.f32.gmra.mrb[150].mxu1 %vm1744_vm3, %v2881_v41  ;;  %v14424_v63 = vadd.f32 %v3483_v54, %v14269_v38  ;;  %v10552_v25 = vpop.f32.mrb[167].mxu0  ;;  %v2653_v13 = vpop.permute.xlu0 %2652 }
 0x283   : > { %10650 = vmatmul.mubr.msk.f32.gmra.mrb[232].mxu0 %vm1744_vm3, %v2839_v36  ;;  %12131 = vrcp.f32 %v2303_v49  ;;  %10527 = vmatprep.mubr.msk.f32.mxu1 %vm12642_vm0, %v17284_v14  ;;  %v2658_v25 = vpop.permute.xlu1 %2657 }
 0x284   : > { %10652 = vmatprep.mubr.msk.f32.mxu0 %vm12642_vm0, %v17284_v14  ;;  %v12124_v17 = vpop.eup %12123  ;;  %v2710_v11 = vmul.f32 %v2648_v52, %v2423_v55 }
 0x285   : > { %v12126_v0 = vpop.eup %12125  ;;  %v2304_v58 = vadd.f32 1.0, %v12124_v17  ;;  %v2882_v15 = vld [vmem:[#allocation2 + $0x11e] sm:$0xff] }
 0x286   : > { %v2840_v16 = vld [vmem:[#allocation2 + $0x11d] sm:$0xff]  ;;  %2798 = vst.msk [vmem:[#allocation2 + $0x130] sm:$0xff] %vm1744_vm3, %v2710_v11  ;;  %v2424_v38 = vmul.f32 %v12126_v0, %v14351_v62  ;;  %10528 = vmatmul.mubr.msk.f32.gmra.mrb[152].mxu1 %vm1744_vm3, %v2882_v15 }
 0x287   : > { %10653 = vmatmul.mubr.msk.f32.gmra.mrb[234].mxu0 %vm1744_vm3, %v2840_v16  ;;  %12133 = vrcp.f32 %v2304_v58  ;;  %10530 = vmatprep.mubr.msk.f32.mxu1 %vm12642_vm0, %v17284_v14  ;;  %v2663_v58 = vpop.permute.xlu0 %2662 }
 0x288   : > { %10655 = vmatprep.mubr.msk.f32.mxu0 %vm12642_vm0, %v17284_v14  ;;  %v12128_v57 = vpop.eup %12127  ;;  %v2711_v49 = vmul.f32 %v2653_v13, %v2424_v38 }
 0x289   : > { %v12130_v41 = vpop.eup %12129  ;;  %v2305_v36 = vadd.f32 1.0, %v12128_v57  ;;  %v2883_v54 = vld [vmem:[#allocation2 + $0x126] sm:$0xff] }
 0x28a   : > { %v2841_v55 = vld [vmem:[#allocation2 + $0x125] sm:$0xff]  ;;  %2799 = vst.msk [vmem:[#allocation2 + $0x138] sm:$0xff] %vm1744_vm3, %v2711_v49  ;;  %v2425_v62 = vmul.f32 %v12130_v41, %v14363_v50  ;;  %10531 = vmatmul.mubr.msk.f32.gmra.mrb[154].mxu1 %vm1744_vm3, %v2883_v54 }
 0x28b   : > { %10656 = vmatmul.mubr.msk.f32.gmra.mrb[236].mxu0 %vm1744_vm3, %v2841_v55  ;;  %12135 = vrcp.f32 %v2305_v36  ;;  %10533 = vmatprep.mubr.msk.f32.mxu1 %vm12642_vm0, %v17284_v14 }
 0x28c   : > { %10658 = vmatprep.mubr.msk.f32.mxu0 %vm12642_vm0, %v17284_v14  ;;  %v2712_v52 = vmul.f32 %v2658_v25, %v2425_v62 }
 0x28d   : > { %v12132_v17 = vpop.eup %12131  ;;  %v2884_v11 = vld [vmem:[#allocation2 + $0x12e] sm:$0xff] }
 0x28e   : > { %v2842_v0 = vld [vmem:[#allocation2 + $0x12d] sm:$0xff]  ;;  %2800 = vst.msk [vmem:[#allocation2 + $0x140] sm:$0xff] %vm1744_vm3, %v2712_v52  ;;  %v2426_v50 = vmul.f32 %v12132_v17, %v14375_v6  ;;  %10534 = vmatmul.mubr.msk.f32.gmra.mrb[156].mxu1 %vm1744_vm3, %v2884_v11  ;;  %v2668_v6 = vpop.permute.xlu1 %2667  ;;  %v4162_v11 = vld [vmem:[#allocation2 + $0x17] sm:$0xff] }
 0x28f   : > { %10659 = vmatmul.mubr.msk.f32.gmra.mrb[238].mxu0 %vm1744_vm3, %v2842_v0  ;;  %10536 = vmatprep.mubr.msk.f32.mxu1 %vm12642_vm0, %v17284_v14  ;;  %v9072_v17 = vld [vmem:[%s17165_s8 + $0x10] sm:$0xf] }
 0x290   : > { %10661 = vmatprep.mubr.msk.f32.mxu0 %vm12642_vm0, %v17284_v14  ;;  %v2713_v15 = vmul.f32 %v2663_v58, %v2426_v50  ;;  %v3683_v0 = vld [vmem:[#allocation2 + $0xf] sm:$0xff]  ;;  %v4163_v50 = vld [vmem:[#allocation2 + $0x1f] sm:$0xff]  ;;  %v4164_v58 = vld [vmem:[#allocation2 + $0x27] sm:$0xff] }
 0x291   : > { %v12134_v16 = vpop.eup %12133  ;;  %v2885_v38 = vld [vmem:[#allocation2 + $0x136] sm:$0xff] }
 0x292   : > { %v2843_v13 = vld [vmem:[#allocation2 + $0x135] sm:$0xff]  ;;  %2801 = vst.msk [vmem:[#allocation2 + $0x148] sm:$0xff] %vm1744_vm3, %v2713_v15  ;;  %v2427_v57 = vmul.f32 %v12134_v16, %v14387_v56  ;;  %10537 = vmatmul.mubr.msk.f32.gmra.mrb[158].mxu1 %vm1744_vm3, %v2885_v38  ;;  %v2673_v56 = vpop.permute.xlu0 %2672  ;;  %v4167_v38 = vld [vmem:[#allocation2 + $0x3f] sm:$0xff] }
 0x293   : > { %10662 = vmatmul.mubr.msk.f32.gmra.mrb[240].mxu0 %vm1744_vm3, %v2843_v13  ;;  %10539 = vmatprep.mubr.msk.f32.mxu1 %vm12642_vm0, %v17284_v14  ;;  %v4165_v15 = vld [vmem:[#allocation2 + $0x2f] sm:$0xff]  ;;  %v4166_v16 = vld [vmem:[#allocation2 + $0x37] sm:$0xff]  ;;  %v4168_v13 = vld [vmem:[#allocation2 + $0x47] sm:$0xff] }
 0x294   : > { %10664 = vmatprep.mubr.msk.f32.mxu0 %vm12642_vm0, %v17284_v14  ;;  %v2714_v49 = vmul.f32 %v2668_v6, %v2427_v57  ;;  %v4169_v57 = vld [vmem:[#allocation2 + $0x4f] sm:$0xff]  ;;  %v4170_v6 = vld [vmem:[#allocation2 + $0x57] sm:$0xff] }
 0x295   : > { %v12136_v41 = vpop.eup %12135  ;;  %v2886_v36 = vld [vmem:[#allocation2 + $0x13e] sm:$0xff] }
 0x296   : > { %v2844_v54 = vld [vmem:[#allocation2 + $0x13d] sm:$0xff]  ;;  %2802 = vst.msk [vmem:[#allocation2 + $0x150] sm:$0xff] %vm1744_vm3, %v2714_v49  ;;  %v2428_v55 = vmul.f32 %v12136_v41, %v14399_v37  ;;  %10540 = vmatmul.mubr.msk.f32.gmra.mrb[160].mxu1 %vm1744_vm3, %v2886_v36  ;;  %v3682_v37 = vld [vmem:[#allocation2 + $0x7] sm:$0xff]  ;;  %v9115_v49 = vld [vmem:[%s17165_s8 + $0x14] sm:$0xf] }
 0x297   : > { %10665 = vmatmul.mubr.msk.f32.gmra.mrb[242].mxu0 %vm1744_vm3, %v2844_v54  ;;  %10542 = vmatprep.mubr.msk.f32.mxu1 %vm12642_vm0, %v17284_v14  ;;  %v4171_v41 = vld [vmem:[#allocation2 + $0x5f] sm:$0xff]  ;;  %v4172_v36 = vld [vmem:[#allocation2 + $0x67] sm:$0xff]  ;;  %v4173_v54 = vld [vmem:[#allocation2 + $0x6f] sm:$0xff] }
 0x298   : > { %10667 = vmatprep.mubr.msk.f32.mxu0 %vm12642_vm0, %v17284_v14  ;;  %v2715_v62 = vmul.f32 %v2673_v56, %v2428_v55  ;;  %v4174_v55 = vld [vmem:[#allocation2 + $0x77] sm:$0xff]  ;;  %v4175_v56 = vld [vmem:[#allocation2 + $0x7f] sm:$0xff] }
 0x299   : > { %v2887_v25 = vld [vmem:[#allocation2 + $0x146] sm:$0xf] }
 0x29a   : > { %v2845_v52 = vld [vmem:[#allocation2 + $0x145] sm:$0xf]  ;;  %2804 = vst.msk [vmem:[#allocation2 + $0x158] sm:$0xf] %vm2803_vm4, %v2715_v62  ;;  %10543 = vmatmul.mubr.msk.f32.gmra.mrb[162].mxu1 %vm1744_vm3, %v2887_v25 }
 0x29b   : > { %10668 = vmatmul.mubr.msk.f32.gmra.mrb[244].mxu0 %vm1744_vm3, %v2845_v52  ;;  %10672 = vmatprep.mubr.msk.f32.mxu1 %vm12642_vm0, %v17284_v14  ;;  %v4176_v52 = vld [vmem:[#allocation2 + $0x87] sm:$0xff] }
 0x29c   : > { %10797 = vmatprep.mubr.msk.f32.mxu0 %vm12642_vm0, %v17284_v14 }
 0x29e   : > { %10673 = vmatmul.mubr.msk.f32.vlgmr.msra.gmra.mrb[164].mxu1 %vm1744_vm3, %v3682_v37 }
 0x29f   : > { %10798 = vmatmul.mubr.msk.f32.vlgmr.msra.gmra.mrb[246].mxu0 %vm1744_vm3, %v4162_v11  ;;  %10921 = vmatpush3.msk.msra.mxu1 %vm1868_vm2, %v9072_v17 }
 0x2a0   : > { %10675 = vmatprep.mubr.msk.f32.mxu1 %vm12642_vm0, %v17284_v14  ;;  %10800 = vmatprep.mubr.msk.f32.mxu0 %vm12642_vm0, %v17284_v14 }
 0x2a1   : > { %11170 = vmatprep.subr.mxu1 %v17284_v14  ;;  %11046 = vmatpush3.msk.msra.mxu0 %vm1868_vm2, %v9115_v49 }
 0x2a2   : > { %10676 = vmatmul.mubr.msk.f32.gmra.mrb[166].mxu1 %vm1744_vm3, %v3683_v0  ;;  %11295 = vmatprep.subr.mxu0 %v17284_v14 }
 0x2a3   : > { %10801 = vmatmul.mubr.msk.f32.gmra.mrb[248].mxu0 %vm1744_vm3, %v4163_v50  ;;  %10678 = vmatprep.mubr.msk.f32.mxu1 %vm12642_vm0, %v17284_v14 }
 0x2a4   : > { %10803 = vmatprep.mubr.msk.f32.mxu0 %vm12642_vm0, %v17284_v14 }
 0x2a6   : > { %10679 = vmatmul.mubr.msk.f32.gmra.mrb[168].mxu1 %vm1744_vm3, %v4162_v11 }
 0x2a7   : > { %10804 = vmatmul.mubr.msk.f32.gmra.mrb[250].mxu0 %vm1744_vm3, %v4164_v58  ;;  %10681 = vmatprep.mubr.msk.f32.mxu1 %vm12642_vm0, %v17284_v14 }
 0x2a8   : > { %10806 = vmatprep.mubr.msk.f32.mxu0 %vm12642_vm0, %v17284_v14 }
 0x2aa   : > { %10682 = vmatmul.mubr.msk.f32.gmra.mrb[170].mxu1 %vm1744_vm3, %v4163_v50 }
 0x2ab   : > { %10807 = vmatmul.mubr.msk.f32.gmra.mrb[252].mxu0 %vm1744_vm3, %v4165_v15  ;;  %10684 = vmatprep.mubr.msk.f32.mxu1 %vm12642_vm0, %v17284_v14 }
 0x2ac   : > { %10809 = vmatprep.mubr.msk.f32.mxu0 %vm12642_vm0, %v17284_v14 }
 0x2ae   : > { %10685 = vmatmul.mubr.msk.f32.gmra.mrb[172].mxu1 %vm1744_vm3, %v4164_v58  ;;  %v4177_v58 = vld [vmem:[#allocation2 + $0x8f] sm:$0xff] }
 0x2af   : > { %10810 = vmatmul.mubr.msk.f32.gmra.mrb[254].mxu0 %vm1744_vm3, %v4166_v16  ;;  %10687 = vmatprep.mubr.msk.f32.mxu1 %vm12642_vm0, %v17284_v14 }
 0x2b0   : > { %10812 = vmatprep.mubr.msk.f32.mxu0 %vm12642_vm0, %v17284_v14 }
 0x2b2   : > { %10688 = vmatmul.mubr.msk.f32.gmra.mrb[174].mxu1 %vm1744_vm3, %v4165_v15 }
 0x2b3   : > { %10813 = vmatmul.mubr.msk.f32.gmra.mrb[0].mxu0 %vm1744_vm3, %v4167_v38  ;;  %10690 = vmatprep.mubr.msk.f32.mxu1 %vm12642_vm0, %v17284_v14 }
 0x2b4   : > { %10815 = vmatprep.mubr.msk.f32.mxu0 %vm12642_vm0, %v17284_v14 }
 0x2b6   : > { %10691 = vmatmul.mubr.msk.f32.gmra.mrb[176].mxu1 %vm1744_vm3, %v4166_v16 }
 0x2b7   : > { %10816 = vmatmul.mubr.msk.f32.gmra.mrb[2].mxu0 %vm1744_vm3, %v4168_v13  ;;  %10693 = vmatprep.mubr.msk.f32.mxu1 %vm12642_vm0, %v17284_v14 }
 0x2b8   : > { %10818 = vmatprep.mubr.msk.f32.mxu0 %vm12642_vm0, %v17284_v14 }
 0x2ba   : > { %10694 = vmatmul.mubr.msk.f32.gmra.mrb[178].mxu1 %vm1744_vm3, %v4167_v38 }
 0x2bb   : > { %10819 = vmatmul.mubr.msk.f32.gmra.mrb[4].mxu0 %vm1744_vm3, %v4169_v57  ;;  %10696 = vmatprep.mubr.msk.f32.mxu1 %vm12642_vm0, %v17284_v14 }
 0x2bc   : > { %10821 = vmatprep.mubr.msk.f32.mxu0 %vm12642_vm0, %v17284_v14 }
 0x2be   : > { %10697 = vmatmul.mubr.msk.f32.gmra.mrb[180].mxu1 %vm1744_vm3, %v4168_v13 }
 0x2bf   : > { %10822 = vmatmul.mubr.msk.f32.gmra.mrb[6].mxu0 %vm1744_vm3, %v4170_v6  ;;  %10699 = vmatprep.mubr.msk.f32.mxu1 %vm12642_vm0, %v17284_v14 }
 0x2c0   : > { %10824 = vmatprep.mubr.msk.f32.mxu0 %vm12642_vm0, %v17284_v14 }
 0x2c2   : > { %10700 = vmatmul.mubr.msk.f32.gmra.mrb[182].mxu1 %vm1744_vm3, %v4169_v57 }
 0x2c3   : > { %10825 = vmatmul.mubr.msk.f32.gmra.mrb[8].mxu0 %vm1744_vm3, %v4171_v41  ;;  %10702 = vmatprep.mubr.msk.f32.mxu1 %vm12642_vm0, %v17284_v14 }
 0x2c4   : > { %10827 = vmatprep.mubr.msk.f32.mxu0 %vm12642_vm0, %v17284_v14 }
 0x2c6   : > { %10703 = vmatmul.mubr.msk.f32.gmra.mrb[184].mxu1 %vm1744_vm3, %v4170_v6  ;;  %v4178_v6 = vld [vmem:[#allocation2 + $0x97] sm:$0xff] }
 0x2c7   : > { %10828 = vmatmul.mubr.msk.f32.gmra.mrb[10].mxu0 %vm1744_vm3, %v4172_v36  ;;  %10705 = vmatprep.mubr.msk.f32.mxu1 %vm12642_vm0, %v17284_v14 }
 0x2c8   : > { %10830 = vmatprep.mubr.msk.f32.mxu0 %vm12642_vm0, %v17284_v14 }
 0x2ca   : > { %10706 = vmatmul.mubr.msk.f32.gmra.mrb[186].mxu1 %vm1744_vm3, %v4171_v41 }
 0x2cb   : > { %10831 = vmatmul.mubr.msk.f32.gmra.mrb[12].mxu0 %vm1744_vm3, %v4173_v54  ;;  %10708 = vmatprep.mubr.msk.f32.mxu1 %vm12642_vm0, %v17284_v14 }
 0x2cc   : > { %10833 = vmatprep.mubr.msk.f32.mxu0 %vm12642_vm0, %v17284_v14 }
 0x2ce   : > { %10709 = vmatmul.mubr.msk.f32.gmra.mrb[188].mxu1 %vm1744_vm3, %v4172_v36 }
 0x2cf   : > { %10834 = vmatmul.mubr.msk.f32.gmra.mrb[14].mxu0 %vm1744_vm3, %v4174_v55  ;;  %10711 = vmatprep.mubr.msk.f32.mxu1 %vm12642_vm0, %v17284_v14 }
 0x2d0   : > { %10836 = vmatprep.mubr.msk.f32.mxu0 %vm12642_vm0, %v17284_v14 }
 0x2d2   : > { %10712 = vmatmul.mubr.msk.f32.gmra.mrb[190].mxu1 %vm1744_vm3, %v4173_v54 }
 0x2d3   : > { %10837 = vmatmul.mubr.msk.f32.gmra.mrb[16].mxu0 %vm1744_vm3, %v4175_v56  ;;  %10714 = vmatprep.mubr.msk.f32.mxu1 %vm12642_vm0, %v17284_v14 }
 0x2d4   : > { %10839 = vmatprep.mubr.msk.f32.mxu0 %vm12642_vm0, %v17284_v14 }
 0x2d5   : > { %v3092_v62 = vpop.f32.mrb[86].mxu1 }
 0x2d6   : > { %v3488_v25 = vpop.f32.mrb[168].mxu0  ;;  %v10430_v17 = vpop.f32.mrb[87].mxu1  ;;  %10715 = vmatmul.mubr.msk.f32.gmra.mrb[192].mxu1 %vm1744_vm3, %v4174_v55 }
 0x2d7   : > { %v14570_v37 = vadd.f32 %v3488_v25, %v3092_v62  ;;  %v10555_v11 = vpop.f32.mrb[169].mxu0  ;;  %10840 = vmatmul.mubr.msk.f32.gmra.mrb[18].mxu0 %vm1744_vm3, %v4176_v52  ;;  %10717 = vmatprep.mubr.msk.f32.mxu1 %vm12642_vm0, %v17284_v14 }
 0x2d8   : > { %10842 = vmatprep.mubr.msk.f32.mxu0 %vm12642_vm0, %v17284_v14 }
 0x2d9   : > { %v3097_v0 = vpop.f32.mrb[88].mxu1 }
 0x2da   : > { %v3493_v50 = vpop.f32.mrb[170].mxu0  ;;  %v10433_v16 = vpop.f32.mrb[89].mxu1  ;;  %10718 = vmatmul.mubr.msk.f32.gmra.mrb[194].mxu1 %vm1744_vm3, %v4175_v56  ;;  %v4179_v56 = vld [vmem:[#allocation2 + $0x9f] sm:$0xff] }
 0x2db   : > { %v14578_v15 = vadd.f32 %v3493_v50, %v3097_v0  ;;  %v10558_v38 = vpop.f32.mrb[171].mxu0  ;;  %10843 = vmatmul.mubr.msk.f32.gmra.mrb[20].mxu0 %vm1744_vm3, %v4177_v58  ;;  %10720 = vmatprep.mubr.msk.f32.mxu1 %vm12642_vm0, %v17284_v14  ;;  %v4180_v0 = vld [vmem:[#allocation2 + $0xa7] sm:$0xff] }
 0x2dc   : > { %10845 = vmatprep.mubr.msk.f32.mxu0 %vm12642_vm0, %v17284_v14 }
 0x2dd   : > { %v3102_v13 = vpop.f32.mrb[90].mxu1 }
 0x2de   : > { %v3498_v57 = vpop.f32.mrb[172].mxu0  ;;  %v10436_v41 = vpop.f32.mrb[91].mxu1  ;;  %10721 = vmatmul.mubr.msk.f32.gmra.mrb[196].mxu1 %vm1744_vm3, %v4176_v52 }
 0x2df   : > { %v14586_v49 = vadd.f32 %v3498_v57, %v3102_v13  ;;  %v10561_v36 = vpop.f32.mrb[173].mxu0  ;;  %10846 = vmatmul.mubr.msk.f32.gmra.mrb[22].mxu0 %vm1744_vm3, %v4178_v6  ;;  %10723 = vmatprep.mubr.msk.f32.mxu1 %vm12642_vm0, %v17284_v14  ;;  %v4181_v57 = vld [vmem:[#allocation2 + $0xaf] sm:$0xff] }
 0x2e0   : > { %10848 = vmatprep.mubr.msk.f32.mxu0 %vm12642_vm0, %v17284_v14 }
 0x2e1   : > { %v3107_v54 = vpop.f32.mrb[92].mxu1 }
 0x2e2   : > { %v3503_v55 = vpop.f32.mrb[174].mxu0  ;;  %v10439_v25 = vpop.f32.mrb[93].mxu1  ;;  %10724 = vmatmul.mubr.msk.f32.gmra.mrb[198].mxu1 %vm1744_vm3, %v4177_v58 }
 0x2e3   : > { %v14594_v62 = vadd.f32 %v3503_v55, %v3107_v54  ;;  %v10564_v17 = vpop.f32.mrb[175].mxu0  ;;  %10849 = vmatmul.mubr.msk.f32.gmra.mrb[24].mxu0 %vm1744_vm3, %v4179_v56  ;;  %10726 = vmatprep.mubr.msk.f32.mxu1 %vm12642_vm0, %v17284_v14  ;;  %v4182_v25 = vld [vmem:[#allocation2 + $0xb7] sm:$0xff] }
 0x2e4   : > { %10851 = vmatprep.mubr.msk.f32.mxu0 %vm12642_vm0, %v17284_v14 }
 0x2e5   : > { %v3112_v52 = vpop.f32.mrb[94].mxu1 }
 0x2e6   : > { %v3508_v11 = vpop.f32.mrb[176].mxu0  ;;  %v10442_v16 = vpop.f32.mrb[95].mxu1  ;;  %10727 = vmatmul.mubr.msk.f32.gmra.mrb[200].mxu1 %vm1744_vm3, %v4178_v6 }
 0x2e7   : > { %v14602_v50 = vadd.f32 %v3508_v11, %v3112_v52  ;;  %v10567_v38 = vpop.f32.mrb[177].mxu0  ;;  %10852 = vmatmul.mubr.msk.f32.gmra.mrb[26].mxu0 %vm1744_vm3, %v4180_v0  ;;  %10729 = vmatprep.mubr.msk.f32.mxu1 %vm12642_vm0, %v17284_v14 }
 0x2e8   : > { %10854 = vmatprep.mubr.msk.f32.mxu0 %vm12642_vm0, %v17284_v14  ;;  %v4183_v38 = vld [vmem:[#allocation2 + $0xbf] sm:$0xff] }
 0x2e9   : > { %v3117_v58 = vpop.f32.mrb[96].mxu1 }
 0x2ea   : > { %v3513_v13 = vpop.f32.mrb[178].mxu0  ;;  %v10445_v36 = vpop.f32.mrb[97].mxu1  ;;  %10730 = vmatmul.mubr.msk.f32.gmra.mrb[202].mxu1 %vm1744_vm3, %v4179_v56 }
 0x2eb   : > { %v14610_v41 = vadd.f32 %v3513_v13, %v3117_v58  ;;  %v10570_v54 = vpop.f32.mrb[179].mxu0  ;;  %10855 = vmatmul.mubr.msk.f32.gmra.mrb[28].mxu0 %vm1744_vm3, %v4181_v57  ;;  %10732 = vmatprep.mubr.msk.f32.mxu1 %vm12642_vm0, %v17284_v14 }
 0x2ec   : > { %10857 = vmatprep.mubr.msk.f32.mxu0 %vm12642_vm0, %v17284_v14 }
 0x2ed   : > { %v3122_v6 = vpop.f32.mrb[98].mxu1 }
 0x2ee   : > { %v3518_v55 = vpop.f32.mrb[180].mxu0  ;;  %v10448_v52 = vpop.f32.mrb[99].mxu1  ;;  %10733 = vmatmul.mubr.msk.f32.gmra.mrb[204].mxu1 %vm1744_vm3, %v4180_v0 }
 0x2ef   : > { %v14618_v17 = vadd.f32 %v3518_v55, %v3122_v6  ;;  %v10573_v11 = vpop.f32.mrb[181].mxu0  ;;  %10858 = vmatmul.mubr.msk.f32.gmra.mrb[30].mxu0 %vm1744_vm3, %v4182_v25  ;;  %10735 = vmatprep.mubr.msk.f32.mxu1 %vm12642_vm0, %v17284_v14  ;;  %v4184_v6 = vld [vmem:[#allocation2 + $0xc7] sm:$0xff] }
 0x2f0   : > { %10860 = vmatprep.mubr.msk.f32.mxu0 %vm12642_vm0, %v17284_v14 }
 0x2f1   : > { %v3127_v56 = vpop.f32.mrb[100].mxu1 }
 0x2f2   : > { %v3523_v16 = vpop.f32.mrb[182].mxu0  ;;  %v10451_v13 = vpop.f32.mrb[101].mxu1  ;;  %10736 = vmatmul.mubr.msk.f32.gmra.mrb[206].mxu1 %vm1744_vm3, %v4181_v57 }
 0x2f3   : > { %v14626_v58 = vadd.f32 %v3523_v16, %v3127_v56  ;;  %v10576_v36 = vpop.f32.mrb[183].mxu0  ;;  %10861 = vmatmul.mubr.msk.f32.gmra.mrb[32].mxu0 %vm1744_vm3, %v4183_v38  ;;  %10738 = vmatprep.mubr.msk.f32.mxu1 %vm12642_vm0, %v17284_v14  ;;  %v4185_v16 = vld [vmem:[#allocation2 + $0xcf] sm:$0xff] }
 0x2f4   : > { %10863 = vmatprep.mubr.msk.f32.mxu0 %vm12642_vm0, %v17284_v14 }
 0x2f5   : > { %v3132_v0 = vpop.f32.mrb[102].mxu1 }
 0x2f6   : > { %v3528_v54 = vpop.f32.mrb[184].mxu0  ;;  %v10454_v52 = vpop.f32.mrb[103].mxu1  ;;  %10739 = vmatmul.mubr.msk.f32.gmra.mrb[208].mxu1 %vm1744_vm3, %v4182_v25 }
 0x2f7   : > { %v14634_v55 = vadd.f32 %v3528_v54, %v3132_v0  ;;  %v10579_v11 = vpop.f32.mrb[185].mxu0  ;;  %10864 = vmatmul.mubr.msk.f32.gmra.mrb[34].mxu0 %vm1744_vm3, %v4184_v6  ;;  %10741 = vmatprep.mubr.msk.f32.mxu1 %vm12642_vm0, %v17284_v14  ;;  %v4186_v52 = vld [vmem:[#allocation2 + $0xd7] sm:$0xff] }
 0x2f8   : > { %10866 = vmatprep.mubr.msk.f32.mxu0 %vm12642_vm0, %v17284_v14 }
 0x2f9   : > { %v3137_v57 = vpop.f32.mrb[104].mxu1 }
 0x2fa   : > { %v3533_v56 = vpop.f32.mrb[186].mxu0  ;;  %v10457_v36 = vpop.f32.mrb[105].mxu1  ;;  %10742 = vmatmul.mubr.msk.f32.gmra.mrb[210].mxu1 %vm1744_vm3, %v4183_v38 }
 0x2fb   : > { %v14642_v13 = vadd.f32 %v3533_v56, %v3137_v57  ;;  %v10582_v0 = vpop.f32.mrb[187].mxu0  ;;  %10867 = vmatmul.mubr.msk.f32.gmra.mrb[36].mxu0 %vm1744_vm3, %v4185_v16  ;;  %10744 = vmatprep.mubr.msk.f32.mxu1 %vm12642_vm0, %v17284_v14  ;;  %v4187_v36 = vld [vmem:[#allocation2 + $0xdf] sm:$0xff] }
 0x2fc   : > { %10869 = vmatprep.mubr.msk.f32.mxu0 %vm12642_vm0, %v17284_v14 }
 0x2fd   : > { %v3142_v25 = vpop.f32.mrb[106].mxu1 }
 0x2fe   : > { %v3538_v54 = vpop.f32.mrb[188].mxu0  ;;  %v10460_v5 = vpop.f32.mrb[107].mxu1  ;;  %10745 = vmatmul.mubr.msk.f32.gmra.mrb[212].mxu1 %vm1744_vm3, %v4184_v6 }
 0x2ff   : > { %v14650_v11 = vadd.f32 %v3538_v54, %v3142_v25  ;;  %v10585_v57 = vpop.f32.mrb[189].mxu0  ;;  %10870 = vmatmul.mubr.msk.f32.gmra.mrb[38].mxu0 %vm1744_vm3, %v4186_v52  ;;  %10747 = vmatprep.mubr.msk.f32.mxu1 %vm12642_vm0, %v17284_v14  ;;  %v4188_v54 = vld [vmem:[#allocation2 + $0xe7] sm:$0xff] }
 0x300   : > { %10872 = vmatprep.mubr.msk.f32.mxu0 %vm12642_vm0, %v17284_v14 }
 0x301   : > { %v3147_v38 = vpop.f32.mrb[108].mxu1 }
 0x302   : > { %v3543_v56 = vpop.f32.mrb[190].mxu0  ;;  %v10463_v48 = vpop.f32.mrb[109].mxu1  ;;  %10748 = vmatmul.mubr.msk.f32.gmra.mrb[214].mxu1 %vm1744_vm3, %v4185_v16 }
 0x303   : > { %v14658_v0 = vadd.f32 %v3543_v56, %v3147_v38  ;;  %v10588_v25 = vpop.f32.mrb[191].mxu0  ;;  %10873 = vmatmul.mubr.msk.f32.gmra.mrb[40].mxu0 %vm1744_vm3, %v4187_v36  ;;  %10750 = vmatprep.mubr.msk.f32.mxu1 %vm12642_vm0, %v17284_v14  ;;  %v4189_v56 = vld [vmem:[#allocation2 + $0xef] sm:$0xff] }
 0x304   : > { %10875 = vmatprep.mubr.msk.f32.mxu0 %vm12642_vm0, %v17284_v14 }
 0x305   : > { %v3152_v5 = vpop.f32.mrb[110].mxu1 }
 0x306   : > { %v3548_v6 = vpop.f32.mrb[192].mxu0  ;;  %v10466_v47 = vpop.f32.mrb[111].mxu1  ;;  %10751 = vmatmul.mubr.msk.f32.gmra.mrb[216].mxu1 %vm1744_vm3, %v4186_v52 }
 0x307   : > { %v14666_v57 = vadd.f32 %v3548_v6, %v3152_v5  ;;  %v10591_v38 = vpop.f32.mrb[193].mxu0  ;;  %10876 = vmatmul.mubr.msk.f32.gmra.mrb[42].mxu0 %vm1744_vm3, %v4188_v54  ;;  %10753 = vmatprep.mubr.msk.f32.mxu1 %vm12642_vm0, %v17284_v14  ;;  %v4190_v6 = vld [vmem:[#allocation2 + $0xf7] sm:$0xff] }
 0x308   : > { %10878 = vmatprep.mubr.msk.f32.mxu0 %vm12642_vm0, %v17284_v14 }
 0x309   : > { %v3157_v48 = vpop.f32.mrb[112].mxu1 }
 0x30a   : > { %v3553_v16 = vpop.f32.mrb[194].mxu0  ;;  %v10469_v61 = vpop.f32.mrb[113].mxu1  ;;  %10754 = vmatmul.mubr.msk.f32.gmra.mrb[218].mxu1 %vm1744_vm3, %v4187_v36 }
 0x30b   : > { %v14674_v25 = vadd.f32 %v3553_v16, %v3157_v48  ;;  %v10594_v5 = vpop.f32.mrb[195].mxu0  ;;  %10879 = vmatmul.mubr.msk.f32.gmra.mrb[44].mxu0 %vm1744_vm3, %v4189_v56  ;;  %10756 = vmatprep.mubr.msk.f32.mxu1 %vm12642_vm0, %v17284_v14  ;;  %v4191_v16 = vld [vmem:[#allocation2 + $0xff] sm:$0xff] }
 0x30c   : > { %10881 = vmatprep.mubr.msk.f32.mxu0 %vm12642_vm0, %v17284_v14 }
 0x30d   : > { %v3162_v47 = vpop.f32.mrb[114].mxu1 }
 0x30e   : > { %v3558_v52 = vpop.f32.mrb[196].mxu0  ;;  %v10472_v10 = vpop.f32.mrb[115].mxu1  ;;  %10757 = vmatmul.mubr.msk.f32.gmra.mrb[220].mxu1 %vm1744_vm3, %v4188_v54 }
 0x30f   : > { %v14682_v38 = vadd.f32 %v3558_v52, %v3162_v47  ;;  %v10597_v48 = vpop.f32.mrb[197].mxu0  ;;  %10882 = vmatmul.mubr.msk.f32.gmra.mrb[46].mxu0 %vm1744_vm3, %v4190_v6  ;;  %10759 = vmatprep.mubr.msk.f32.mxu1 %vm12642_vm0, %v17284_v14  ;;  %v4192_v52 = vld [vmem:[#allocation2 + $0x107] sm:$0xff] }
 0x310   : > { %10884 = vmatprep.mubr.msk.f32.mxu0 %vm12642_vm0, %v17284_v14 }
 0x311   : > { %v3167_v61 = vpop.f32.mrb[116].mxu1 }
 0x312   : > { %v3563_v36 = vpop.f32.mrb[198].mxu0  ;;  %v10475_v8 = vpop.f32.mrb[117].mxu1  ;;  %10760 = vmatmul.mubr.msk.f32.gmra.mrb[222].mxu1 %vm1744_vm3, %v4189_v56 }
 0x313   : > { %v14690_v5 = vadd.f32 %v3563_v36, %v3167_v61  ;;  %v10600_v47 = vpop.f32.mrb[199].mxu0  ;;  %10885 = vmatmul.mubr.msk.f32.gmra.mrb[48].mxu0 %vm1744_vm3, %v4191_v16  ;;  %10762 = vmatprep.mubr.msk.f32.mxu1 %vm12642_vm0, %v17284_v14  ;;  %v4193_v36 = vld [vmem:[#allocation2 + $0x10f] sm:$0xff] }
 0x314   : > { %10887 = vmatprep.mubr.msk.f32.mxu0 %vm12642_vm0, %v17284_v14 }
 0x315   : > { %v3172_v10 = vpop.f32.mrb[118].mxu1 }
 0x316   : > { %v3568_v54 = vpop.f32.mrb[200].mxu0  ;;  %v10478_v2 = vpop.f32.mrb[119].mxu1  ;;  %10763 = vmatmul.mubr.msk.f32.gmra.mrb[224].mxu1 %vm1744_vm3, %v4190_v6 }
 0x317   : > { %v14698_v48 = vadd.f32 %v3568_v54, %v3172_v10  ;;  %v10603_v61 = vpop.f32.mrb[201].mxu0  ;;  %10888 = vmatmul.mubr.msk.f32.gmra.mrb[50].mxu0 %vm1744_vm3, %v4192_v52  ;;  %10765 = vmatprep.mubr.msk.f32.mxu1 %vm12642_vm0, %v17284_v14  ;;  %v4194_v54 = vld [vmem:[#allocation2 + $0x117] sm:$0xff] }
 0x318   : > { %10890 = vmatprep.mubr.msk.f32.mxu0 %vm12642_vm0, %v17284_v14 }
 0x319   : > { %v3177_v8 = vpop.f32.mrb[120].mxu1 }
 0x31a   : > { %v3573_v56 = vpop.f32.mrb[202].mxu0  ;;  %v10481_v39 = vpop.f32.mrb[121].mxu1  ;;  %10766 = vmatmul.mubr.msk.f32.gmra.mrb[226].mxu1 %vm1744_vm3, %v4191_v16 }
 0x31b   : > { %v14706_v47 = vadd.f32 %v3573_v56, %v3177_v8  ;;  %v10606_v10 = vpop.f32.mrb[203].mxu0  ;;  %10891 = vmatmul.mubr.msk.f32.gmra.mrb[52].mxu0 %vm1744_vm3, %v4193_v36  ;;  %10768 = vmatprep.mubr.msk.f32.mxu1 %vm12642_vm0, %v17284_v14  ;;  %v4195_v56 = vld [vmem:[#allocation2 + $0x11f] sm:$0xff] }
 0x31c   : > { %10893 = vmatprep.mubr.msk.f32.mxu0 %vm12642_vm0, %v17284_v14 }
 0x31d   : > { %v3182_v2 = vpop.f32.mrb[122].mxu1 }
 0x31e   : > { %v3578_v6 = vpop.f32.mrb[204].mxu0  ;;  %v10484_v24 = vpop.f32.mrb[123].mxu1  ;;  %10769 = vmatmul.mubr.msk.f32.gmra.mrb[228].mxu1 %vm1744_vm3, %v4192_v52 }
 0x31f   : > { %v14714_v61 = vadd.f32 %v3578_v6, %v3182_v2  ;;  %v10609_v8 = vpop.f32.mrb[205].mxu0  ;;  %10894 = vmatmul.mubr.msk.f32.gmra.mrb[54].mxu0 %vm1744_vm3, %v4194_v54  ;;  %10771 = vmatprep.mubr.msk.f32.mxu1 %vm12642_vm0, %v17284_v14  ;;  %v4196_v6 = vld [vmem:[#allocation2 + $0x127] sm:$0xff] }
 0x320   : > { %10896 = vmatprep.mubr.msk.f32.mxu0 %vm12642_vm0, %v17284_v14 }
 0x321   : > { %v3187_v39 = vpop.f32.mrb[124].mxu1 }
 0x322   : > { %v3583_v16 = vpop.f32.mrb[206].mxu0  ;;  %v10487_v4 = vpop.f32.mrb[125].mxu1  ;;  %10772 = vmatmul.mubr.msk.f32.gmra.mrb[230].mxu1 %vm1744_vm3, %v4193_v36 }
 0x323   : > { %v14722_v10 = vadd.f32 %v3583_v16, %v3187_v39  ;;  %v10612_v2 = vpop.f32.mrb[207].mxu0  ;;  %10897 = vmatmul.mubr.msk.f32.gmra.mrb[56].mxu0 %vm1744_vm3, %v4195_v56  ;;  %10774 = vmatprep.mubr.msk.f32.mxu1 %vm12642_vm0, %v17284_v14  ;;  %v4197_v16 = vld [vmem:[#allocation2 + $0x12f] sm:$0xff] }
 0x324   : > { %10899 = vmatprep.mubr.msk.f32.mxu0 %vm12642_vm0, %v17284_v14 }
 0x325   : > { %v3192_v24 = vpop.f32.mrb[126].mxu1 }
 0x326   : > { %v3588_v52 = vpop.f32.mrb[208].mxu0  ;;  %v10490_v53 = vpop.f32.mrb[127].mxu1  ;;  %10775 = vmatmul.mubr.msk.f32.gmra.mrb[232].mxu1 %vm1744_vm3, %v4194_v54 }
 0x327   : > { %v14730_v8 = vadd.f32 %v3588_v52, %v3192_v24  ;;  %v10615_v39 = vpop.f32.mrb[209].mxu0  ;;  %10900 = vmatmul.mubr.msk.f32.gmra.mrb[58].mxu0 %vm1744_vm3, %v4196_v6  ;;  %10777 = vmatprep.mubr.msk.f32.mxu1 %vm12642_vm0, %v17284_v14  ;;  %v4198_v52 = vld [vmem:[#allocation2 + $0x137] sm:$0xff] }
 0x328   : > { %10902 = vmatprep.mubr.msk.f32.mxu0 %vm12642_vm0, %v17284_v14 }
 0x329   : > { %v3197_v4 = vpop.f32.mrb[128].mxu1 }
 0x32a   : > { %v3593_v36 = vpop.f32.mrb[210].mxu0  ;;  %v10493_v31 = vpop.f32.mrb[129].mxu1  ;;  %10778 = vmatmul.mubr.msk.f32.gmra.mrb[234].mxu1 %vm1744_vm3, %v4195_v56 }
 0x32b   : > { %v14738_v2 = vadd.f32 %v3593_v36, %v3197_v4  ;;  %v10618_v24 = vpop.f32.mrb[211].mxu0  ;;  %10903 = vmatmul.mubr.msk.f32.gmra.mrb[60].mxu0 %vm1744_vm3, %v4197_v16  ;;  %10780 = vmatprep.mubr.msk.f32.mxu1 %vm12642_vm0, %v17284_v14  ;;  %v4199_v36 = vld [vmem:[#allocation2 + $0x13f] sm:$0xff] }
 0x32c   : > { %10905 = vmatprep.mubr.msk.f32.mxu0 %vm12642_vm0, %v17284_v14 }
 0x32d   : > { %v3202_v53 = vpop.f32.mrb[130].mxu1 }
 0x32e   : > { %v3598_v54 = vpop.f32.mrb[212].mxu0  ;;  %v10496_v59 = vpop.f32.mrb[131].mxu1  ;;  %10781 = vmatmul.mubr.msk.f32.gmra.mrb[236].mxu1 %vm1744_vm3, %v4196_v6 }
 0x32f   : > { %v14746_v39 = vadd.f32 %v3598_v54, %v3202_v53  ;;  %v10621_v4 = vpop.f32.mrb[213].mxu0  ;;  %10906 = vmatmul.mubr.msk.f32.gmra.mrb[62].mxu0 %vm1744_vm3, %v4198_v52  ;;  %10783 = vmatprep.mubr.msk.f32.mxu1 %vm12642_vm0, %v17284_v14  ;;  %v4200_v54 = vld [vmem:[#allocation2 + $0x147] sm:$0xff] }
 0x330   : > { %10908 = vmatprep.mubr.msk.f32.mxu0 %vm12642_vm0, %v17284_v14 }
 0x331   : > { %v3207_v31 = vpop.f32.mrb[132].mxu1 }
 0x332   : > { %v3603_v56 = vpop.f32.mrb[214].mxu0  ;;  %v10499_v42 = vpop.f32.mrb[133].mxu1  ;;  %10784 = vmatmul.mubr.msk.f32.gmra.mrb[238].mxu1 %vm1744_vm3, %v4197_v16 }
 0x333   : > { %v14754_v24 = vadd.f32 %v3603_v56, %v3207_v31  ;;  %v10624_v53 = vpop.f32.mrb[215].mxu0  ;;  %10909 = vmatmul.mubr.msk.f32.gmra.mrb[64].mxu0 %vm1744_vm3, %v4199_v36  ;;  %10786 = vmatprep.mubr.msk.f32.mxu1 %vm12642_vm0, %v17284_v14  ;;  %v4201_v56 = vld [vmem:[#allocation2 + $0x14f] sm:$0xff] }
 0x334   : > { %10911 = vmatprep.mubr.msk.f32.mxu0 %vm12642_vm0, %v17284_v14 }
 0x335   : > { %v3212_v59 = vpop.f32.mrb[134].mxu1 }
 0x336   : > { %v3608_v6 = vpop.f32.mrb[216].mxu0  ;;  %v10502_v43 = vpop.f32.mrb[135].mxu1  ;;  %10787 = vmatmul.mubr.msk.f32.gmra.mrb[240].mxu1 %vm1744_vm3, %v4198_v52 }
 0x337   : > { %v14762_v4 = vadd.f32 %v3608_v6, %v3212_v59  ;;  %v10627_v31 = vpop.f32.mrb[217].mxu0  ;;  %10912 = vmatmul.mubr.msk.f32.gmra.mrb[66].mxu0 %vm1744_vm3, %v4200_v54  ;;  %10789 = vmatprep.mubr.msk.f32.mxu1 %vm12642_vm0, %v17284_v14  ;;  %v3722_v6 = vld [vmem:[#allocation2 + $0x147] sm:$0xf]  ;;  %v4202_v54 = vld [vmem:[#allocation2 + $0x157] sm:$0xf] }
 0x338   : > { %10914 = vmatprep.mubr.msk.f32.mxu0 %vm12642_vm0, %v17284_v14 }
 0x339   : > { %v3217_v42 = vpop.f32.mrb[136].mxu1 }
 0x33a   : > { %v3613_v16 = vpop.f32.mrb[218].mxu0  ;;  %v10505_v12 = vpop.f32.mrb[137].mxu1  ;;  %10790 = vmatmul.mubr.msk.f32.gmra.mrb[242].mxu1 %vm1744_vm3, %v4199_v36 }
 0x33b   : > { %v14770_v53 = vadd.f32 %v3613_v16, %v3217_v42  ;;  %v10630_v59 = vpop.f32.mrb[219].mxu0  ;;  %10915 = vmatmul.mubr.msk.f32.gmra.mrb[68].mxu0 %vm1744_vm3, %v4201_v56  ;;  %10792 = vmatprep.mubr.msk.f32.mxu1 %vm12642_vm0, %v17284_v14  ;;  %v9158_v12 = vld [vmem:[%s17165_s8 + $0x18] sm:$0xf] }
 0x33c   : > { %10917 = vmatprep.mubr.msk.f32.mxu0 %vm12642_vm0, %v17284_v14  ;;  %v4642_v59 = vld [vmem:[#allocation2 + $0x18] sm:$0xff] }
 0x33d   : > { %v3222_v43 = vpop.f32.mrb[138].mxu1 }
 0x33e   : > { %v3618_v52 = vpop.f32.mrb[220].mxu0  ;;  %v10508_v42 = vpop.f32.mrb[139].mxu1  ;;  %10793 = vmatmul.mubr.msk.f32.gmra.mrb[244].mxu1 %vm1744_vm3, %v3722_v6 }
 0x33f   : > { %v14778_v31 = vadd.f32 %v3618_v52, %v3222_v43  ;;  %v10633_v16 = vpop.f32.mrb[221].mxu0  ;;  %10918 = vmatmul.mubr.msk.f32.gmra.mrb[70].mxu0 %vm1744_vm3, %v4202_v54  ;;  %10922 = vmatprep.mubr.msk.f32.mxu1 %vm12642_vm0, %v17284_v14  ;;  %v5122_v43 = vld [vmem:[#allocation2 + $0x19] sm:$0xff] }
 0x340   : > { %11047 = vmatprep.mubr.msk.f32.mxu0 %vm12642_vm0, %v17284_v14 }
 0x341   : > { %v3227_v36 = vpop.f32.mrb[140].mxu1 }
 0x342   : > { %v3623_v56 = vpop.f32.mrb[222].mxu0  ;;  %v10511_v42 = vpop.f32.mrb[141].mxu1  ;;  %10923 = vmatmul.mubr.msk.f32.vlgmr.msra.gmra.mrb[246].mxu1 %vm1744_vm3, %v4642_v59 }
 0x343   : > { %v14789_v52 = vadd.f32 %v3623_v56, %v3227_v36  ;;  %v10636_v6 = vpop.f32.mrb[223].mxu0  ;;  %11048 = vmatmul.mubr.msk.f32.vlgmr.msra.gmra.mrb[72].mxu0 %vm1744_vm3, %v5122_v43  ;;  %11171 = vmatpush3.msk.msra.mxu1 %vm1868_vm2, %v9158_v12  ;;  %v4643_v36 = vld [vmem:[#allocation2 + $0x20] sm:$0xff] }
 0x344   : > { %10925 = vmatprep.mubr.msk.f32.mxu1 %vm12642_vm0, %v17284_v14  ;;  %11050 = vmatprep.mubr.msk.f32.mxu0 %vm12642_vm0, %v17284_v14  ;;  %v5123_v56 = vld [vmem:[#allocation2 + $0x21] sm:$0xff] }
 0x345   : > { %11420 = vmatprep.subr.mxu1 %v17284_v14  ;;  %v3232_v54 = vpop.f32.mrb[142].mxu1 }
 0x346   : > { %v3628_v16 = vpop.f32.mrb[224].mxu0  ;;  %v10514_v6 = vpop.f32.mrb[143].mxu1  ;;  %10926 = vmatmul.mubr.msk.f32.gmra.mrb[248].mxu1 %vm1744_vm3, %v4643_v36 }
 0x347   : > { %v14799_v42 = vadd.f32 %v3628_v16, %v3232_v54  ;;  %v10639_v59 = vpop.f32.mrb[225].mxu0  ;;  %11051 = vmatmul.mubr.msk.f32.gmra.mrb[74].mxu0 %vm1744_vm3, %v5123_v56  ;;  %10928 = vmatprep.mubr.msk.f32.mxu1 %vm12642_vm0, %v17284_v14  ;;  %v4645_v6 = vld [vmem:[#allocation2 + $0x30] sm:$0xff] }
 0x348   : > { %11053 = vmatprep.mubr.msk.f32.mxu0 %vm12642_vm0, %v17284_v14  ;;  %v14818_v59 = vld [vmem:[#allocation2 + $0x31] sm:$0xff] }
 0x349   : > { %v3237_v12 = vpop.f32.mrb[144].mxu1 }
 0x34a   : > { %v3633_v43 = vpop.f32.mrb[226].mxu0  ;;  %v10517_v54 = vpop.f32.mrb[145].mxu1  ;;  %10929 = vmatmul.mubr.msk.f32.gmra.mrb[250].mxu1 %vm1744_vm3, %v4644_v28 }
 0x34b   : > { %v14809_v29 = vadd.f32 %v3633_v43, %v3237_v12  ;;  %v10642_v16 = vpop.f32.mrb[227].mxu0  ;;  %11054 = vmatmul.mubr.msk.f32.gmra.mrb[76].mxu0 %vm1744_vm3, %v14807_v40  ;;  %10931 = vmatprep.mubr.msk.f32.mxu1 %vm12642_vm0, %v17284_v14 }
 0x34c   : > { %11056 = vmatprep.mubr.msk.f32.mxu0 %vm12642_vm0, %v17284_v14 }
 0x34d   : > { %v3242_v36 = vpop.f32.mrb[146].mxu1 }
 0x34e   : > { %v3638_v56 = vpop.f32.mrb[228].mxu0  ;;  %v10520_v43 = vpop.f32.mrb[147].mxu1  ;;  %10932 = vmatmul.mubr.msk.f32.gmra.mrb[252].mxu1 %vm1744_vm3, %v4645_v6 }
 0x34f   : > { %v14820_v12 = vadd.f32 %v3638_v56, %v3242_v36  ;;  %v10645_v54 = vpop.f32.mrb[229].mxu0  ;;  %11057 = vmatmul.mubr.msk.f32.gmra.mrb[78].mxu0 %vm1744_vm3, %v14818_v59  ;;  %10934 = vmatprep.mubr.msk.f32.mxu1 %vm12642_vm0, %v17284_v14 }
 0x350   : > { %11059 = vmatprep.mubr.msk.f32.mxu0 %vm12642_vm0, %v17284_v14 }
 0x351   : > { %v3247_v28 = vpop.f32.mrb[148].mxu1 }
 0x352   : > { %v3643_v16 = vpop.f32.mrb[230].mxu0  ;;  %v10523_v56 = vpop.f32.mrb[149].mxu1  ;;  %10935 = vmatmul.mubr.msk.f32.gmra.mrb[254].mxu1 %vm1744_vm3, %v4646_v20 }
 0x353   : > { %v14831_v36 = vadd.f32 %v3643_v16, %v3247_v28  ;;  %v10648_v43 = vpop.f32.mrb[231].mxu0  ;;  %11060 = vmatmul.mubr.msk.f32.gmra.mrb[80].mxu0 %vm1744_vm3, %v14829_v27  ;;  %10937 = vmatprep.mubr.msk.f32.mxu1 %vm12642_vm0, %v17284_v14 }
 0x354   : > { %11062 = vmatprep.mubr.msk.f32.mxu0 %vm12642_vm0, %v17284_v14 }
 0x355   : > { %v3252_v6 = vpop.f32.mrb[150].mxu1 }
 0x356   : > { %v3648_v54 = vpop.f32.mrb[232].mxu0  ;;  %v10526_v16 = vpop.f32.mrb[151].mxu1  ;;  %10938 = vmatmul.mubr.msk.f32.gmra.mrb[0].mxu1 %vm1744_vm3, %v4647_v35 }
 0x357   : > { %v14842_v28 = vadd.f32 %v3648_v54, %v3252_v6  ;;  %v10651_v56 = vpop.f32.mrb[233].mxu0  ;;  %11063 = vmatmul.mubr.msk.f32.gmra.mrb[82].mxu0 %vm1744_vm3, %v14840_v3  ;;  %10940 = vmatprep.mubr.msk.f32.mxu1 %vm12642_vm0, %v17284_v14 }
 0x358   : > { %11065 = vmatprep.mubr.msk.f32.mxu0 %vm12642_vm0, %v17284_v14 }
 0x359   : > { %v3257_v20 = vpop.f32.mrb[152].mxu1 }
 0x35a   : > { %v3653_v43 = vpop.f32.mrb[234].mxu0  ;;  %v10529_v54 = vpop.f32.mrb[153].mxu1  ;;  %10941 = vmatmul.mubr.msk.f32.gmra.mrb[2].mxu1 %vm1744_vm3, %v4648_v21 }
 0x35b   : > { %v14853_v6 = vadd.f32 %v3653_v43, %v3257_v20  ;;  %v10654_v16 = vpop.f32.mrb[235].mxu0  ;;  %11066 = vmatmul.mubr.msk.f32.gmra.mrb[84].mxu0 %vm1744_vm3, %v14851_v1  ;;  %10943 = vmatprep.mubr.msk.f32.mxu1 %vm12642_vm0, %v17284_v14 }
 0x35c   : > { %11068 = vmatprep.mubr.msk.f32.mxu0 %vm12642_vm0, %v17284_v14 }
 0x35d   : > { %v3262_v35 = vpop.f32.mrb[154].mxu1 }
 0x35e   : > { %v3658_v56 = vpop.f32.mrb[236].mxu0  ;;  %v10532_v43 = vpop.f32.mrb[155].mxu1  ;;  %10944 = vmatmul.mubr.msk.f32.gmra.mrb[4].mxu1 %vm1744_vm3, %v4649_v60  ;;  %v9201_v60 = vld [vmem:[%s17165_s8 + $0x1c] sm:$0xf] }
 0x35f   : > { %v14864_v20 = vadd.f32 %v3658_v56, %v3262_v35  ;;  %v10657_v54 = vpop.f32.mrb[237].mxu0  ;;  %11069 = vmatmul.mubr.msk.f32.gmra.mrb[86].mxu0 %vm1744_vm3, %v14862_v22  ;;  %10946 = vmatprep.mubr.msk.f32.mxu1 %vm12642_vm0, %v17284_v14 }
 0x360   : > { %11071 = vmatprep.mubr.msk.f32.mxu0 %vm12642_vm0, %v17284_v14  ;;  %11296 = vmatpush3.msk.msra.mxu0 %vm1868_vm2, %v9201_v60  ;;  %v4652_v60 = vld [vmem:[#allocation2 + $0x68] sm:$0xff] }
 0x361   : > { %v3267_v21 = vpop.f32.mrb[156].mxu1  ;;  %11545 = vmatprep.subr.mxu0 %v17284_v14 }
 0x362   : > { %v3663_v16 = vpop.f32.mrb[238].mxu0  ;;  %v10535_v56 = vpop.f32.mrb[157].mxu1  ;;  %10947 = vmatmul.mubr.msk.f32.gmra.mrb[6].mxu1 %vm1744_vm3, %v4650_v46 }
 0x363   : > { %v14875_v35 = vadd.f32 %v3663_v16, %v3267_v21  ;;  %v10660_v43 = vpop.f32.mrb[239].mxu0  ;;  %11072 = vmatmul.mubr.msk.f32.gmra.mrb[88].mxu0 %vm1744_vm3, %v14873_v9  ;;  %10949 = vmatprep.mubr.msk.f32.mxu1 %vm12642_vm0, %v17284_v14  ;;  %v4651_v16 = vld [vmem:[#allocation2 + $0x60] sm:$0xff] }
 0x364   : > { %11074 = vmatprep.mubr.msk.f32.mxu0 %vm12642_vm0, %v17284_v14  ;;  %v14887_v56 = vld [vmem:[#allocation2 + $0x61] sm:$0xff] }
 0x365   : > { %v3272_v54 = vpop.f32.mrb[158].mxu1 }
 0x366   : > { %v3668_v21 = vpop.f32.mrb[240].mxu0  ;;  %v10538_v43 = vpop.f32.mrb[159].mxu1  ;;  %10950 = vmatmul.mubr.msk.f32.gmra.mrb[8].mxu1 %vm1744_vm3, %v4651_v16 }
 0x367   : > { %v14890_v46 = vadd.f32 %v3668_v21, %v3272_v54  ;;  %v10663_v34 = vpop.f32.mrb[241].mxu0  ;;  %11075 = vmatmul.mubr.msk.f32.gmra.mrb[90].mxu0 %vm1744_vm3, %v14887_v56  ;;  %10952 = vmatprep.mubr.msk.f32.mxu1 %vm12642_vm0, %v17284_v14  ;;  %v14900_v54 = vld [vmem:[#allocation2 + $0x69] sm:$0xff] }
 0x368   : > { %11077 = vmatprep.mubr.msk.f32.mxu0 %vm12642_vm0, %v17284_v14 }
 0x369   : > { %v3277_v45 = vpop.f32.mrb[160].mxu1 }
 0x36a   : > { %v3673_v33 = vpop.f32.mrb[242].mxu0  ;;  %v10541_v34 = vpop.f32.mrb[161].mxu1  ;;  %10953 = vmatmul.mubr.msk.f32.gmra.mrb[10].mxu1 %vm1744_vm3, %v4652_v60 }
 0x36b   : > { %v14902_v21 = vadd.f32 %v3673_v33, %v3277_v45  ;;  %v10666_v16 = vpop.f32.mrb[243].mxu0  ;;  %11078 = vmatmul.mubr.msk.f32.gmra.mrb[92].mxu0 %vm1744_vm3, %v14900_v54  ;;  %10955 = vmatprep.mubr.msk.f32.mxu1 %vm12642_vm0, %v17284_v14 }
 0x36c   : > { %11080 = vmatprep.mubr.msk.f32.mxu0 %vm12642_vm0, %v17284_v14 }
 0x36d   : > { %v3282_v43 = vpop.f32.mrb[162].mxu1 }
 0x36e   : > { %v3678_v26 = vpop.f32.mrb[244].mxu0  ;;  %v10544_v45 = vpop.f32.mrb[163].mxu1  ;;  %10956 = vmatmul.mubr.msk.f32.gmra.mrb[12].mxu1 %vm1744_vm3, %v4653_v19 }
 0x36f   : > { %v14913_v33 = vadd.f32 %v3678_v26, %v3282_v43  ;;  %v10669_v34 = vpop.f32.mrb[245].mxu0  ;;  %11081 = vmatmul.mubr.msk.f32.gmra.mrb[94].mxu0 %vm1744_vm3, %v14911_v44  ;;  %10958 = vmatprep.mubr.msk.f32.mxu1 %vm12642_vm0, %v17284_v14 }
 0x370   : > { %11083 = vmatprep.mubr.msk.f32.mxu0 %vm12642_vm0, %v17284_v14 }
 0x371   : > { %v3917_v60 = vpop.f32.mrb[164].mxu1 }
 0x372   : > { %v4397_v16 = vpop.f32.mrb[246].mxu0  ;;  %v4121_v26 = vadd.f32 %v3917_v60, %v14413_v51  ;;  %v10674_v43 = vpop.f32.mrb[165].mxu1  ;;  %10959 = vmatmul.mubr.msk.f32.gmra.mrb[14].mxu1 %vm1744_vm3, %v4654_v30 }
 0x373   : > { %v10799_v45 = vpop.f32.mrb[247].mxu0  ;;  %11084 = vmatmul.mubr.msk.f32.gmra.mrb[96].mxu0 %vm1744_vm3, %v14922_v7  ;;  %10961 = vmatprep.mubr.msk.f32.mxu1 %vm12642_vm0, %v17284_v14 }
 0x374   : > { %11086 = vmatprep.mubr.msk.f32.mxu0 %vm12642_vm0, %v17284_v14  ;;  %v14932_v19 = vadd.f32 %v4397_v16, %v4121_v26  ;;  %v4656_v45 = vld [vmem:[#allocation2 + $0x88] sm:$0xff] }
 0x375   : > { %v3922_v34 = vpop.f32.mrb[166].mxu1 }
 0x376   : > { %17297 = vst [vmem:[#allocation85_spill] sm:$0xff] %v14932_v19  ;;  %v4402_v23 = vpop.f32.mrb[248].mxu0  ;;  %v4122_v51 = vadd.f32 %v3922_v34, %v14424_v63  ;;  %v10677_v60 = vpop.f32.mrb[167].mxu1  ;;  %10962 = vmatmul.mubr.msk.f32.gmra.mrb[16].mxu1 %vm1744_vm3, %v4655_v32  ;;  %v14946_v19 = vld [vmem:[#allocation2 + $0x89] sm:$0xff] }
 0x377   : > { %v10802_v30 = vpop.f32.mrb[249].mxu0  ;;  %11087 = vmatmul.mubr.msk.f32.gmra.mrb[98].mxu0 %vm1744_vm3, %v14934_v18  ;;  %10964 = vmatprep.mubr.msk.f32.mxu1 %vm12642_vm0, %v17284_v14 }
 0x378   : > { %11089 = vmatprep.mubr.msk.f32.mxu0 %vm12642_vm0, %v17284_v14  ;;  %v14944_v16 = vadd.f32 %v4402_v23, %v4122_v51  ;;  %v4657_v30 = vld [vmem:[#allocation2 + $0x90] sm:$0xff] }
 0x379   : > { %v3927_v26 = vpop.f32.mrb[168].mxu1 }
 0x37a   : > { %17298 = vst [vmem:[#allocation86_spill] sm:$0xff] %v14944_v16  ;;  %v4407_v43 = vpop.f32.mrb[250].mxu0  ;;  %v4123_v63 = vadd.f32 %v3927_v26, %v14570_v37  ;;  %v10680_v34 = vpop.f32.mrb[169].mxu1  ;;  %10965 = vmatmul.mubr.msk.f32.gmra.mrb[18].mxu1 %vm1744_vm3, %v4656_v45  ;;  %v14958_v16 = vld [vmem:[#allocation2 + $0x91] sm:$0xff] }
 0x37b   : > { %v10805_v32 = vpop.f32.mrb[251].mxu0  ;;  %11090 = vmatmul.mubr.msk.f32.gmra.mrb[100].mxu0 %vm1744_vm3, %v14946_v19  ;;  %10967 = vmatprep.mubr.msk.f32.mxu1 %vm12642_vm0, %v17284_v14 }
 0x37c   : > { %11092 = vmatprep.mubr.msk.f32.mxu0 %vm12642_vm0, %v17284_v14  ;;  %v14956_v23 = vadd.f32 %v4407_v43, %v4123_v63  ;;  %v4658_v32 = vld [vmem:[#allocation2 + $0x98] sm:$0xff] }
 0x37d   : > { %v3932_v51 = vpop.f32.mrb[170].mxu1 }
 0x37e   : > { %17299 = vst [vmem:[#allocation87_spill] sm:$0xff] %v14956_v23  ;;  %v4412_v60 = vpop.f32.mrb[252].mxu0  ;;  %v4124_v37 = vadd.f32 %v3932_v51, %v14578_v15  ;;  %v10683_v26 = vpop.f32.mrb[171].mxu1  ;;  %10968 = vmatmul.mubr.msk.f32.gmra.mrb[20].mxu1 %vm1744_vm3, %v4657_v30  ;;  %v14970_v23 = vld [vmem:[#allocation2 + $0x99] sm:$0xff] }
 0x37f   : > { %v10808_v45 = vpop.f32.mrb[253].mxu0  ;;  %11093 = vmatmul.mubr.msk.f32.gmra.mrb[102].mxu0 %vm1744_vm3, %v14958_v16  ;;  %10970 = vmatprep.mubr.msk.f32.mxu1 %vm12642_vm0, %v17284_v14 }
 0x380   : > { %11095 = vmatprep.mubr.msk.f32.mxu0 %vm12642_vm0, %v17284_v14  ;;  %v14968_v43 = vadd.f32 %v4412_v60, %v4124_v37  ;;  %v4659_v45 = vld [vmem:[#allocation2 + $0xa0] sm:$0xff] }
 0x381   : > { %v3937_v63 = vpop.f32.mrb[172].mxu1 }
 0x382   : > { %17300 = vst [vmem:[#allocation88_spill] sm:$0xff] %v14968_v43  ;;  %v4417_v34 = vpop.f32.mrb[254].mxu0  ;;  %v4125_v15 = vadd.f32 %v3937_v63, %v14586_v49  ;;  %v10686_v51 = vpop.f32.mrb[173].mxu1  ;;  %10971 = vmatmul.mubr.msk.f32.gmra.mrb[22].mxu1 %vm1744_vm3, %v4658_v32  ;;  %v14982_v43 = vld [vmem:[#allocation2 + $0xa1] sm:$0xff] }
 0x383   : > { %v10811_v30 = vpop.f32.mrb[255].mxu0  ;;  %11096 = vmatmul.mubr.msk.f32.gmra.mrb[104].mxu0 %vm1744_vm3, %v14970_v23  ;;  %10973 = vmatprep.mubr.msk.f32.mxu1 %vm12642_vm0, %v17284_v14 }
 0x384   : > { %11098 = vmatprep.mubr.msk.f32.mxu0 %vm12642_vm0, %v17284_v14  ;;  %v14980_v60 = vadd.f32 %v4417_v34, %v4125_v15  ;;  %v4660_v30 = vld [vmem:[#allocation2 + $0xa8] sm:$0xff] }
 0x385   : > { %v3942_v37 = vpop.f32.mrb[174].mxu1 }
 0x386   : > { %17301 = vst [vmem:[#allocation89_spill] sm:$0xff] %v14980_v60  ;;  %v4422_v26 = vpop.f32.mrb[0].mxu0  ;;  %v4126_v49 = vadd.f32 %v3942_v37, %v14594_v62  ;;  %v10689_v63 = vpop.f32.mrb[175].mxu1  ;;  %10974 = vmatmul.mubr.msk.f32.gmra.mrb[24].mxu1 %vm1744_vm3, %v4659_v45  ;;  %v14994_v60 = vld [vmem:[#allocation2 + $0xa9] sm:$0xff] }
 0x387   : > { %v10814_v32 = vpop.f32.mrb[1].mxu0  ;;  %11099 = vmatmul.mubr.msk.f32.gmra.mrb[106].mxu0 %vm1744_vm3, %v14982_v43  ;;  %10976 = vmatprep.mubr.msk.f32.mxu1 %vm12642_vm0, %v17284_v14 }
 0x388   : > { %11101 = vmatprep.mubr.msk.f32.mxu0 %vm12642_vm0, %v17284_v14  ;;  %v14992_v34 = vadd.f32 %v4422_v26, %v4126_v49  ;;  %v4661_v32 = vld [vmem:[#allocation2 + $0xb0] sm:$0xff] }
 0x389   : > { %v3947_v15 = vpop.f32.mrb[176].mxu1 }
 0x38a   : > { %17302 = vst [vmem:[#allocation90_spill] sm:$0xff] %v14992_v34  ;;  %v4427_v51 = vpop.f32.mrb[2].mxu0  ;;  %v4127_v62 = vadd.f32 %v3947_v15, %v14602_v50  ;;  %v10692_v37 = vpop.f32.mrb[177].mxu1  ;;  %10977 = vmatmul.mubr.msk.f32.gmra.mrb[26].mxu1 %vm1744_vm3, %v4660_v30  ;;  %v15006_v34 = vld [vmem:[#allocation2 + $0xb1] sm:$0xff] }
 0x38b   : > { %v10817_v45 = vpop.f32.mrb[3].mxu0  ;;  %11102 = vmatmul.mubr.msk.f32.gmra.mrb[108].mxu0 %vm1744_vm3, %v14994_v60  ;;  %10979 = vmatprep.mubr.msk.f32.mxu1 %vm12642_vm0, %v17284_v14 }
 0x38c   : > { %11104 = vmatprep.mubr.msk.f32.mxu0 %vm12642_vm0, %v17284_v14  ;;  %v15004_v26 = vadd.f32 %v4427_v51, %v4127_v62  ;;  %v4662_v45 = vld [vmem:[#allocation2 + $0xb8] sm:$0xff] }
 0x38d   : > { %v3952_v49 = vpop.f32.mrb[178].mxu1 }
 0x38e   : > { %17303 = vst [vmem:[#allocation91_spill] sm:$0xff] %v15004_v26  ;;  %v4432_v63 = vpop.f32.mrb[4].mxu0  ;;  %v4128_v50 = vadd.f32 %v3952_v49, %v14610_v41  ;;  %v10695_v15 = vpop.f32.mrb[179].mxu1  ;;  %10980 = vmatmul.mubr.msk.f32.gmra.mrb[28].mxu1 %vm1744_vm3, %v4661_v32  ;;  %v15018_v26 = vld [vmem:[#allocation2 + $0xb9] sm:$0xff] }
 0x38f   : > { %v10820_v30 = vpop.f32.mrb[5].mxu0  ;;  %11105 = vmatmul.mubr.msk.f32.gmra.mrb[110].mxu0 %vm1744_vm3, %v15006_v34  ;;  %10982 = vmatprep.mubr.msk.f32.mxu1 %vm12642_vm0, %v17284_v14 }
 0x390   : > { %11107 = vmatprep.mubr.msk.f32.mxu0 %vm12642_vm0, %v17284_v14  ;;  %v15016_v51 = vadd.f32 %v4432_v63, %v4128_v50  ;;  %v4663_v30 = vld [vmem:[#allocation2 + $0xc0] sm:$0xff] }
 0x391   : > { %v3957_v62 = vpop.f32.mrb[180].mxu1 }
 0x392   : > { %17304 = vst [vmem:[#allocation92_spill] sm:$0xff] %v15016_v51  ;;  %v4437_v37 = vpop.f32.mrb[6].mxu0  ;;  %v4129_v41 = vadd.f32 %v3957_v62, %v14618_v17  ;;  %v10698_v49 = vpop.f32.mrb[181].mxu1  ;;  %10983 = vmatmul.mubr.msk.f32.gmra.mrb[30].mxu1 %vm1744_vm3, %v4662_v45  ;;  %v15030_v51 = vld [vmem:[#allocation2 + $0xc1] sm:$0xff] }
 0x393   : > { %v10823_v32 = vpop.f32.mrb[7].mxu0  ;;  %11108 = vmatmul.mubr.msk.f32.gmra.mrb[112].mxu0 %vm1744_vm3, %v15018_v26  ;;  %10985 = vmatprep.mubr.msk.f32.mxu1 %vm12642_vm0, %v17284_v14 }
 0x394   : > { %11110 = vmatprep.mubr.msk.f32.mxu0 %vm12642_vm0, %v17284_v14  ;;  %v15028_v63 = vadd.f32 %v4437_v37, %v4129_v41  ;;  %v4664_v32 = vld [vmem:[#allocation2 + $0xc8] sm:$0xff] }
 0x395   : > { %v3962_v50 = vpop.f32.mrb[182].mxu1 }
 0x396   : > { %17305 = vst [vmem:[#allocation93_spill] sm:$0xff] %v15028_v63  ;;  %v4442_v15 = vpop.f32.mrb[8].mxu0  ;;  %v4130_v17 = vadd.f32 %v3962_v50, %v14626_v58  ;;  %v10701_v62 = vpop.f32.mrb[183].mxu1  ;;  %10986 = vmatmul.mubr.msk.f32.gmra.mrb[32].mxu1 %vm1744_vm3, %v4663_v30  ;;  %v15042_v63 = vld [vmem:[#allocation2 + $0xc9] sm:$0xff] }
 0x397   : > { %v10826_v45 = vpop.f32.mrb[9].mxu0  ;;  %11111 = vmatmul.mubr.msk.f32.gmra.mrb[114].mxu0 %vm1744_vm3, %v15030_v51  ;;  %10988 = vmatprep.mubr.msk.f32.mxu1 %vm12642_vm0, %v17284_v14 }
 0x398   : > { %11113 = vmatprep.mubr.msk.f32.mxu0 %vm12642_vm0, %v17284_v14  ;;  %v15040_v37 = vadd.f32 %v4442_v15, %v4130_v17  ;;  %v4665_v45 = vld [vmem:[#allocation2 + $0xd0] sm:$0xff] }
 0x399   : > { %v3967_v41 = vpop.f32.mrb[184].mxu1 }
 0x39a   : > { %17306 = vst [vmem:[#allocation94_spill] sm:$0xff] %v15040_v37  ;;  %v4447_v49 = vpop.f32.mrb[10].mxu0  ;;  %v4131_v58 = vadd.f32 %v3967_v41, %v14634_v55  ;;  %v10704_v50 = vpop.f32.mrb[185].mxu1  ;;  %10989 = vmatmul.mubr.msk.f32.gmra.mrb[34].mxu1 %vm1744_vm3, %v4664_v32  ;;  %v15054_v37 = vld [vmem:[#allocation2 + $0xd1] sm:$0xff] }
 0x39b   : > { %v10829_v30 = vpop.f32.mrb[11].mxu0  ;;  %11114 = vmatmul.mubr.msk.f32.gmra.mrb[116].mxu0 %vm1744_vm3, %v15042_v63  ;;  %10991 = vmatprep.mubr.msk.f32.mxu1 %vm12642_vm0, %v17284_v14 }
 0x39c   : > { %11116 = vmatprep.mubr.msk.f32.mxu0 %vm12642_vm0, %v17284_v14  ;;  %v15052_v15 = vadd.f32 %v4447_v49, %v4131_v58  ;;  %v4666_v30 = vld [vmem:[#allocation2 + $0xd8] sm:$0xff] }
 0x39d   : > { %v3972_v17 = vpop.f32.mrb[186].mxu1 }
 0x39e   : > { %17307 = vst [vmem:[#allocation95_spill] sm:$0xff] %v15052_v15  ;;  %v4452_v62 = vpop.f32.mrb[12].mxu0  ;;  %v4132_v55 = vadd.f32 %v3972_v17, %v14642_v13  ;;  %v10707_v41 = vpop.f32.mrb[187].mxu1  ;;  %10992 = vmatmul.mubr.msk.f32.gmra.mrb[36].mxu1 %vm1744_vm3, %v4665_v45  ;;  %v15066_v15 = vld [vmem:[#allocation2 + $0xd9] sm:$0xff] }
 0x39f   : > { %v10832_v32 = vpop.f32.mrb[13].mxu0  ;;  %11117 = vmatmul.mubr.msk.f32.gmra.mrb[118].mxu0 %vm1744_vm3, %v15054_v37  ;;  %10994 = vmatprep.mubr.msk.f32.mxu1 %vm12642_vm0, %v17284_v14 }
 0x3a0   : > { %11119 = vmatprep.mubr.msk.f32.mxu0 %vm12642_vm0, %v17284_v14  ;;  %v15064_v49 = vadd.f32 %v4452_v62, %v4132_v55  ;;  %v4667_v32 = vld [vmem:[#allocation2 + $0xe0] sm:$0xff] }
 0x3a1   : > { %v3977_v58 = vpop.f32.mrb[188].mxu1 }
 0x3a2   : > { %17308 = vst [vmem:[#allocation96_spill] sm:$0xff] %v15064_v49  ;;  %v4457_v50 = vpop.f32.mrb[14].mxu0  ;;  %v4133_v13 = vadd.f32 %v3977_v58, %v14650_v11  ;;  %v10710_v17 = vpop.f32.mrb[189].mxu1  ;;  %10995 = vmatmul.mubr.msk.f32.gmra.mrb[38].mxu1 %vm1744_vm3, %v4666_v30  ;;  %v15078_v49 = vld [vmem:[#allocation2 + $0xe1] sm:$0xff] }
 0x3a3   : > { %v10835_v45 = vpop.f32.mrb[15].mxu0  ;;  %11120 = vmatmul.mubr.msk.f32.gmra.mrb[120].mxu0 %vm1744_vm3, %v15066_v15  ;;  %10997 = vmatprep.mubr.msk.f32.mxu1 %vm12642_vm0, %v17284_v14 }
 0x3a4   : > { %11122 = vmatprep.mubr.msk.f32.mxu0 %vm12642_vm0, %v17284_v14  ;;  %v15076_v62 = vadd.f32 %v4457_v50, %v4133_v13  ;;  %v4668_v45 = vld [vmem:[#allocation2 + $0xe8] sm:$0xff] }
 0x3a5   : > { %v3982_v55 = vpop.f32.mrb[190].mxu1 }
 0x3a6   : > { %17309 = vst [vmem:[#allocation97_spill] sm:$0xff] %v15076_v62  ;;  %v4462_v41 = vpop.f32.mrb[16].mxu0  ;;  %v4134_v11 = vadd.f32 %v3982_v55, %v14658_v0  ;;  %v10713_v58 = vpop.f32.mrb[191].mxu1  ;;  %10998 = vmatmul.mubr.msk.f32.gmra.mrb[40].mxu1 %vm1744_vm3, %v4667_v32  ;;  %v15090_v62 = vld [vmem:[#allocation2 + $0xe9] sm:$0xff] }
 0x3a7   : > { %v10838_v30 = vpop.f32.mrb[17].mxu0  ;;  %11123 = vmatmul.mubr.msk.f32.gmra.mrb[122].mxu0 %vm1744_vm3, %v15078_v49  ;;  %11000 = vmatprep.mubr.msk.f32.mxu1 %vm12642_vm0, %v17284_v14 }
 0x3a8   : > { %11125 = vmatprep.mubr.msk.f32.mxu0 %vm12642_vm0, %v17284_v14  ;;  %v15088_v50 = vadd.f32 %v4462_v41, %v4134_v11  ;;  %v4669_v30 = vld [vmem:[#allocation2 + $0xf0] sm:$0xff] }
 0x3a9   : > { %v3987_v13 = vpop.f32.mrb[192].mxu1 }
 0x3aa   : > { %17310 = vst [vmem:[#allocation98_spill] sm:$0xff] %v15088_v50  ;;  %v4467_v17 = vpop.f32.mrb[18].mxu0  ;;  %v4135_v0 = vadd.f32 %v3987_v13, %v14666_v57  ;;  %v10716_v55 = vpop.f32.mrb[193].mxu1  ;;  %11001 = vmatmul.mubr.msk.f32.gmra.mrb[42].mxu1 %vm1744_vm3, %v4668_v45  ;;  %v15102_v50 = vld [vmem:[#allocation2 + $0xf1] sm:$0xff] }
 0x3ab   : > { %v10841_v32 = vpop.f32.mrb[19].mxu0  ;;  %11126 = vmatmul.mubr.msk.f32.gmra.mrb[124].mxu0 %vm1744_vm3, %v15090_v62  ;;  %11003 = vmatprep.mubr.msk.f32.mxu1 %vm12642_vm0, %v17284_v14 }
 0x3ac   : > { %11128 = vmatprep.mubr.msk.f32.mxu0 %vm12642_vm0, %v17284_v14  ;;  %v15100_v41 = vadd.f32 %v4467_v17, %v4135_v0  ;;  %v4670_v32 = vld [vmem:[#allocation2 + $0xf8] sm:$0xff] }
 0x3ad   : > { %v3992_v11 = vpop.f32.mrb[194].mxu1 }
 0x3ae   : > { %17311 = vst [vmem:[#allocation99_spill] sm:$0xff] %v15100_v41  ;;  %v4472_v58 = vpop.f32.mrb[20].mxu0  ;;  %v4136_v57 = vadd.f32 %v3992_v11, %v14674_v25  ;;  %v10719_v13 = vpop.f32.mrb[195].mxu1  ;;  %11004 = vmatmul.mubr.msk.f32.gmra.mrb[44].mxu1 %vm1744_vm3, %v4669_v30  ;;  %v15114_v41 = vld [vmem:[#allocation2 + $0xf9] sm:$0xff] }
 0x3af   : > { %v10844_v45 = vpop.f32.mrb[21].mxu0  ;;  %11129 = vmatmul.mubr.msk.f32.gmra.mrb[126].mxu0 %vm1744_vm3, %v15102_v50  ;;  %11006 = vmatprep.mubr.msk.f32.mxu1 %vm12642_vm0, %v17284_v14 }
 0x3b0   : > { %11131 = vmatprep.mubr.msk.f32.mxu0 %vm12642_vm0, %v17284_v14  ;;  %v15112_v17 = vadd.f32 %v4472_v58, %v4136_v57  ;;  %v4671_v45 = vld [vmem:[#allocation2 + $0x100] sm:$0xff] }
 0x3b1   : > { %v3997_v0 = vpop.f32.mrb[196].mxu1 }
 0x3b2   : > { %17312 = vst [vmem:[#allocation100_spill] sm:$0xff] %v15112_v17  ;;  %v4477_v55 = vpop.f32.mrb[22].mxu0  ;;  %v4137_v25 = vadd.f32 %v3997_v0, %v14682_v38  ;;  %v10722_v11 = vpop.f32.mrb[197].mxu1  ;;  %11007 = vmatmul.mubr.msk.f32.gmra.mrb[46].mxu1 %vm1744_vm3, %v4670_v32  ;;  %v15126_v17 = vld [vmem:[#allocation2 + $0x101] sm:$0xff] }
 0x3b3   : > { %v10847_v30 = vpop.f32.mrb[23].mxu0  ;;  %11132 = vmatmul.mubr.msk.f32.gmra.mrb[128].mxu0 %vm1744_vm3, %v15114_v41  ;;  %11009 = vmatprep.mubr.msk.f32.mxu1 %vm12642_vm0, %v17284_v14 }
 0x3b4   : > { %11134 = vmatprep.mubr.msk.f32.mxu0 %vm12642_vm0, %v17284_v14  ;;  %v15124_v58 = vadd.f32 %v4477_v55, %v4137_v25  ;;  %v4672_v30 = vld [vmem:[#allocation2 + $0x108] sm:$0xff] }
 0x3b5   : > { %v4002_v57 = vpop.f32.mrb[198].mxu1 }
 0x3b6   : > { %17313 = vst [vmem:[#allocation101_spill] sm:$0xff] %v15124_v58  ;;  %v4482_v13 = vpop.f32.mrb[24].mxu0  ;;  %v4138_v38 = vadd.f32 %v4002_v57, %v14690_v5  ;;  %v10725_v0 = vpop.f32.mrb[199].mxu1  ;;  %11010 = vmatmul.mubr.msk.f32.gmra.mrb[48].mxu1 %vm1744_vm3, %v4671_v45  ;;  %v15138_v58 = vld [vmem:[#allocation2 + $0x109] sm:$0xff] }
 0x3b7   : > { %v10850_v32 = vpop.f32.mrb[25].mxu0  ;;  %11135 = vmatmul.mubr.msk.f32.gmra.mrb[130].mxu0 %vm1744_vm3, %v15126_v17  ;;  %11012 = vmatprep.mubr.msk.f32.mxu1 %vm12642_vm0, %v17284_v14 }
 0x3b8   : > { %11137 = vmatprep.mubr.msk.f32.mxu0 %vm12642_vm0, %v17284_v14  ;;  %v15136_v55 = vadd.f32 %v4482_v13, %v4138_v38  ;;  %v4673_v32 = vld [vmem:[#allocation2 + $0x110] sm:$0xff] }
 0x3b9   : > { %v4007_v25 = vpop.f32.mrb[200].mxu1 }
 0x3ba   : > { %17314 = vst [vmem:[#allocation102_spill] sm:$0xff] %v15136_v55  ;;  %v4487_v11 = vpop.f32.mrb[26].mxu0  ;;  %v4139_v5 = vadd.f32 %v4007_v25, %v14698_v48  ;;  %v10728_v57 = vpop.f32.mrb[201].mxu1  ;;  %11013 = vmatmul.mubr.msk.f32.gmra.mrb[50].mxu1 %vm1744_vm3, %v4672_v30  ;;  %v15150_v55 = vld [vmem:[#allocation2 + $0x111] sm:$0xff] }
 0x3bb   : > { %v10853_v45 = vpop.f32.mrb[27].mxu0  ;;  %11138 = vmatmul.mubr.msk.f32.gmra.mrb[132].mxu0 %vm1744_vm3, %v15138_v58  ;;  %11015 = vmatprep.mubr.msk.f32.mxu1 %vm12642_vm0, %v17284_v14 }
 0x3bc   : > { %11140 = vmatprep.mubr.msk.f32.mxu0 %vm12642_vm0, %v17284_v14  ;;  %v15148_v13 = vadd.f32 %v4487_v11, %v4139_v5  ;;  %v4674_v45 = vld [vmem:[#allocation2 + $0x118] sm:$0xff] }
 0x3bd   : > { %v4012_v38 = vpop.f32.mrb[202].mxu1 }
 0x3be   : > { %17315 = vst [vmem:[#allocation103_spill] sm:$0xff] %v15148_v13  ;;  %v4492_v0 = vpop.f32.mrb[28].mxu0  ;;  %v4140_v48 = vadd.f32 %v4012_v38, %v14706_v47  ;;  %v10731_v25 = vpop.f32.mrb[203].mxu1  ;;  %11016 = vmatmul.mubr.msk.f32.gmra.mrb[52].mxu1 %vm1744_vm3, %v4673_v32  ;;  %v15162_v13 = vld [vmem:[#allocation2 + $0x119] sm:$0xff] }
 0x3bf   : > { %v10856_v30 = vpop.f32.mrb[29].mxu0  ;;  %11141 = vmatmul.mubr.msk.f32.gmra.mrb[134].mxu0 %vm1744_vm3, %v15150_v55  ;;  %11018 = vmatprep.mubr.msk.f32.mxu1 %vm12642_vm0, %v17284_v14 }
 0x3c0   : > { %11143 = vmatprep.mubr.msk.f32.mxu0 %vm12642_vm0, %v17284_v14  ;;  %v15160_v11 = vadd.f32 %v4492_v0, %v4140_v48  ;;  %v4675_v30 = vld [vmem:[#allocation2 + $0x120] sm:$0xff] }
 0x3c1   : > { %v4017_v5 = vpop.f32.mrb[204].mxu1 }
 0x3c2   : > { %17316 = vst [vmem:[#allocation104_spill] sm:$0xff] %v15160_v11  ;;  %v4497_v57 = vpop.f32.mrb[30].mxu0  ;;  %v4141_v47 = vadd.f32 %v4017_v5, %v14714_v61  ;;  %v10734_v38 = vpop.f32.mrb[205].mxu1  ;;  %11019 = vmatmul.mubr.msk.f32.gmra.mrb[54].mxu1 %vm1744_vm3, %v4674_v45  ;;  %v15174_v11 = vld [vmem:[#allocation2 + $0x121] sm:$0xff] }
 0x3c3   : > { %v10859_v32 = vpop.f32.mrb[31].mxu0  ;;  %11144 = vmatmul.mubr.msk.f32.gmra.mrb[136].mxu0 %vm1744_vm3, %v15162_v13  ;;  %11021 = vmatprep.mubr.msk.f32.mxu1 %vm12642_vm0, %v17284_v14 }
 0x3c4   : > { %11146 = vmatprep.mubr.msk.f32.mxu0 %vm12642_vm0, %v17284_v14  ;;  %v15172_v0 = vadd.f32 %v4497_v57, %v4141_v47  ;;  %v4676_v32 = vld [vmem:[#allocation2 + $0x128] sm:$0xff] }
 0x3c5   : > { %v4022_v48 = vpop.f32.mrb[206].mxu1 }
 0x3c6   : > { %17317 = vst [vmem:[#allocation105_spill] sm:$0xff] %v15172_v0  ;;  %v4502_v25 = vpop.f32.mrb[32].mxu0  ;;  %v4142_v61 = vadd.f32 %v4022_v48, %v14722_v10  ;;  %v10737_v5 = vpop.f32.mrb[207].mxu1  ;;  %11022 = vmatmul.mubr.msk.f32.gmra.mrb[56].mxu1 %vm1744_vm3, %v4675_v30  ;;  %v15186_v0 = vld [vmem:[#allocation2 + $0x129] sm:$0xff] }
 0x3c7   : > { %v10862_v45 = vpop.f32.mrb[33].mxu0  ;;  %11147 = vmatmul.mubr.msk.f32.gmra.mrb[138].mxu0 %vm1744_vm3, %v15174_v11  ;;  %11024 = vmatprep.mubr.msk.f32.mxu1 %vm12642_vm0, %v17284_v14 }
 0x3c8   : > { %11149 = vmatprep.mubr.msk.f32.mxu0 %vm12642_vm0, %v17284_v14  ;;  %v15184_v57 = vadd.f32 %v4502_v25, %v4142_v61  ;;  %v4677_v45 = vld [vmem:[#allocation2 + $0x130] sm:$0xff] }
 0x3c9   : > { %v4027_v47 = vpop.f32.mrb[208].mxu1 }
 0x3ca   : > { %17318 = vst [vmem:[#allocation106_spill] sm:$0xff] %v15184_v57  ;;  %v4507_v38 = vpop.f32.mrb[34].mxu0  ;;  %v4143_v10 = vadd.f32 %v4027_v47, %v14730_v8  ;;  %v10740_v48 = vpop.f32.mrb[209].mxu1  ;;  %11025 = vmatmul.mubr.msk.f32.gmra.mrb[58].mxu1 %vm1744_vm3, %v4676_v32  ;;  %v15198_v57 = vld [vmem:[#allocation2 + $0x131] sm:$0xff] }
 0x3cb   : > { %v10865_v30 = vpop.f32.mrb[35].mxu0  ;;  %11150 = vmatmul.mubr.msk.f32.gmra.mrb[140].mxu0 %vm1744_vm3, %v15186_v0  ;;  %11027 = vmatprep.mubr.msk.f32.mxu1 %vm12642_vm0, %v17284_v14 }
 0x3cc   : > { %11152 = vmatprep.mubr.msk.f32.mxu0 %vm12642_vm0, %v17284_v14  ;;  %v15196_v25 = vadd.f32 %v4507_v38, %v4143_v10  ;;  %v4678_v30 = vld [vmem:[#allocation2 + $0x138] sm:$0xff] }
 0x3cd   : > { %v4032_v61 = vpop.f32.mrb[210].mxu1 }
 0x3ce   : > { %17319 = vst [vmem:[#allocation107_spill] sm:$0xff] %v15196_v25  ;;  %v4512_v5 = vpop.f32.mrb[36].mxu0  ;;  %v4144_v8 = vadd.f32 %v4032_v61, %v14738_v2  ;;  %v10743_v47 = vpop.f32.mrb[211].mxu1  ;;  %11028 = vmatmul.mubr.msk.f32.gmra.mrb[60].mxu1 %vm1744_vm3, %v4677_v45  ;;  %v15210_v25 = vld [vmem:[#allocation2 + $0x139] sm:$0xff] }
 0x3cf   : > { %v10868_v32 = vpop.f32.mrb[37].mxu0  ;;  %11153 = vmatmul.mubr.msk.f32.gmra.mrb[142].mxu0 %vm1744_vm3, %v15198_v57  ;;  %11030 = vmatprep.mubr.msk.f32.mxu1 %vm12642_vm0, %v17284_v14 }
 0x3d0   : > { %11155 = vmatprep.mubr.msk.f32.mxu0 %vm12642_vm0, %v17284_v14  ;;  %v15208_v38 = vadd.f32 %v4512_v5, %v4144_v8  ;;  %v4679_v32 = vld [vmem:[#allocation2 + $0x140] sm:$0xff] }
 0x3d1   : > { %v4037_v10 = vpop.f32.mrb[212].mxu1 }
 0x3d2   : > { %17320 = vst [vmem:[#allocation108_spill] sm:$0xff] %v15208_v38  ;;  %v4517_v48 = vpop.f32.mrb[38].mxu0  ;;  %v4145_v2 = vadd.f32 %v4037_v10, %v14746_v39  ;;  %v10746_v61 = vpop.f32.mrb[213].mxu1  ;;  %11031 = vmatmul.mubr.msk.f32.gmra.mrb[62].mxu1 %vm1744_vm3, %v4678_v30  ;;  %v15222_v38 = vld [vmem:[#allocation2 + $0x141] sm:$0xff] }
 0x3d3   : > { %v10871_v45 = vpop.f32.mrb[39].mxu0  ;;  %11156 = vmatmul.mubr.msk.f32.gmra.mrb[144].mxu0 %vm1744_vm3, %v15210_v25  ;;  %11033 = vmatprep.mubr.msk.f32.mxu1 %vm12642_vm0, %v17284_v14 }
 0x3d4   : > { %11158 = vmatprep.mubr.msk.f32.mxu0 %vm12642_vm0, %v17284_v14  ;;  %v15220_v5 = vadd.f32 %v4517_v48, %v4145_v2  ;;  %v4680_v45 = vld [vmem:[#allocation2 + $0x148] sm:$0xff] }
 0x3d5   : > { %v4042_v8 = vpop.f32.mrb[214].mxu1 }
 0x3d6   : > { %17321 = vst [vmem:[#allocation109_spill] sm:$0xff] %v15220_v5  ;;  %v4522_v47 = vpop.f32.mrb[40].mxu0  ;;  %v4146_v39 = vadd.f32 %v4042_v8, %v14754_v24  ;;  %v10749_v10 = vpop.f32.mrb[215].mxu1  ;;  %11034 = vmatmul.mubr.msk.f32.gmra.mrb[64].mxu1 %vm1744_vm3, %v4679_v32  ;;  %v15234_v5 = vld [vmem:[#allocation2 + $0x149] sm:$0xff] }
 0x3d7   : > { %v10874_v30 = vpop.f32.mrb[41].mxu0  ;;  %11159 = vmatmul.mubr.msk.f32.gmra.mrb[146].mxu0 %vm1744_vm3, %v15222_v38  ;;  %11036 = vmatprep.mubr.msk.f32.mxu1 %vm12642_vm0, %v17284_v14 }
 0x3d8   : > { %11161 = vmatprep.mubr.msk.f32.mxu0 %vm12642_vm0, %v17284_v14  ;;  %v15232_v48 = vadd.f32 %v4522_v47, %v4146_v39  ;;  %v4681_v30 = vld [vmem:[#allocation2 + $0x150] sm:$0xff] }
 0x3d9   : > { %v4047_v2 = vpop.f32.mrb[216].mxu1 }
 0x3da   : > { %17322 = vst [vmem:[#allocation110_spill] sm:$0xff] %v15232_v48  ;;  %v4527_v61 = vpop.f32.mrb[42].mxu0  ;;  %v4147_v24 = vadd.f32 %v4047_v2, %v14762_v4  ;;  %v10752_v8 = vpop.f32.mrb[217].mxu1  ;;  %11037 = vmatmul.mubr.msk.f32.gmra.mrb[66].mxu1 %vm1744_vm3, %v4680_v45  ;;  %v15246_v48 = vld [vmem:[#allocation2 + $0x151] sm:$0xff] }
 0x3db   : > { %v10877_v32 = vpop.f32.mrb[43].mxu0  ;;  %11162 = vmatmul.mubr.msk.f32.gmra.mrb[148].mxu0 %vm1744_vm3, %v15234_v5  ;;  %11039 = vmatprep.mubr.msk.f32.mxu1 %vm12642_vm0, %v17284_v14 }
 0x3dc   : > { %11164 = vmatprep.mubr.msk.f32.mxu0 %vm12642_vm0, %v17284_v14  ;;  %v15244_v47 = vadd.f32 %v4527_v61, %v4147_v24  ;;  %v4682_v32 = vld [vmem:[#allocation2 + $0x158] sm:$0xf] }
 0x3dd   : > { %v4052_v39 = vpop.f32.mrb[218].mxu1 }
 0x3de   : > { %17323 = vst [vmem:[#allocation111_spill] sm:$0xff] %v15244_v47  ;;  %v4532_v10 = vpop.f32.mrb[44].mxu0  ;;  %v4148_v4 = vadd.f32 %v4052_v39, %v14770_v53  ;;  %v10755_v2 = vpop.f32.mrb[219].mxu1  ;;  %11040 = vmatmul.mubr.msk.f32.gmra.mrb[68].mxu1 %vm1744_vm3, %v4681_v30  ;;  %v5162_v47 = vld [vmem:[#allocation2 + $0x159] sm:$0xf] }
 0x3df   : > { %v10880_v45 = vpop.f32.mrb[45].mxu0  ;;  %11165 = vmatmul.mubr.msk.f32.gmra.mrb[150].mxu0 %vm1744_vm3, %v15246_v48  ;;  %11042 = vmatprep.mubr.msk.f32.mxu1 %vm12642_vm0, %v17284_v14  ;;  %v9244_v30 = vld [vmem:[%s17165_s8 + $0x20] sm:$0xf] }
 0x3e0   : > { %11167 = vmatprep.mubr.msk.f32.mxu0 %vm12642_vm0, %v17284_v14  ;;  %v15256_v61 = vadd.f32 %v4532_v10, %v4148_v4  ;;  %v6082_v45 = vld [vmem:[#allocation2 + $0x2a] sm:$0xff] }
 0x3e1   : > { %v4057_v24 = vpop.f32.mrb[220].mxu1 }
 0x3e2   : > { %v4537_v8 = vpop.f32.mrb[46].mxu0  ;;  %v4149_v53 = vadd.f32 %v4057_v24, %v14778_v31  ;;  %v10758_v39 = vpop.f32.mrb[221].mxu1  ;;  %11043 = vmatmul.mubr.msk.f32.gmra.mrb[70].mxu1 %vm1744_vm3, %v4682_v32 }
 0x3e3   : > { %v10883_v2 = vpop.f32.mrb[47].mxu0  ;;  %11168 = vmatmul.mubr.msk.f32.gmra.mrb[152].mxu0 %vm1744_vm3, %v5162_v47  ;;  %11172 = vmatprep.mubr.msk.f32.mxu1 %vm12642_vm0, %v17284_v14 }
 0x3e4   : > { %11297 = vmatprep.mubr.msk.f32.mxu0 %vm12642_vm0, %v17284_v14  ;;  %v15265_v10 = vadd.f32 %v4537_v8, %v4149_v53  ;;  %v6083_v53 = vld [vmem:[#allocation2 + $0x32] sm:$0xff] }
 0x3e5   : > { %v4062_v4 = vpop.f32.mrb[222].mxu1 }
 0x3e6   : > { %v4542_v31 = vpop.f32.mrb[48].mxu0  ;;  %v4150_v24 = vadd.f32 %v4062_v4, %v14789_v52  ;;  %v10761_v32 = vpop.f32.mrb[223].mxu1  ;;  %11173 = vmatmul.mubr.msk.f32.vlgmr.msra.gmra.mrb[72].mxu1 %vm1744_vm3, %v14807_v40 }
 0x3e7   : > { %v10886_v39 = vpop.f32.mrb[49].mxu0  ;;  %11298 = vmatmul.mubr.msk.f32.vlgmr.msra.gmra.mrb[154].mxu0 %vm1744_vm3, %v6082_v45  ;;  %11421 = vmatpush3.msk.msra.mxu1 %vm1868_vm2, %v9244_v30 }
 0x3e8   : > { %11175 = vmatprep.mubr.msk.f32.mxu1 %vm12642_vm0, %v17284_v14  ;;  %v15277_v47 = vadd.f32 %v4542_v31, %v4150_v24  ;;  %11300 = vmatprep.mubr.msk.f32.mxu0 %vm12642_vm0, %v17284_v14  ;;  %v6084_v24 = vld [vmem:[#allocation2 + $0x3a] sm:$0xff] }
 0x3e9   : > { %11670 = vmatprep.subr.mxu1 %v17284_v14  ;;  %v4067_v52 = vpop.f32.mrb[224].mxu1 }
 0x3ea   : > { %v4547_v8 = vpop.f32.mrb[50].mxu0  ;;  %v4151_v2 = vadd.f32 %v4067_v52, %v14799_v42  ;;  %v10764_v40 = vpop.f32.mrb[225].mxu1  ;;  %11176 = vmatmul.mubr.msk.f32.gmra.mrb[74].mxu1 %vm1744_vm3, %v14818_v59 }
 0x3eb   : > { %v10889_v4 = vpop.f32.mrb[51].mxu0  ;;  %11301 = vmatmul.mubr.msk.f32.gmra.mrb[156].mxu0 %vm1744_vm3, %v6083_v53  ;;  %11178 = vmatprep.mubr.msk.f32.mxu1 %vm12642_vm0, %v17284_v14  ;;  %v6085_v53 = vld [vmem:[#allocation2 + $0x42] sm:$0xff] }
 0x3ec   : > { %11303 = vmatprep.mubr.msk.f32.mxu0 %vm12642_vm0, %v17284_v14  ;;  %v15290_v30 = vadd.f32 %v4547_v8, %v4151_v2 }
 0x3ed   : > { %v4072_v31 = vpop.f32.mrb[226].mxu1 }
 0x3ee   : > { %v4552_v45 = vpop.f32.mrb[52].mxu0  ;;  %v4152_v42 = vadd.f32 %v4072_v31, %v14809_v29  ;;  %v10767_v32 = vpop.f32.mrb[227].mxu1  ;;  %11179 = vmatmul.mubr.msk.f32.gmra.mrb[76].mxu1 %vm1744_vm3, %v14829_v27 }
 0x3ef   : > { %v10892_v39 = vpop.f32.mrb[53].mxu0  ;;  %11304 = vmatmul.mubr.msk.f32.gmra.mrb[158].mxu0 %vm1744_vm3, %v6084_v24  ;;  %11181 = vmatprep.mubr.msk.f32.mxu1 %vm12642_vm0, %v17284_v14 }
 0x3f0   : > { %11306 = vmatprep.mubr.msk.f32.mxu0 %vm12642_vm0, %v17284_v14  ;;  %v15300_v59 = vadd.f32 %v4552_v45, %v4152_v42  ;;  %v6086_v45 = vld [vmem:[#allocation2 + $0x4a] sm:$0xff] }
 0x3f1   : > { %v4077_v52 = vpop.f32.mrb[228].mxu1 }
 0x3f2   : > { %v4557_v8 = vpop.f32.mrb[54].mxu0  ;;  %v4153_v29 = vadd.f32 %v4077_v52, %v14820_v12  ;;  %v10770_v2 = vpop.f32.mrb[229].mxu1  ;;  %11182 = vmatmul.mubr.msk.f32.gmra.mrb[78].mxu1 %vm1744_vm3, %v14840_v3  ;;  %v6087_v52 = vld [vmem:[#allocation2 + $0x52] sm:$0xff] }
 0x3f3   : > { %v10895_v40 = vpop.f32.mrb[55].mxu0  ;;  %11307 = vmatmul.mubr.msk.f32.gmra.mrb[160].mxu0 %vm1744_vm3, %v6085_v53  ;;  %11184 = vmatprep.mubr.msk.f32.mxu1 %vm12642_vm0, %v17284_v14  ;;  %v6088_v2 = vld [vmem:[#allocation2 + $0x5a] sm:$0xff] }
 0x3f4   : > { %11309 = vmatprep.mubr.msk.f32.mxu0 %vm12642_vm0, %v17284_v14  ;;  %v15310_v27 = vadd.f32 %v4557_v8, %v4153_v29 }
 0x3f5   : > { %v4082_v4 = vpop.f32.mrb[230].mxu1 }
 0x3f6   : > { %v4562_v31 = vpop.f32.mrb[56].mxu0  ;;  %v4154_v12 = vadd.f32 %v4082_v4, %v14831_v36  ;;  %v10773_v24 = vpop.f32.mrb[231].mxu1  ;;  %11185 = vmatmul.mubr.msk.f32.gmra.mrb[80].mxu1 %vm1744_vm3, %v14851_v1 }
 0x3f7   : > { %v10898_v42 = vpop.f32.mrb[57].mxu0  ;;  %11310 = vmatmul.mubr.msk.f32.gmra.mrb[162].mxu0 %vm1744_vm3, %v6086_v45  ;;  %11187 = vmatprep.mubr.msk.f32.mxu1 %vm12642_vm0, %v17284_v14  ;;  %v6089_v24 = vld [vmem:[#allocation2 + $0x62] sm:$0xff] }
 0x3f8   : > { %11312 = vmatprep.mubr.msk.f32.mxu0 %vm12642_vm0, %v17284_v14  ;;  %v15320_v3 = vadd.f32 %v4562_v31, %v4154_v12 }
 0x3f9   : > { %v4087_v32 = vpop.f32.mrb[232].mxu1 }
 0x3fa   : > { %v4567_v39 = vpop.f32.mrb[58].mxu0  ;;  %v4155_v36 = vadd.f32 %v4087_v32, %v14842_v28  ;;  %v10776_v8 = vpop.f32.mrb[233].mxu1  ;;  %11188 = vmatmul.mubr.msk.f32.gmra.mrb[82].mxu1 %vm1744_vm3, %v14862_v22 }
 0x3fb   : > { %v10901_v53 = vpop.f32.mrb[59].mxu0  ;;  %11313 = vmatmul.mubr.msk.f32.gmra.mrb[164].mxu0 %vm1744_vm3, %v6087_v52  ;;  %11190 = vmatprep.mubr.msk.f32.mxu1 %vm12642_vm0, %v17284_v14 }
 0x3fc   : > { %11315 = vmatprep.mubr.msk.f32.mxu0 %vm12642_vm0, %v17284_v14  ;;  %v15330_v1 = vadd.f32 %v4567_v39, %v4155_v36  ;;  %v6090_v36 = vld [vmem:[#allocation2 + $0x6a] sm:$0xff] }
 0x3fd   : > { %v4092_v29 = vpop.f32.mrb[234].mxu1 }
 0x3fe   : > { %v4572_v28 = vpop.f32.mrb[60].mxu0  ;;  %v4156_v40 = vadd.f32 %v4092_v29, %v14853_v6  ;;  %v10779_v4 = vpop.f32.mrb[235].mxu1  ;;  %11191 = vmatmul.mubr.msk.f32.gmra.mrb[84].mxu1 %vm1744_vm3, %v14873_v9 }
 0x3ff   : > { %v10904_v22 = vpop.f32.mrb[61].mxu0  ;;  %11316 = vmatmul.mubr.msk.f32.gmra.mrb[166].mxu0 %vm1744_vm3, %v6088_v2  ;;  %11193 = vmatprep.mubr.msk.f32.mxu1 %vm12642_vm0, %v17284_v14  ;;  %v6091_v2 = vld [vmem:[#allocation2 + $0x72] sm:$0xff] }
 0x400   : > { %11318 = vmatprep.mubr.msk.f32.mxu0 %vm12642_vm0, %v17284_v14  ;;  %v15341_v31 = vadd.f32 %v4572_v28, %v4156_v40 }
 0x401   : > { %v4097_v45 = vpop.f32.mrb[236].mxu1 }
 0x402   : > { %v4577_v12 = vpop.f32.mrb[62].mxu0  ;;  %v4157_v6 = vadd.f32 %v4097_v45, %v14864_v20  ;;  %v10782_v42 = vpop.f32.mrb[237].mxu1  ;;  %11194 = vmatmul.mubr.msk.f32.gmra.mrb[86].mxu1 %vm1744_vm3, %v14887_v56 }
 0x403   : > { %v10907_v32 = vpop.f32.mrb[63].mxu0  ;;  %11319 = vmatmul.mubr.msk.f32.gmra.mrb[168].mxu0 %vm1744_vm3, %v6089_v24  ;;  %11196 = vmatprep.mubr.msk.f32.mxu1 %vm12642_vm0, %v17284_v14 }
 0x404   : > { %11321 = vmatprep.mubr.msk.f32.mxu0 %vm12642_vm0, %v17284_v14  ;;  %v15351_v9 = vadd.f32 %v4577_v12, %v4157_v6  ;;  %v6092_v12 = vld [vmem:[#allocation2 + $0x7a] sm:$0xff] }
 0x405   : > { %v4102_v39 = vpop.f32.mrb[238].mxu1 }
 0x406   : > { %v4582_v52 = vpop.f32.mrb[64].mxu0  ;;  %v4158_v20 = vadd.f32 %v4102_v39, %v14875_v35  ;;  %v10785_v8 = vpop.f32.mrb[239].mxu1  ;;  %11197 = vmatmul.mubr.msk.f32.gmra.mrb[88].mxu1 %vm1744_vm3, %v14900_v54  ;;  %v7419_v54 = vld [vmem:[%s17168_s11] sm:$0xf] }
 0x407   : > { %v10910_v53 = vpop.f32.mrb[65].mxu0  ;;  %11322 = vmatmul.mubr.msk.f32.gmra.mrb[170].mxu0 %vm1744_vm3, %v6090_v36  ;;  %11199 = vmatprep.mubr.msk.f32.mxu1 %vm12642_vm0, %v17284_v14 }
 0x408   : > { %11324 = vmatprep.mubr.msk.f32.mxu0 %vm12642_vm0, %v17284_v14  ;;  %v15361_v56 = vadd.f32 %v4582_v52, %v4158_v20  ;;  %11546 = vmatpush3.msk.msra.mxu0 %vm1868_vm2, %v7419_v54  ;;  %v6093_v52 = vld [vmem:[#allocation2 + $0x82] sm:$0xff]  ;;  %v6095_v54 = vld [vmem:[#allocation2 + $0x92] sm:$0xff] }
 0x409   : > { %v4107_v29 = vpop.f32.mrb[240].mxu1 }
 0x40a   : > { %v4587_v28 = vpop.f32.mrb[66].mxu0  ;;  %v4159_v35 = vadd.f32 %v4107_v29, %v14890_v46  ;;  %v10788_v40 = vpop.f32.mrb[241].mxu1  ;;  %11200 = vmatmul.mubr.msk.f32.gmra.mrb[90].mxu1 %vm1744_vm3, %v14911_v44  ;;  %v6094_v29 = vld [vmem:[#allocation2 + $0x8a] sm:$0xff] }
 0x40b   : > { %v10913_v4 = vpop.f32.mrb[67].mxu0  ;;  %11325 = vmatmul.mubr.msk.f32.gmra.mrb[172].mxu0 %vm1744_vm3, %v6091_v2  ;;  %11202 = vmatprep.mubr.msk.f32.mxu1 %vm12642_vm0, %v17284_v14 }
 0x40c   : > { %11327 = vmatprep.mubr.msk.f32.mxu0 %vm12642_vm0, %v17284_v14  ;;  %v15374_v22 = vadd.f32 %v4587_v28, %v4159_v35  ;;  %v17324_v28 = vld [vmem:[#allocation85_spill] sm:$0xff] }
 0x40d   : > { %v4112_v46 = vpop.f32.mrb[242].mxu1 }
 0x40e   : > { %v4592_v45 = vpop.f32.mrb[68].mxu0  ;;  %v4160_v44 = vadd.f32 %v4112_v46, %v14902_v21  ;;  %v10791_v24 = vpop.f32.mrb[243].mxu1  ;;  %11203 = vmatmul.mubr.msk.f32.gmra.mrb[92].mxu1 %vm1744_vm3, %v14922_v7  ;;  %v17325_v46 = vld [vmem:[#allocation86_spill] sm:$0xff] }
 0x40f   : > { %v10916_v6 = vpop.f32.mrb[69].mxu0  ;;  %11328 = vmatmul.mubr.msk.f32.gmra.mrb[174].mxu0 %vm1744_vm3, %v6092_v12  ;;  %11205 = vmatprep.mubr.msk.f32.mxu1 %vm12642_vm0, %v17284_v14 }
 0x410   : > { %11330 = vmatprep.mubr.msk.f32.mxu0 %vm12642_vm0, %v17284_v14  ;;  %v15385_v42 = vadd.f32 %v4592_v45, %v4160_v44 }
 0x411   : > { %v4117_v32 = vpop.f32.mrb[244].mxu1 }
 0x412   : > { %v4597_v39 = vpop.f32.mrb[70].mxu0  ;;  %v4161_v21 = vadd.f32 %v4117_v32, %v14913_v33  ;;  %v10794_v36 = vpop.f32.mrb[245].mxu1  ;;  %11206 = vmatmul.mubr.msk.f32.gmra.mrb[94].mxu1 %vm1744_vm3, %v14934_v18  ;;  %v6096_v32 = vld [vmem:[#allocation2 + $0x9a] sm:$0xff] }
 0x413   : > { %v10919_v20 = vpop.f32.mrb[71].mxu0  ;;  %11331 = vmatmul.mubr.msk.f32.gmra.mrb[176].mxu0 %vm1744_vm3, %v6093_v52  ;;  %11208 = vmatprep.mubr.msk.f32.mxu1 %vm12642_vm0, %v17284_v14 }
 0x414   : > { %11333 = vmatprep.mubr.msk.f32.mxu0 %vm12642_vm0, %v17284_v14  ;;  %v15395_v7 = vadd.f32 %v4597_v39, %v4161_v21  ;;  %v17326_v39 = vld [vmem:[#allocation87_spill] sm:$0xff] }
 0x415   : > { %v4877_v8 = vpop.f32.mrb[246].mxu1 }
 0x416   : > { %v5357_v53 = vpop.f32.mrb[72].mxu0  ;;  %v5081_v33 = vadd.f32 %v4877_v8, %v17324_v28  ;;  %v10924_v2 = vpop.f32.mrb[247].mxu1  ;;  %11209 = vmatmul.mubr.msk.f32.gmra.mrb[96].mxu1 %vm1744_vm3, %v14946_v19 }
 0x417   : > { %v11049_v35 = vpop.f32.mrb[73].mxu0  ;;  %11334 = vmatmul.mubr.msk.f32.gmra.mrb[178].mxu0 %vm1744_vm3, %v6094_v29  ;;  %11211 = vmatprep.mubr.msk.f32.mxu1 %vm12642_vm0, %v17284_v14  ;;  %v17327_v29 = vld [vmem:[#allocation88_spill] sm:$0xff] }
 0x418   : > { %11336 = vmatprep.mubr.msk.f32.mxu0 %vm12642_vm0, %v17284_v14  ;;  %v15405_v18 = vadd.f32 %v5357_v53, %v5081_v33  ;;  %v6097_v53 = vld [vmem:[#allocation2 + $0xa2] sm:$0xff] }
 0x419   : > { %v4882_v40 = vpop.f32.mrb[248].mxu1 }
 0x41a   : > { %v5362_v4 = vpop.f32.mrb[74].mxu0  ;;  %v5082_v45 = vadd.f32 %v4882_v40, %v17325_v46  ;;  %v10927_v12 = vpop.f32.mrb[249].mxu1  ;;  %11212 = vmatmul.mubr.msk.f32.gmra.mrb[98].mxu1 %vm1744_vm3, %v14958_v16 }
 0x41b   : > { %v11052_v44 = vpop.f32.mrb[75].mxu0  ;;  %11337 = vmatmul.mubr.msk.f32.gmra.mrb[180].mxu0 %vm1744_vm3, %v6095_v54  ;;  %11214 = vmatprep.mubr.msk.f32.mxu1 %vm12642_vm0, %v17284_v14  ;;  %v17328_v54 = vld [vmem:[#allocation89_spill] sm:$0xff] }
 0x41c   : > { %11339 = vmatprep.mubr.msk.f32.mxu0 %vm12642_vm0, %v17284_v14  ;;  %v15415_v19 = vadd.f32 %v5362_v4, %v5082_v45  ;;  %v6098_v4 = vld [vmem:[#allocation2 + $0xaa] sm:$0xff] }
 0x41d   : > { %v4887_v24 = vpop.f32.mrb[250].mxu1 }
 0x41e   : > { %v5367_v6 = vpop.f32.mrb[76].mxu0  ;;  %v5083_v52 = vadd.f32 %v4887_v24, %v17326_v39  ;;  %v10930_v21 = vpop.f32.mrb[251].mxu1  ;;  %11215 = vmatmul.mubr.msk.f32.gmra.mrb[100].mxu1 %vm1744_vm3, %v14970_v23 }
 0x41f   : > { %v11055_v36 = vpop.f32.mrb[77].mxu0  ;;  %11340 = vmatmul.mubr.msk.f32.gmra.mrb[182].mxu0 %vm1744_vm3, %v6096_v32  ;;  %11217 = vmatprep.mubr.msk.f32.mxu1 %vm12642_vm0, %v17284_v14  ;;  %v17329_v32 = vld [vmem:[#allocation90_spill] sm:$0xff] }
 0x420   : > { %11342 = vmatprep.mubr.msk.f32.mxu0 %vm12642_vm0, %v17284_v14  ;;  %v15425_v16 = vadd.f32 %v5367_v6, %v5083_v52  ;;  %v6099_v6 = vld [vmem:[#allocation2 + $0xb2] sm:$0xff] }
 0x421   : > { %v4892_v20 = vpop.f32.mrb[252].mxu1 }
 0x422   : > { %v5372_v8 = vpop.f32.mrb[78].mxu0  ;;  %v5084_v28 = vadd.f32 %v4892_v20, %v17327_v29  ;;  %v10933_v33 = vpop.f32.mrb[253].mxu1  ;;  %11218 = vmatmul.mubr.msk.f32.gmra.mrb[102].mxu1 %vm1744_vm3, %v14982_v43 }
 0x423   : > { %v11058_v2 = vpop.f32.mrb[79].mxu0  ;;  %11343 = vmatmul.mubr.msk.f32.gmra.mrb[184].mxu0 %vm1744_vm3, %v6097_v53  ;;  %11220 = vmatprep.mubr.msk.f32.mxu1 %vm12642_vm0, %v17284_v14  ;;  %v17330_v53 = vld [vmem:[#allocation91_spill] sm:$0xff] }
 0x424   : > { %11345 = vmatprep.mubr.msk.f32.mxu0 %vm12642_vm0, %v17284_v14  ;;  %v15435_v23 = vadd.f32 %v5372_v8, %v5084_v28  ;;  %v6100_v8 = vld [vmem:[#allocation2 + $0xba] sm:$0xff] }
 0x425   : > { %v4897_v35 = vpop.f32.mrb[254].mxu1 }
 0x426   : > { %v5377_v40 = vpop.f32.mrb[80].mxu0  ;;  %v5085_v46 = vadd.f32 %v4897_v35, %v17328_v54  ;;  %v10936_v45 = vpop.f32.mrb[255].mxu1  ;;  %11221 = vmatmul.mubr.msk.f32.gmra.mrb[104].mxu1 %vm1744_vm3, %v14994_v60 }
 0x427   : > { %v11061_v12 = vpop.f32.mrb[81].mxu0  ;;  %11346 = vmatmul.mubr.msk.f32.gmra.mrb[186].mxu0 %vm1744_vm3, %v6098_v4  ;;  %11223 = vmatprep.mubr.msk.f32.mxu1 %vm12642_vm0, %v17284_v14  ;;  %v17331_v4 = vld [vmem:[#allocation92_spill] sm:$0xff] }
 0x428   : > { %11348 = vmatprep.mubr.msk.f32.mxu0 %vm12642_vm0, %v17284_v14  ;;  %v15445_v43 = vadd.f32 %v5377_v40, %v5085_v46  ;;  %v6101_v40 = vld [vmem:[#allocation2 + $0xc2] sm:$0xff] }
 0x429   : > { %v4902_v44 = vpop.f32.mrb[0].mxu1 }
 0x42a   : > { %v5382_v24 = vpop.f32.mrb[82].mxu0  ;;  %v5086_v39 = vadd.f32 %v4902_v44, %v17329_v32  ;;  %v10939_v52 = vpop.f32.mrb[1].mxu1  ;;  %11224 = vmatmul.mubr.msk.f32.gmra.mrb[106].mxu1 %vm1744_vm3, %v15006_v34 }
 0x42b   : > { %v11064_v21 = vpop.f32.mrb[83].mxu0  ;;  %11349 = vmatmul.mubr.msk.f32.gmra.mrb[188].mxu0 %vm1744_vm3, %v6099_v6  ;;  %11226 = vmatprep.mubr.msk.f32.mxu1 %vm12642_vm0, %v17284_v14  ;;  %v17332_v6 = vld [vmem:[#allocation93_spill] sm:$0xff] }
 0x42c   : > { %11351 = vmatprep.mubr.msk.f32.mxu0 %vm12642_vm0, %v17284_v14  ;;  %v15455_v60 = vadd.f32 %v5382_v24, %v5086_v39  ;;  %v6102_v24 = vld [vmem:[#allocation2 + $0xca] sm:$0xff] }
 0x42d   : > { %v4907_v36 = vpop.f32.mrb[2].mxu1 }
 0x42e   : > { %v5387_v20 = vpop.f32.mrb[84].mxu0  ;;  %v5087_v29 = vadd.f32 %v4907_v36, %v17330_v53  ;;  %v10942_v28 = vpop.f32.mrb[3].mxu1  ;;  %11227 = vmatmul.mubr.msk.f32.gmra.mrb[108].mxu1 %vm1744_vm3, %v15018_v26 }
 0x42f   : > { %v11067_v33 = vpop.f32.mrb[85].mxu0  ;;  %11352 = vmatmul.mubr.msk.f32.gmra.mrb[190].mxu0 %vm1744_vm3, %v6100_v8  ;;  %11229 = vmatprep.mubr.msk.f32.mxu1 %vm12642_vm0, %v17284_v14  ;;  %v17333_v8 = vld [vmem:[#allocation94_spill] sm:$0xff] }
 0x430   : > { %11354 = vmatprep.mubr.msk.f32.mxu0 %vm12642_vm0, %v17284_v14  ;;  %v15465_v34 = vadd.f32 %v5387_v20, %v5087_v29  ;;  %v6103_v20 = vld [vmem:[#allocation2 + $0xd2] sm:$0xff] }
 0x431   : > { %v4912_v2 = vpop.f32.mrb[4].mxu1 }
 0x432   : > { %v5392_v35 = vpop.f32.mrb[86].mxu0  ;;  %v5088_v54 = vadd.f32 %v4912_v2, %v17331_v4  ;;  %v10945_v46 = vpop.f32.mrb[5].mxu1  ;;  %11230 = vmatmul.mubr.msk.f32.gmra.mrb[110].mxu1 %vm1744_vm3, %v15030_v51 }
 0x433   : > { %v11070_v45 = vpop.f32.mrb[87].mxu0  ;;  %11355 = vmatmul.mubr.msk.f32.gmra.mrb[192].mxu0 %vm1744_vm3, %v6101_v40  ;;  %11232 = vmatprep.mubr.msk.f32.mxu1 %vm12642_vm0, %v17284_v14  ;;  %v17334_v40 = vld [vmem:[#allocation95_spill] sm:$0xff] }
 0x434   : > { %11357 = vmatprep.mubr.msk.f32.mxu0 %vm12642_vm0, %v17284_v14  ;;  %v15475_v26 = vadd.f32 %v5392_v35, %v5088_v54  ;;  %v6104_v35 = vld [vmem:[#allocation2 + $0xda] sm:$0xff] }
 0x435   : > { %v4917_v12 = vpop.f32.mrb[6].mxu1 }
 0x436   : > { %v5397_v44 = vpop.f32.mrb[88].mxu0  ;;  %v5089_v32 = vadd.f32 %v4917_v12, %v17332_v6  ;;  %v10948_v39 = vpop.f32.mrb[7].mxu1  ;;  %11233 = vmatmul.mubr.msk.f32.gmra.mrb[112].mxu1 %vm1744_vm3, %v15042_v63 }
 0x437   : > { %v11073_v52 = vpop.f32.mrb[89].mxu0  ;;  %11358 = vmatmul.mubr.msk.f32.gmra.mrb[194].mxu0 %vm1744_vm3, %v6102_v24  ;;  %11235 = vmatprep.mubr.msk.f32.mxu1 %vm12642_vm0, %v17284_v14  ;;  %v17335_v24 = vld [vmem:[#allocation96_spill] sm:$0xff] }
 0x438   : > { %11360 = vmatprep.mubr.msk.f32.mxu0 %vm12642_vm0, %v17284_v14  ;;  %v15485_v51 = vadd.f32 %v5397_v44, %v5089_v32  ;;  %v6105_v44 = vld [vmem:[#allocation2 + $0xe2] sm:$0xff] }
 0x439   : > { %v4922_v21 = vpop.f32.mrb[8].mxu1 }
 0x43a   : > { %v5402_v36 = vpop.f32.mrb[90].mxu0  ;;  %v5090_v53 = vadd.f32 %v4922_v21, %v17333_v8  ;;  %v10951_v29 = vpop.f32.mrb[9].mxu1  ;;  %11236 = vmatmul.mubr.msk.f32.gmra.mrb[114].mxu1 %vm1744_vm3, %v15054_v37 }
 0x43b   : > { %v11076_v28 = vpop.f32.mrb[91].mxu0  ;;  %11361 = vmatmul.mubr.msk.f32.gmra.mrb[196].mxu0 %vm1744_vm3, %v6103_v20  ;;  %11238 = vmatprep.mubr.msk.f32.mxu1 %vm12642_vm0, %v17284_v14  ;;  %v17336_v20 = vld [vmem:[#allocation97_spill] sm:$0xff] }
 0x43c   : > { %11363 = vmatprep.mubr.msk.f32.mxu0 %vm12642_vm0, %v17284_v14  ;;  %v15495_v63 = vadd.f32 %v5402_v36, %v5090_v53  ;;  %v6106_v36 = vld [vmem:[#allocation2 + $0xea] sm:$0xff] }
 0x43d   : > { %v4927_v33 = vpop.f32.mrb[10].mxu1 }
 0x43e   : > { %v5407_v2 = vpop.f32.mrb[92].mxu0  ;;  %v5091_v4 = vadd.f32 %v4927_v33, %v17334_v40  ;;  %v10954_v54 = vpop.f32.mrb[11].mxu1  ;;  %11239 = vmatmul.mubr.msk.f32.gmra.mrb[116].mxu1 %vm1744_vm3, %v15066_v15 }
 0x43f   : > { %v11079_v46 = vpop.f32.mrb[93].mxu0  ;;  %11364 = vmatmul.mubr.msk.f32.gmra.mrb[198].mxu0 %vm1744_vm3, %v6104_v35  ;;  %11241 = vmatprep.mubr.msk.f32.mxu1 %vm12642_vm0, %v17284_v14  ;;  %v17337_v35 = vld [vmem:[#allocation98_spill] sm:$0xff] }
 0x440   : > { %11366 = vmatprep.mubr.msk.f32.mxu0 %vm12642_vm0, %v17284_v14  ;;  %v15505_v37 = vadd.f32 %v5407_v2, %v5091_v4  ;;  %v6107_v2 = vld [vmem:[#allocation2 + $0xf2] sm:$0xff] }
 0x441   : > { %v4932_v45 = vpop.f32.mrb[12].mxu1 }
 0x442   : > { %v5412_v12 = vpop.f32.mrb[94].mxu0  ;;  %v5092_v6 = vadd.f32 %v4932_v45, %v17335_v24  ;;  %v10957_v32 = vpop.f32.mrb[13].mxu1  ;;  %11242 = vmatmul.mubr.msk.f32.gmra.mrb[118].mxu1 %vm1744_vm3, %v15078_v49 }
 0x443   : > { %v11082_v39 = vpop.f32.mrb[95].mxu0  ;;  %11367 = vmatmul.mubr.msk.f32.gmra.mrb[200].mxu0 %vm1744_vm3, %v6105_v44  ;;  %11244 = vmatprep.mubr.msk.f32.mxu1 %vm12642_vm0, %v17284_v14  ;;  %v17338_v44 = vld [vmem:[#allocation99_spill] sm:$0xff] }
 0x444   : > { %11369 = vmatprep.mubr.msk.f32.mxu0 %vm12642_vm0, %v17284_v14  ;;  %v15515_v15 = vadd.f32 %v5412_v12, %v5092_v6  ;;  %v6108_v12 = vld [vmem:[#allocation2 + $0xfa] sm:$0xff] }
 0x445   : > { %v4937_v52 = vpop.f32.mrb[14].mxu1 }
 0x446   : > { %v5417_v21 = vpop.f32.mrb[96].mxu0  ;;  %v5093_v8 = vadd.f32 %v4937_v52, %v17336_v20  ;;  %v10960_v53 = vpop.f32.mrb[15].mxu1  ;;  %11245 = vmatmul.mubr.msk.f32.gmra.mrb[120].mxu1 %vm1744_vm3, %v15090_v62 }
 0x447   : > { %v11085_v29 = vpop.f32.mrb[97].mxu0  ;;  %11370 = vmatmul.mubr.msk.f32.gmra.mrb[202].mxu0 %vm1744_vm3, %v6106_v36  ;;  %11247 = vmatprep.mubr.msk.f32.mxu1 %vm12642_vm0, %v17284_v14  ;;  %v17339_v36 = vld [vmem:[#allocation100_spill] sm:$0xff] }
 0x448   : > { %11372 = vmatprep.mubr.msk.f32.mxu0 %vm12642_vm0, %v17284_v14  ;;  %v15525_v49 = vadd.f32 %v5417_v21, %v5093_v8  ;;  %v6109_v21 = vld [vmem:[#allocation2 + $0x102] sm:$0xff] }
 0x449   : > { %v4942_v28 = vpop.f32.mrb[16].mxu1 }
 0x44a   : > { %v5422_v33 = vpop.f32.mrb[98].mxu0  ;;  %v5094_v40 = vadd.f32 %v4942_v28, %v17337_v35  ;;  %v10963_v4 = vpop.f32.mrb[17].mxu1  ;;  %11248 = vmatmul.mubr.msk.f32.gmra.mrb[122].mxu1 %vm1744_vm3, %v15102_v50 }
 0x44b   : > { %v11088_v54 = vpop.f32.mrb[99].mxu0  ;;  %11373 = vmatmul.mubr.msk.f32.gmra.mrb[204].mxu0 %vm1744_vm3, %v6107_v2  ;;  %11250 = vmatprep.mubr.msk.f32.mxu1 %vm12642_vm0, %v17284_v14  ;;  %v17340_v2 = vld [vmem:[#allocation101_spill] sm:$0xff] }
 0x44c   : > { %11375 = vmatprep.mubr.msk.f32.mxu0 %vm12642_vm0, %v17284_v14  ;;  %v15535_v62 = vadd.f32 %v5422_v33, %v5094_v40  ;;  %v6110_v33 = vld [vmem:[#allocation2 + $0x10a] sm:$0xff] }
 0x44d   : > { %v4947_v46 = vpop.f32.mrb[18].mxu1 }
 0x44e   : > { %v5427_v45 = vpop.f32.mrb[100].mxu0  ;;  %v5095_v24 = vadd.f32 %v4947_v46, %v17338_v44  ;;  %v10966_v6 = vpop.f32.mrb[19].mxu1  ;;  %11251 = vmatmul.mubr.msk.f32.gmra.mrb[124].mxu1 %vm1744_vm3, %v15114_v41 }
 0x44f   : > { %v11091_v32 = vpop.f32.mrb[101].mxu0  ;;  %11376 = vmatmul.mubr.msk.f32.gmra.mrb[206].mxu0 %vm1744_vm3, %v6108_v12  ;;  %11253 = vmatprep.mubr.msk.f32.mxu1 %vm12642_vm0, %v17284_v14  ;;  %v17341_v12 = vld [vmem:[#allocation102_spill] sm:$0xff] }
 0x450   : > { %11378 = vmatprep.mubr.msk.f32.mxu0 %vm12642_vm0, %v17284_v14  ;;  %v15545_v50 = vadd.f32 %v5427_v45, %v5095_v24  ;;  %v6111_v45 = vld [vmem:[#allocation2 + $0x112] sm:$0xff] }
 0x451   : > { %v4952_v39 = vpop.f32.mrb[20].mxu1 }
 0x452   : > { %v5432_v52 = vpop.f32.mrb[102].mxu0  ;;  %v5096_v20 = vadd.f32 %v4952_v39, %v17339_v36  ;;  %v10969_v8 = vpop.f32.mrb[21].mxu1  ;;  %11254 = vmatmul.mubr.msk.f32.gmra.mrb[126].mxu1 %vm1744_vm3, %v15126_v17 }
 0x453   : > { %v11094_v53 = vpop.f32.mrb[103].mxu0  ;;  %11379 = vmatmul.mubr.msk.f32.gmra.mrb[208].mxu0 %vm1744_vm3, %v6109_v21  ;;  %11256 = vmatprep.mubr.msk.f32.mxu1 %vm12642_vm0, %v17284_v14  ;;  %v17342_v21 = vld [vmem:[#allocation103_spill] sm:$0xff] }
 0x454   : > { %11381 = vmatprep.mubr.msk.f32.mxu0 %vm12642_vm0, %v17284_v14  ;;  %v15555_v41 = vadd.f32 %v5432_v52, %v5096_v20  ;;  %v6112_v52 = vld [vmem:[#allocation2 + $0x11a] sm:$0xff] }
 0x455   : > { %v4957_v29 = vpop.f32.mrb[22].mxu1 }
 0x456   : > { %v5437_v28 = vpop.f32.mrb[104].mxu0  ;;  %v5097_v35 = vadd.f32 %v4957_v29, %v17340_v2  ;;  %v10972_v40 = vpop.f32.mrb[23].mxu1  ;;  %11257 = vmatmul.mubr.msk.f32.gmra.mrb[128].mxu1 %vm1744_vm3, %v15138_v58  ;;  %v17343_v2 = vld [vmem:[#allocation38_spill] sm:$0xff] }
 0x457   : > { %v11097_v4 = vpop.f32.mrb[105].mxu0  ;;  %11382 = vmatmul.mubr.msk.f32.gmra.mrb[210].mxu0 %vm1744_vm3, %v6110_v33  ;;  %11259 = vmatprep.mubr.msk.f32.mxu1 %vm12642_vm0, %v17284_v14  ;;  %v6113_v33 = vld [vmem:[#allocation2 + $0x122] sm:$0xff] }
 0x458   : > { %11384 = vmatprep.mubr.msk.f32.mxu0 %vm12642_vm0, %v17284_v14  ;;  %v15565_v17 = vadd.f32 %v5437_v28, %v5097_v35  ;;  %v17344_v35 = vld [vmem:[#allocation104_spill] sm:$0xff] }
 0x459   : > { %v4962_v54 = vpop.f32.mrb[24].mxu1 }
 0x45a   : > { %v5442_v46 = vpop.f32.mrb[106].mxu0  ;;  %v5098_v44 = vadd.f32 %v4962_v54, %v17341_v12  ;;  %v10975_v24 = vpop.f32.mrb[25].mxu1  ;;  %11260 = vmatmul.mubr.msk.f32.gmra.mrb[130].mxu1 %vm1744_vm3, %v15150_v55  ;;  %v15584_v55 = vld [vmem:[%s17162_s5] ss:$0 sm:$0xff] }
 0x45b   : > { %v11100_v6 = vpop.f32.mrb[107].mxu0  ;;  %11385 = vmatmul.mubr.msk.f32.gmra.mrb[212].mxu0 %vm1744_vm3, %v6111_v45  ;;  %11262 = vmatprep.mubr.msk.f32.mxu1 %vm12642_vm0, %v17284_v14 }
 0x45c   : > { %11387 = vmatprep.mubr.msk.f32.mxu0 %vm12642_vm0, %v17284_v14  ;;  %v15575_v58 = vadd.f32 %v5442_v46, %v5098_v44  ;;  %v6114_v44 = vld [vmem:[#allocation2 + $0x12a] sm:$0xff]  ;;  %v17345_v6 = vld [vmem:[#allocation40_spill] sm:$0xff] }
 0x45d   : > { %v4967_v32 = vpop.f32.mrb[26].mxu1 }
 0x45e   : > { %v5447_v39 = vpop.f32.mrb[108].mxu0  ;;  %v5099_v36 = vadd.f32 %v4967_v32, %v17342_v21  ;;  %v10978_v20 = vpop.f32.mrb[27].mxu1  ;;  %11263 = vmatmul.mubr.msk.f32.gmra.mrb[132].mxu1 %vm1744_vm3, %v15162_v13  ;;  %v15594_v13 = vadd.f32 %v15584_v55, %v17343_v2  ;;  %v15609_v32 = vadd.f32 %v15584_v55, %v17345_v6  ;;  %v17349_v6 = vld [vmem:[#allocation44_spill] sm:$0xff] }
 0x45f   : > { %v11103_v8 = vpop.f32.mrb[109].mxu0  ;;  %11388 = vmatmul.mubr.msk.f32.gmra.mrb[214].mxu0 %vm1744_vm3, %v6112_v52  ;;  %11265 = vmatprep.mubr.msk.f32.mxu1 %vm12642_vm0, %v17284_v14 }
 0x460   : > { %11390 = vmatprep.mubr.msk.f32.mxu0 %vm12642_vm0, %v17284_v14  ;;  %v15590_v53 = vadd.f32 %v5447_v39, %v5099_v36  ;;  %v8776_v24 = vmul.f32 -1.442695, %v15594_v13 }
 0x461   : > { %v4972_v29 = vpop.f32.mrb[28].mxu1 }
 0x462   : > { %v5452_v28 = vpop.f32.mrb[110].mxu0  ;;  %v5100_v40 = vadd.f32 %v4972_v29, %v17344_v35  ;;  %v10981_v4 = vpop.f32.mrb[29].mxu1  ;;  %11266 = vmatmul.mubr.msk.f32.gmra.mrb[134].mxu1 %vm1744_vm3, %v15174_v11  ;;  %v17346_v11 = vld [vmem:[#allocation105_spill] sm:$0xff]  ;;  %v6115_v29 = vld [vmem:[#allocation2 + $0x132] sm:$0xff]  ;;  %12137 = vpow2.f32 %v8776_v24 }
 0x463   : > { %v11106_v54 = vpop.f32.mrb[111].mxu0  ;;  %11391 = vmatmul.mubr.msk.f32.gmra.mrb[216].mxu0 %vm1744_vm3, %v6113_v33  ;;  %11268 = vmatprep.mubr.msk.f32.mxu1 %vm12642_vm0, %v17284_v14  ;;  %v17347_v33 = vld [vmem:[#allocation42_spill] sm:$0xff] }
 0x464   : > { %11393 = vmatprep.mubr.msk.f32.mxu0 %vm12642_vm0, %v17284_v14  ;;  %v15604_v46 = vadd.f32 %v5452_v28, %v5100_v40  ;;  %v8777_v28 = vmul.f32 -1.442695, %v15609_v32  ;;  %v15624_v2 = vadd.f32 %v15584_v55, %v17347_v33 }
 0x465   : > { %v4977_v45 = vpop.f32.mrb[30].mxu1 }
 0x466   : > { %v5457_v12 = vpop.f32.mrb[112].mxu0  ;;  %v5101_v39 = vadd.f32 %v4977_v45, %v17346_v11  ;;  %v10984_v52 = vpop.f32.mrb[31].mxu1  ;;  %11269 = vmatmul.mubr.msk.f32.gmra.mrb[136].mxu1 %vm1744_vm3, %v15186_v0  ;;  %v17348_v0 = vld [vmem:[#allocation106_spill] sm:$0xff]  ;;  %12139 = vpow2.f32 %v8777_v28  ;;  %v8778_v24 = vmul.f32 -1.442695, %v15624_v2  ;;  %v15639_v11 = vadd.f32 %v15584_v55, %v17349_v6 }
 0x467   : > { %v11109_v21 = vpop.f32.mrb[113].mxu0  ;;  %11394 = vmatmul.mubr.msk.f32.gmra.mrb[218].mxu0 %vm1744_vm3, %v6114_v44  ;;  %11271 = vmatprep.mubr.msk.f32.mxu1 %vm12642_vm0, %v17284_v14  ;;  %v6116_v44 = vld [vmem:[#allocation2 + $0x13a] sm:$0xff]  ;;  %v6117_v28 = vld [vmem:[#allocation2 + $0x142] sm:$0xff] }
 0x468   : > { %11396 = vmatprep.mubr.msk.f32.mxu0 %vm12642_vm0, %v17284_v14  ;;  %v15619_v36 = vadd.f32 %v5457_v12, %v5101_v39  ;;  %12141 = vpow2.f32 %v8778_v24  ;;  %v8779_v33 = vmul.f32 -1.442695, %v15639_v11 }
 0x469   : > { %v4982_v20 = vpop.f32.mrb[32].mxu1 }
 0x46a   : > { %v5462_v8 = vpop.f32.mrb[114].mxu0  ;;  %v5102_v35 = vadd.f32 %v4982_v20, %v17348_v0  ;;  %v10987_v40 = vpop.f32.mrb[33].mxu1  ;;  %11272 = vmatmul.mubr.msk.f32.gmra.mrb[138].mxu1 %vm1744_vm3, %v15198_v57  ;;  %v17350_v57 = vld [vmem:[#allocation107_spill] sm:$0xff]  ;;  %v17352_v0 = vld [vmem:[#allocation46_spill] sm:$0xff]  ;;  %12143 = vpow2.f32 %v8779_v33 }
 0x46b   : > { %v11112_v4 = vpop.f32.mrb[115].mxu0  ;;  %11397 = vmatmul.mubr.msk.f32.gmra.mrb[220].mxu0 %vm1744_vm3, %v6115_v29  ;;  %11274 = vmatprep.mubr.msk.f32.mxu1 %vm12642_vm0, %v17284_v14 }
 0x46c   : > { %11399 = vmatprep.mubr.msk.f32.mxu0 %vm12642_vm0, %v17284_v14  ;;  %v15634_v54 = vadd.f32 %v5462_v8, %v5102_v35  ;;  %v15654_v35 = vadd.f32 %v15584_v55, %v17352_v0 }
 0x46d   : > { %v4987_v45 = vpop.f32.mrb[34].mxu1 }
 0x46e   : > { %v5467_v12 = vpop.f32.mrb[116].mxu0  ;;  %v5103_v39 = vadd.f32 %v4987_v45, %v17350_v57  ;;  %v10990_v52 = vpop.f32.mrb[35].mxu1  ;;  %11275 = vmatmul.mubr.msk.f32.gmra.mrb[140].mxu1 %vm1744_vm3, %v15210_v25  ;;  %v17353_v25 = vld [vmem:[#allocation108_spill] sm:$0xff]  ;;  %v6118_v57 = vld [vmem:[#allocation2 + $0x14a] sm:$0xff] }
 0x46f   : > { %v11115_v21 = vpop.f32.mrb[117].mxu0  ;;  %11400 = vmatmul.mubr.msk.f32.gmra.mrb[222].mxu0 %vm1744_vm3, %v6116_v44  ;;  %11277 = vmatprep.mubr.msk.f32.mxu1 %vm12642_vm0, %v17284_v14  ;;  %v17355_v52 = vld [vmem:[#allocation48_spill] sm:$0xff] }
 0x470   : > { %11402 = vmatprep.mubr.msk.f32.mxu0 %vm12642_vm0, %v17284_v14  ;;  %v15649_v20 = vadd.f32 %v5467_v12, %v5103_v39  ;;  %v12138_v12 = vpop.eup %12137  ;;  %v8780_v39 = vmul.f32 -1.442695, %v15654_v35  ;;  %v17356_v21 = vld [vmem:[#allocation109_spill] sm:$0xff] }
 0x471   : > { %v4992_v8 = vpop.f32.mrb[36].mxu1  ;;  %v12140_v33 = vpop.eup %12139 }
 0x472   : > { %17351 = vst [vmem:[#allocation85_spill] sm:$0xff] %v15649_v20  ;;  %v5472_v29 = vpop.f32.mrb[118].mxu0  ;;  %v5104_v40 = vadd.f32 %v4992_v8, %v17353_v25  ;;  %v10993_v4 = vpop.f32.mrb[37].mxu1  ;;  %11278 = vmatmul.mubr.msk.f32.gmra.mrb[142].mxu1 %vm1744_vm3, %v15222_v38  ;;  %v15669_v38 = vadd.f32 %v15584_v55, %v17355_v52  ;;  %12145 = vpow2.f32 %v8780_v39  ;;  %v17358_v52 = vld [vmem:[#allocation50_spill] sm:$0xff] }
 0x473   : > { %v11118_v45 = vpop.f32.mrb[119].mxu0  ;;  %11403 = vmatmul.mubr.msk.f32.gmra.mrb[224].mxu0 %vm1744_vm3, %v6117_v28  ;;  %11280 = vmatprep.mubr.msk.f32.mxu1 %vm12642_vm0, %v17284_v14  ;;  %v12142_v39 = vpop.eup %12141 }
 0x474   : > { %11405 = vmatprep.mubr.msk.f32.mxu0 %vm12642_vm0, %v17284_v14  ;;  %v15664_v44 = vadd.f32 %v5472_v29, %v5104_v40  ;;  %v1572_v29 = vadd.f32 1.0, %v12138_v12  ;;  %v6119_v45 = vld [vmem:[#allocation2 + $0x152] sm:$0xff]  ;;  %v17359_v12 = vld [vmem:[#allocation110_spill] sm:$0xff] }
 0x475   : > { %v4997_v24 = vpop.f32.mrb[38].mxu1 }
 0x476   : > { %17354 = vst [vmem:[#allocation86_spill] sm:$0xff] %v15664_v44  ;;  %v5477_v6 = vpop.f32.mrb[120].mxu0  ;;  %v5105_v8 = vadd.f32 %v4997_v24, %v17356_v21  ;;  %v10996_v28 = vpop.f32.mrb[39].mxu1  ;;  %11281 = vmatmul.mubr.msk.f32.gmra.mrb[144].mxu1 %vm1744_vm3, %v15234_v5  ;;  %v8781_v24 = vmul.f32 -1.442695, %v15669_v38  ;;  %v15684_v5 = vadd.f32 %v15584_v55, %v17358_v52  ;;  %12147 = vrcp.f32 %v1572_v29  ;;  %v5640_v52 = vld [vmem:[#allocation2 + $0x159] sm:$0xff] }
 0x477   : > { %v11121_v0 = vpop.f32.mrb[121].mxu0  ;;  %11406 = vmatmul.mubr.msk.f32.gmra.mrb[226].mxu0 %vm1744_vm3, %v6118_v57  ;;  %11283 = vmatprep.mubr.msk.f32.mxu1 %vm12642_vm0, %v17284_v14 }
 0x478   : > { %11408 = vmatprep.mubr.msk.f32.mxu0 %vm12642_vm0, %v17284_v14  ;;  %v15679_v25 = vadd.f32 %v5477_v6, %v5105_v8  ;;  %v1573_v6 = vadd.f32 1.0, %v12140_v33  ;;  %12149 = vpow2.f32 %v8781_v24  ;;  %v17362_v33 = vld [vmem:[#allocation111_spill] sm:$0xff]  ;;  %v5641_v24 = vld [vmem:[#allocation2 + $0x161] sm:$0xff] }
 0x479   : > { %v5002_v40 = vpop.f32.mrb[40].mxu1 }
 0x47a   : > { %17357 = vst [vmem:[#allocation87_spill] sm:$0xff] %v15679_v25  ;;  %v5482_v4 = vpop.f32.mrb[122].mxu0  ;;  %v5106_v57 = vadd.f32 %v5002_v40, %v17359_v12  ;;  %v10999_v21 = vpop.f32.mrb[41].mxu1  ;;  %11284 = vmatmul.mubr.msk.f32.gmra.mrb[146].mxu1 %vm1744_vm3, %v15246_v48  ;;  %v6120_v12 = vld [vmem:[#allocation2 + $0x15a] sm:$0xff]  ;;  %v8782_v48 = vmul.f32 -1.442695, %v15684_v5  ;;  %12151 = vrcp.f32 %v1573_v6 }
 0x47b   : > { %v11124_v28 = vpop.f32.mrb[123].mxu0  ;;  %11409 = vmatmul.mubr.msk.f32.gmra.mrb[228].mxu0 %vm1744_vm3, %v6119_v45  ;;  %11286 = vmatprep.mubr.msk.f32.mxu1 %vm12642_vm0, %v17284_v14  ;;  %v17361_v21 = vld [vmem:[#allocation51_spill] sm:$0xff] }
 0x47c   : > { %11411 = vmatprep.mubr.msk.f32.mxu0 %vm12642_vm0, %v17284_v14  ;;  %v15694_v8 = vadd.f32 %v5482_v4, %v5106_v57  ;;  %v15699_v29 = vadd.f32 %v15584_v55, %v17361_v21  ;;  %v1574_v4 = vadd.f32 1.0, %v12142_v39  ;;  %v6121_v57 = vld [vmem:[#allocation2 + $0x162] sm:$0xff]  ;;  %v12144_v21 = vpop.eup %12143  ;;  %12153 = vpow2.f32 %v8782_v48 }
 0x47d   : > { %v5007_v0 = vpop.f32.mrb[42].mxu1  ;;  %v5642_v48 = vld [vmem:[#allocation2 + $0x169] sm:$0xf] }
 0x47e   : > { %17360 = vst [vmem:[#allocation88_spill] sm:$0xff] %v15694_v8  ;;  %v5487_v40 = vpop.f32.mrb[124].mxu0  ;;  %v5107_v45 = vadd.f32 %v5007_v0, %v17362_v33  ;;  %v11002_v28 = vpop.f32.mrb[43].mxu1  ;;  %11287 = vmatmul.mubr.msk.f32.gmra.mrb[148].mxu1 %vm1744_vm3, %v5640_v52  ;;  %v17364_v52 = vld [vmem:[#allocation52_spill] sm:$0xff]  ;;  %12155 = vrcp.f32 %v1574_v4 }
 0x47f   : > { %v11127_v25 = vpop.f32.mrb[125].mxu0  ;;  %11412 = vmatmul.mubr.msk.f32.gmra.mrb[230].mxu0 %vm1744_vm3, %v6120_v12  ;;  %11289 = vmatprep.mubr.msk.f32.mxu1 %vm12642_vm0, %v17284_v14  ;;  %v15713_v6 = vadd.f32 %v15584_v55, %v17364_v52  ;;  %v12146_v52 = vpop.eup %12145 }
 0x480   : > { %11414 = vmatprep.mubr.msk.f32.mxu0 %vm12642_vm0, %v17284_v14  ;;  %v15708_v8 = vadd.f32 %v5487_v40, %v5107_v45  ;;  %v8783_v25 = vmul.f32 -1.442695, %v15699_v29  ;;  %v1575_v40 = vadd.f32 1.0, %v12144_v21  ;;  %v6122_v45 = vld [vmem:[#allocation2 + $0x16a] sm:$0xf] }
 0x481   : > { %v5012_v0 = vpop.f32.mrb[44].mxu1 }
 0x482   : > { %17363 = vst [vmem:[#allocation89_spill] sm:$0xff] %v15708_v8  ;;  %v5492_v33 = vpop.f32.mrb[126].mxu0  ;;  %v5108_v39 = vadd.f32 %v5012_v0, %v15256_v61  ;;  %v11005_v12 = vpop.f32.mrb[45].mxu1  ;;  %11290 = vmatmul.mubr.msk.f32.gmra.mrb[150].mxu1 %vm1744_vm3, %v5641_v24  ;;  %12157 = vpow2.f32 %v8783_v25  ;;  %v8784_v24 = vmul.f32 -1.442695, %v15713_v6 }
 0x483   : > { %v11130_v28 = vpop.f32.mrb[127].mxu0  ;;  %11415 = vmatmul.mubr.msk.f32.gmra.mrb[232].mxu0 %vm1744_vm3, %v6121_v57  ;;  %11292 = vmatprep.mubr.msk.f32.mxu1 %vm12642_vm0, %v17284_v14  ;;  %v12148_v61 = vpop.eup %12147  ;;  %v17366_v57 = vld [vmem:[#allocation53_spill] sm:$0xff]  ;;  %12159 = vrcp.f32 %v1575_v40 }
 0x484   : > { %11417 = vmatprep.mubr.msk.f32.mxu0 %vm12642_vm0, %v17284_v14  ;;  %v15722_v8 = vadd.f32 %v5492_v33, %v5108_v39  ;;  %v15727_v4 = vadd.f32 %v15584_v55, %v17366_v57  ;;  %v1576_v33 = vadd.f32 1.0, %v12146_v52  ;;  %v12150_v25 = vpop.eup %12149  ;;  %v1695_v39 = vmul.f32 %v12148_v61, %v15594_v13  ;;  %v7418_v40 = vld [vmem:[%s17167_s10] sm:$0xf] }
 0x485   : > { %v5017_v0 = vpop.f32.mrb[46].mxu1  ;;  %12161 = vpow2.f32 %v8784_v24 }
 0x486   : > { %17365 = vst [vmem:[#allocation90_spill] sm:$0xff] %v15722_v8  ;;  %v5497_v12 = vpop.f32.mrb[128].mxu0  ;;  %v5109_v21 = vadd.f32 %v5017_v0, %v15265_v10  ;;  %v11008_v28 = vpop.f32.mrb[47].mxu1  ;;  %11293 = vmatmul.mubr.msk.f32.gmra.mrb[152].mxu1 %vm1744_vm3, %v5642_v48  ;;  %v8785_v48 = vmul.f32 -1.442695, %v15727_v4  ;;  %12163 = vrcp.f32 %v1576_v33 }
 0x487   : > { %v11133_v44 = vpop.f32.mrb[129].mxu0  ;;  %11418 = vmatmul.mubr.msk.f32.gmra.mrb[234].mxu0 %vm1744_vm3, %v6122_v45  ;;  %11422 = vmatprep.mubr.msk.f32.mxu1 %vm12642_vm0, %v17284_v14  ;;  %v12152_v10 = vpop.eup %12151  ;;  %v6562_v28 = vld [vmem:[#allocation2 + $0x2b] sm:$0xff] }
 0x488   : > { %11547 = vmatprep.mubr.msk.f32.mxu0 %vm12642_vm0, %v17284_v14  ;;  %v15737_v57 = vadd.f32 %v5497_v12, %v5109_v21  ;;  %v17368_v45 = vld [vmem:[#allocation54_spill] sm:$0xff]  ;;  %v1577_v12 = vadd.f32 1.0, %v12150_v25  ;;  %v12154_v24 = vpop.eup %12153  ;;  %v1696_v21 = vmul.f32 %v12152_v10, %v15609_v32  ;;  %12165 = vpow2.f32 %v8785_v48  ;;  %v17369_v25 = vld [vmem:[#allocation55_spill] sm:$0xff] }
 0x489   : > { %v5022_v0 = vpop.f32.mrb[48].mxu1  ;;  %v15745_v52 = vadd.f32 %v15584_v55, %v17368_v45  ;;  %v1578_v32 = vadd.f32 1.0, %v12154_v24 }
 0x48a   : > { %17367 = vst [vmem:[#allocation91_spill] sm:$0xff] %v15737_v57  ;;  %v5502_v44 = vpop.f32.mrb[130].mxu0  ;;  %v5110_v8 = vadd.f32 %v5022_v0, %v15277_v47  ;;  %v11011_v13 = vpop.f32.mrb[49].mxu1  ;;  %11423 = vmatmul.mubr.msk.f32.vlgmr.msra.gmra.mrb[154].mxu1 %vm1744_vm3, %v6562_v28  ;;  %12167 = vrcp.f32 %v1577_v12  ;;  %v17370_v12 = vld [vmem:[#allocation56_spill] sm:$0xff] }
 0x48b   : > { %v11136_v61 = vpop.f32.mrb[131].mxu0  ;;  %11548 = vmatmul.mubr.msk.f32.vlgmr.msra.gmra.mrb[236].mxu0 %vm1744_vm3, %v1695_v39  ;;  %11425 = vmatprep.mubr.msk.f32.mxu1 %vm12642_vm0, %v17284_v14  ;;  %v12156_v47 = vpop.eup %12155  ;;  %v6563_v13 = vld [vmem:[#allocation2 + $0x33] sm:$0xff]  ;;  %v8786_v33 = vmul.f32 -1.442695, %v15745_v52  ;;  %v15761_v39 = vadd.f32 %v15584_v55, %v17369_v25  ;;  %v15776_v24 = vadd.f32 %v15584_v55, %v17370_v12 }
 0x48c   : > { %11550 = vmatprep.mubr.msk.f32.mxu0 %vm12642_vm0, %v17284_v14  ;;  %v15755_v45 = vadd.f32 %v5502_v44, %v5110_v8  ;;  %11671 = vmatpush3.msk.msra.mxu1 %vm1868_vm2, %v7418_v40  ;;  %v12158_v8 = vpop.eup %12157  ;;  %v1697_v10 = vmul.f32 %v12156_v47, %v15624_v2  ;;  %v6564_v40 = vld [vmem:[#allocation2 + $0x3b] sm:$0xff] }
 0x48d   : > { %v5027_v0 = vpop.f32.mrb[50].mxu1  ;;  %12169 = vpow2.f32 %v8786_v33  ;;  %v8787_v48 = vmul.f32 -1.442695, %v15761_v39  ;;  %v1579_v2 = vadd.f32 1.0, %v12158_v8 }
 0x48e   : > { %v5507_v28 = vpop.f32.mrb[132].mxu0  ;;  %v5111_v61 = vadd.f32 %v5027_v0, %v15290_v30  ;;  %v11014_v57 = vpop.f32.mrb[51].mxu1  ;;  %11426 = vmatmul.mubr.msk.f32.gmra.mrb[156].mxu1 %vm1744_vm3, %v6563_v13  ;;  %12171 = vrcp.f32 %v1578_v32  ;;  %v17371_v32 = vld [vmem:[#allocation57_spill] sm:$0xff] }
 0x48f   : > { %v11139_v20 = vpop.f32.mrb[133].mxu0  ;;  %11551 = vmatmul.mubr.msk.f32.gmra.mrb[238].mxu0 %vm1744_vm3, %v1696_v21  ;;  %11428 = vmatprep.mubr.msk.f32.mxu1 %vm12642_vm0, %v17284_v14  ;;  %v12160_v30 = vpop.eup %12159  ;;  %12173 = vpow2.f32 %v8787_v48  ;;  %v15791_v8 = vadd.f32 %v15584_v55, %v17371_v32 }
 0x490   : > { %11553 = vmatprep.mubr.msk.f32.mxu0 %vm12642_vm0, %v17284_v14  ;;  %v15771_v44 = vadd.f32 %v5507_v28, %v5111_v61  ;;  %v12162_v47 = vpop.eup %12161  ;;  %v1698_v28 = vmul.f32 %v12160_v30, %v15639_v11  ;;  %12175 = vrcp.f32 %v1579_v2  ;;  %v17372_v2 = vld [vmem:[#allocation58_spill] sm:$0xff] }
 0x491   : > { %v5032_v57 = vpop.f32.mrb[52].mxu1  ;;  %v1580_v11 = vadd.f32 1.0, %v12162_v47  ;;  %v15806_v47 = vadd.f32 %v15584_v55, %v17372_v2 }
 0x492   : > { %v5512_v20 = vpop.f32.mrb[134].mxu0  ;;  %v5112_v21 = vadd.f32 %v5032_v57, %v15300_v59  ;;  %v11017_v0 = vpop.f32.mrb[53].mxu1  ;;  %11429 = vmatmul.mubr.msk.f32.gmra.mrb[158].mxu1 %vm1744_vm3, %v6564_v40  ;;  %v6565_v57 = vld [vmem:[#allocation2 + $0x43] sm:$0xff] }
 0x493   : > { %v11142_v13 = vpop.f32.mrb[135].mxu0  ;;  %11554 = vmatmul.mubr.msk.f32.gmra.mrb[240].mxu0 %vm1744_vm3, %v1697_v10  ;;  %11431 = vmatprep.mubr.msk.f32.mxu1 %vm12642_vm0, %v17284_v14  ;;  %v12164_v59 = vpop.eup %12163  ;;  %v8788_v10 = vmul.f32 -1.442695, %v15776_v24 }
 0x494   : > { %11556 = vmatprep.mubr.msk.f32.mxu0 %vm12642_vm0, %v17284_v14  ;;  %v15786_v33 = vadd.f32 %v5512_v20, %v5112_v21  ;;  %v12166_v30 = vpop.eup %12165  ;;  %v1699_v20 = vmul.f32 %v12164_v59, %v15654_v35 }
 0x495   : > { %v5037_v25 = vpop.f32.mrb[54].mxu1  ;;  %12177 = vpow2.f32 %v8788_v10  ;;  %v1581_v35 = vadd.f32 1.0, %v12166_v30 }
 0x496   : > { %v5517_v61 = vpop.f32.mrb[136].mxu0  ;;  %v5113_v40 = vadd.f32 %v5037_v25, %v15310_v27  ;;  %v11020_v12 = vpop.f32.mrb[55].mxu1  ;;  %11432 = vmatmul.mubr.msk.f32.gmra.mrb[160].mxu1 %vm1744_vm3, %v6565_v57  ;;  %v6566_v25 = vld [vmem:[#allocation2 + $0x4b] sm:$0xff]  ;;  %12179 = vrcp.f32 %v1580_v11 }
 0x497   : > { %v11145_v0 = vpop.f32.mrb[137].mxu0  ;;  %11557 = vmatmul.mubr.msk.f32.gmra.mrb[242].mxu0 %vm1744_vm3, %v1698_v28  ;;  %11434 = vmatprep.mubr.msk.f32.mxu1 %vm12642_vm0, %v17284_v14  ;;  %v12168_v27 = vpop.eup %12167  ;;  %v8789_v28 = vmul.f32 -1.442695, %v15791_v8  ;;  %v17373_v11 = vld [vmem:[#allocation59_spill] sm:$0xff] }
 0x498   : > { %11559 = vmatprep.mubr.msk.f32.mxu0 %vm12642_vm0, %v17284_v14  ;;  %v15801_v48 = vadd.f32 %v5517_v61, %v5113_v40  ;;  %v12170_v59 = vpop.eup %12169  ;;  %v1700_v61 = vmul.f32 %v12168_v27, %v15669_v38  ;;  %v15821_v30 = vadd.f32 %v15584_v55, %v17373_v11 }
 0x499   : > { %v5042_v21 = vpop.f32.mrb[56].mxu1  ;;  %12181 = vpow2.f32 %v8789_v28  ;;  %v1582_v38 = vadd.f32 1.0, %v12170_v59 }
 0x49a   : > { %v5522_v13 = vpop.f32.mrb[138].mxu0  ;;  %v5114_v57 = vadd.f32 %v5042_v21, %v15320_v3  ;;  %v11023_v32 = vpop.f32.mrb[57].mxu1  ;;  %11435 = vmatmul.mubr.msk.f32.gmra.mrb[162].mxu1 %vm1744_vm3, %v6566_v25  ;;  %v6567_v21 = vld [vmem:[#allocation2 + $0x53] sm:$0xff]  ;;  %12183 = vrcp.f32 %v1581_v35 }
 0x49b   : > { %v11148_v12 = vpop.f32.mrb[139].mxu0  ;;  %11560 = vmatmul.mubr.msk.f32.gmra.mrb[244].mxu0 %vm1744_vm3, %v1699_v20  ;;  %11437 = vmatprep.mubr.msk.f32.mxu1 %vm12642_vm0, %v17284_v14  ;;  %v12172_v3 = vpop.eup %12171  ;;  %v8790_v20 = vmul.f32 -1.442695, %v15806_v47  ;;  %v17374_v35 = vld [vmem:[#allocation60_spill] sm:$0xff] }
 0x49c   : > { %11562 = vmatprep.mubr.msk.f32.mxu0 %vm12642_vm0, %v17284_v14  ;;  %v15816_v10 = vadd.f32 %v5522_v13, %v5114_v57  ;;  %v12174_v27 = vpop.eup %12173  ;;  %v1701_v13 = vmul.f32 %v12172_v3, %v15684_v5  ;;  %v15836_v59 = vadd.f32 %v15584_v55, %v17374_v35 }
 0x49d   : > { %v5047_v40 = vpop.f32.mrb[58].mxu1  ;;  %12185 = vpow2.f32 %v8790_v20  ;;  %v1583_v5 = vadd.f32 1.0, %v12174_v27 }
 0x49e   : > { %v5527_v0 = vpop.f32.mrb[140].mxu0  ;;  %v5115_v25 = vadd.f32 %v5047_v40, %v15330_v1  ;;  %v11026_v2 = vpop.f32.mrb[59].mxu1  ;;  %11438 = vmatmul.mubr.msk.f32.gmra.mrb[164].mxu1 %vm1744_vm3, %v6567_v21  ;;  %v6568_v40 = vld [vmem:[#allocation2 + $0x5b] sm:$0xff]  ;;  %12187 = vrcp.f32 %v1582_v38 }
 0x49f   : > { %v11151_v32 = vpop.f32.mrb[141].mxu0  ;;  %11563 = vmatmul.mubr.msk.f32.gmra.mrb[246].mxu0 %vm1744_vm3, %v1700_v61  ;;  %11440 = vmatprep.mubr.msk.f32.mxu1 %vm12642_vm0, %v17284_v14  ;;  %v12176_v1 = vpop.eup %12175  ;;  %v8791_v61 = vmul.f32 -1.442695, %v15821_v30  ;;  %v17375_v38 = vld [vmem:[#allocation61_spill] sm:$0xff] }
 0x4a0   : > { %11565 = vmatprep.mubr.msk.f32.mxu0 %vm12642_vm0, %v17284_v14  ;;  %v15831_v28 = vadd.f32 %v5527_v0, %v5115_v25  ;;  %v12178_v3 = vpop.eup %12177  ;;  %v1702_v0 = vmul.f32 %v12176_v1, %v15699_v29  ;;  %v15851_v27 = vadd.f32 %v15584_v55, %v17375_v38 }
 0x4a1   : > { %v5052_v57 = vpop.f32.mrb[60].mxu1  ;;  %12189 = vpow2.f32 %v8791_v61  ;;  %v1584_v29 = vadd.f32 1.0, %v12178_v3 }
 0x4a2   : > { %v5532_v12 = vpop.f32.mrb[142].mxu0  ;;  %v5116_v21 = vadd.f32 %v5052_v57, %v15341_v31  ;;  %v11029_v11 = vpop.f32.mrb[61].mxu1  ;;  %11441 = vmatmul.mubr.msk.f32.gmra.mrb[166].mxu1 %vm1744_vm3, %v6568_v40  ;;  %v6569_v57 = vld [vmem:[#allocation2 + $0x63] sm:$0xff]  ;;  %12191 = vrcp.f32 %v1583_v5 }
 0x4a3   : > { %v11154_v2 = vpop.f32.mrb[143].mxu0  ;;  %11566 = vmatmul.mubr.msk.f32.gmra.mrb[248].mxu0 %vm1744_vm3, %v1701_v13  ;;  %11443 = vmatprep.mubr.msk.f32.mxu1 %vm12642_vm0, %v17284_v14  ;;  %v12180_v31 = vpop.eup %12179  ;;  %v8792_v13 = vmul.f32 -1.442695, %v15836_v59  ;;  %v17376_v5 = vld [vmem:[#allocation62_spill] sm:$0xff] }
 0x4a4   : > { %11568 = vmatprep.mubr.msk.f32.mxu0 %vm12642_vm0, %v17284_v14  ;;  %v15846_v20 = vadd.f32 %v5532_v12, %v5116_v21  ;;  %v12182_v1 = vpop.eup %12181  ;;  %v1703_v12 = vmul.f32 %v12180_v31, %v15713_v6  ;;  %v15866_v3 = vadd.f32 %v15584_v55, %v17376_v5 }
 0x4a5   : > { %v5057_v25 = vpop.f32.mrb[62].mxu1  ;;  %12193 = vpow2.f32 %v8792_v13  ;;  %v1585_v6 = vadd.f32 1.0, %v12182_v1 }
 0x4a6   : > { %v5537_v32 = vpop.f32.mrb[144].mxu0  ;;  %v5117_v40 = vadd.f32 %v5057_v25, %v15351_v9  ;;  %v11032_v35 = vpop.f32.mrb[63].mxu1  ;;  %11444 = vmatmul.mubr.msk.f32.gmra.mrb[168].mxu1 %vm1744_vm3, %v6569_v57  ;;  %v6570_v25 = vld [vmem:[#allocation2 + $0x6b] sm:$0xff]  ;;  %12195 = vrcp.f32 %v1584_v29 }
 0x4a7   : > { %v11157_v11 = vpop.f32.mrb[145].mxu0  ;;  %11569 = vmatmul.mubr.msk.f32.gmra.mrb[250].mxu0 %vm1744_vm3, %v1702_v0  ;;  %11446 = vmatprep.mubr.msk.f32.mxu1 %vm12642_vm0, %v17284_v14  ;;  %v12184_v9 = vpop.eup %12183  ;;  %v8793_v0 = vmul.f32 -1.442695, %v15851_v27  ;;  %v17377_v29 = vld [vmem:[#allocation63_spill] sm:$0xff] }
 0x4a8   : > { %11571 = vmatprep.mubr.msk.f32.mxu0 %vm12642_vm0, %v17284_v14  ;;  %v15861_v61 = vadd.f32 %v5537_v32, %v5117_v40  ;;  %v12186_v31 = vpop.eup %12185  ;;  %v1704_v32 = vmul.f32 %v12184_v9, %v15727_v4  ;;  %v15881_v1 = vadd.f32 %v15584_v55, %v17377_v29 }
 0x4a9   : > { %v5062_v21 = vpop.f32.mrb[64].mxu1  ;;  %12197 = vpow2.f32 %v8793_v0  ;;  %v1586_v4 = vadd.f32 1.0, %v12186_v31 }
 0x4aa   : > { %v5542_v2 = vpop.f32.mrb[146].mxu0  ;;  %v5118_v57 = vadd.f32 %v5062_v21, %v15361_v56  ;;  %v11035_v38 = vpop.f32.mrb[65].mxu1  ;;  %11447 = vmatmul.mubr.msk.f32.gmra.mrb[170].mxu1 %vm1744_vm3, %v6570_v25  ;;  %v6571_v21 = vld [vmem:[#allocation2 + $0x73] sm:$0xff]  ;;  %12199 = vrcp.f32 %v1585_v6 }
 0x4ab   : > { %v11160_v35 = vpop.f32.mrb[147].mxu0  ;;  %11572 = vmatmul.mubr.msk.f32.gmra.mrb[252].mxu0 %vm1744_vm3, %v1703_v12  ;;  %11449 = vmatprep.mubr.msk.f32.mxu1 %vm12642_vm0, %v17284_v14  ;;  %v12188_v56 = vpop.eup %12187  ;;  %v8794_v12 = vmul.f32 -1.442695, %v15866_v3  ;;  %v17378_v6 = vld [vmem:[#allocation64_spill] sm:$0xff] }
 0x4ac   : > { %11574 = vmatprep.mubr.msk.f32.mxu0 %vm12642_vm0, %v17284_v14  ;;  %v15876_v13 = vadd.f32 %v5542_v2, %v5118_v57  ;;  %v12190_v9 = vpop.eup %12189  ;;  %v1705_v2 = vmul.f32 %v12188_v56, %v15745_v52  ;;  %v15896_v31 = vadd.f32 %v15584_v55, %v17378_v6 }
 0x4ad   : > { %v5067_v40 = vpop.f32.mrb[66].mxu1  ;;  %12201 = vpow2.f32 %v8794_v12  ;;  %v1587_v52 = vadd.f32 1.0, %v12190_v9 }
 0x4ae   : > { %v5547_v11 = vpop.f32.mrb[148].mxu0  ;;  %v5119_v25 = vadd.f32 %v5067_v40, %v15374_v22  ;;  %v11038_v5 = vpop.f32.mrb[67].mxu1  ;;  %11450 = vmatmul.mubr.msk.f32.gmra.mrb[172].mxu1 %vm1744_vm3, %v6571_v21  ;;  %v6572_v40 = vld [vmem:[#allocation2 + $0x7b] sm:$0xff]  ;;  %12203 = vrcp.f32 %v1586_v4 }
 0x4af   : > { %v11163_v38 = vpop.f32.mrb[149].mxu0  ;;  %11575 = vmatmul.mubr.msk.f32.gmra.mrb[254].mxu0 %vm1744_vm3, %v1704_v32  ;;  %11452 = vmatprep.mubr.msk.f32.mxu1 %vm12642_vm0, %v17284_v14  ;;  %v12192_v22 = vpop.eup %12191  ;;  %v8795_v32 = vmul.f32 -1.442695, %v15881_v1  ;;  %v17379_v4 = vld [vmem:[#allocation65_spill] sm:$0xff] }
 0x4b0   : > { %11577 = vmatprep.mubr.msk.f32.mxu0 %vm12642_vm0, %v17284_v14  ;;  %v15891_v0 = vadd.f32 %v5547_v11, %v5119_v25  ;;  %v12194_v56 = vpop.eup %12193  ;;  %v1706_v11 = vmul.f32 %v12192_v22, %v15761_v39  ;;  %v15911_v9 = vadd.f32 %v15584_v55, %v17379_v4 }
 0x4b1   : > { %v5072_v57 = vpop.f32.mrb[68].mxu1  ;;  %12205 = vpow2.f32 %v8795_v32  ;;  %v1588_v39 = vadd.f32 1.0, %v12194_v56 }
 0x4b2   : > { %v5552_v35 = vpop.f32.mrb[150].mxu0  ;;  %v5120_v21 = vadd.f32 %v5072_v57, %v15385_v42  ;;  %v11041_v29 = vpop.f32.mrb[69].mxu1  ;;  %11453 = vmatmul.mubr.msk.f32.gmra.mrb[174].mxu1 %vm1744_vm3, %v6572_v40  ;;  %v6573_v57 = vld [vmem:[#allocation2 + $0x83] sm:$0xff]  ;;  %12207 = vrcp.f32 %v1587_v52 }
 0x4b3   : > { %v11166_v5 = vpop.f32.mrb[151].mxu0  ;;  %11578 = vmatmul.mubr.msk.f32.gmra.mrb[0].mxu0 %vm1744_vm3, %v1705_v2  ;;  %11455 = vmatprep.mubr.msk.f32.mxu1 %vm12642_vm0, %v17284_v14  ;;  %v12196_v42 = vpop.eup %12195  ;;  %v8796_v2 = vmul.f32 -1.442695, %v15896_v31  ;;  %v17380_v52 = vld [vmem:[#allocation66_spill] sm:$0xff] }
 0x4b4   : > { %11580 = vmatprep.mubr.msk.f32.mxu0 %vm12642_vm0, %v17284_v14  ;;  %v15906_v12 = vadd.f32 %v5552_v35, %v5120_v21  ;;  %v12198_v22 = vpop.eup %12197  ;;  %v1707_v35 = vmul.f32 %v12196_v42, %v15776_v24  ;;  %v15926_v56 = vadd.f32 %v15584_v55, %v17380_v52 }
 0x4b5   : > { %v5077_v25 = vpop.f32.mrb[70].mxu1  ;;  %12209 = vpow2.f32 %v8796_v2  ;;  %v1589_v24 = vadd.f32 1.0, %v12198_v22 }
 0x4b6   : > { %v5557_v38 = vpop.f32.mrb[152].mxu0  ;;  %v5121_v40 = vadd.f32 %v5077_v25, %v15395_v7  ;;  %v11044_v6 = vpop.f32.mrb[71].mxu1  ;;  %11456 = vmatmul.mubr.msk.f32.gmra.mrb[176].mxu1 %vm1744_vm3, %v6573_v57  ;;  %v6574_v25 = vld [vmem:[#allocation2 + $0x8b] sm:$0xff]  ;;  %12211 = vrcp.f32 %v1588_v39 }
 0x4b7   : > { %v11169_v29 = vpop.f32.mrb[153].mxu0  ;;  %11581 = vmatmul.mubr.msk.f32.gmra.mrb[2].mxu0 %vm1744_vm3, %v1706_v11  ;;  %11458 = vmatprep.mubr.msk.f32.mxu1 %vm12642_vm0, %v17284_v14  ;;  %v12200_v7 = vpop.eup %12199  ;;  %v8797_v11 = vmul.f32 -1.442695, %v15911_v9  ;;  %v17381_v39 = vld [vmem:[#allocation67_spill] sm:$0xff] }
 0x4b8   : > { %11583 = vmatprep.mubr.msk.f32.mxu0 %vm12642_vm0, %v17284_v14  ;;  %v15921_v32 = vadd.f32 %v5557_v38, %v5121_v40  ;;  %v12202_v42 = vpop.eup %12201  ;;  %v1708_v38 = vmul.f32 %v12200_v7, %v15791_v8  ;;  %v15941_v22 = vadd.f32 %v15584_v55, %v17381_v39 }
 0x4b9   : > { %v5837_v21 = vpop.f32.mrb[72].mxu1  ;;  %12213 = vpow2.f32 %v8797_v11  ;;  %v1590_v8 = vadd.f32 1.0, %v12202_v42 }
 0x4ba   : > { %v6317_v5 = vpop.f32.mrb[154].mxu0  ;;  %v6041_v57 = vadd.f32 %v5837_v21, %v15405_v18  ;;  %v11174_v4 = vpop.f32.mrb[73].mxu1  ;;  %11459 = vmatmul.mubr.msk.f32.gmra.mrb[178].mxu1 %vm1744_vm3, %v6574_v25  ;;  %v6575_v21 = vld [vmem:[#allocation2 + $0x93] sm:$0xff]  ;;  %12215 = vrcp.f32 %v1589_v24 }
 0x4bb   : > { %v11299_v6 = vpop.f32.mrb[155].mxu0  ;;  %11584 = vmatmul.mubr.msk.f32.gmra.mrb[4].mxu0 %vm1744_vm3, %v1707_v35  ;;  %11461 = vmatprep.mubr.msk.f32.mxu1 %vm12642_vm0, %v17284_v14  ;;  %v12204_v18 = vpop.eup %12203  ;;  %v8798_v35 = vmul.f32 -1.442695, %v15926_v56  ;;  %v17382_v24 = vld [vmem:[#allocation68_spill] sm:$0xff] }
 0x4bc   : > { %11586 = vmatprep.mubr.msk.f32.mxu0 %vm12642_vm0, %v17284_v14  ;;  %v15936_v2 = vadd.f32 %v6317_v5, %v6041_v57  ;;  %v12206_v7 = vpop.eup %12205  ;;  %v1709_v5 = vmul.f32 %v12204_v18, %v15806_v47  ;;  %v15956_v42 = vadd.f32 %v15584_v55, %v17382_v24 }
 0x4bd   : > { %v5842_v40 = vpop.f32.mrb[74].mxu1  ;;  %12217 = vpow2.f32 %v8798_v35  ;;  %v1591_v47 = vadd.f32 1.0, %v12206_v7 }
 0x4be   : > { %v6322_v29 = vpop.f32.mrb[156].mxu0  ;;  %v6042_v25 = vadd.f32 %v5842_v40, %v15415_v19  ;;  %v11177_v52 = vpop.f32.mrb[75].mxu1  ;;  %11462 = vmatmul.mubr.msk.f32.gmra.mrb[180].mxu1 %vm1744_vm3, %v6575_v21  ;;  %v6576_v40 = vld [vmem:[#allocation2 + $0x9b] sm:$0xff]  ;;  %12219 = vrcp.f32 %v1590_v8 }
 0x4bf   : > { %v11302_v4 = vpop.f32.mrb[157].mxu0  ;;  %11587 = vmatmul.mubr.msk.f32.gmra.mrb[6].mxu0 %vm1744_vm3, %v1708_v38  ;;  %11464 = vmatprep.mubr.msk.f32.mxu1 %vm12642_vm0, %v17284_v14  ;;  %v12208_v19 = vpop.eup %12207  ;;  %v8799_v38 = vmul.f32 -1.442695, %v15941_v22  ;;  %v17383_v8 = vld [vmem:[#allocation69_spill] sm:$0xff] }
 0x4c0   : > { %11589 = vmatprep.mubr.msk.f32.mxu0 %vm12642_vm0, %v17284_v14  ;;  %v15951_v11 = vadd.f32 %v6322_v29, %v6042_v25  ;;  %v12210_v18 = vpop.eup %12209  ;;  %v1710_v29 = vmul.f32 %v12208_v19, %v15821_v30  ;;  %v15971_v7 = vadd.f32 %v15584_v55, %v17383_v8 }
 0x4c1   : > { %v5847_v57 = vpop.f32.mrb[76].mxu1  ;;  %12221 = vpow2.f32 %v8799_v38  ;;  %v1592_v30 = vadd.f32 1.0, %v12210_v18 }
 0x4c2   : > { %v6327_v6 = vpop.f32.mrb[158].mxu0  ;;  %v6043_v21 = vadd.f32 %v5847_v57, %v15425_v16  ;;  %v11180_v39 = vpop.f32.mrb[77].mxu1  ;;  %11465 = vmatmul.mubr.msk.f32.gmra.mrb[182].mxu1 %vm1744_vm3, %v6576_v40  ;;  %v6577_v57 = vld [vmem:[#allocation2 + $0xa3] sm:$0xff]  ;;  %12223 = vrcp.f32 %v1591_v47 }
 0x4c3   : > { %v11305_v52 = vpop.f32.mrb[159].mxu0  ;;  %11590 = vmatmul.mubr.msk.f32.gmra.mrb[8].mxu0 %vm1744_vm3, %v1709_v5  ;;  %11467 = vmatprep.mubr.msk.f32.mxu1 %vm12642_vm0, %v17284_v14  ;;  %v12212_v16 = vpop.eup %12211  ;;  %v8800_v5 = vmul.f32 -1.442695, %v15956_v42  ;;  %v17384_v47 = vld [vmem:[#allocation70_spill] sm:$0xff] }
 0x4c4   : > { %11592 = vmatprep.mubr.msk.f32.mxu0 %vm12642_vm0, %v17284_v14  ;;  %v15966_v35 = vadd.f32 %v6327_v6, %v6043_v21  ;;  %v12214_v19 = vpop.eup %12213  ;;  %v1711_v6 = vmul.f32 %v12212_v16, %v15836_v59  ;;  %v15986_v18 = vadd.f32 %v15584_v55, %v17384_v47 }
 0x4c5   : > { %v5852_v25 = vpop.f32.mrb[78].mxu1  ;;  %12225 = vpow2.f32 %v8800_v5  ;;  %v1593_v59 = vadd.f32 1.0, %v12214_v19 }
 0x4c6   : > { %v6332_v4 = vpop.f32.mrb[160].mxu0  ;;  %v6044_v40 = vadd.f32 %v5852_v25, %v15435_v23  ;;  %v11183_v24 = vpop.f32.mrb[79].mxu1  ;;  %11468 = vmatmul.mubr.msk.f32.gmra.mrb[184].mxu1 %vm1744_vm3, %v6577_v57  ;;  %v6578_v25 = vld [vmem:[#allocation2 + $0xab] sm:$0xff]  ;;  %12227 = vrcp.f32 %v1592_v30 }
 0x4c7   : > { %v11308_v39 = vpop.f32.mrb[161].mxu0  ;;  %11593 = vmatmul.mubr.msk.f32.gmra.mrb[10].mxu0 %vm1744_vm3, %v1710_v29  ;;  %11470 = vmatprep.mubr.msk.f32.mxu1 %vm12642_vm0, %v17284_v14  ;;  %v12216_v23 = vpop.eup %12215  ;;  %v8801_v29 = vmul.f32 -1.442695, %v15971_v7  ;;  %v17385_v30 = vld [vmem:[#allocation71_spill] sm:$0xff] }
 0x4c8   : > { %11595 = vmatprep.mubr.msk.f32.mxu0 %vm12642_vm0, %v17284_v14  ;;  %v15981_v38 = vadd.f32 %v6332_v4, %v6044_v40  ;;  %v12218_v16 = vpop.eup %12217  ;;  %v1712_v4 = vmul.f32 %v12216_v23, %v15851_v27  ;;  %v16001_v19 = vadd.f32 %v15584_v55, %v17385_v30 }
 0x4c9   : > { %v5857_v21 = vpop.f32.mrb[80].mxu1  ;;  %12229 = vpow2.f32 %v8801_v29  ;;  %v1594_v27 = vadd.f32 1.0, %v12218_v16 }
 0x4ca   : > { %v6337_v52 = vpop.f32.mrb[162].mxu0  ;;  %v6045_v57 = vadd.f32 %v5857_v21, %v15445_v43  ;;  %v11186_v8 = vpop.f32.mrb[81].mxu1  ;;  %11471 = vmatmul.mubr.msk.f32.gmra.mrb[186].mxu1 %vm1744_vm3, %v6578_v25  ;;  %v6579_v21 = vld [vmem:[#allocation2 + $0xb3] sm:$0xff]  ;;  %12231 = vrcp.f32 %v1593_v59 }
 0x4cb   : > { %v11311_v24 = vpop.f32.mrb[163].mxu0  ;;  %11596 = vmatmul.mubr.msk.f32.gmra.mrb[12].mxu0 %vm1744_vm3, %v1711_v6  ;;  %11473 = vmatprep.mubr.msk.f32.mxu1 %vm12642_vm0, %v17284_v14  ;;  %v12220_v43 = vpop.eup %12219  ;;  %v8802_v6 = vmul.f32 -1.442695, %v15986_v18  ;;  %v17386_v59 = vld [vmem:[#allocation72_spill] sm:$0xff] }
 0x4cc   : > { %11598 = vmatprep.mubr.msk.f32.mxu0 %vm12642_vm0, %v17284_v14  ;;  %v15996_v5 = vadd.f32 %v6337_v52, %v6045_v57  ;;  %v12222_v23 = vpop.eup %12221  ;;  %v1713_v52 = vmul.f32 %v12220_v43, %v15866_v3  ;;  %v16016_v16 = vadd.f32 %v15584_v55, %v17386_v59 }
 0x4cd   : > { %v5862_v40 = vpop.f32.mrb[82].mxu1  ;;  %12233 = vpow2.f32 %v8802_v6  ;;  %v1595_v3 = vadd.f32 1.0, %v12222_v23  ;;  %v17387_v23 = vld [vmem:[#allocation73_spill] sm:$0xff] }
 0x4ce   : > { %v6342_v39 = vpop.f32.mrb[164].mxu0  ;;  %v6046_v25 = vadd.f32 %v5862_v40, %v15455_v60  ;;  %v11189_v47 = vpop.f32.mrb[83].mxu1  ;;  %11474 = vmatmul.mubr.msk.f32.gmra.mrb[188].mxu1 %vm1744_vm3, %v6579_v21  ;;  %v6580_v40 = vld [vmem:[#allocation2 + $0xbb] sm:$0xff]  ;;  %12235 = vrcp.f32 %v1594_v27 }
 0x4cf   : > { %v11314_v8 = vpop.f32.mrb[165].mxu0  ;;  %11599 = vmatmul.mubr.msk.f32.gmra.mrb[14].mxu0 %vm1744_vm3, %v1712_v4  ;;  %11476 = vmatprep.mubr.msk.f32.mxu1 %vm12642_vm0, %v17284_v14  ;;  %v12224_v60 = vpop.eup %12223  ;;  %v8803_v4 = vmul.f32 -1.442695, %v16001_v19  ;;  %v16032_v27 = vld [vmem:[%s17162_s5] ss:$0 sm:$0xff] }
 0x4d0   : > { %11601 = vmatprep.mubr.msk.f32.mxu0 %vm12642_vm0, %v17284_v14  ;;  %v16011_v29 = vadd.f32 %v6342_v39, %v6046_v25  ;;  %v12226_v43 = vpop.eup %12225  ;;  %v1714_v55 = vmul.f32 %v12224_v60, %v15881_v1  ;;  %v6581_v8 = vld [vmem:[#allocation2 + $0xc3] sm:$0xff] }
 0x4d1   : > { %v5867_v57 = vpop.f32.mrb[84].mxu1  ;;  %12237 = vpow2.f32 %v8803_v4 }
 0x4d2   : > { %v6347_v24 = vpop.f32.mrb[166].mxu0  ;;  %v6047_v21 = vadd.f32 %v5867_v57, %v15465_v34  ;;  %v11192_v30 = vpop.f32.mrb[85].mxu1  ;;  %11477 = vmatmul.mubr.msk.f32.gmra.mrb[190].mxu1 %vm1744_vm3, %v6580_v40  ;;  %v16036_v57 = vadd.f32 %v16032_v27, %v17387_v23  ;;  %12239 = vrcp.f32 %v1595_v3  ;;  %v1596_v40 = vadd.f32 1.0, %v12226_v43  ;;  %v17388_v3 = vld [vmem:[#allocation74_spill] sm:$0xff] }
 0x4d3   : > { %v11317_v47 = vpop.f32.mrb[167].mxu0  ;;  %11602 = vmatmul.mubr.msk.f32.gmra.mrb[16].mxu0 %vm1744_vm3, %v1713_v52  ;;  %11479 = vmatprep.mubr.msk.f32.mxu1 %vm12642_vm0, %v17284_v14  ;;  %v12228_v34 = vpop.eup %12227  ;;  %v8804_v52 = vmul.f32 -1.442695, %v16016_v16  ;;  %v16051_v43 = vadd.f32 %v16032_v27, %v17388_v3 }
 0x4d4   : > { %11604 = vmatprep.mubr.msk.f32.mxu0 %vm12642_vm0, %v17284_v14  ;;  %v16026_v39 = vadd.f32 %v6347_v24, %v6047_v21  ;;  %v12230_v4 = vpop.eup %12229  ;;  %v1715_v59 = vmul.f32 %v12228_v34, %v15896_v31 }
 0x4d5   : > { %v5872_v6 = vpop.f32.mrb[86].mxu1  ;;  %12241 = vpow2.f32 %v8804_v52  ;;  %v1597_v31 = vadd.f32 1.0, %v12230_v4 }
 0x4d6   : > { %v6352_v25 = vpop.f32.mrb[168].mxu0  ;;  %v6048_v1 = vadd.f32 %v5872_v6, %v15475_v26  ;;  %v11195_v60 = vpop.f32.mrb[87].mxu1  ;;  %11480 = vmatmul.mubr.msk.f32.gmra.mrb[192].mxu1 %vm1744_vm3, %v6581_v8  ;;  %v6582_v6 = vld [vmem:[#allocation2 + $0xcb] sm:$0xff]  ;;  %12243 = vrcp.f32 %v1596_v40 }
 0x4d7   : > { %v11320_v24 = vpop.f32.mrb[169].mxu0  ;;  %11605 = vmatmul.mubr.msk.f32.gmra.mrb[18].mxu0 %vm1744_vm3, %v1714_v55  ;;  %11482 = vmatprep.mubr.msk.f32.mxu1 %vm12642_vm0, %v17284_v14  ;;  %v12232_v26 = vpop.eup %12231  ;;  %v8805_v55 = vmul.f32 -1.442695, %v16036_v57  ;;  %v17389_v40 = vld [vmem:[#allocation75_spill] sm:$0xff] }
 0x4d8   : > { %11607 = vmatprep.mubr.msk.f32.mxu0 %vm12642_vm0, %v17284_v14  ;;  %v16046_v21 = vadd.f32 %v6352_v25, %v6048_v1  ;;  %v12234_v34 = vpop.eup %12233  ;;  %v1716_v25 = vmul.f32 %v12232_v26, %v15911_v9  ;;  %v16066_v4 = vadd.f32 %v16032_v27, %v17389_v40 }
 0x4d9   : > { %v5877_v30 = vpop.f32.mrb[88].mxu1  ;;  %12245 = vpow2.f32 %v8805_v55  ;;  %v1598_v9 = vadd.f32 1.0, %v12234_v34 }
 0x4da   : > { %v6357_v47 = vpop.f32.mrb[170].mxu0  ;;  %v6049_v8 = vadd.f32 %v5877_v30, %v15485_v51  ;;  %v11198_v23 = vpop.f32.mrb[89].mxu1  ;;  %11483 = vmatmul.mubr.msk.f32.gmra.mrb[194].mxu1 %vm1744_vm3, %v6582_v6  ;;  %v6583_v30 = vld [vmem:[#allocation2 + $0xd3] sm:$0xff]  ;;  %12247 = vrcp.f32 %v1597_v31 }
 0x4db   : > { %v11323_v60 = vpop.f32.mrb[171].mxu0  ;;  %11608 = vmatmul.mubr.msk.f32.gmra.mrb[20].mxu0 %vm1744_vm3, %v1715_v59  ;;  %11485 = vmatprep.mubr.msk.f32.mxu1 %vm12642_vm0, %v17284_v14  ;;  %v12236_v51 = vpop.eup %12235  ;;  %v8806_v59 = vmul.f32 -1.442695, %v16051_v43  ;;  %v17390_v31 = vld [vmem:[#allocation76_spill] sm:$0xff] }
 0x4dc   : > { %11610 = vmatprep.mubr.msk.f32.mxu0 %vm12642_vm0, %v17284_v14  ;;  %v16061_v52 = vadd.f32 %v6357_v47, %v6049_v8  ;;  %v12238_v26 = vpop.eup %12237  ;;  %v1717_v47 = vmul.f32 %v12236_v51, %v15926_v56  ;;  %v16081_v34 = vadd.f32 %v16032_v27, %v17390_v31 }
 0x4dd   : > { %v5882_v1 = vpop.f32.mrb[90].mxu1  ;;  %12249 = vpow2.f32 %v8806_v59  ;;  %v1599_v56 = vadd.f32 1.0, %v12238_v26 }
 0x4de   : > { %v6362_v24 = vpop.f32.mrb[172].mxu0  ;;  %v6050_v6 = vadd.f32 %v5882_v1, %v15495_v63  ;;  %v11201_v3 = vpop.f32.mrb[91].mxu1  ;;  %11486 = vmatmul.mubr.msk.f32.gmra.mrb[196].mxu1 %vm1744_vm3, %v6583_v30  ;;  %v6584_v1 = vld [vmem:[#allocation2 + $0xdb] sm:$0xff]  ;;  %12251 = vrcp.f32 %v1598_v9 }
 0x4df   : > { %v11326_v23 = vpop.f32.mrb[173].mxu0  ;;  %11611 = vmatmul.mubr.msk.f32.gmra.mrb[22].mxu0 %vm1744_vm3, %v1716_v25  ;;  %11488 = vmatprep.mubr.msk.f32.mxu1 %vm12642_vm0, %v17284_v14  ;;  %v12240_v63 = vpop.eup %12239  ;;  %v8807_v25 = vmul.f32 -1.442695, %v16066_v4  ;;  %v17391_v9 = vld [vmem:[#allocation77_spill] sm:$0xff] }
 0x4e0   : > { %11613 = vmatprep.mubr.msk.f32.mxu0 %vm12642_vm0, %v17284_v14  ;;  %v16076_v55 = vadd.f32 %v6362_v24, %v6050_v6  ;;  %v12242_v51 = vpop.eup %12241  ;;  %v1718_v24 = vmul.f32 %v12240_v63, %v15941_v22  ;;  %v16096_v26 = vadd.f32 %v16032_v27, %v17391_v9 }
 0x4e1   : > { %v5887_v8 = vpop.f32.mrb[92].mxu1  ;;  %12253 = vpow2.f32 %v8807_v25  ;;  %v1600_v22 = vadd.f32 1.0, %v12242_v51 }
 0x4e2   : > { %v6367_v60 = vpop.f32.mrb[174].mxu0  ;;  %v6051_v30 = vadd.f32 %v5887_v8, %v15505_v37  ;;  %v11204_v40 = vpop.f32.mrb[93].mxu1  ;;  %11489 = vmatmul.mubr.msk.f32.gmra.mrb[198].mxu1 %vm1744_vm3, %v6584_v1  ;;  %v6585_v8 = vld [vmem:[#allocation2 + $0xe3] sm:$0xff]  ;;  %12255 = vrcp.f32 %v1599_v56 }
 0x4e3   : > { %v11329_v3 = vpop.f32.mrb[175].mxu0  ;;  %11614 = vmatmul.mubr.msk.f32.gmra.mrb[24].mxu0 %vm1744_vm3, %v1717_v47  ;;  %11491 = vmatprep.mubr.msk.f32.mxu1 %vm12642_vm0, %v17284_v14  ;;  %v12244_v37 = vpop.eup %12243  ;;  %v8808_v47 = vmul.f32 -1.442695, %v16081_v34  ;;  %v17392_v56 = vld [vmem:[#allocation78_spill] sm:$0xff] }
 0x4e4   : > { %11616 = vmatprep.mubr.msk.f32.mxu0 %vm12642_vm0, %v17284_v14  ;;  %v16091_v59 = vadd.f32 %v6367_v60, %v6051_v30  ;;  %v12246_v63 = vpop.eup %12245  ;;  %v1719_v60 = vmul.f32 %v12244_v37, %v15956_v42  ;;  %v16111_v51 = vadd.f32 %v16032_v27, %v17392_v56 }
 0x4e5   : > { %v5892_v6 = vpop.f32.mrb[94].mxu1  ;;  %12257 = vpow2.f32 %v8808_v47  ;;  %v1601_v42 = vadd.f32 1.0, %v12246_v63 }
 0x4e6   : > { %v6372_v23 = vpop.f32.mrb[176].mxu0  ;;  %v6052_v1 = vadd.f32 %v5892_v6, %v15515_v15  ;;  %v11207_v31 = vpop.f32.mrb[95].mxu1  ;;  %11492 = vmatmul.mubr.msk.f32.gmra.mrb[200].mxu1 %vm1744_vm3, %v6585_v8  ;;  %v6586_v6 = vld [vmem:[#allocation2 + $0xeb] sm:$0xff]  ;;  %12259 = vrcp.f32 %v1600_v22 }
 0x4e7   : > { %v11332_v40 = vpop.f32.mrb[177].mxu0  ;;  %11617 = vmatmul.mubr.msk.f32.gmra.mrb[26].mxu0 %vm1744_vm3, %v1718_v24  ;;  %11494 = vmatprep.mubr.msk.f32.mxu1 %vm12642_vm0, %v17284_v14  ;;  %v12248_v15 = vpop.eup %12247  ;;  %v8809_v24 = vmul.f32 -1.442695, %v16096_v26  ;;  %v17393_v22 = vld [vmem:[#allocation79_spill] sm:$0xff] }
 0x4e8   : > { %11619 = vmatprep.mubr.msk.f32.mxu0 %vm12642_vm0, %v17284_v14  ;;  %v16106_v25 = vadd.f32 %v6372_v23, %v6052_v1  ;;  %v12250_v37 = vpop.eup %12249  ;;  %v1720_v23 = vmul.f32 %v12248_v15, %v15971_v7  ;;  %v16126_v63 = vadd.f32 %v16032_v27, %v17393_v22 }
 0x4e9   : > { %v5897_v30 = vpop.f32.mrb[96].mxu1  ;;  %12261 = vpow2.f32 %v8809_v24  ;;  %v1602_v7 = vadd.f32 1.0, %v12250_v37 }
 0x4ea   : > { %v6377_v3 = vpop.f32.mrb[178].mxu0  ;;  %v6053_v8 = vadd.f32 %v5897_v30, %v15525_v49  ;;  %v11210_v9 = vpop.f32.mrb[97].mxu1  ;;  %11495 = vmatmul.mubr.msk.f32.gmra.mrb[202].mxu1 %vm1744_vm3, %v6586_v6  ;;  %v6587_v30 = vld [vmem:[#allocation2 + $0xf3] sm:$0xff]  ;;  %12263 = vrcp.f32 %v1601_v42 }
 0x4eb   : > { %v11335_v31 = vpop.f32.mrb[179].mxu0  ;;  %11620 = vmatmul.mubr.msk.f32.gmra.mrb[28].mxu0 %vm1744_vm3, %v1719_v60  ;;  %11497 = vmatprep.mubr.msk.f32.mxu1 %vm12642_vm0, %v17284_v14  ;;  %v12252_v49 = vpop.eup %12251  ;;  %v8810_v60 = vmul.f32 -1.442695, %v16111_v51  ;;  %v17394_v42 = vld [vmem:[#allocation80_spill] sm:$0xff] }
 0x4ec   : > { %11622 = vmatprep.mubr.msk.f32.mxu0 %vm12642_vm0, %v17284_v14  ;;  %v16121_v47 = vadd.f32 %v6377_v3, %v6053_v8  ;;  %v12254_v15 = vpop.eup %12253  ;;  %v1721_v3 = vmul.f32 %v12252_v49, %v15986_v18  ;;  %v16141_v37 = vadd.f32 %v16032_v27, %v17394_v42 }
 0x4ed   : > { %v5902_v1 = vpop.f32.mrb[98].mxu1  ;;  %12265 = vpow2.f32 %v8810_v60  ;;  %v1603_v18 = vadd.f32 1.0, %v12254_v15 }
 0x4ee   : > { %v6382_v40 = vpop.f32.mrb[180].mxu0  ;;  %v6054_v6 = vadd.f32 %v5902_v1, %v15535_v62  ;;  %v11213_v56 = vpop.f32.mrb[99].mxu1  ;;  %11498 = vmatmul.mubr.msk.f32.gmra.mrb[204].mxu1 %vm1744_vm3, %v6587_v30  ;;  %v6588_v1 = vld [vmem:[#allocation2 + $0xfb] sm:$0xff]  ;;  %12267 = vrcp.f32 %v1602_v7 }
 0x4ef   : > { %v11338_v9 = vpop.f32.mrb[181].mxu0  ;;  %11623 = vmatmul.mubr.msk.f32.gmra.mrb[30].mxu0 %vm1744_vm3, %v1720_v23  ;;  %11500 = vmatprep.mubr.msk.f32.mxu1 %vm12642_vm0, %v17284_v14  ;;  %v12256_v62 = vpop.eup %12255  ;;  %v8811_v23 = vmul.f32 -1.442695, %v16126_v63  ;;  %v17395_v7 = vld [vmem:[#allocation81_spill] sm:$0xff] }
 0x4f0   : > { %11625 = vmatprep.mubr.msk.f32.mxu0 %vm12642_vm0, %v17284_v14  ;;  %v16136_v24 = vadd.f32 %v6382_v40, %v6054_v6  ;;  %v12258_v49 = vpop.eup %12257  ;;  %v1722_v40 = vmul.f32 %v12256_v62, %v16001_v19  ;;  %v16156_v15 = vadd.f32 %v16032_v27, %v17395_v7 }
 0x4f1   : > { %v5907_v8 = vpop.f32.mrb[100].mxu1  ;;  %12269 = vpow2.f32 %v8811_v23  ;;  %v1604_v19 = vadd.f32 1.0, %v12258_v49 }
 0x4f2   : > { %v6387_v31 = vpop.f32.mrb[182].mxu0  ;;  %v6055_v30 = vadd.f32 %v5907_v8, %v15545_v50  ;;  %v11216_v22 = vpop.f32.mrb[101].mxu1  ;;  %11501 = vmatmul.mubr.msk.f32.gmra.mrb[206].mxu1 %vm1744_vm3, %v6588_v1  ;;  %v6589_v8 = vld [vmem:[#allocation2 + $0x103] sm:$0xff]  ;;  %12271 = vrcp.f32 %v1603_v18 }
 0x4f3   : > { %v11341_v56 = vpop.f32.mrb[183].mxu0  ;;  %11626 = vmatmul.mubr.msk.f32.gmra.mrb[32].mxu0 %vm1744_vm3, %v1721_v3  ;;  %11503 = vmatprep.mubr.msk.f32.mxu1 %vm12642_vm0, %v17284_v14  ;;  %v12260_v50 = vpop.eup %12259  ;;  %v8812_v3 = vmul.f32 -1.442695, %v16141_v37  ;;  %v17396_v18 = vld [vmem:[#allocation82_spill] sm:$0xff] }
 0x4f4   : > { %11628 = vmatprep.mubr.msk.f32.mxu0 %vm12642_vm0, %v17284_v14  ;;  %v16151_v60 = vadd.f32 %v6387_v31, %v6055_v30  ;;  %v12262_v62 = vpop.eup %12261  ;;  %v1723_v31 = vmul.f32 %v12260_v50, %v16016_v16  ;;  %v16171_v49 = vadd.f32 %v16032_v27, %v17396_v18 }
 0x4f5   : > { %v5912_v6 = vpop.f32.mrb[102].mxu1  ;;  %12273 = vpow2.f32 %v8812_v3  ;;  %v1605_v16 = vadd.f32 1.0, %v12262_v62 }
 0x4f6   : > { %v6392_v9 = vpop.f32.mrb[184].mxu0  ;;  %v6056_v1 = vadd.f32 %v5912_v6, %v15555_v41  ;;  %v11219_v42 = vpop.f32.mrb[103].mxu1  ;;  %11504 = vmatmul.mubr.msk.f32.gmra.mrb[208].mxu1 %vm1744_vm3, %v6589_v8  ;;  %v6590_v6 = vld [vmem:[#allocation2 + $0x10b] sm:$0xff]  ;;  %12275 = vrcp.f32 %v1604_v19 }
 0x4f7   : > { %v11344_v22 = vpop.f32.mrb[185].mxu0  ;;  %11629 = vmatmul.mubr.msk.f32.gmra.mrb[34].mxu0 %vm1744_vm3, %v1722_v40  ;;  %11506 = vmatprep.mubr.msk.f32.mxu1 %vm12642_vm0, %v17284_v14  ;;  %v12264_v41 = vpop.eup %12263  ;;  %v8813_v40 = vmul.f32 -1.442695, %v16156_v15  ;;  %v17397_v19 = vld [vmem:[#allocation83_spill] sm:$0xff] }
 0x4f8   : > { %11631 = vmatprep.mubr.msk.f32.mxu0 %vm12642_vm0, %v17284_v14  ;;  %v16166_v23 = vadd.f32 %v6392_v9, %v6056_v1  ;;  %v12266_v50 = vpop.eup %12265  ;;  %v1724_v9 = vmul.f32 %v12264_v41, %v16036_v57  ;;  %v16186_v62 = vadd.f32 %v16032_v27, %v17397_v19 }
 0x4f9   : > { %v5917_v30 = vpop.f32.mrb[104].mxu1  ;;  %12277 = vpow2.f32 %v8813_v40  ;;  %v1606_v57 = vadd.f32 1.0, %v12266_v50 }
 0x4fa   : > { %v6397_v56 = vpop.f32.mrb[186].mxu0  ;;  %v6057_v8 = vadd.f32 %v5917_v30, %v15565_v17  ;;  %v11222_v7 = vpop.f32.mrb[105].mxu1  ;;  %11507 = vmatmul.mubr.msk.f32.gmra.mrb[210].mxu1 %vm1744_vm3, %v6590_v6  ;;  %v6591_v30 = vld [vmem:[#allocation2 + $0x113] sm:$0xff]  ;;  %12279 = vrcp.f32 %v1605_v16 }
 0x4fb   : > { %v11347_v42 = vpop.f32.mrb[187].mxu0  ;;  %11632 = vmatmul.mubr.msk.f32.gmra.mrb[36].mxu0 %vm1744_vm3, %v1723_v31  ;;  %11509 = vmatprep.mubr.msk.f32.mxu1 %vm12642_vm0, %v17284_v14  ;;  %v12268_v17 = vpop.eup %12267  ;;  %v8814_v31 = vmul.f32 -1.442695, %v16171_v49  ;;  %v17398_v16 = vld [vmem:[#allocation84_spill] sm:$0xff] }
 0x4fc   : > { %11634 = vmatprep.mubr.msk.f32.mxu0 %vm12642_vm0, %v17284_v14  ;;  %v16181_v3 = vadd.f32 %v6397_v56, %v6057_v8  ;;  %v12270_v41 = vpop.eup %12269  ;;  %v1725_v56 = vmul.f32 %v12268_v17, %v16051_v43  ;;  %v16201_v50 = vadd.f32 %v16032_v27, %v17398_v16 }
 0x4fd   : > { %v5922_v1 = vpop.f32.mrb[106].mxu1  ;;  %12281 = vpow2.f32 %v8814_v31  ;;  %v1607_v43 = vadd.f32 1.0, %v12270_v41 }
 0x4fe   : > { %v6402_v22 = vpop.f32.mrb[188].mxu0  ;;  %v6058_v6 = vadd.f32 %v5922_v1, %v15575_v58  ;;  %v11225_v18 = vpop.f32.mrb[107].mxu1  ;;  %11510 = vmatmul.mubr.msk.f32.gmra.mrb[212].mxu1 %vm1744_vm3, %v6591_v30  ;;  %v6592_v1 = vld [vmem:[#allocation2 + $0x11b] sm:$0xff]  ;;  %12283 = vrcp.f32 %v1606_v57 }
 0x4ff   : > { %v11350_v7 = vpop.f32.mrb[189].mxu0  ;;  %11635 = vmatmul.mubr.msk.f32.gmra.mrb[38].mxu0 %vm1744_vm3, %v1724_v9  ;;  %11512 = vmatprep.mubr.msk.f32.mxu1 %vm12642_vm0, %v17284_v14  ;;  %v12272_v58 = vpop.eup %12271  ;;  %v8815_v9 = vmul.f32 -1.442695, %v16186_v62 }
 0x500   : > { %11637 = vmatprep.mubr.msk.f32.mxu0 %vm12642_vm0, %v17284_v14  ;;  %v16196_v40 = vadd.f32 %v6402_v22, %v6058_v6  ;;  %v12274_v17 = vpop.eup %12273  ;;  %v1726_v27 = vmul.f32 %v12272_v58, %v16066_v4  ;;  %v6593_v7 = vld [vmem:[#allocation2 + $0x123] sm:$0xff] }
 0x501   : > { %v5927_v8 = vpop.f32.mrb[108].mxu1  ;;  %12285 = vpow2.f32 %v8815_v9 }
 0x502   : > { %v6407_v42 = vpop.f32.mrb[190].mxu0  ;;  %v6059_v30 = vadd.f32 %v5927_v8, %v15590_v53  ;;  %v11228_v19 = vpop.f32.mrb[109].mxu1  ;;  %11513 = vmatmul.mubr.msk.f32.gmra.mrb[214].mxu1 %vm1744_vm3, %v6592_v1  ;;  %12287 = vrcp.f32 %v1607_v43  ;;  %v1608_v1 = vadd.f32 1.0, %v12274_v17 }
 0x503   : > { %v11353_v18 = vpop.f32.mrb[191].mxu0  ;;  %11638 = vmatmul.mubr.msk.f32.gmra.mrb[40].mxu0 %vm1744_vm3, %v1725_v56  ;;  %11515 = vmatprep.mubr.msk.f32.mxu1 %vm12642_vm0, %v17284_v14  ;;  %v12276_v53 = vpop.eup %12275  ;;  %v8816_v56 = vmul.f32 -1.442695, %v16201_v50 }
 0x504   : > { %11640 = vmatprep.mubr.msk.f32.mxu0 %vm12642_vm0, %v17284_v14  ;;  %v16211_v22 = vadd.f32 %v6407_v42, %v6059_v30  ;;  %v12278_v4 = vpop.eup %12277  ;;  %v1727_v58 = vmul.f32 %v12276_v53, %v16081_v34  ;;  %v6594_v30 = vld [vmem:[#allocation2 + $0x12b] sm:$0xff] }
 0x505   : > { %v5932_v31 = vpop.f32.mrb[110].mxu1  ;;  %12289 = vpow2.f32 %v8816_v56  ;;  %v1609_v17 = vadd.f32 1.0, %v12278_v4 }
 0x506   : > { %v6412_v6 = vpop.f32.mrb[192].mxu0  ;;  %v6060_v57 = vadd.f32 %v5932_v31, %v15604_v46  ;;  %v11231_v41 = vpop.f32.mrb[111].mxu1  ;;  %11516 = vmatmul.mubr.msk.f32.gmra.mrb[216].mxu1 %vm1744_vm3, %v6593_v7  ;;  %12291 = vrcp.f32 %v1608_v1  ;;  %v6595_v7 = vld [vmem:[#allocation2 + $0x133] sm:$0xff] }
 0x507   : > { %v11356_v8 = vpop.f32.mrb[193].mxu0  ;;  %11641 = vmatmul.mubr.msk.f32.gmra.mrb[42].mxu0 %vm1744_vm3, %v1726_v27  ;;  %11518 = vmatprep.mubr.msk.f32.mxu1 %vm12642_vm0, %v17284_v14  ;;  %v12280_v46 = vpop.eup %12279  ;;  %12293 = vrcp.f32 %v1609_v17 }
 0x508   : > { %11643 = vmatprep.mubr.msk.f32.mxu0 %vm12642_vm0, %v17284_v14  ;;  %v16222_v42 = vadd.f32 %v6412_v6, %v6060_v57  ;;  %v12282_v34 = vpop.eup %12281  ;;  %v1728_v27 = vmul.f32 %v12280_v46, %v16096_v26 }
 0x509   : > { %v5937_v9 = vpop.f32.mrb[112].mxu1  ;;  %v1610_v8 = vadd.f32 1.0, %v12282_v34 }
 0x50a   : > { %v6417_v16 = vpop.f32.mrb[194].mxu0  ;;  %v6061_v19 = vadd.f32 %v5937_v9, %v15619_v36  ;;  %v11234_v18 = vpop.f32.mrb[113].mxu1  ;;  %11519 = vmatmul.mubr.msk.f32.gmra.mrb[218].mxu1 %vm1744_vm3, %v6594_v30  ;;  %v6596_v9 = vld [vmem:[#allocation2 + $0x13b] sm:$0xff] }
 0x50b   : > { %v11359_v43 = vpop.f32.mrb[195].mxu0  ;;  %11644 = vmatmul.mubr.msk.f32.gmra.mrb[44].mxu0 %vm1744_vm3, %v1727_v58  ;;  %11521 = vmatprep.mubr.msk.f32.mxu1 %vm12642_vm0, %v17284_v14  ;;  %v12284_v36 = vpop.eup %12283  ;;  %12295 = vrcp.f32 %v1610_v8 }
 0x50c   : > { %11646 = vmatprep.mubr.msk.f32.mxu0 %vm12642_vm0, %v17284_v14  ;;  %v16232_v53 = vadd.f32 %v6417_v16, %v6061_v19  ;;  %v12286_v26 = vpop.eup %12285  ;;  %v1729_v1 = vmul.f32 %v12284_v36, %v16111_v51  ;;  %v17399_v16 = vld [vmem:[#allocation85_spill] sm:$0xff] }
 0x50d   : > { %v5942_v31 = vpop.f32.mrb[114].mxu1  ;;  %v1611_v43 = vadd.f32 1.0, %v12286_v26 }
 0x50e   : > { %v6422_v6 = vpop.f32.mrb[196].mxu0  ;;  %v6062_v56 = vadd.f32 %v5942_v31, %v15634_v54  ;;  %v11237_v57 = vpop.f32.mrb[115].mxu1  ;;  %11522 = vmatmul.mubr.msk.f32.gmra.mrb[220].mxu1 %vm1744_vm3, %v6595_v7  ;;  %v17400_v7 = vld [vmem:[#allocation86_spill] sm:$0xff] }
 0x50f   : > { %v11362_v41 = vpop.f32.mrb[197].mxu0  ;;  %11647 = vmatmul.mubr.msk.f32.gmra.mrb[46].mxu0 %vm1744_vm3, %v1728_v27  ;;  %11524 = vmatprep.mubr.msk.f32.mxu1 %vm12642_vm0, %v17284_v14  ;;  %v12288_v54 = vpop.eup %12287  ;;  %12297 = vrcp.f32 %v1611_v43 }
 0x510   : > { %11649 = vmatprep.mubr.msk.f32.mxu0 %vm12642_vm0, %v17284_v14  ;;  %v16242_v4 = vadd.f32 %v6422_v6, %v6062_v56  ;;  %v12290_v51 = vpop.eup %12289  ;;  %v1730_v17 = vmul.f32 %v12288_v54, %v16126_v63  ;;  %v6597_v6 = vld [vmem:[#allocation2 + $0x143] sm:$0xff] }
 0x511   : > { %v5947_v58 = vpop.f32.mrb[116].mxu1  ;;  %v12292_v27 = vpop.eup %12291  ;;  %v1612_v8 = vadd.f32 1.0, %v12290_v51 }
 0x512   : > { %v6427_v46 = vpop.f32.mrb[198].mxu0  ;;  %v6063_v30 = vadd.f32 %v5947_v58, %v17399_v16  ;;  %v11240_v19 = vpop.f32.mrb[117].mxu1  ;;  %11525 = vmatmul.mubr.msk.f32.gmra.mrb[222].mxu1 %vm1744_vm3, %v6596_v9  ;;  %v1731_v63 = vmul.f32 %v12292_v27, %v16141_v37  ;;  %v17401_v9 = vld [vmem:[#allocation87_spill] sm:$0xff] }
 0x513   : > { %v11365_v18 = vpop.f32.mrb[199].mxu0  ;;  %11650 = vmatmul.mubr.msk.f32.gmra.mrb[48].mxu0 %vm1744_vm3, %v1729_v1  ;;  %11527 = vmatprep.mubr.msk.f32.mxu1 %vm12642_vm0, %v17284_v14  ;;  %v12294_v1 = vpop.eup %12293  ;;  %12299 = vrcp.f32 %v1612_v8  ;;  %v6599_v27 = vld [vmem:[#allocation2 + $0x153] sm:$0xff] }
 0x514   : > { %11652 = vmatprep.mubr.msk.f32.mxu0 %vm12642_vm0, %v17284_v14  ;;  %v16252_v34 = vadd.f32 %v6427_v46, %v6063_v30  ;;  %v6598_v46 = vld [vmem:[#allocation2 + $0x14b] sm:$0xff]  ;;  %v1732_v37 = vmul.f32 %v12294_v1, %v16156_v15  ;;  %v17403_v1 = vld [vmem:[#allocation89_spill] sm:$0xff] }
 0x515   : > { %v5952_v36 = vpop.f32.mrb[118].mxu1  ;;  %v12296_v43 = vpop.eup %12295 }
 0x516   : > { %v6432_v31 = vpop.f32.mrb[200].mxu0  ;;  %v6064_v56 = vadd.f32 %v5952_v36, %v17400_v7  ;;  %v11243_v57 = vpop.f32.mrb[119].mxu1  ;;  %11528 = vmatmul.mubr.msk.f32.gmra.mrb[224].mxu1 %vm1744_vm3, %v6597_v6  ;;  %v17402_v36 = vld [vmem:[#allocation88_spill] sm:$0xff]  ;;  %v1733_v15 = vmul.f32 %v12296_v43, %v16171_v49  ;;  %v6601_v49 = vld [vmem:[#allocation2 + $0x163] sm:$0xff] }
 0x517   : > { %v11368_v41 = vpop.f32.mrb[201].mxu0  ;;  %11653 = vmatmul.mubr.msk.f32.gmra.mrb[50].mxu0 %vm1744_vm3, %v1730_v17  ;;  %11530 = vmatprep.mubr.msk.f32.mxu1 %vm12642_vm0, %v17284_v14  ;;  %v17404_v43 = vld [vmem:[#allocation90_spill] sm:$0xff] }
 0x518   : > { %11655 = vmatprep.mubr.msk.f32.mxu0 %vm12642_vm0, %v17284_v14  ;;  %v16262_v26 = vadd.f32 %v6432_v31, %v6064_v56 }
 0x519   : > { %v5957_v54 = vpop.f32.mrb[120].mxu1  ;;  %v12298_v57 = vpop.eup %12297 }
 0x51a   : > { %v6437_v58 = vpop.f32.mrb[202].mxu0  ;;  %v6065_v16 = vadd.f32 %v5957_v54, %v17401_v9  ;;  %v11246_v30 = vpop.f32.mrb[121].mxu1  ;;  %11531 = vmatmul.mubr.msk.f32.gmra.mrb[226].mxu1 %vm1744_vm3, %v6598_v46  ;;  %v1734_v9 = vmul.f32 %v12298_v57, %v16186_v62  ;;  %v6602_v62 = vld [vmem:[#allocation2 + $0x16b] sm:$0xf] }
 0x51b   : > { %v11371_v19 = vpop.f32.mrb[203].mxu0  ;;  %11656 = vmatmul.mubr.msk.f32.gmra.mrb[52].mxu0 %vm1744_vm3, %v1731_v63  ;;  %11533 = vmatprep.mubr.msk.f32.mxu1 %vm12642_vm0, %v17284_v14  ;;  %v6600_v63 = vld [vmem:[#allocation2 + $0x15b] sm:$0xff] }
 0x51c   : > { %11658 = vmatprep.mubr.msk.f32.mxu0 %vm12642_vm0, %v17284_v14  ;;  %v16272_v18 = vadd.f32 %v6437_v58, %v6065_v16 }
 0x51d   : > { %v5962_v51 = vpop.f32.mrb[122].mxu1  ;;  %v12300_v30 = vpop.eup %12299 }
 0x51e   : > { %v6442_v17 = vpop.f32.mrb[204].mxu0  ;;  %v6066_v31 = vadd.f32 %v5962_v51, %v17402_v36  ;;  %v11249_v6 = vpop.f32.mrb[123].mxu1  ;;  %11534 = vmatmul.mubr.msk.f32.gmra.mrb[228].mxu1 %vm1744_vm3, %v6599_v27  ;;  %v1735_v36 = vmul.f32 %v12300_v30, %v16201_v50 }
 0x51f   : > { %v11374_v7 = vpop.f32.mrb[205].mxu0  ;;  %11659 = vmatmul.mubr.msk.f32.gmra.mrb[54].mxu0 %vm1744_vm3, %v1732_v37  ;;  %11536 = vmatprep.mubr.msk.f32.mxu1 %vm12642_vm0, %v17284_v14 }
 0x520   : > { %11661 = vmatprep.mubr.msk.f32.mxu0 %vm12642_vm0, %v17284_v14  ;;  %v16282_v56 = vadd.f32 %v6442_v17, %v6066_v31 }
 0x521   : > { %v5967_v41 = vpop.f32.mrb[124].mxu1 }
 0x522   : > { %v6447_v8 = vpop.f32.mrb[206].mxu0  ;;  %v6067_v54 = vadd.f32 %v5967_v41, %v17403_v1  ;;  %v11252_v58 = vpop.f32.mrb[125].mxu1  ;;  %11537 = vmatmul.mubr.msk.f32.gmra.mrb[230].mxu1 %vm1744_vm3, %v6600_v63 }
 0x523   : > { %v11377_v46 = vpop.f32.mrb[207].mxu0  ;;  %11662 = vmatmul.mubr.msk.f32.gmra.mrb[56].mxu0 %vm1744_vm3, %v1733_v15  ;;  %11539 = vmatprep.mubr.msk.f32.mxu1 %vm12642_vm0, %v17284_v14  ;;  %v17405_v15 = vld [vmem:[#allocation91_spill] sm:$0xff] }
 0x524   : > { %11664 = vmatprep.mubr.msk.f32.mxu0 %vm12642_vm0, %v17284_v14  ;;  %v16292_v16 = vadd.f32 %v6447_v8, %v6067_v54 }
 0x525   : > { %v5972_v19 = vpop.f32.mrb[126].mxu1 }
 0x526   : > { %v6452_v37 = vpop.f32.mrb[208].mxu0  ;;  %v6068_v51 = vadd.f32 %v5972_v19, %v17404_v43  ;;  %v11255_v17 = vpop.f32.mrb[127].mxu1  ;;  %11540 = vmatmul.mubr.msk.f32.gmra.mrb[232].mxu1 %vm1744_vm3, %v6601_v49 }
 0x527   : > { %v11380_v27 = vpop.f32.mrb[209].mxu0  ;;  %11665 = vmatmul.mubr.msk.f32.gmra.mrb[58].mxu0 %vm1744_vm3, %v1734_v9  ;;  %11542 = vmatprep.mubr.msk.f32.mxu1 %vm12642_vm0, %v17284_v14 }
 0x528   : > { %11667 = vmatprep.mubr.msk.f32.mxu0 %vm12642_vm0, %v17284_v14  ;;  %v16302_v31 = vadd.f32 %v6452_v37, %v6068_v51 }
 0x529   : > { %v5977_v6 = vpop.f32.mrb[128].mxu1 }
 0x52a   : > { %v6457_v7 = vpop.f32.mrb[210].mxu0  ;;  %v6069_v57 = vadd.f32 %v5977_v6, %v17405_v15  ;;  %v11258_v41 = vpop.f32.mrb[129].mxu1  ;;  %11543 = vmatmul.mubr.msk.f32.gmra.mrb[234].mxu1 %vm1744_vm3, %v6602_v62 }
 0x52b   : > { %v11383_v8 = vpop.f32.mrb[211].mxu0  ;;  %11668 = vmatmul.mubr.msk.f32.gmra.mrb[60].mxu0 %vm1744_vm3, %v1735_v36  ;;  %11672 = vmatprep.mubr.msk.f32.mxu1 %vm12642_vm0, %v17284_v14 }
 0x52c   : > { %v16309_v63 = vadd.f32 %v6457_v7, %v6069_v57 }
 0x52d   : > { %v5982_v1 = vpop.f32.mrb[130].mxu1 }
 0x52e   : > { %v6462_v54 = vpop.f32.mrb[212].mxu0  ;;  %v6070_v50 = vadd.f32 %v5982_v1, %v15755_v45  ;;  %v11261_v58 = vpop.f32.mrb[131].mxu1 }
 0x52f   : > { %v11386_v46 = vpop.f32.mrb[213].mxu0 }
 0x530   : > { %v16312_v49 = vadd.f32 %v6462_v54, %v6070_v50 }
 0x531   : > { %v5987_v9 = vpop.f32.mrb[132].mxu1 }
 0x532   : > { %v6467_v30 = vpop.f32.mrb[214].mxu0  ;;  %v6071_v19 = vadd.f32 %v5987_v9, %v15771_v44  ;;  %v11264_v37 = vpop.f32.mrb[133].mxu1 }
 0x533   : > { %v11389_v43 = vpop.f32.mrb[215].mxu0 }
 0x534   : > { %v16315_v51 = vadd.f32 %v6467_v30, %v6071_v19 }
 0x535   : > { %v5992_v17 = vpop.f32.mrb[134].mxu1 }
 0x536   : > { %v6472_v27 = vpop.f32.mrb[216].mxu0  ;;  %v6072_v62 = vadd.f32 %v5992_v17, %v15786_v33  ;;  %v11267_v36 = vpop.f32.mrb[135].mxu1 }
 0x537   : > { %v11392_v6 = vpop.f32.mrb[217].mxu0 }
 0x538   : > { %v16318_v7 = vadd.f32 %v6472_v27, %v6072_v62 }
 0x539   : > { %v5997_v45 = vpop.f32.mrb[136].mxu1 }
 0x53a   : > { %v6477_v15 = vpop.f32.mrb[218].mxu0  ;;  %v6073_v57 = vadd.f32 %v5997_v45, %v15801_v48  ;;  %v11270_v41 = vpop.f32.mrb[137].mxu1 }
 0x53b   : > { %v11395_v8 = vpop.f32.mrb[219].mxu0 }
 0x53c   : > { %v16321_v1 = vadd.f32 %v6477_v15, %v6073_v57 }
 0x53d   : > { %v6002_v44 = vpop.f32.mrb[138].mxu1 }
 0x53e   : > { %v6482_v54 = vpop.f32.mrb[220].mxu0  ;;  %v6074_v50 = vadd.f32 %v6002_v44, %v15816_v10  ;;  %v11273_v58 = vpop.f32.mrb[139].mxu1 }
 0x53f   : > { %v11398_v46 = vpop.f32.mrb[221].mxu0 }
 0x540   : > { %v16324_v9 = vadd.f32 %v6482_v54, %v6074_v50 }
 0x541   : > { %v6007_v33 = vpop.f32.mrb[140].mxu1 }
 0x542   : > { %v6487_v30 = vpop.f32.mrb[222].mxu0  ;;  %v6075_v19 = vadd.f32 %v6007_v33, %v15831_v28  ;;  %v11276_v37 = vpop.f32.mrb[141].mxu1 }
 0x543   : > { %v11401_v43 = vpop.f32.mrb[223].mxu0 }
 0x544   : > { %v16327_v17 = vadd.f32 %v6487_v30, %v6075_v19 }
 0x545   : > { %v6012_v48 = vpop.f32.mrb[142].mxu1 }
 0x546   : > { %v6492_v27 = vpop.f32.mrb[224].mxu0  ;;  %v6076_v62 = vadd.f32 %v6012_v48, %v15846_v20  ;;  %v11279_v36 = vpop.f32.mrb[143].mxu1 }
 0x547   : > { %v11404_v6 = vpop.f32.mrb[225].mxu0 }
 0x548   : > { %v16330_v45 = vadd.f32 %v6492_v27, %v6076_v62 }
 0x549   : > { %v6017_v10 = vpop.f32.mrb[144].mxu1 }
 0x54a   : > { %v6497_v15 = vpop.f32.mrb[226].mxu0  ;;  %v6077_v57 = vadd.f32 %v6017_v10, %v15861_v61  ;;  %v11282_v41 = vpop.f32.mrb[145].mxu1 }
 0x54b   : > { %v11407_v8 = vpop.f32.mrb[227].mxu0 }
 0x54c   : > { %v16333_v44 = vadd.f32 %v6497_v15, %v6077_v57 }
 0x54d   : > { %v6022_v28 = vpop.f32.mrb[146].mxu1 }
 0x54e   : > { %v6502_v54 = vpop.f32.mrb[228].mxu0  ;;  %v6078_v50 = vadd.f32 %v6022_v28, %v15876_v13  ;;  %v11285_v58 = vpop.f32.mrb[147].mxu1 }
 0x54f   : > { %v11410_v46 = vpop.f32.mrb[229].mxu0 }
 0x550   : > { %v16336_v33 = vadd.f32 %v6502_v54, %v6078_v50  ;;  %v16350_v54 = vld [vmem:[%s17166_s9] ss:$0 sm:$0xff] }
 0x551   : > { %v6027_v20 = vpop.f32.mrb[148].mxu1 }
 0x552   : > { %v6507_v30 = vpop.f32.mrb[230].mxu0  ;;  %v6079_v19 = vadd.f32 %v6027_v20, %v15891_v0  ;;  %v11288_v37 = vpop.f32.mrb[149].mxu1 }
 0x553   : > { %v11413_v43 = vpop.f32.mrb[231].mxu0 }
 0x554   : > { %v16339_v48 = vadd.f32 %v6507_v30, %v6079_v19 }
 0x555   : > { %v6032_v61 = vpop.f32.mrb[150].mxu1 }
 0x556   : > { %v6512_v27 = vpop.f32.mrb[232].mxu0  ;;  %v6080_v62 = vadd.f32 %v6032_v61, %v15906_v12  ;;  %v11291_v36 = vpop.f32.mrb[151].mxu1 }
 0x557   : > { %v11416_v6 = vpop.f32.mrb[233].mxu0 }
 0x558   : > { %v16342_v10 = vadd.f32 %v6512_v27, %v6080_v62 }
 0x559   : > { %v6037_v13 = vpop.f32.mrb[152].mxu1 }
 0x55a   : > { %v6517_v15 = vpop.f32.mrb[234].mxu0  ;;  %v6081_v57 = vadd.f32 %v6037_v13, %v15921_v32  ;;  %v11294_v41 = vpop.f32.mrb[153].mxu1 }
 0x55b   : > { %v11419_v8 = vpop.f32.mrb[235].mxu0 }
 0x55c   : > { %v16345_v28 = vadd.f32 %v6517_v15, %v6081_v57 }
 0x55d   : > { %v6797_v0 = vpop.f32.mrb[154].mxu1 }
 0x55e   : > { %v16352_v50 = vpop.f32.mrb[236].mxu0  ;;  %v7001_v12 = vadd.f32 %v6797_v0, %v15936_v2  ;;  %v11424_v58 = vpop.f32.mrb[155].mxu1 }
 0x55f   : > { %v11549_v46 = vpop.f32.mrb[237].mxu0 }
 0x560   : > { %v16356_v20 = vadd.f32 %v16350_v54, %v7001_v12 }
 0x561   : > { %v6802_v32 = vpop.f32.mrb[156].mxu1 }
 0x562   : > { %v16358_v30 = vpop.f32.mrb[238].mxu0  ;;  %v9288_v19 = vmul.f32 -1.442695, %v16356_v20  ;;  %v7002_v37 = vadd.f32 %v6802_v32, %v15951_v11  ;;  %v11427_v43 = vpop.f32.mrb[157].mxu1 }
 0x563   : > { %v11552_v61 = vpop.f32.mrb[239].mxu0 }
 0x564   : > { %12301 = vpow2.f32 %v9288_v19  ;;  %v16363_v27 = vadd.f32 %v16350_v54, %v7002_v37 }
 0x565   : > { %v6807_v62 = vpop.f32.mrb[158].mxu1 }
 0x566   : > { %v16365_v2 = vpop.f32.mrb[240].mxu0  ;;  %v9289_v36 = vmul.f32 -1.442695, %v16363_v27  ;;  %v7003_v6 = vadd.f32 %v6807_v62, %v15966_v35  ;;  %v11430_v13 = vpop.f32.mrb[159].mxu1 }
 0x567   : > { %v11555_v15 = vpop.f32.mrb[241].mxu0 }
 0x568   : > { %12303 = vpow2.f32 %v9289_v36  ;;  %v16370_v57 = vadd.f32 %v16350_v54, %v7003_v6 }
 0x569   : > { %v6812_v11 = vpop.f32.mrb[160].mxu1 }
 0x56a   : > { %v16372_v41 = vpop.f32.mrb[242].mxu0  ;;  %v9290_v8 = vmul.f32 -1.442695, %v16370_v57  ;;  %v7004_v0 = vadd.f32 %v6812_v11, %v15981_v38  ;;  %v11433_v12 = vpop.f32.mrb[161].mxu1 }
 0x56b   : > { %v11558_v58 = vpop.f32.mrb[243].mxu0 }
 0x56c   : > { %12305 = vpow2.f32 %v9290_v8  ;;  %v16377_v46 = vadd.f32 %v16350_v54, %v7004_v0 }
 0x56d   : > { %v6817_v35 = vpop.f32.mrb[162].mxu1 }
 0x56e   : > { %v16379_v32 = vpop.f32.mrb[244].mxu0  ;;  %v12302_v19 = vpop.eup %12301  ;;  %v9291_v37 = vmul.f32 -1.442695, %v16377_v46  ;;  %v7005_v43 = vadd.f32 %v6817_v35, %v15996_v5 }
 0x56f   : > { %v11436_v61 = vpop.f32.mrb[163].mxu1  ;;  %v11561_v62 = vpop.f32.mrb[245].mxu0  ;;  %v7213_v36 = vadd.f32 1.0, %v12302_v19 }
 0x570   : > { %12307 = vpow2.f32 %v9291_v37  ;;  %v16384_v38 = vadd.f32 %v16350_v54, %v7005_v43 }
 0x571   : > { %12309 = vrcp.f32 %v7213_v36  ;;  %v6822_v6 = vpop.f32.mrb[164].mxu1 }
 0x572   : > { %v16386_v13 = vpop.f32.mrb[246].mxu0  ;;  %v12304_v15 = vpop.eup %12303  ;;  %v9292_v11 = vmul.f32 -1.442695, %v16384_v38  ;;  %v7006_v8 = vadd.f32 %v6822_v6, %v16011_v29 }
 0x573   : > { %17406 = vst [vmem:[#allocation92_spill] sm:$0xff] %v16386_v13  ;;  %v11439_v0 = vpop.f32.mrb[165].mxu1  ;;  %v11564_v12 = vpop.f32.mrb[247].mxu0  ;;  %v7214_v58 = vadd.f32 1.0, %v12304_v15 }
 0x574   : > { %12311 = vpow2.f32 %v9292_v11  ;;  %v16391_v5 = vadd.f32 %v16350_v54, %v7006_v8 }
 0x575   : > { %12313 = vrcp.f32 %v7214_v58  ;;  %v6827_v35 = vpop.f32.mrb[166].mxu1 }
 0x576   : > { %v16393_v19 = vpop.f32.mrb[248].mxu0  ;;  %v12306_v37 = vpop.eup %12305  ;;  %v9293_v43 = vmul.f32 -1.442695, %v16391_v5  ;;  %v7007_v61 = vadd.f32 %v6827_v35, %v16026_v39 }
 0x577   : > { %17407 = vst [vmem:[#allocation93_spill] sm:$0xff] %v16393_v19  ;;  %v11442_v62 = vpop.f32.mrb[167].mxu1  ;;  %v11567_v36 = vpop.f32.mrb[249].mxu0  ;;  %v7215_v13 = vadd.f32 1.0, %v12306_v37 }
 0x578   : > { %12315 = vpow2.f32 %v9293_v43  ;;  %v16398_v29 = vadd.f32 %v16350_v54, %v7007_v61  ;;  %v17409_v62 = vld [vmem:[#allocation3_spill] sm:$0xff] }
 0x579   : > { %12317 = vrcp.f32 %v7215_v13  ;;  %v6832_v6 = vpop.f32.mrb[168].mxu1 }
 0x57a   : > { %v16400_v15 = vpop.f32.mrb[250].mxu0  ;;  %v12308_v11 = vpop.eup %12307  ;;  %v9294_v8 = vmul.f32 -1.442695, %v16398_v29  ;;  %v7008_v0 = vadd.f32 %v6832_v6, %v16046_v21 }
 0x57b   : > { %17408 = vst [vmem:[#allocation94_spill] sm:$0xff] %v16400_v15  ;;  %v11445_v12 = vpop.f32.mrb[169].mxu1  ;;  %v11570_v58 = vpop.f32.mrb[251].mxu0  ;;  %v7216_v39 = vadd.f32 1.0, %v12308_v11 }
 0x57c   : > { %v12310_v19 = vpop.eup %12309  ;;  %12319 = vpow2.f32 %v9294_v8  ;;  %v16406_v37 = vadd.f32 %v16350_v54, %v7008_v0 }
 0x57d   : > { %v7336_v35 = vmul.f32 %v12310_v19, %v16356_v20  ;;  %12321 = vrcp.f32 %v7216_v39  ;;  %v6837_v13 = vpop.f32.mrb[170].mxu1  ;;  %v17410_v39 = vld [vmem:[#allocation4_spill] sm:$0xff] }
 0x57e   : > { %v16408_v43 = vpop.f32.mrb[252].mxu0  ;;  %v12312_v61 = vpop.eup %12311  ;;  %v9295_v15 = vmul.f32 -1.442695, %v16406_v37  ;;  %v7009_v21 = vadd.f32 %v6837_v13, %v16061_v52 }
 0x57f   : > { %v7377_v36 = vadd.f32 %v7336_v35, %v17409_v62  ;;  %v11448_v6 = vpop.f32.mrb[171].mxu1  ;;  %v11573_v12 = vpop.f32.mrb[253].mxu0  ;;  %v7217_v58 = vadd.f32 1.0, %v12312_v61 }
 0x580   : > { %v12314_v11 = vpop.eup %12313  ;;  %12323 = vpow2.f32 %v9295_v15  ;;  %v16415_v19 = vadd.f32 %v16350_v54, %v7009_v21 }
 0x581   : > { %v7337_v20 = vmul.f32 %v12314_v11, %v16363_v27  ;;  %11673 = vmatmul.mubr.msk.f32.vlgmr.msra.gmra.mrb[236].mxu1 %vm1744_vm3, %v7377_v36  ;;  %12325 = vrcp.f32 %v7217_v58  ;;  %v6842_v8 = vpop.f32.mrb[172].mxu1  ;;  %v17411_v58 = vld [vmem:[#allocation5_spill] sm:$0xff] }
 0x582   : > { %v16418_v0 = vpop.f32.mrb[254].mxu0  ;;  %11675 = vmatprep.mubr.msk.f32.mxu1 %vm12642_vm0, %v17284_v14  ;;  %v12316_v52 = vpop.eup %12315  ;;  %v9296_v13 = vmul.f32 -1.442695, %v16415_v19  ;;  %v7010_v27 = vadd.f32 %v6842_v8, %v16076_v55 }
 0x583   : > { %v7378_v35 = vadd.f32 %v7337_v20, %v17410_v39  ;;  %v11451_v15 = vpop.f32.mrb[173].mxu1  ;;  %v11576_v61 = vpop.f32.mrb[255].mxu0  ;;  %v7218_v21 = vadd.f32 1.0, %v12316_v52 }
 0x584   : > { %v12318_v62 = vpop.eup %12317  ;;  %12327 = vpow2.f32 %v9296_v13  ;;  %v16427_v6 = vadd.f32 %v16350_v54, %v7010_v27 }
 0x585   : > { %v7338_v36 = vmul.f32 %v12318_v62, %v16370_v57  ;;  %11676 = vmatmul.mubr.msk.f32.gmra.mrb[238].mxu1 %vm1744_vm3, %v7378_v35  ;;  %12329 = vrcp.f32 %v7218_v21  ;;  %v6847_v12 = vpop.f32.mrb[174].mxu1  ;;  %v17412_v21 = vld [vmem:[#allocation6_spill] sm:$0xff] }
 0x586   : > { %v16430_v11 = vpop.f32.mrb[0].mxu0  ;;  %11678 = vmatprep.mubr.msk.f32.mxu1 %vm12642_vm0, %v17284_v14  ;;  %v12320_v55 = vpop.eup %12319  ;;  %v9297_v8 = vmul.f32 -1.442695, %v16427_v6  ;;  %v7011_v57 = vadd.f32 %v6847_v12, %v16091_v59 }
 0x587   : > { %v7379_v20 = vadd.f32 %v7338_v36, %v17411_v58  ;;  %v11454_v52 = vpop.f32.mrb[175].mxu1  ;;  %v11579_v39 = vpop.f32.mrb[1].mxu0  ;;  %v7219_v27 = vadd.f32 1.0, %v12320_v55 }
 0x588   : > { %v12322_v13 = vpop.eup %12321  ;;  %12331 = vpow2.f32 %v9297_v8  ;;  %v16439_v15 = vadd.f32 %v16350_v54, %v7011_v57 }
 0x589   : > { %v7339_v35 = vmul.f32 %v12322_v13, %v16377_v46  ;;  %11679 = vmatmul.mubr.msk.f32.gmra.mrb[240].mxu1 %vm1744_vm3, %v7379_v20  ;;  %12333 = vrcp.f32 %v7219_v27  ;;  %v6852_v61 = vpop.f32.mrb[176].mxu1  ;;  %v17413_v27 = vld [vmem:[#allocation7_spill] sm:$0xff] }
 0x58a   : > { %v16442_v62 = vpop.f32.mrb[2].mxu0  ;;  %11681 = vmatprep.mubr.msk.f32.mxu1 %vm12642_vm0, %v17284_v14  ;;  %v12324_v59 = vpop.eup %12323  ;;  %v9298_v12 = vmul.f32 -1.442695, %v16439_v15  ;;  %v7012_v46 = vadd.f32 %v6852_v61, %v16106_v25 }
 0x58b   : > { %v7380_v36 = vadd.f32 %v7339_v35, %v17412_v21  ;;  %v11457_v55 = vpop.f32.mrb[177].mxu1  ;;  %v11582_v58 = vpop.f32.mrb[3].mxu0  ;;  %v7220_v57 = vadd.f32 1.0, %v12324_v59 }
 0x58c   : > { %v12326_v8 = vpop.eup %12325  ;;  %12335 = vpow2.f32 %v9298_v12  ;;  %v16451_v52 = vadd.f32 %v16350_v54, %v7012_v46 }
 0x58d   : > { %v7340_v20 = vmul.f32 %v12326_v8, %v16384_v38  ;;  %11682 = vmatmul.mubr.msk.f32.gmra.mrb[242].mxu1 %vm1744_vm3, %v7380_v36  ;;  %12337 = vrcp.f32 %v7220_v57  ;;  %v6857_v39 = vpop.f32.mrb[178].mxu1  ;;  %v17414_v57 = vld [vmem:[#allocation8_spill] sm:$0xff] }
 0x58e   : > { %v16454_v13 = vpop.f32.mrb[4].mxu0  ;;  %11684 = vmatprep.mubr.msk.f32.mxu1 %vm12642_vm0, %v17284_v14  ;;  %v12328_v25 = vpop.eup %12327  ;;  %v9299_v61 = vmul.f32 -1.442695, %v16451_v52  ;;  %v7013_v38 = vadd.f32 %v6857_v39, %v16121_v47 }
 0x58f   : > { %v7381_v35 = vadd.f32 %v7340_v20, %v17413_v27  ;;  %v11460_v59 = vpop.f32.mrb[179].mxu1  ;;  %v11585_v21 = vpop.f32.mrb[5].mxu0  ;;  %v7221_v46 = vadd.f32 1.0, %v12328_v25 }
 0x590   : > { %v12330_v12 = vpop.eup %12329  ;;  %12339 = vpow2.f32 %v9299_v61  ;;  %v16463_v55 = vadd.f32 %v16350_v54, %v7013_v38 }
 0x591   : > { %v7341_v36 = vmul.f32 %v12330_v12, %v16391_v5  ;;  %11685 = vmatmul.mubr.msk.f32.gmra.mrb[244].mxu1 %vm1744_vm3, %v7381_v35  ;;  %12341 = vrcp.f32 %v7221_v46  ;;  %v6862_v58 = vpop.f32.mrb[180].mxu1  ;;  %v17415_v46 = vld [vmem:[#allocation9_spill] sm:$0xff] }
 0x592   : > { %v16466_v8 = vpop.f32.mrb[6].mxu0  ;;  %11687 = vmatprep.mubr.msk.f32.mxu1 %vm12642_vm0, %v17284_v14  ;;  %v12332_v47 = vpop.eup %12331  ;;  %v9300_v39 = vmul.f32 -1.442695, %v16463_v55  ;;  %v7014_v5 = vadd.f32 %v6862_v58, %v16136_v24 }
 0x593   : > { %v7382_v20 = vadd.f32 %v7341_v36, %v17414_v57  ;;  %v11463_v25 = vpop.f32.mrb[181].mxu1  ;;  %v11588_v27 = vpop.f32.mrb[7].mxu0  ;;  %v7222_v38 = vadd.f32 1.0, %v12332_v47 }
 0x594   : > { %v12334_v61 = vpop.eup %12333  ;;  %12343 = vpow2.f32 %v9300_v39  ;;  %v16475_v59 = vadd.f32 %v16350_v54, %v7014_v5 }
 0x595   : > { %v7342_v35 = vmul.f32 %v12334_v61, %v16398_v29  ;;  %11688 = vmatmul.mubr.msk.f32.gmra.mrb[246].mxu1 %vm1744_vm3, %v7382_v20  ;;  %12345 = vrcp.f32 %v7222_v38  ;;  %v6867_v21 = vpop.f32.mrb[182].mxu1  ;;  %v17416_v38 = vld [vmem:[#allocation10_spill] sm:$0xff] }
 0x596   : > { %v16478_v12 = vpop.f32.mrb[8].mxu0  ;;  %11690 = vmatprep.mubr.msk.f32.mxu1 %vm12642_vm0, %v17284_v14  ;;  %v12336_v24 = vpop.eup %12335  ;;  %v9301_v58 = vmul.f32 -1.442695, %v16475_v59  ;;  %v7015_v29 = vadd.f32 %v6867_v21, %v16151_v60 }
 0x597   : > { %v7383_v36 = vadd.f32 %v7342_v35, %v17415_v46  ;;  %v11466_v47 = vpop.f32.mrb[183].mxu1  ;;  %v11591_v57 = vpop.f32.mrb[9].mxu0  ;;  %v7223_v5 = vadd.f32 1.0, %v12336_v24 }
 0x598   : > { %v12338_v39 = vpop.eup %12337  ;;  %12347 = vpow2.f32 %v9301_v58  ;;  %v16487_v25 = vadd.f32 %v16350_v54, %v7015_v29 }
 0x599   : > { %v7343_v20 = vmul.f32 %v12338_v39, %v16406_v37  ;;  %11691 = vmatmul.mubr.msk.f32.gmra.mrb[248].mxu1 %vm1744_vm3, %v7383_v36  ;;  %12349 = vrcp.f32 %v7223_v5  ;;  %v6872_v27 = vpop.f32.mrb[184].mxu1  ;;  %v17417_v5 = vld [vmem:[#allocation11_spill] sm:$0xff] }
 0x59a   : > { %v16490_v61 = vpop.f32.mrb[10].mxu0  ;;  %11693 = vmatprep.mubr.msk.f32.mxu1 %vm12642_vm0, %v17284_v14  ;;  %v12340_v60 = vpop.eup %12339  ;;  %v9302_v21 = vmul.f32 -1.442695, %v16487_v25  ;;  %v7016_v37 = vadd.f32 %v6872_v27, %v16166_v23 }
 0x59b   : > { %v7384_v35 = vadd.f32 %v7343_v20, %v17416_v38  ;;  %v11469_v24 = vpop.f32.mrb[185].mxu1  ;;  %v11594_v46 = vpop.f32.mrb[11].mxu0  ;;  %v7224_v29 = vadd.f32 1.0, %v12340_v60 }
 0x59c   : > { %v12342_v58 = vpop.eup %12341  ;;  %12351 = vpow2.f32 %v9302_v21  ;;  %v16499_v47 = vadd.f32 %v16350_v54, %v7016_v37 }
 0x59d   : > { %v7344_v36 = vmul.f32 %v12342_v58, %v16415_v19  ;;  %11694 = vmatmul.mubr.msk.f32.gmra.mrb[250].mxu1 %vm1744_vm3, %v7384_v35  ;;  %12353 = vrcp.f32 %v7224_v29  ;;  %v6877_v57 = vpop.f32.mrb[186].mxu1  ;;  %v17418_v29 = vld [vmem:[#allocation12_spill] sm:$0xff] }
 0x59e   : > { %v16502_v39 = vpop.f32.mrb[12].mxu0  ;;  %11696 = vmatprep.mubr.msk.f32.mxu1 %vm12642_vm0, %v17284_v14  ;;  %v12344_v23 = vpop.eup %12343  ;;  %v9303_v27 = vmul.f32 -1.442695, %v16499_v47  ;;  %v7017_v19 = vadd.f32 %v6877_v57, %v16181_v3 }
 0x59f   : > { %v7385_v20 = vadd.f32 %v7344_v36, %v17417_v5  ;;  %v11472_v60 = vpop.f32.mrb[187].mxu1  ;;  %v11597_v38 = vpop.f32.mrb[13].mxu0  ;;  %v7225_v37 = vadd.f32 1.0, %v12344_v23 }
 0x5a0   : > { %v12346_v21 = vpop.eup %12345  ;;  %12355 = vpow2.f32 %v9303_v27  ;;  %v16511_v24 = vadd.f32 %v16350_v54, %v7017_v19 }
 0x5a1   : > { %v7345_v35 = vmul.f32 %v12346_v21, %v16427_v6  ;;  %11697 = vmatmul.mubr.msk.f32.gmra.mrb[252].mxu1 %vm1744_vm3, %v7385_v20  ;;  %12357 = vrcp.f32 %v7225_v37  ;;  %v6882_v46 = vpop.f32.mrb[188].mxu1  ;;  %v17419_v37 = vld [vmem:[#allocation13_spill] sm:$0xff] }
 0x5a2   : > { %v16514_v58 = vpop.f32.mrb[14].mxu0  ;;  %11699 = vmatprep.mubr.msk.f32.mxu1 %vm12642_vm0, %v17284_v14  ;;  %v12348_v3 = vpop.eup %12347  ;;  %v9304_v57 = vmul.f32 -1.442695, %v16511_v24  ;;  %v7018_v6 = vadd.f32 %v6882_v46, %v16196_v40 }
 0x5a3   : > { %v7386_v36 = vadd.f32 %v7345_v35, %v17418_v29  ;;  %v11475_v23 = vpop.f32.mrb[189].mxu1  ;;  %v11600_v5 = vpop.f32.mrb[15].mxu0  ;;  %v7226_v19 = vadd.f32 1.0, %v12348_v3 }
 0x5a4   : > { %v12350_v27 = vpop.eup %12349  ;;  %12359 = vpow2.f32 %v9304_v57  ;;  %v16523_v60 = vadd.f32 %v16350_v54, %v7018_v6 }
 0x5a5   : > { %v7346_v20 = vmul.f32 %v12350_v27, %v16439_v15  ;;  %11700 = vmatmul.mubr.msk.f32.gmra.mrb[254].mxu1 %vm1744_vm3, %v7386_v36  ;;  %12361 = vrcp.f32 %v7226_v19  ;;  %v6887_v38 = vpop.f32.mrb[190].mxu1  ;;  %v17420_v19 = vld [vmem:[#allocation14_spill] sm:$0xff] }
 0x5a6   : > { %v16526_v21 = vpop.f32.mrb[16].mxu0  ;;  %11702 = vmatprep.mubr.msk.f32.mxu1 %vm12642_vm0, %v17284_v14  ;;  %v12352_v40 = vpop.eup %12351  ;;  %v9305_v46 = vmul.f32 -1.442695, %v16523_v60  ;;  %v7019_v15 = vadd.f32 %v6887_v38, %v16211_v22 }
 0x5a7   : > { %v7387_v35 = vadd.f32 %v7346_v20, %v17419_v37  ;;  %v11478_v3 = vpop.f32.mrb[191].mxu1  ;;  %v11603_v29 = vpop.f32.mrb[17].mxu0  ;;  %v7227_v6 = vadd.f32 1.0, %v12352_v40 }
 0x5a8   : > { %v12354_v57 = vpop.eup %12353  ;;  %12363 = vpow2.f32 %v9305_v46  ;;  %v16535_v23 = vadd.f32 %v16350_v54, %v7019_v15 }
 0x5a9   : > { %v7347_v36 = vmul.f32 %v12354_v57, %v16451_v52  ;;  %11703 = vmatmul.mubr.msk.f32.gmra.mrb[0].mxu1 %vm1744_vm3, %v7387_v35  ;;  %12365 = vrcp.f32 %v7227_v6  ;;  %v6892_v5 = vpop.f32.mrb[192].mxu1  ;;  %v17421_v6 = vld [vmem:[#allocation15_spill] sm:$0xff] }
 0x5aa   : > { %v16538_v27 = vpop.f32.mrb[18].mxu0  ;;  %11705 = vmatprep.mubr.msk.f32.mxu1 %vm12642_vm0, %v17284_v14  ;;  %v12356_v22 = vpop.eup %12355  ;;  %v9306_v38 = vmul.f32 -1.442695, %v16535_v23  ;;  %v7020_v52 = vadd.f32 %v6892_v5, %v16222_v42 }
 0x5ab   : > { %v7388_v20 = vadd.f32 %v7347_v36, %v17420_v19  ;;  %v11481_v40 = vpop.f32.mrb[193].mxu1  ;;  %v11606_v37 = vpop.f32.mrb[19].mxu0  ;;  %v7228_v15 = vadd.f32 1.0, %v12356_v22 }
 0x5ac   : > { %v12358_v46 = vpop.eup %12357  ;;  %12367 = vpow2.f32 %v9306_v38  ;;  %v16547_v3 = vadd.f32 %v16350_v54, %v7020_v52 }
 0x5ad   : > { %v7348_v35 = vmul.f32 %v12358_v46, %v16463_v55  ;;  %11706 = vmatmul.mubr.msk.f32.gmra.mrb[2].mxu1 %vm1744_vm3, %v7388_v20  ;;  %12369 = vrcp.f32 %v7228_v15  ;;  %v6897_v29 = vpop.f32.mrb[194].mxu1  ;;  %v17422_v15 = vld [vmem:[#allocation16_spill] sm:$0xff] }
 0x5ae   : > { %v16550_v57 = vpop.f32.mrb[20].mxu0  ;;  %11708 = vmatprep.mubr.msk.f32.mxu1 %vm12642_vm0, %v17284_v14  ;;  %v12360_v42 = vpop.eup %12359  ;;  %v9307_v5 = vmul.f32 -1.442695, %v16547_v3  ;;  %v7021_v55 = vadd.f32 %v6897_v29, %v16232_v53 }
 0x5af   : > { %v7389_v36 = vadd.f32 %v7348_v35, %v17421_v6  ;;  %v11484_v22 = vpop.f32.mrb[195].mxu1  ;;  %v11609_v19 = vpop.f32.mrb[21].mxu0  ;;  %v7229_v52 = vadd.f32 1.0, %v12360_v42 }
 0x5b0   : > { %v12362_v38 = vpop.eup %12361  ;;  %12371 = vpow2.f32 %v9307_v5  ;;  %v16559_v40 = vadd.f32 %v16350_v54, %v7021_v55 }
 0x5b1   : > { %v7349_v20 = vmul.f32 %v12362_v38, %v16475_v59  ;;  %11709 = vmatmul.mubr.msk.f32.gmra.mrb[4].mxu1 %vm1744_vm3, %v7389_v36  ;;  %12373 = vrcp.f32 %v7229_v52  ;;  %v6902_v37 = vpop.f32.mrb[196].mxu1  ;;  %v17423_v52 = vld [vmem:[#allocation17_spill] sm:$0xff] }
 0x5b2   : > { %v16562_v46 = vpop.f32.mrb[22].mxu0  ;;  %11711 = vmatprep.mubr.msk.f32.mxu1 %vm12642_vm0, %v17284_v14  ;;  %v12364_v53 = vpop.eup %12363  ;;  %v9308_v29 = vmul.f32 -1.442695, %v16559_v40  ;;  %v7022_v59 = vadd.f32 %v6902_v37, %v16242_v4 }
 0x5b3   : > { %v7390_v35 = vadd.f32 %v7349_v20, %v17422_v15  ;;  %v11487_v42 = vpop.f32.mrb[197].mxu1  ;;  %v11612_v6 = vpop.f32.mrb[23].mxu0  ;;  %v7230_v55 = vadd.f32 1.0, %v12364_v53 }
 0x5b4   : > { %v12366_v5 = vpop.eup %12365  ;;  %12375 = vpow2.f32 %v9308_v29  ;;  %v16571_v22 = vadd.f32 %v16350_v54, %v7022_v59 }
 0x5b5   : > { %v7350_v36 = vmul.f32 %v12366_v5, %v16487_v25  ;;  %11712 = vmatmul.mubr.msk.f32.gmra.mrb[6].mxu1 %vm1744_vm3, %v7390_v35  ;;  %12377 = vrcp.f32 %v7230_v55  ;;  %v6907_v19 = vpop.f32.mrb[198].mxu1  ;;  %v17424_v55 = vld [vmem:[#allocation18_spill] sm:$0xff] }
 0x5b6   : > { %v16574_v38 = vpop.f32.mrb[24].mxu0  ;;  %11714 = vmatprep.mubr.msk.f32.mxu1 %vm12642_vm0, %v17284_v14  ;;  %v12368_v4 = vpop.eup %12367  ;;  %v9309_v37 = vmul.f32 -1.442695, %v16571_v22  ;;  %v7023_v25 = vadd.f32 %v6907_v19, %v16252_v34 }
 0x5b7   : > { %v7391_v20 = vadd.f32 %v7350_v36, %v17423_v52  ;;  %v11490_v53 = vpop.f32.mrb[199].mxu1  ;;  %v11615_v15 = vpop.f32.mrb[25].mxu0  ;;  %v7231_v59 = vadd.f32 1.0, %v12368_v4 }
 0x5b8   : > { %v12370_v29 = vpop.eup %12369  ;;  %12379 = vpow2.f32 %v9309_v37  ;;  %v16583_v42 = vadd.f32 %v16350_v54, %v7023_v25 }
 0x5b9   : > { %v7351_v35 = vmul.f32 %v12370_v29, %v16499_v47  ;;  %11715 = vmatmul.mubr.msk.f32.gmra.mrb[8].mxu1 %vm1744_vm3, %v7391_v20  ;;  %12381 = vrcp.f32 %v7231_v59  ;;  %v6912_v6 = vpop.f32.mrb[200].mxu1  ;;  %v17425_v59 = vld [vmem:[#allocation19_spill] sm:$0xff] }
 0x5ba   : > { %v16586_v5 = vpop.f32.mrb[26].mxu0  ;;  %11717 = vmatprep.mubr.msk.f32.mxu1 %vm12642_vm0, %v17284_v14  ;;  %v12372_v34 = vpop.eup %12371  ;;  %v9310_v19 = vmul.f32 -1.442695, %v16583_v42  ;;  %v7024_v47 = vadd.f32 %v6912_v6, %v16262_v26 }
 0x5bb   : > { %v7392_v36 = vadd.f32 %v7351_v35, %v17424_v55  ;;  %v11493_v4 = vpop.f32.mrb[201].mxu1  ;;  %v11618_v52 = vpop.f32.mrb[27].mxu0  ;;  %v7232_v25 = vadd.f32 1.0, %v12372_v34 }
 0x5bc   : > { %v12374_v37 = vpop.eup %12373  ;;  %12383 = vpow2.f32 %v9310_v19  ;;  %v16595_v53 = vadd.f32 %v16350_v54, %v7024_v47 }
 0x5bd   : > { %v7352_v20 = vmul.f32 %v12374_v37, %v16511_v24  ;;  %11718 = vmatmul.mubr.msk.f32.gmra.mrb[10].mxu1 %vm1744_vm3, %v7392_v36  ;;  %12385 = vrcp.f32 %v7232_v25  ;;  %v6917_v15 = vpop.f32.mrb[202].mxu1  ;;  %v17426_v25 = vld [vmem:[#allocation20_spill] sm:$0xff] }
 0x5be   : > { %v16598_v29 = vpop.f32.mrb[28].mxu0  ;;  %11720 = vmatprep.mubr.msk.f32.mxu1 %vm12642_vm0, %v17284_v14  ;;  %v12376_v26 = vpop.eup %12375  ;;  %v9311_v6 = vmul.f32 -1.442695, %v16595_v53  ;;  %v7025_v24 = vadd.f32 %v6917_v15, %v16272_v18 }
 0x5bf   : > { %v7393_v35 = vadd.f32 %v7352_v20, %v17425_v59  ;;  %v11496_v34 = vpop.f32.mrb[203].mxu1  ;;  %v11621_v55 = vpop.f32.mrb[29].mxu0  ;;  %v7233_v47 = vadd.f32 1.0, %v12376_v26 }
 0x5c0   : > { %v12378_v19 = vpop.eup %12377  ;;  %12387 = vpow2.f32 %v9311_v6  ;;  %v16607_v4 = vadd.f32 %v16350_v54, %v7025_v24 }
 0x5c1   : > { %v7353_v36 = vmul.f32 %v12378_v19, %v16523_v60  ;;  %11721 = vmatmul.mubr.msk.f32.gmra.mrb[12].mxu1 %vm1744_vm3, %v7393_v35  ;;  %12389 = vrcp.f32 %v7233_v47  ;;  %v6922_v52 = vpop.f32.mrb[204].mxu1  ;;  %v17427_v47 = vld [vmem:[#allocation21_spill] sm:$0xff] }
 0x5c2   : > { %v16610_v37 = vpop.f32.mrb[30].mxu0  ;;  %11723 = vmatprep.mubr.msk.f32.mxu1 %vm12642_vm0, %v17284_v14  ;;  %v12380_v18 = vpop.eup %12379  ;;  %v9312_v15 = vmul.f32 -1.442695, %v16607_v4  ;;  %v7026_v60 = vadd.f32 %v6922_v52, %v16282_v56 }
 0x5c3   : > { %v7394_v20 = vadd.f32 %v7353_v36, %v17426_v25  ;;  %v11499_v26 = vpop.f32.mrb[205].mxu1  ;;  %v11624_v59 = vpop.f32.mrb[31].mxu0  ;;  %v7234_v24 = vadd.f32 1.0, %v12380_v18 }
 0x5c4   : > { %v12382_v6 = vpop.eup %12381  ;;  %12391 = vpow2.f32 %v9312_v15  ;;  %v16619_v34 = vadd.f32 %v16350_v54, %v7026_v60 }
 0x5c5   : > { %v7354_v35 = vmul.f32 %v12382_v6, %v16535_v23  ;;  %11724 = vmatmul.mubr.msk.f32.gmra.mrb[14].mxu1 %vm1744_vm3, %v7394_v20  ;;  %12393 = vrcp.f32 %v7234_v24  ;;  %v6927_v55 = vpop.f32.mrb[206].mxu1  ;;  %v17428_v24 = vld [vmem:[#allocation22_spill] sm:$0xff] }
 0x5c6   : > { %v16622_v19 = vpop.f32.mrb[32].mxu0  ;;  %11726 = vmatprep.mubr.msk.f32.mxu1 %vm12642_vm0, %v17284_v14  ;;  %v12384_v56 = vpop.eup %12383  ;;  %v9313_v52 = vmul.f32 -1.442695, %v16619_v34  ;;  %v7027_v23 = vadd.f32 %v6927_v55, %v16292_v16 }
 0x5c7   : > { %v7395_v36 = vadd.f32 %v7354_v35, %v17427_v47  ;;  %v11502_v18 = vpop.f32.mrb[207].mxu1  ;;  %v11627_v25 = vpop.f32.mrb[33].mxu0  ;;  %v7235_v60 = vadd.f32 1.0, %v12384_v56 }
 0x5c8   : > { %v12386_v15 = vpop.eup %12385  ;;  %12395 = vpow2.f32 %v9313_v52  ;;  %v16631_v26 = vadd.f32 %v16350_v54, %v7027_v23 }
 0x5c9   : > { %v7355_v20 = vmul.f32 %v12386_v15, %v16547_v3  ;;  %11727 = vmatmul.mubr.msk.f32.gmra.mrb[16].mxu1 %vm1744_vm3, %v7395_v36  ;;  %12397 = vrcp.f32 %v7235_v60  ;;  %v6932_v59 = vpop.f32.mrb[208].mxu1  ;;  %v17429_v60 = vld [vmem:[#allocation23_spill] sm:$0xff] }
 0x5ca   : > { %v16634_v6 = vpop.f32.mrb[34].mxu0  ;;  %11729 = vmatprep.mubr.msk.f32.mxu1 %vm12642_vm0, %v17284_v14  ;;  %v12388_v16 = vpop.eup %12387  ;;  %v9314_v55 = vmul.f32 -1.442695, %v16631_v26  ;;  %v7028_v3 = vadd.f32 %v6932_v59, %v16302_v31 }
 0x5cb   : > { %v7396_v35 = vadd.f32 %v7355_v20, %v17428_v24  ;;  %v11505_v56 = vpop.f32.mrb[209].mxu1  ;;  %v11630_v47 = vpop.f32.mrb[35].mxu0  ;;  %v7236_v23 = vadd.f32 1.0, %v12388_v16 }
 0x5cc   : > { %v12390_v52 = vpop.eup %12389  ;;  %12399 = vpow2.f32 %v9314_v55  ;;  %v16643_v18 = vadd.f32 %v16350_v54, %v7028_v3 }
 0x5cd   : > { %v7356_v36 = vmul.f32 %v12390_v52, %v16559_v40  ;;  %11730 = vmatmul.mubr.msk.f32.gmra.mrb[18].mxu1 %vm1744_vm3, %v7396_v35  ;;  %12401 = vrcp.f32 %v7236_v23  ;;  %v6937_v25 = vpop.f32.mrb[210].mxu1  ;;  %v17430_v23 = vld [vmem:[#allocation24_spill] sm:$0xff] }
 0x5ce   : > { %v16646_v15 = vpop.f32.mrb[36].mxu0  ;;  %11732 = vmatprep.mubr.msk.f32.mxu1 %vm12642_vm0, %v17284_v14  ;;  %v12392_v31 = vpop.eup %12391  ;;  %v9315_v59 = vmul.f32 -1.442695, %v16643_v18  ;;  %v7029_v40 = vadd.f32 %v6937_v25, %v16309_v63 }
 0x5cf   : > { %v7397_v20 = vadd.f32 %v7356_v36, %v17429_v60  ;;  %v11508_v16 = vpop.f32.mrb[211].mxu1  ;;  %v11633_v24 = vpop.f32.mrb[37].mxu0  ;;  %v7237_v3 = vadd.f32 1.0, %v12392_v31 }
 0x5d0   : > { %v12394_v55 = vpop.eup %12393  ;;  %12403 = vpow2.f32 %v9315_v59  ;;  %v16655_v56 = vadd.f32 %v16350_v54, %v7029_v40 }
 0x5d1   : > { %v7357_v35 = vmul.f32 %v12394_v55, %v16571_v22  ;;  %11733 = vmatmul.mubr.msk.f32.gmra.mrb[20].mxu1 %vm1744_vm3, %v7397_v20  ;;  %12405 = vrcp.f32 %v7237_v3  ;;  %v6942_v47 = vpop.f32.mrb[212].mxu1  ;;  %v17431_v3 = vld [vmem:[#allocation25_spill] sm:$0xff] }
 0x5d2   : > { %v16658_v52 = vpop.f32.mrb[38].mxu0  ;;  %11735 = vmatprep.mubr.msk.f32.mxu1 %vm12642_vm0, %v17284_v14  ;;  %v12396_v63 = vpop.eup %12395  ;;  %v9316_v25 = vmul.f32 -1.442695, %v16655_v56  ;;  %v7030_v22 = vadd.f32 %v6942_v47, %v16312_v49 }
 0x5d3   : > { %v7398_v36 = vadd.f32 %v7357_v35, %v17430_v23  ;;  %v11511_v31 = vpop.f32.mrb[213].mxu1  ;;  %v11636_v60 = vpop.f32.mrb[39].mxu0  ;;  %v7238_v40 = vadd.f32 1.0, %v12396_v63 }
 0x5d4   : > { %v12398_v59 = vpop.eup %12397  ;;  %12407 = vpow2.f32 %v9316_v25  ;;  %v16667_v16 = vadd.f32 %v16350_v54, %v7030_v22 }
 0x5d5   : > { %v7358_v20 = vmul.f32 %v12398_v59, %v16583_v42  ;;  %11736 = vmatmul.mubr.msk.f32.gmra.mrb[22].mxu1 %vm1744_vm3, %v7398_v36  ;;  %12409 = vrcp.f32 %v7238_v40  ;;  %v6947_v24 = vpop.f32.mrb[214].mxu1  ;;  %v17432_v40 = vld [vmem:[#allocation26_spill] sm:$0xff] }
 0x5d6   : > { %v16670_v55 = vpop.f32.mrb[40].mxu0  ;;  %11738 = vmatprep.mubr.msk.f32.mxu1 %vm12642_vm0, %v17284_v14  ;;  %v12400_v49 = vpop.eup %12399  ;;  %v9317_v47 = vmul.f32 -1.442695, %v16667_v16  ;;  %v7031_v42 = vadd.f32 %v6947_v24, %v16315_v51 }
 0x5d7   : > { %v7399_v35 = vadd.f32 %v7358_v20, %v17431_v3  ;;  %v11514_v63 = vpop.f32.mrb[215].mxu1  ;;  %v11639_v23 = vpop.f32.mrb[41].mxu0  ;;  %v7239_v22 = vadd.f32 1.0, %v12400_v49 }
 0x5d8   : > { %v12402_v25 = vpop.eup %12401  ;;  %12411 = vpow2.f32 %v9317_v47  ;;  %v16679_v31 = vadd.f32 %v16350_v54, %v7031_v42 }
 0x5d9   : > { %v7359_v36 = vmul.f32 %v12402_v25, %v16595_v53  ;;  %11739 = vmatmul.mubr.msk.f32.gmra.mrb[24].mxu1 %vm1744_vm3, %v7399_v35  ;;  %12413 = vrcp.f32 %v7239_v22  ;;  %v6952_v60 = vpop.f32.mrb[216].mxu1  ;;  %v17433_v22 = vld [vmem:[#allocation27_spill] sm:$0xff] }
 0x5da   : > { %v16682_v59 = vpop.f32.mrb[42].mxu0  ;;  %11741 = vmatprep.mubr.msk.f32.mxu1 %vm12642_vm0, %v17284_v14  ;;  %v12404_v51 = vpop.eup %12403  ;;  %v9318_v24 = vmul.f32 -1.442695, %v16679_v31  ;;  %v7032_v53 = vadd.f32 %v6952_v60, %v16318_v7 }
 0x5db   : > { %v7400_v20 = vadd.f32 %v7359_v36, %v17432_v40  ;;  %v11517_v49 = vpop.f32.mrb[217].mxu1  ;;  %v11642_v3 = vpop.f32.mrb[43].mxu0  ;;  %v7240_v42 = vadd.f32 1.0, %v12404_v51 }
 0x5dc   : > { %v12406_v47 = vpop.eup %12405  ;;  %12415 = vpow2.f32 %v9318_v24  ;;  %v16691_v63 = vadd.f32 %v16350_v54, %v7032_v53 }
 0x5dd   : > { %v7360_v35 = vmul.f32 %v12406_v47, %v16607_v4  ;;  %11742 = vmatmul.mubr.msk.f32.gmra.mrb[26].mxu1 %vm1744_vm3, %v7400_v20  ;;  %12417 = vrcp.f32 %v7240_v42  ;;  %v6957_v23 = vpop.f32.mrb[218].mxu1  ;;  %v17434_v42 = vld [vmem:[#allocation28_spill] sm:$0xff] }
 0x5de   : > { %v16694_v25 = vpop.f32.mrb[44].mxu0  ;;  %11744 = vmatprep.mubr.msk.f32.mxu1 %vm12642_vm0, %v17284_v14  ;;  %v12408_v7 = vpop.eup %12407  ;;  %v9319_v60 = vmul.f32 -1.442695, %v16691_v63  ;;  %v7033_v4 = vadd.f32 %v6957_v23, %v16321_v1 }
 0x5df   : > { %v7401_v36 = vadd.f32 %v7360_v35, %v17433_v22  ;;  %v11520_v51 = vpop.f32.mrb[219].mxu1  ;;  %v11645_v40 = vpop.f32.mrb[45].mxu0  ;;  %v7241_v53 = vadd.f32 1.0, %v12408_v7 }
 0x5e0   : > { %v12410_v24 = vpop.eup %12409  ;;  %12419 = vpow2.f32 %v9319_v60  ;;  %v16703_v49 = vadd.f32 %v16350_v54, %v7033_v4 }
 0x5e1   : > { %v7361_v20 = vmul.f32 %v12410_v24, %v16619_v34  ;;  %11745 = vmatmul.mubr.msk.f32.gmra.mrb[28].mxu1 %vm1744_vm3, %v7401_v36  ;;  %12421 = vrcp.f32 %v7241_v53  ;;  %v6962_v3 = vpop.f32.mrb[220].mxu1  ;;  %v17435_v53 = vld [vmem:[#allocation29_spill] sm:$0xff] }
 0x5e2   : > { %v16706_v47 = vpop.f32.mrb[46].mxu0  ;;  %11747 = vmatprep.mubr.msk.f32.mxu1 %vm12642_vm0, %v17284_v14  ;;  %v12412_v1 = vpop.eup %12411  ;;  %v9320_v23 = vmul.f32 -1.442695, %v16703_v49  ;;  %v7034_v34 = vadd.f32 %v6962_v3, %v16324_v9 }
 0x5e3   : > { %v7402_v35 = vadd.f32 %v7361_v20, %v17434_v42  ;;  %v11523_v7 = vpop.f32.mrb[221].mxu1  ;;  %v11648_v22 = vpop.f32.mrb[47].mxu0  ;;  %v7242_v4 = vadd.f32 1.0, %v12412_v1 }
 0x5e4   : > { %v12414_v60 = vpop.eup %12413  ;;  %12423 = vpow2.f32 %v9320_v23  ;;  %v16715_v51 = vadd.f32 %v16350_v54, %v7034_v34 }
 0x5e5   : > { %v7362_v36 = vmul.f32 %v12414_v60, %v16631_v26  ;;  %11748 = vmatmul.mubr.msk.f32.gmra.mrb[30].mxu1 %vm1744_vm3, %v7402_v35  ;;  %12425 = vrcp.f32 %v7242_v4  ;;  %v6967_v40 = vpop.f32.mrb[222].mxu1  ;;  %v17436_v4 = vld [vmem:[#allocation30_spill] sm:$0xff] }
 0x5e6   : > { %v16718_v24 = vpop.f32.mrb[48].mxu0  ;;  %11750 = vmatprep.mubr.msk.f32.mxu1 %vm12642_vm0, %v17284_v14  ;;  %v12416_v9 = vpop.eup %12415  ;;  %v9321_v3 = vmul.f32 -1.442695, %v16715_v51  ;;  %v7035_v26 = vadd.f32 %v6967_v40, %v16327_v17 }
 0x5e7   : > { %v7403_v20 = vadd.f32 %v7362_v36, %v17435_v53  ;;  %v11526_v1 = vpop.f32.mrb[223].mxu1  ;;  %v11651_v42 = vpop.f32.mrb[49].mxu0  ;;  %v7243_v34 = vadd.f32 1.0, %v12416_v9 }
 0x5e8   : > { %v12418_v23 = vpop.eup %12417  ;;  %12427 = vpow2.f32 %v9321_v3  ;;  %v16727_v7 = vadd.f32 %v16350_v54, %v7035_v26  ;;  %v16741_v26 = vld [vmem:[%s17166_s9] ss:$0 sm:$0xff] }
 0x5e9   : > { %v7363_v35 = vmul.f32 %v12418_v23, %v16643_v18  ;;  %11751 = vmatmul.mubr.msk.f32.gmra.mrb[32].mxu1 %vm1744_vm3, %v7403_v20  ;;  %12429 = vrcp.f32 %v7243_v34  ;;  %v6972_v22 = vpop.f32.mrb[224].mxu1 }
 0x5ea   : > { %v16730_v60 = vpop.f32.mrb[50].mxu0  ;;  %11753 = vmatprep.mubr.msk.f32.mxu1 %vm12642_vm0, %v17284_v14  ;;  %v12420_v17 = vpop.eup %12419  ;;  %v9322_v40 = vmul.f32 -1.442695, %v16727_v7  ;;  %v7036_v18 = vadd.f32 %v6972_v22, %v16330_v45 }
 0x5eb   : > { %v7404_v36 = vadd.f32 %v7363_v35, %v17436_v4  ;;  %v11529_v9 = vpop.f32.mrb[225].mxu1  ;;  %v11654_v53 = vpop.f32.mrb[51].mxu0  ;;  %v7244_v3 = vadd.f32 1.0, %v12420_v17 }
 0x5ec   : > { %v12422_v54 = vpop.eup %12421  ;;  %12431 = vpow2.f32 %v9322_v40  ;;  %v16744_v1 = vadd.f32 %v16741_v26, %v7036_v18 }
 0x5ed   : > { %v7364_v20 = vmul.f32 %v12422_v54, %v16655_v56  ;;  %11754 = vmatmul.mubr.msk.f32.gmra.mrb[34].mxu1 %vm1744_vm3, %v7404_v36  ;;  %12433 = vrcp.f32 %v7244_v3  ;;  %v6977_v42 = vpop.f32.mrb[226].mxu1  ;;  %v17437_v56 = vld [vmem:[#allocation31_spill] sm:$0xff]  ;;  %v17438_v3 = vld [vmem:[#allocation32_spill] sm:$0xff] }
 0x5ee   : > { %v16747_v45 = vpop.f32.mrb[52].mxu0  ;;  %11756 = vmatprep.mubr.msk.f32.mxu1 %vm12642_vm0, %v17284_v14  ;;  %v12424_v23 = vpop.eup %12423  ;;  %v9323_v35 = vmul.f32 -1.442695, %v16744_v1  ;;  %v7037_v22 = vadd.f32 %v6977_v42, %v16333_v44 }
 0x5ef   : > { %v7405_v34 = vadd.f32 %v7364_v20, %v17437_v56  ;;  %v11532_v17 = vpop.f32.mrb[227].mxu1  ;;  %v11657_v4 = vpop.f32.mrb[53].mxu0  ;;  %v7245_v18 = vadd.f32 1.0, %v12424_v23 }
 0x5f0   : > { %v12426_v40 = vpop.eup %12425  ;;  %12435 = vpow2.f32 %v9323_v35  ;;  %v16756_v9 = vadd.f32 %v16741_v26, %v7037_v22 }
 0x5f1   : > { %v7365_v36 = vmul.f32 %v12426_v40, %v16667_v16  ;;  %11757 = vmatmul.mubr.msk.f32.gmra.mrb[36].mxu1 %vm1744_vm3, %v7405_v34  ;;  %12437 = vrcp.f32 %v7245_v18  ;;  %v6982_v53 = vpop.f32.mrb[228].mxu1  ;;  %v17439_v18 = vld [vmem:[#allocation33_spill] sm:$0xff] }
 0x5f2   : > { %v16759_v54 = vpop.f32.mrb[54].mxu0  ;;  %11759 = vmatprep.mubr.msk.f32.mxu1 %vm12642_vm0, %v17284_v14  ;;  %v12428_v44 = vpop.eup %12427  ;;  %v9324_v42 = vmul.f32 -1.442695, %v16756_v9  ;;  %v7038_v16 = vadd.f32 %v6982_v53, %v16336_v33 }
 0x5f3   : > { %v7406_v20 = vadd.f32 %v7365_v36, %v17438_v3  ;;  %v11535_v23 = vpop.f32.mrb[229].mxu1  ;;  %v11660_v56 = vpop.f32.mrb[55].mxu0  ;;  %v7246_v22 = vadd.f32 1.0, %v12428_v44 }
 0x5f4   : > { %v12430_v35 = vpop.eup %12429  ;;  %12439 = vpow2.f32 %v9324_v42  ;;  %v16768_v17 = vadd.f32 %v16741_v26, %v7038_v16 }
 0x5f5   : > { %v7366_v34 = vmul.f32 %v12430_v35, %v16679_v31  ;;  %11760 = vmatmul.mubr.msk.f32.gmra.mrb[38].mxu1 %vm1744_vm3, %v7406_v20  ;;  %12441 = vrcp.f32 %v7246_v22  ;;  %v6987_v4 = vpop.f32.mrb[230].mxu1  ;;  %v17440_v22 = vld [vmem:[#allocation34_spill] sm:$0xff] }
 0x5f6   : > { %v16771_v40 = vpop.f32.mrb[56].mxu0  ;;  %11762 = vmatprep.mubr.msk.f32.mxu1 %vm12642_vm0, %v17284_v14  ;;  %v12432_v33 = vpop.eup %12431  ;;  %v9325_v53 = vmul.f32 -1.442695, %v16768_v17  ;;  %v7039_v31 = vadd.f32 %v6987_v4, %v16339_v48 }
 0x5f7   : > { %v7407_v36 = vadd.f32 %v7366_v34, %v17439_v18  ;;  %v11538_v44 = vpop.f32.mrb[231].mxu1  ;;  %v11663_v3 = vpop.f32.mrb[57].mxu0  ;;  %v7247_v16 = vadd.f32 1.0, %v12432_v33 }
 0x5f8   : > { %v12434_v42 = vpop.eup %12433  ;;  %12443 = vpow2.f32 %v9325_v53  ;;  %v16780_v23 = vadd.f32 %v16741_v26, %v7039_v31 }
 0x5f9   : > { %v7367_v20 = vmul.f32 %v12434_v42, %v16691_v63  ;;  %11763 = vmatmul.mubr.msk.f32.gmra.mrb[40].mxu1 %vm1744_vm3, %v7407_v36  ;;  %12445 = vrcp.f32 %v7247_v16  ;;  %v6992_v56 = vpop.f32.mrb[232].mxu1 }
 0x5fa   : > { %v16783_v35 = vpop.f32.mrb[58].mxu0  ;;  %11765 = vmatprep.mubr.msk.f32.mxu1 %vm12642_vm0, %v17284_v14  ;;  %v12436_v48 = vpop.eup %12435  ;;  %v9326_v4 = vmul.f32 -1.442695, %v16780_v23  ;;  %v7040_v63 = vadd.f32 %v6992_v56, %v16342_v10  ;;  %v17441_v10 = vld [vmem:[#allocation35_spill] sm:$0xff] }
 0x5fb   : > { %v7408_v34 = vadd.f32 %v7367_v20, %v17440_v22  ;;  %v11541_v33 = vpop.f32.mrb[233].mxu1  ;;  %v11666_v18 = vpop.f32.mrb[59].mxu0  ;;  %v7248_v31 = vadd.f32 1.0, %v12436_v48 }
 0x5fc   : > { %v12438_v53 = vpop.eup %12437  ;;  %12447 = vpow2.f32 %v9326_v4  ;;  %v7088_v44 = vadd.f32 %v16741_v26, %v7040_v63 }
 0x5fd   : > { %v7368_v36 = vmul.f32 %v12438_v53, %v16703_v49  ;;  %11766 = vmatmul.mubr.msk.f32.gmra.mrb[42].mxu1 %vm1744_vm3, %v7408_v34  ;;  %12449 = vrcp.f32 %v7248_v31  ;;  %v6997_v3 = vpop.f32.mrb[234].mxu1  ;;  %v17442_v53 = vld [vmem:[#allocation36_spill] sm:$0xff] }
 0x5fe   : > { %v16793_v42 = vpop.f32.mrb[60].mxu0  ;;  %11768 = vmatprep.mubr.msk.f32.mxu1 %vm12642_vm0, %v17284_v14  ;;  %v12440_v16 = vpop.eup %12439  ;;  %v9327_v56 = vmul.f32 -1.442695, %v7088_v44  ;;  %v7041_v48 = vadd.f32 %v6997_v3, %v16345_v28 }
 0x5ff   : > { %v7409_v20 = vadd.f32 %v7368_v36, %v17441_v10  ;;  %v11544_v22 = vpop.f32.mrb[235].mxu1  ;;  %v11669_v49 = vpop.f32.mrb[61].mxu0  ;;  %v7249_v33 = vadd.f32 1.0, %v12440_v16 }
 0x600   : > { %v12442_v4 = vpop.eup %12441  ;;  %12451 = vpow2.f32 %v9327_v56  ;;  %v7089_v34 = vadd.f32 %v16741_v26, %v7041_v48  ;;  %v17443_v26 = vld [vmem:[#allocation37_spill] sm:$0xff]  ;;  %v17444_v22 = vld [vmem:[#allocation39_spill] sm:$0xff] }
 0x601   : > { %v7369_v63 = vmul.f32 %v12442_v4, %v16715_v51  ;;  %11769 = vmatmul.mubr.msk.f32.gmra.mrb[44].mxu1 %vm1744_vm3, %v7409_v20  ;;  %12453 = vrcp.f32 %v7249_v33 }
 0x602   : > { %11771 = vmatprep.mubr.msk.f32.mxu1 %vm12642_vm0, %v17284_v14  ;;  %v12444_v18 = vpop.eup %12443  ;;  %v9328_v36 = vmul.f32 -1.442695, %v7089_v34 }
 0x603   : > { %v7410_v31 = vadd.f32 %v7369_v63, %v17442_v53  ;;  %v12446_v28 = vpop.eup %12445  ;;  %v7250_v3 = vadd.f32 1.0, %v12444_v18  ;;  %v17445_v18 = vld [vmem:[#allocation41_spill] sm:$0xff] }
 0x604   : > { %v7370_v10 = vmul.f32 %v12446_v28, %v16727_v7  ;;  %12455 = vpow2.f32 %v9328_v36 }
 0x605   : > { %11772 = vmatmul.mubr.msk.f32.gmra.mrb[46].mxu1 %vm1744_vm3, %v7410_v31  ;;  %12457 = vrcp.f32 %v7250_v3 }
 0x606   : > { %11774 = vmatprep.mubr.msk.f32.mxu1 %vm12642_vm0, %v17284_v14  ;;  %v12448_v51 = vpop.eup %12447  ;;  %v7411_v16 = vadd.f32 %v7370_v10, %v17443_v26  ;;  %v17447_v26 = vld [vmem:[#allocation45_spill] sm:$0xff] }
 0x607   : > { %v12450_v20 = vpop.eup %12449  ;;  %v7251_v56 = vadd.f32 1.0, %v12448_v51 }
 0x608   : > { %v7371_v48 = vmul.f32 %v12450_v20, %v16744_v1 }
 0x609   : > { %11775 = vmatmul.mubr.msk.f32.gmra.mrb[48].mxu1 %vm1744_vm3, %v7411_v16  ;;  %12459 = vrcp.f32 %v7251_v56  ;;  %v17448_v56 = vld [vmem:[#allocation47_spill] sm:$0xff] }
 0x60a   : > { %11777 = vmatprep.mubr.msk.f32.mxu1 %vm12642_vm0, %v17284_v14  ;;  %v12452_v7 = vpop.eup %12451  ;;  %v7412_v49 = vadd.f32 %v7371_v48, %v17444_v22 }
 0x60b   : > { %v12454_v4 = vpop.eup %12453  ;;  %v7252_v33 = vadd.f32 1.0, %v12452_v7 }
 0x60c   : > { %v7372_v63 = vmul.f32 %v12454_v4, %v16756_v9  ;;  %v17446_v9 = vld [vmem:[#allocation43_spill] sm:$0xff] }
 0x60d   : > { %11778 = vmatmul.mubr.msk.f32.gmra.mrb[50].mxu1 %vm1744_vm3, %v7412_v49  ;;  %12461 = vrcp.f32 %v7252_v33 }
 0x60e   : > { %11780 = vmatprep.mubr.msk.f32.mxu1 %vm12642_vm0, %v17284_v14  ;;  %v12456_v1 = vpop.eup %12455  ;;  %v7413_v53 = vadd.f32 %v7372_v63, %v17445_v18 }
 0x60f   : > { %v12458_v31 = vpop.eup %12457  ;;  %v7253_v36 = vadd.f32 1.0, %v12456_v1 }
 0x610   : > { %v7373_v28 = vmul.f32 %v12458_v31, %v16768_v17 }
 0x611   : > { %11781 = vmatmul.mubr.msk.f32.gmra.mrb[52].mxu1 %vm1744_vm3, %v7413_v53  ;;  %12463 = vrcp.f32 %v7253_v36 }
 0x612   : > { %11783 = vmatprep.mubr.msk.f32.mxu1 %vm12642_vm0, %v17284_v14  ;;  %v7414_v3 = vadd.f32 %v7373_v28, %v17446_v9 }
 0x613   : > { %v12460_v10 = vpop.eup %12459 }
 0x614   : > { %v7374_v51 = vmul.f32 %v12460_v10, %v16780_v23  ;;  %v17449_v23 = vld [vmem:[#allocation49_spill] sm:$0xff] }
 0x615   : > { %11784 = vmatmul.mubr.msk.f32.gmra.mrb[54].mxu1 %vm1744_vm3, %v7414_v3 }
 0x616   : > { %11786 = vmatprep.mubr.msk.f32.mxu1 %vm12642_vm0, %v17284_v14  ;;  %v7415_v16 = vadd.f32 %v7374_v51, %v17447_v26 }
 0x617   : > { %v12462_v20 = vpop.eup %12461 }
 0x618   : > { %v7375_v17 = vmul.f32 %v12462_v20, %v7088_v44  ;;  %v16842_v44 = vld [vmem:[%s17169_s12] ss:$0 sm:$0xff] }
 0x619   : > { %11787 = vmatmul.mubr.msk.f32.gmra.mrb[56].mxu1 %vm1744_vm3, %v7415_v16 }
 0x61a   : > { %11789 = vmatprep.mubr.msk.f32.mxu1 %vm12642_vm0, %v17284_v14  ;;  %v7416_v48 = vadd.f32 %v7375_v17, %v17448_v56 }
 0x61b   : > { %v12464_v7 = vpop.eup %12463 }
 0x61c   : > { %v7376_v22 = vmul.f32 %v12464_v7, %v7089_v34 }
 0x61d   : > { %11790 = vmatmul.mubr.msk.f32.gmra.mrb[58].mxu1 %vm1744_vm3, %v7416_v48 }
 0x61e   : > { %11792 = vmatprep.mubr.msk.f32.mxu1 %vm12642_vm0, %v17284_v14  ;;  %v7417_v49 = vadd.f32 %v7376_v22, %v17449_v23 }
 0x621   : > { %11793 = vmatmul.mubr.msk.f32.gmra.mrb[60].mxu1 %vm1744_vm3, %v7417_v49 }
 0x654   : > { %v8008_v4 = vpop.f32.mrb[236].mxu1 }
 0x655   : > { %v8009_v33 = vadd.f32 %v8008_v4, %v16352_v50  ;;  %v11674_v63 = vpop.f32.mrb[237].mxu1  ;;  %v17450_v4 = vld [vmem:[#allocation92_spill] sm:$0xff] }
 0x657   : > { %v8219_v34 = vadd.f32 %v16842_v44, %v8009_v33 }
 0x658   : > { %v8013_v1 = vpop.f32.mrb[238].mxu1 }
 0x659   : > { %v9414_v18 = vmul.f32 -1.442695, %v8219_v34  ;;  %v8014_v53 = vadd.f32 %v8013_v1, %v16358_v30  ;;  %v11677_v14 = vpop.f32.mrb[239].mxu1 }
 0x65b   : > { %12465 = vpow2.f32 %v9414_v18  ;;  %v8220_v31 = vadd.f32 %v16842_v44, %v8014_v53 }
 0x65c   : > { %v8018_v36 = vpop.f32.mrb[240].mxu1 }
 0x65d   : > { %v9415_v28 = vmul.f32 -1.442695, %v8220_v31  ;;  %v8019_v9 = vadd.f32 %v8018_v36, %v16365_v2  ;;  %v11680_v3 = vpop.f32.mrb[241].mxu1  ;;  %v17451_v36 = vld [vmem:[#allocation93_spill] sm:$0xff] }
 0x65f   : > { %12467 = vpow2.f32 %v9415_v28  ;;  %v16850_v10 = vadd.f32 %v16842_v44, %v8019_v9 }
 0x660   : > { %v8023_v50 = vpop.f32.mrb[242].mxu1 }
 0x661   : > { %v9416_v51 = vmul.f32 -1.442695, %v16850_v10  ;;  %v8024_v26 = vadd.f32 %v8023_v50, %v16372_v41  ;;  %v11683_v16 = vpop.f32.mrb[243].mxu1 }
 0x663   : > { %12469 = vpow2.f32 %v9416_v51  ;;  %v16855_v30 = vadd.f32 %v16842_v44, %v8024_v26 }
 0x664   : > { %v8028_v20 = vpop.f32.mrb[244].mxu1 }
 0x665   : > { %v12466_v17 = vpop.eup %12465  ;;  %v9417_v56 = vmul.f32 -1.442695, %v16855_v30  ;;  %v8029_v2 = vadd.f32 %v8028_v20, %v16379_v32  ;;  %v11686_v48 = vpop.f32.mrb[245].mxu1  ;;  %v17452_v20 = vld [vmem:[#allocation94_spill] sm:$0xff] }
 0x666   : > { %v8383_v7 = vadd.f32 1.0, %v12466_v17 }
 0x667   : > { %12471 = vpow2.f32 %v9417_v56  ;;  %v16860_v22 = vadd.f32 %v16842_v44, %v8029_v2 }
 0x668   : > { %12473 = vrcp.f32 %v8383_v7  ;;  %v8033_v23 = vpop.f32.mrb[246].mxu1 }
 0x669   : > { %v12468_v41 = vpop.eup %12467  ;;  %v9418_v49 = vmul.f32 -1.442695, %v16860_v22  ;;  %v8034_v33 = vadd.f32 %v8033_v23, %v17450_v4  ;;  %v11689_v63 = vpop.f32.mrb[247].mxu1 }
 0x66a   : > { %v8384_v1 = vadd.f32 1.0, %v12468_v41 }
 0x66b   : > { %12475 = vpow2.f32 %v9418_v49  ;;  %v16865_v18 = vadd.f32 %v16842_v44, %v8034_v33 }
 0x66c   : > { %12477 = vrcp.f32 %v8384_v1  ;;  %v8038_v32 = vpop.f32.mrb[248].mxu1 }
 0x66d   : > { %v12470_v53 = vpop.eup %12469  ;;  %v9419_v14 = vmul.f32 -1.442695, %v16865_v18  ;;  %v8039_v28 = vadd.f32 %v8038_v32, %v17451_v36  ;;  %v11692_v9 = vpop.f32.mrb[249].mxu1 }
 0x66e   : > { %v8385_v3 = vadd.f32 1.0, %v12470_v53 }
 0x66f   : > { %12479 = vpow2.f32 %v9419_v14  ;;  %v16870_v50 = vadd.f32 %v16842_v44, %v8039_v28 }
 0x670   : > { %12481 = vrcp.f32 %v8385_v3  ;;  %v8043_v51 = vpop.f32.mrb[250].mxu1 }
 0x671   : > { %v12472_v26 = vpop.eup %12471  ;;  %v9420_v16 = vmul.f32 -1.442695, %v16870_v50  ;;  %v8044_v17 = vadd.f32 %v8043_v51, %v17452_v20  ;;  %v11695_v56 = vpop.f32.mrb[251].mxu1 }
 0x672   : > { %v12474_v2 = vpop.eup %12473  ;;  %v8386_v48 = vadd.f32 1.0, %v12472_v26 }
 0x673   : > { %v8506_v7 = vmul.f32 %v12474_v2, %v8219_v34  ;;  %12483 = vpow2.f32 %v9420_v16  ;;  %v16882_v23 = vadd.f32 %v16842_v44, %v8044_v17 }
 0x674   : > { %12485 = vrcp.f32 %v8386_v48  ;;  %v8048_v41 = vpop.f32.mrb[252].mxu1 }
 0x675   : > { %v12476_v49 = vpop.eup %12475  ;;  %8547 = vst.msk [vmem:[%s16879_s18] sm:$0xff] %vm490_vm1, %v8506_v7  ;;  %v9421_v4 = vmul.f32 -1.442695, %v16882_v23  ;;  %v8049_v33 = vadd.f32 %v8048_v41, %v16408_v43  ;;  %v11698_v63 = vpop.f32.mrb[253].mxu1 }
 0x676   : > { %v12478_v1 = vpop.eup %12477  ;;  %v8387_v32 = vadd.f32 1.0, %v12476_v49 }
 0x677   : > { %v8507_v53 = vmul.f32 %v12478_v1, %v8220_v31  ;;  %12487 = vpow2.f32 %v9421_v4  ;;  %v16889_v34 = vadd.f32 %v16842_v44, %v8049_v33 }
 0x678   : > { %12489 = vrcp.f32 %v8387_v32  ;;  %v8053_v14 = vpop.f32.mrb[254].mxu1 }
 0x679   : > { %v12480_v36 = vpop.eup %12479  ;;  %8548 = vst.msk [vmem:[%s16879_s18 + $0x8] sm:$0xff] %vm490_vm1, %v8507_v53  ;;  %v9422_v28 = vmul.f32 -1.442695, %v16889_v34  ;;  %v8054_v9 = vadd.f32 %v8053_v14, %v16418_v0  ;;  %v11701_v3 = vpop.f32.mrb[255].mxu1 }
 0x67a   : > { %v12482_v43 = vpop.eup %12481  ;;  %v8388_v51 = vadd.f32 1.0, %v12480_v36 }
 0x67b   : > { %v8508_v26 = vmul.f32 %v12482_v43, %v16850_v10  ;;  %12491 = vpow2.f32 %v9422_v28  ;;  %v16897_v31 = vadd.f32 %v16842_v44, %v8054_v9 }
 0x67c   : > { %12493 = vrcp.f32 %v8388_v51  ;;  %v8058_v16 = vpop.f32.mrb[0].mxu1 }
 0x67d   : > { %v12484_v20 = vpop.eup %12483  ;;  %8549 = vst.msk [vmem:[%s16879_s18 + $0x10] sm:$0xff] %vm490_vm1, %v8508_v26  ;;  %v9423_v17 = vmul.f32 -1.442695, %v16897_v31  ;;  %v8059_v56 = vadd.f32 %v8058_v16, %v16430_v11  ;;  %v11704_v0 = vpop.f32.mrb[1].mxu1 }
 0x67e   : > { %v12486_v2 = vpop.eup %12485  ;;  %v8389_v48 = vadd.f32 1.0, %v12484_v20 }
 0x67f   : > { %v8509_v7 = vmul.f32 %v12486_v2, %v16855_v30  ;;  %12495 = vpow2.f32 %v9423_v17  ;;  %v16905_v10 = vadd.f32 %v16842_v44, %v8059_v56 }
 0x680   : > { %12497 = vrcp.f32 %v8389_v48  ;;  %v8063_v41 = vpop.f32.mrb[2].mxu1 }
 0x681   : > { %v12488_v49 = vpop.eup %12487  ;;  %8550 = vst.msk [vmem:[%s16879_s18 + $0x18] sm:$0xff] %vm490_vm1, %v8509_v7  ;;  %v9424_v4 = vmul.f32 -1.442695, %v16905_v10  ;;  %v8064_v33 = vadd.f32 %v8063_v41, %v16442_v62  ;;  %v11707_v11 = vpop.f32.mrb[3].mxu1 }
 0x682   : > { %v12490_v63 = vpop.eup %12489  ;;  %v8390_v1 = vadd.f32 1.0, %v12488_v49 }
 0x683   : > { %v8510_v32 = vmul.f32 %v12490_v63, %v16860_v22  ;;  %12499 = vpow2.f32 %v9424_v4  ;;  %v16913_v30 = vadd.f32 %v16842_v44, %v8064_v33 }
 0x684   : > { %12501 = vrcp.f32 %v8390_v1  ;;  %v8068_v53 = vpop.f32.mrb[4].mxu1 }
 0x685   : > { %v12492_v14 = vpop.eup %12491  ;;  %8551 = vst.msk [vmem:[%s16879_s18 + $0x20] sm:$0xff] %vm490_vm1, %v8510_v32  ;;  %v9425_v36 = vmul.f32 -1.442695, %v16913_v30  ;;  %v8069_v28 = vadd.f32 %v8068_v53, %v16454_v13  ;;  %v11710_v62 = vpop.f32.mrb[5].mxu1 }
 0x686   : > { %v12494_v9 = vpop.eup %12493  ;;  %v8391_v3 = vadd.f32 1.0, %v12492_v14 }
 0x687   : > { %v8511_v43 = vmul.f32 %v12494_v9, %v16865_v18  ;;  %12503 = vpow2.f32 %v9425_v36  ;;  %v16921_v22 = vadd.f32 %v16842_v44, %v8069_v28 }
 0x688   : > { %12505 = vrcp.f32 %v8391_v3  ;;  %v8073_v51 = vpop.f32.mrb[6].mxu1 }
 0x689   : > { %v12496_v26 = vpop.eup %12495  ;;  %8552 = vst.msk [vmem:[%s16879_s18 + $0x28] sm:$0xff] %vm490_vm1, %v8511_v43  ;;  %v9426_v16 = vmul.f32 -1.442695, %v16921_v22  ;;  %v8074_v20 = vadd.f32 %v8073_v51, %v16466_v8  ;;  %v11713_v13 = vpop.f32.mrb[7].mxu1 }
 0x68a   : > { %v12498_v17 = vpop.eup %12497  ;;  %v8392_v56 = vadd.f32 1.0, %v12496_v26 }
 0x68b   : > { %v8512_v0 = vmul.f32 %v12498_v17, %v16870_v50  ;;  %12507 = vpow2.f32 %v9426_v16  ;;  %v16929_v18 = vadd.f32 %v16842_v44, %v8074_v20 }
 0x68c   : > { %12509 = vrcp.f32 %v8392_v56  ;;  %v8078_v2 = vpop.f32.mrb[8].mxu1 }
 0x68d   : > { %v12500_v48 = vpop.eup %12499  ;;  %8553 = vst.msk [vmem:[%s16879_s18 + $0x30] sm:$0xff] %vm490_vm1, %v8512_v0  ;;  %v9427_v7 = vmul.f32 -1.442695, %v16929_v18  ;;  %v8079_v41 = vadd.f32 %v8078_v2, %v16478_v12  ;;  %v11716_v8 = vpop.f32.mrb[9].mxu1 }
 0x68e   : > { %v12502_v49 = vpop.eup %12501  ;;  %v8393_v4 = vadd.f32 1.0, %v12500_v48 }
 0x68f   : > { %v8513_v33 = vmul.f32 %v12502_v49, %v16882_v23  ;;  %12511 = vpow2.f32 %v9427_v7  ;;  %v16937_v50 = vadd.f32 %v16842_v44, %v8079_v41 }
 0x690   : > { %12513 = vrcp.f32 %v8393_v4  ;;  %v8083_v11 = vpop.f32.mrb[10].mxu1 }
 0x691   : > { %v12504_v63 = vpop.eup %12503  ;;  %8554 = vst.msk [vmem:[%s16879_s18 + $0x38] sm:$0xff] %vm490_vm1, %v8513_v33  ;;  %v9428_v1 = vmul.f32 -1.442695, %v16937_v50  ;;  %v8084_v32 = vadd.f32 %v8083_v11, %v16490_v61  ;;  %v11719_v12 = vpop.f32.mrb[11].mxu1 }
 0x692   : > { %v12506_v53 = vpop.eup %12505  ;;  %v8394_v14 = vadd.f32 1.0, %v12504_v63 }
 0x693   : > { %v8514_v36 = vmul.f32 %v12506_v53, %v16889_v34  ;;  %12515 = vpow2.f32 %v9428_v1  ;;  %v16945_v23 = vadd.f32 %v16842_v44, %v8084_v32 }
 0x694   : > { %12517 = vrcp.f32 %v8394_v14  ;;  %v8088_v28 = vpop.f32.mrb[12].mxu1 }
 0x695   : > { %v12508_v62 = vpop.eup %12507  ;;  %8555 = vst.msk [vmem:[%s16879_s18 + $0x40] sm:$0xff] %vm490_vm1, %v8514_v36  ;;  %v9429_v9 = vmul.f32 -1.442695, %v16945_v23  ;;  %v8089_v3 = vadd.f32 %v8088_v28, %v16502_v39  ;;  %v11722_v61 = vpop.f32.mrb[13].mxu1 }
 0x696   : > { %v12510_v43 = vpop.eup %12509  ;;  %v8395_v51 = vadd.f32 1.0, %v12508_v62 }
 0x697   : > { %v8515_v26 = vmul.f32 %v12510_v43, %v16897_v31  ;;  %12519 = vpow2.f32 %v9429_v9  ;;  %v16953_v34 = vadd.f32 %v16842_v44, %v8089_v3 }
 0x698   : > { %12521 = vrcp.f32 %v8395_v51  ;;  %v8093_v16 = vpop.f32.mrb[14].mxu1 }
 0x699   : > { %v12512_v20 = vpop.eup %12511  ;;  %8556 = vst.msk [vmem:[%s16879_s18 + $0x48] sm:$0xff] %vm490_vm1, %v8515_v26  ;;  %v9430_v13 = vmul.f32 -1.442695, %v16953_v34  ;;  %v8094_v17 = vadd.f32 %v8093_v16, %v16514_v58  ;;  %v11725_v39 = vpop.f32.mrb[15].mxu1 }
 0x69a   : > { %v12514_v56 = vpop.eup %12513  ;;  %v8396_v0 = vadd.f32 1.0, %v12512_v20 }
 0x69b   : > { %v8516_v2 = vmul.f32 %v12514_v56, %v16905_v10  ;;  %12523 = vpow2.f32 %v9430_v13  ;;  %v16961_v31 = vadd.f32 %v16842_v44, %v8094_v17 }
 0x69c   : > { %12525 = vrcp.f32 %v8396_v0  ;;  %v8098_v48 = vpop.f32.mrb[16].mxu1 }
 0x69d   : > { %v12516_v7 = vpop.eup %12515  ;;  %8557 = vst.msk [vmem:[%s16879_s18 + $0x50] sm:$0xff] %vm490_vm1, %v8516_v2  ;;  %v9431_v41 = vmul.f32 -1.442695, %v16961_v31  ;;  %v8099_v8 = vadd.f32 %v8098_v48, %v16526_v21  ;;  %v11728_v58 = vpop.f32.mrb[17].mxu1 }
 0x69e   : > { %v12518_v49 = vpop.eup %12517  ;;  %v8397_v4 = vadd.f32 1.0, %v12516_v7 }
 0x69f   : > { %v8517_v33 = vmul.f32 %v12518_v49, %v16913_v30  ;;  %12527 = vpow2.f32 %v9431_v41  ;;  %v16969_v10 = vadd.f32 %v16842_v44, %v8099_v8 }
 0x6a0   : > { %12529 = vrcp.f32 %v8397_v4  ;;  %v8103_v11 = vpop.f32.mrb[18].mxu1 }
 0x6a1   : > { %v12520_v63 = vpop.eup %12519  ;;  %8558 = vst.msk [vmem:[%s16879_s18 + $0x58] sm:$0xff] %vm490_vm1, %v8517_v33  ;;  %v9432_v1 = vmul.f32 -1.442695, %v16969_v10  ;;  %v8104_v32 = vadd.f32 %v8103_v11, %v16538_v27  ;;  %v11731_v21 = vpop.f32.mrb[19].mxu1 }
 0x6a2   : > { %v12522_v12 = vpop.eup %12521  ;;  %v8398_v53 = vadd.f32 1.0, %v12520_v63 }
 0x6a3   : > { %v8518_v14 = vmul.f32 %v12522_v12, %v16921_v22  ;;  %12531 = vpow2.f32 %v9432_v1  ;;  %v16977_v30 = vadd.f32 %v16842_v44, %v8104_v32 }
 0x6a4   : > { %12533 = vrcp.f32 %v8398_v53  ;;  %v8108_v36 = vpop.f32.mrb[20].mxu1 }
 0x6a5   : > { %v12524_v28 = vpop.eup %12523  ;;  %8559 = vst.msk [vmem:[%s16879_s18 + $0x60] sm:$0xff] %vm490_vm1, %v8518_v14  ;;  %v9433_v62 = vmul.f32 -1.442695, %v16977_v30  ;;  %v8109_v9 = vadd.f32 %v8108_v36, %v16550_v57  ;;  %v11734_v27 = vpop.f32.mrb[21].mxu1 }
 0x6a6   : > { %v12526_v3 = vpop.eup %12525  ;;  %v8399_v61 = vadd.f32 1.0, %v12524_v28 }
 0x6a7   : > { %v8519_v43 = vmul.f32 %v12526_v3, %v16929_v18  ;;  %12535 = vpow2.f32 %v9433_v62  ;;  %v16985_v22 = vadd.f32 %v16842_v44, %v8109_v9 }
 0x6a8   : > { %12537 = vrcp.f32 %v8399_v61  ;;  %v8113_v51 = vpop.f32.mrb[22].mxu1 }
 0x6a9   : > { %v12528_v26 = vpop.eup %12527  ;;  %8560 = vst.msk [vmem:[%s16879_s18 + $0x68] sm:$0xff] %vm490_vm1, %v8519_v43  ;;  %v9434_v16 = vmul.f32 -1.442695, %v16985_v22  ;;  %v8114_v20 = vadd.f32 %v8113_v51, %v16562_v46  ;;  %v11737_v57 = vpop.f32.mrb[23].mxu1 }
 0x6aa   : > { %v12530_v13 = vpop.eup %12529  ;;  %v8400_v17 = vadd.f32 1.0, %v12528_v26 }
 0x6ab   : > { %v8520_v39 = vmul.f32 %v12530_v13, %v16937_v50  ;;  %12539 = vpow2.f32 %v9434_v16  ;;  %v16993_v18 = vadd.f32 %v16842_v44, %v8114_v20 }
 0x6ac   : > { %12541 = vrcp.f32 %v8400_v17  ;;  %v8118_v56 = vpop.f32.mrb[24].mxu1 }
 0x6ad   : > { %v12532_v0 = vpop.eup %12531  ;;  %8561 = vst.msk [vmem:[%s16879_s18 + $0x70] sm:$0xff] %vm490_vm1, %v8520_v39  ;;  %v9435_v2 = vmul.f32 -1.442695, %v16993_v18  ;;  %v8119_v48 = vadd.f32 %v8118_v56, %v16574_v38  ;;  %v11740_v46 = vpop.f32.mrb[25].mxu1 }
 0x6ae   : > { %v12534_v7 = vpop.eup %12533  ;;  %v8401_v41 = vadd.f32 1.0, %v12532_v0 }
 0x6af   : > { %v8521_v8 = vmul.f32 %v12534_v7, %v16945_v23  ;;  %12543 = vpow2.f32 %v9435_v2  ;;  %v17001_v50 = vadd.f32 %v16842_v44, %v8119_v48 }
 0x6b0   : > { %12545 = vrcp.f32 %v8401_v41  ;;  %v8123_v58 = vpop.f32.mrb[26].mxu1 }
 0x6b1   : > { %v12536_v49 = vpop.eup %12535  ;;  %8562 = vst.msk [vmem:[%s16879_s18 + $0x78] sm:$0xff] %vm490_vm1, %v8521_v8  ;;  %v9436_v4 = vmul.f32 -1.442695, %v17001_v50  ;;  %v8124_v33 = vadd.f32 %v8123_v58, %v16586_v5  ;;  %v11743_v38 = vpop.f32.mrb[27].mxu1 }
 0x6b2   : > { %v12538_v11 = vpop.eup %12537  ;;  %v8402_v63 = vadd.f32 1.0, %v12536_v49 }
 0x6b3   : > { %v8522_v1 = vmul.f32 %v12538_v11, %v16953_v34  ;;  %12547 = vpow2.f32 %v9436_v4  ;;  %v17009_v23 = vadd.f32 %v16842_v44, %v8124_v33 }
 0x6b4   : > { %12549 = vrcp.f32 %v8402_v63  ;;  %v8128_v32 = vpop.f32.mrb[28].mxu1 }
 0x6b5   : > { %v12540_v21 = vpop.eup %12539  ;;  %8563 = vst.msk [vmem:[%s16879_s18 + $0x80] sm:$0xff] %vm490_vm1, %v8522_v1  ;;  %v9437_v12 = vmul.f32 -1.442695, %v17009_v23  ;;  %v8129_v53 = vadd.f32 %v8128_v32, %v16598_v29  ;;  %v11746_v5 = vpop.f32.mrb[29].mxu1 }
 0x6b6   : > { %v12542_v14 = vpop.eup %12541  ;;  %v8403_v36 = vadd.f32 1.0, %v12540_v21 }
 0x6b7   : > { %v8523_v28 = vmul.f32 %v12542_v14, %v16961_v31  ;;  %12551 = vpow2.f32 %v9437_v12  ;;  %v17017_v34 = vadd.f32 %v16842_v44, %v8129_v53 }
 0x6b8   : > { %12553 = vrcp.f32 %v8403_v36  ;;  %v8133_v62 = vpop.f32.mrb[30].mxu1 }
 0x6b9   : > { %v12544_v9 = vpop.eup %12543  ;;  %8564 = vst.msk [vmem:[%s16879_s18 + $0x88] sm:$0xff] %vm490_vm1, %v8523_v28  ;;  %v9438_v27 = vmul.f32 -1.442695, %v17017_v34  ;;  %v8134_v3 = vadd.f32 %v8133_v62, %v16610_v37  ;;  %v11749_v29 = vpop.f32.mrb[31].mxu1 }
 0x6ba   : > { %v12546_v61 = vpop.eup %12545  ;;  %v8404_v43 = vadd.f32 1.0, %v12544_v9 }
 0x6bb   : > { %v8524_v51 = vmul.f32 %v12546_v61, %v16969_v10  ;;  %12555 = vpow2.f32 %v9438_v27  ;;  %v17025_v31 = vadd.f32 %v16842_v44, %v8134_v3 }
 0x6bc   : > { %12557 = vrcp.f32 %v8404_v43  ;;  %v8138_v26 = vpop.f32.mrb[32].mxu1 }
 0x6bd   : > { %v12548_v16 = vpop.eup %12547  ;;  %8565 = vst.msk [vmem:[%s16879_s18 + $0x90] sm:$0xff] %vm490_vm1, %v8524_v51  ;;  %v9439_v20 = vmul.f32 -1.442695, %v17025_v31  ;;  %v8139_v57 = vadd.f32 %v8138_v26, %v16622_v19  ;;  %v11752_v37 = vpop.f32.mrb[33].mxu1 }
 0x6be   : > { %v12550_v13 = vpop.eup %12549  ;;  %v8405_v17 = vadd.f32 1.0, %v12548_v16 }
 0x6bf   : > { %v8525_v39 = vmul.f32 %v12550_v13, %v16977_v30  ;;  %12559 = vpow2.f32 %v9439_v20  ;;  %v17033_v10 = vadd.f32 %v16842_v44, %v8139_v57 }
 0x6c0   : > { %12561 = vrcp.f32 %v8405_v17  ;;  %v8143_v56 = vpop.f32.mrb[34].mxu1 }
 0x6c1   : > { %v12552_v0 = vpop.eup %12551  ;;  %8566 = vst.msk [vmem:[%s16879_s18 + $0x98] sm:$0xff] %vm490_vm1, %v8525_v39  ;;  %v9440_v2 = vmul.f32 -1.442695, %v17033_v10  ;;  %v8144_v48 = vadd.f32 %v8143_v56, %v16634_v6  ;;  %v11755_v19 = vpop.f32.mrb[35].mxu1 }
 0x6c2   : > { %v12554_v46 = vpop.eup %12553  ;;  %v8406_v7 = vadd.f32 1.0, %v12552_v0 }
 0x6c3   : > { %v8526_v41 = vmul.f32 %v12554_v46, %v16985_v22  ;;  %12563 = vpow2.f32 %v9440_v2  ;;  %v17041_v30 = vadd.f32 %v16842_v44, %v8144_v48 }
 0x6c4   : > { %12565 = vrcp.f32 %v8406_v7  ;;  %v8148_v8 = vpop.f32.mrb[36].mxu1 }
 0x6c5   : > { %v12556_v58 = vpop.eup %12555  ;;  %8567 = vst.msk [vmem:[%s16879_s18 + $0xa0] sm:$0xff] %vm490_vm1, %v8526_v41  ;;  %v9441_v49 = vmul.f32 -1.442695, %v17041_v30  ;;  %v8149_v4 = vadd.f32 %v8148_v8, %v16646_v15  ;;  %v11758_v6 = vpop.f32.mrb[37].mxu1 }
 0x6c6   : > { %v12558_v33 = vpop.eup %12557  ;;  %v8407_v38 = vadd.f32 1.0, %v12556_v58 }
 0x6c7   : > { %v8527_v11 = vmul.f32 %v12558_v33, %v16993_v18  ;;  %12567 = vpow2.f32 %v9441_v49  ;;  %v17049_v22 = vadd.f32 %v16842_v44, %v8149_v4 }
 0x6c8   : > { %12569 = vrcp.f32 %v8407_v38  ;;  %v8153_v63 = vpop.f32.mrb[38].mxu1 }
 0x6c9   : > { %v12560_v1 = vpop.eup %12559  ;;  %8568 = vst.msk [vmem:[%s16879_s18 + $0xa8] sm:$0xff] %vm490_vm1, %v8527_v11  ;;  %v9442_v32 = vmul.f32 -1.442695, %v17049_v22  ;;  %v8154_v21 = vadd.f32 %v8153_v63, %v16658_v52  ;;  %v11761_v15 = vpop.f32.mrb[39].mxu1 }
 0x6ca   : > { %v12562_v12 = vpop.eup %12561  ;;  %v8408_v53 = vadd.f32 1.0, %v12560_v1 }
 0x6cb   : > { %v8528_v5 = vmul.f32 %v12562_v12, %v17001_v50  ;;  %12571 = vpow2.f32 %v9442_v32  ;;  %v17057_v18 = vadd.f32 %v16842_v44, %v8154_v21 }
 0x6cc   : > { %12573 = vrcp.f32 %v8408_v53  ;;  %v8158_v14 = vpop.f32.mrb[40].mxu1 }
 0x6cd   : > { %v12564_v36 = vpop.eup %12563  ;;  %8569 = vst.msk [vmem:[%s16879_s18 + $0xb0] sm:$0xff] %vm490_vm1, %v8528_v5  ;;  %v9443_v28 = vmul.f32 -1.442695, %v17057_v18  ;;  %v8159_v62 = vadd.f32 %v8158_v14, %v16670_v55  ;;  %v11764_v52 = vpop.f32.mrb[41].mxu1 }
 0x6ce   : > { %v12566_v9 = vpop.eup %12565  ;;  %v8409_v27 = vadd.f32 1.0, %v12564_v36 }
 0x6cf   : > { %v8529_v3 = vmul.f32 %v12566_v9, %v17009_v23  ;;  %12575 = vpow2.f32 %v9443_v28  ;;  %v17065_v50 = vadd.f32 %v16842_v44, %v8159_v62 }
 0x6d0   : > { %12577 = vrcp.f32 %v8409_v27  ;;  %v8163_v29 = vpop.f32.mrb[42].mxu1 }
 0x6d1   : > { %v12568_v61 = vpop.eup %12567  ;;  %8570 = vst.msk [vmem:[%s16879_s18 + $0xb8] sm:$0xff] %vm490_vm1, %v8529_v3  ;;  %v9444_v43 = vmul.f32 -1.442695, %v17065_v50  ;;  %v8164_v51 = vadd.f32 %v8163_v29, %v16682_v59  ;;  %v11767_v55 = vpop.f32.mrb[43].mxu1 }
 0x6d2   : > { %v12570_v26 = vpop.eup %12569  ;;  %v8410_v16 = vadd.f32 1.0, %v12568_v61 }
 0x6d3   : > { %v8530_v20 = vmul.f32 %v12570_v26, %v17017_v34  ;;  %12579 = vpow2.f32 %v9444_v43  ;;  %v17073_v23 = vadd.f32 %v16842_v44, %v8164_v51 }
 0x6d4   : > { %12581 = vrcp.f32 %v8410_v16  ;;  %v8168_v57 = vpop.f32.mrb[44].mxu1 }
 0x6d5   : > { %v12572_v37 = vpop.eup %12571  ;;  %8571 = vst.msk [vmem:[%s16879_s18 + $0xc0] sm:$0xff] %vm490_vm1, %v8530_v20  ;;  %v9445_v13 = vmul.f32 -1.442695, %v17073_v23  ;;  %v8169_v17 = vadd.f32 %v8168_v57, %v16694_v25  ;;  %v11770_v59 = vpop.f32.mrb[45].mxu1 }
 0x6d6   : > { %v12574_v39 = vpop.eup %12573  ;;  %v8411_v56 = vadd.f32 1.0, %v12572_v37 }
 0x6d7   : > { %v8531_v0 = vmul.f32 %v12574_v39, %v17025_v31  ;;  %12583 = vpow2.f32 %v9445_v13  ;;  %v17081_v34 = vadd.f32 %v16842_v44, %v8169_v17 }
 0x6d8   : > { %12585 = vrcp.f32 %v8411_v56  ;;  %v8173_v2 = vpop.f32.mrb[46].mxu1 }
 0x6d9   : > { %v12576_v48 = vpop.eup %12575  ;;  %8572 = vst.msk [vmem:[%s16879_s18 + $0xc8] sm:$0xff] %vm490_vm1, %v8531_v0  ;;  %v9446_v19 = vmul.f32 -1.442695, %v17081_v34  ;;  %v8174_v46 = vadd.f32 %v8173_v2, %v16706_v47  ;;  %v11773_v25 = vpop.f32.mrb[47].mxu1 }
 0x6da   : > { %v12578_v7 = vpop.eup %12577  ;;  %v8412_v41 = vadd.f32 1.0, %v12576_v48 }
 0x6db   : > { %v8532_v8 = vmul.f32 %v12578_v7, %v17033_v10  ;;  %12587 = vpow2.f32 %v9446_v19  ;;  %v17089_v31 = vadd.f32 %v16842_v44, %v8174_v46 }
 0x6dc   : > { %12589 = vrcp.f32 %v8412_v41  ;;  %v8178_v58 = vpop.f32.mrb[48].mxu1 }
 0x6dd   : > { %v12580_v49 = vpop.eup %12579  ;;  %8573 = vst.msk [vmem:[%s16879_s18 + $0xd0] sm:$0xff] %vm490_vm1, %v8532_v8  ;;  %v9447_v4 = vmul.f32 -1.442695, %v17089_v31  ;;  %v8179_v6 = vadd.f32 %v8178_v58, %v16718_v24  ;;  %v11776_v47 = vpop.f32.mrb[49].mxu1 }
 0x6de   : > { %v12582_v33 = vpop.eup %12581  ;;  %v8413_v38 = vadd.f32 1.0, %v12580_v49 }
 0x6df   : > { %v8533_v11 = vmul.f32 %v12582_v33, %v17041_v30  ;;  %12591 = vpow2.f32 %v9447_v4  ;;  %v17097_v10 = vadd.f32 %v16842_v44, %v8179_v6 }
 0x6e0   : > { %12593 = vrcp.f32 %v8413_v38  ;;  %v8183_v63 = vpop.f32.mrb[50].mxu1 }
 0x6e1   : > { %v12584_v1 = vpop.eup %12583  ;;  %8574 = vst.msk [vmem:[%s16879_s18 + $0xd8] sm:$0xff] %vm490_vm1, %v8533_v11  ;;  %v9448_v32 = vmul.f32 -1.442695, %v17097_v10  ;;  %v8184_v21 = vadd.f32 %v8183_v63, %v16730_v60  ;;  %v11779_v24 = vpop.f32.mrb[51].mxu1 }
 0x6e2   : > { %v12586_v15 = vpop.eup %12585  ;;  %v8414_v12 = vadd.f32 1.0, %v12584_v1 }
 0x6e3   : > { %v8534_v53 = vmul.f32 %v12586_v15, %v17049_v22  ;;  %12595 = vpow2.f32 %v9448_v32  ;;  %v17105_v30 = vadd.f32 %v16842_v44, %v8184_v21 }
 0x6e4   : > { %12597 = vrcp.f32 %v8414_v12  ;;  %v8188_v5 = vpop.f32.mrb[52].mxu1 }
 0x6e5   : > { %v12588_v14 = vpop.eup %12587  ;;  %8575 = vst.msk [vmem:[%s16879_s18 + $0xe0] sm:$0xff] %vm490_vm1, %v8534_v53  ;;  %v9449_v36 = vmul.f32 -1.442695, %v17105_v30  ;;  %v8189_v28 = vadd.f32 %v8188_v5, %v16747_v45  ;;  %v11782_v60 = vpop.f32.mrb[53].mxu1 }
 0x6e6   : > { %v12590_v62 = vpop.eup %12589  ;;  %v8415_v52 = vadd.f32 1.0, %v12588_v14 }
 0x6e7   : > { %v8535_v9 = vmul.f32 %v12590_v62, %v17057_v18  ;;  %12599 = vpow2.f32 %v9449_v36  ;;  %v17113_v22 = vadd.f32 %v16842_v44, %v8189_v28 }
 0x6e8   : > { %12601 = vrcp.f32 %v8415_v52  ;;  %v8193_v27 = vpop.f32.mrb[54].mxu1 }
 0x6e9   : > { %v12592_v3 = vpop.eup %12591  ;;  %8576 = vst.msk [vmem:[%s16879_s18 + $0xe8] sm:$0xff] %vm490_vm1, %v8535_v9  ;;  %v9450_v29 = vmul.f32 -1.442695, %v17113_v22  ;;  %v8194_v61 = vadd.f32 %v8193_v27, %v16759_v54  ;;  %v11785_v45 = vpop.f32.mrb[55].mxu1 }
 0x6ea   : > { %v12594_v43 = vpop.eup %12593  ;;  %v8416_v51 = vadd.f32 1.0, %v12592_v3 }
 0x6eb   : > { %v8536_v55 = vmul.f32 %v12594_v43, %v17065_v50  ;;  %12603 = vpow2.f32 %v9450_v29  ;;  %v8256_v18 = vadd.f32 %v16842_v44, %v8194_v61 }
 0x6ec   : > { %12605 = vrcp.f32 %v8416_v51  ;;  %v8198_v26 = vpop.f32.mrb[56].mxu1 }
 0x6ed   : > { %v12596_v16 = vpop.eup %12595  ;;  %8577 = vst.msk [vmem:[%s16879_s18 + $0xf0] sm:$0xff] %vm490_vm1, %v8536_v55  ;;  %v9451_v20 = vmul.f32 -1.442695, %v8256_v18  ;;  %v8199_v57 = vadd.f32 %v8198_v26, %v16771_v40  ;;  %v11788_v37 = vpop.f32.mrb[57].mxu1 }
 0x6ee   : > { %v12598_v13 = vpop.eup %12597  ;;  %v8417_v54 = vadd.f32 1.0, %v12596_v16 }
 0x6ef   : > { %v8537_v17 = vmul.f32 %v12598_v13, %v17073_v23  ;;  %12607 = vpow2.f32 %v9451_v20  ;;  %v8257_v50 = vadd.f32 %v16842_v44, %v8199_v57 }
 0x6f0   : > { %12609 = vrcp.f32 %v8417_v54  ;;  %v8203_v59 = vpop.f32.mrb[58].mxu1 }
 0x6f1   : > { %v12600_v39 = vpop.eup %12599  ;;  %8578 = vst.msk [vmem:[%s16879_s18 + $0xf8] sm:$0xff] %vm490_vm1, %v8537_v17  ;;  %v9452_v56 = vmul.f32 -1.442695, %v8257_v50  ;;  %v8204_v0 = vadd.f32 %v8203_v59, %v16783_v35  ;;  %v11791_v2 = vpop.f32.mrb[59].mxu1 }
 0x6f2   : > { %v12602_v48 = vpop.eup %12601  ;;  %v8418_v40 = vadd.f32 1.0, %v12600_v39 }
 0x6f3   : > { %v8538_v19 = vmul.f32 %v12602_v48, %v17081_v34  ;;  %12611 = vpow2.f32 %v9452_v56  ;;  %v8258_v23 = vadd.f32 %v16842_v44, %v8204_v0 }
 0x6f4   : > { %12613 = vrcp.f32 %v8418_v40  ;;  %v8208_v46 = vpop.f32.mrb[60].mxu1 }
 0x6f5   : > { %v12604_v25 = vpop.eup %12603  ;;  %8579 = vst.msk [vmem:[%s16879_s18 + $0x100] sm:$0xff] %vm490_vm1, %v8538_v19  ;;  %v9453_v7 = vmul.f32 -1.442695, %v8258_v23  ;;  %v8209_v41 = vadd.f32 %v8208_v46, %v16793_v42  ;;  %v11794_v8 = vpop.f32.mrb[61].mxu1 }
 0x6f6   : > { %v12606_v35 = vpop.eup %12605  ;;  %v8419_v58 = vadd.f32 1.0, %v12604_v25 }
 0x6f7   : > { %v8539_v49 = vmul.f32 %v12606_v35, %v17089_v31  ;;  %12615 = vpow2.f32 %v9453_v7  ;;  %v8259_v34 = vadd.f32 %v16842_v44, %v8209_v41 }
 0x6f8   : > { %12617 = vrcp.f32 %v8419_v58 }
 0x6f9   : > { %v12608_v4 = vpop.eup %12607  ;;  %8580 = vst.msk [vmem:[%s16879_s18 + $0x108] sm:$0xff] %vm490_vm1, %v8539_v49  ;;  %v9454_v6 = vmul.f32 -1.442695, %v8259_v34 }
 0x6fa   : > { %v12610_v47 = vpop.eup %12609  ;;  %v8420_v33 = vadd.f32 1.0, %v12608_v4 }
 0x6fb   : > { %v8540_v38 = vmul.f32 %v12610_v47, %v17097_v10  ;;  %12619 = vpow2.f32 %v9454_v6 }
 0x6fc   : > { %12621 = vrcp.f32 %v8420_v33 }
 0x6fd   : > { %v12612_v42 = vpop.eup %12611  ;;  %8581 = vst.msk [vmem:[%s16879_s18 + $0x110] sm:$0xff] %vm490_vm1, %v8540_v38 }
 0x6fe   : > { %v12614_v31 = vpop.eup %12613  ;;  %v8421_v11 = vadd.f32 1.0, %v12612_v42 }
 0x6ff   : > { %v8541_v44 = vmul.f32 %v12614_v31, %v17105_v30 }
 0x700   : > { %12623 = vrcp.f32 %v8421_v11 }
 0x701   : > { %v12616_v63 = vpop.eup %12615  ;;  %8582 = vst.msk [vmem:[%s16879_s18 + $0x118] sm:$0xff] %vm490_vm1, %v8541_v44 }
 0x702   : > { %v12618_v1 = vpop.eup %12617  ;;  %v8422_v32 = vadd.f32 1.0, %v12616_v63 }
 0x703   : > { %v8542_v10 = vmul.f32 %v12618_v1, %v17113_v22 }
 0x704   : > { %12625 = vrcp.f32 %v8422_v32 }
 0x705   : > { %v12620_v21 = vpop.eup %12619  ;;  %8583 = vst.msk [vmem:[%s16879_s18 + $0x120] sm:$0xff] %vm490_vm1, %v8542_v10 }
 0x706   : > { %v12622_v24 = vpop.eup %12621  ;;  %v8423_v15 = vadd.f32 1.0, %v12620_v21 }
 0x707   : > { %v8543_v12 = vmul.f32 %v12622_v24, %v8256_v18 }
 0x708   : > { %12627 = vrcp.f32 %v8423_v15 }
 0x709   : > { %8584 = vst.msk [vmem:[%s16879_s18 + $0x128] sm:$0xff] %vm490_vm1, %v8543_v12 }
 0x70a   : > { %v12624_v53 = vpop.eup %12623 }
 0x70b   : > { %v8544_v30 = vmul.f32 %v12624_v53, %v8257_v50 }
 0x70d   : > { %8585 = vst.msk [vmem:[%s16879_s18 + $0x130] sm:$0xff] %vm490_vm1, %v8544_v30 }
 0x70e   : > { %v12626_v5 = vpop.eup %12625 }
 0x70f   : > { %v8545_v14 = vmul.f32 %v12626_v5, %v8258_v23 }
 0x711   : > { %8586 = vst.msk [vmem:[%s16879_s18 + $0x138] sm:$0xff] %vm490_vm1, %v8545_v14 }
 0x712   : > { %v12628_v36 = vpop.eup %12627 }
 0x713   : > { %v8546_v28 = vmul.f32 %v12628_v36, %v8259_v34 }
 0x715   : > { %8588 = vst.msk [vmem:[%s16879_s18 + $0x140] sm:$0xf] %vm8587_vm6, %v8546_v28 }
 0x716 PF: > { %s23_s25 = sadd.s32 1, %s12639_s25  }
 0x717   : > { %p20_p4 = scmp.ge.s32.totalorder %s23_s25, 4  }
 0x719   :  { %22 = sbr.rel (!%p20_p4) target bundleno = 1 (0x1), region = 110 }

</bundles_post_ra>
